<compile_context>
chip_gen: v6e
topology: v6e:2x2x1
jax: 0.10.0
libtpu: 0.0.40
codegen_flags: <defaults>
</compile_context>

<pallas_src>
import functools

import jax
import jax.numpy as jnp
from jax.experimental import pallas as pl
from jax.experimental.pallas import tpu as pltpu


# ----------------------------------------------------------------------------
# Bilinear (align_corners=False) interpolation helpers, PyTorch semantics.
# (Plain-JAX glue: runs on the low-res map only, exact f32.)
# ----------------------------------------------------------------------------
def _interp_idx_weights(in_size, out_size):
    scale = in_size / out_size
    src = (jnp.arange(out_size, dtype=jnp.float32) + 0.5) * scale - 0.5
    src = jnp.maximum(src, 0.0)
    i0 = jnp.clip(jnp.floor(src).astype(jnp.int32), 0, in_size - 1)
    i1 = jnp.minimum(i0 + 1, in_size - 1)
    l1 = src - i0.astype(jnp.float32)
    return i0, i1, 1.0 - l1, l1


def _bilinear_nhwc(x, H, W):
    """F.interpolate(mode='bilinear', align_corners=False) on an NHWC tensor."""
    _, Hin, Win, _ = x.shape
    h0, h1, hl0, hl1 = _interp_idx_weights(Hin, H)
    w0, w1, wl0, wl1 = _interp_idx_weights(Win, W)

    def g(hi, wi):
        return x[:, hi[:, None], wi[None, :], :]

    return (hl0[:, None, None] * wl0[None, :, None] * g(h0, w0)
            + hl0[:, None, None] * wl1[None, :, None] * g(h0, w1)
            + hl1[:, None, None] * wl0[None, :, None] * g(h1, w0)
            + hl1[:, None, None] * wl1[None, :, None] * g(h1, w1))


# ----------------------------------------------------------------------------
# In-kernel helper: zero-pad by 1px into an f32 VMEM scratch, scatter the 9
# taps into a bf16 im2col scratch, return the (H*W, 9*C) bf16 matrix so each
# 3x3 conv is a single MXU matmul with a 9*C contraction.
# ----------------------------------------------------------------------------
def _im2col3x3(x_hwc, pad_ref, col_ref, H, W, C):
    pad_ref[...] = jnp.zeros_like(pad_ref)
    pad_ref[1:H + 1, 1:W + 1, :] = x_hwc
    xp = pad_ref[...]
    for dy in range(3):
        for dx in range(3):
            t = dy * 3 + dx
            col_ref[:, :, t * C:(t + 1) * C] = (
                xp[dy:dy + H, dx:dx + W, :].astype(jnp.bfloat16))
    return col_ref[...].reshape(H * W, 9 * C)


# ----------------------------------------------------------------------------
# Fused kernel: x = skip_conv(skip) + up;  out = ResBlock(x).
# One HBM read of each input, one HBM write of the output, per batch element.
# ----------------------------------------------------------------------------
def _upsample_block_kernel(skip_ref, up_ref, wsk_ref, bsk_ref,
                           w1_ref, b1_ref, w2_ref, b2_ref, *rest,
                           H, W, Cs, Cu, Co, has_down):
    if has_down:
        (wd_ref, bd_ref, o_ref,
         pad_s, col_s, pad_x, col_x, pad_r, col_r) = rest
    else:
        (o_ref, pad_s, col_s, pad_x, col_x, pad_r, col_r) = rest

    # --- x = skip_conv(skip_f) + bilinear_upsample(up_f) -------------------
    cols = _im2col3x3(skip_ref[0], pad_s, col_s, H, W, Cs)        # (H*W,9Cs) bf16
    x = jnp.dot(cols, wsk_ref[...],
                preferred_element_type=jnp.float32) + bsk_ref[...]
    x = x.reshape(H, W, Cu) + up_ref[0]                           # f32 add

    # --- ResBlock: r = conv2(relu(conv1(relu(x)))); out = down(x) + r ------
    colx = _im2col3x3(x, pad_x, col_x, H, W, Cu)                  # bf16, no relu
    r = jnp.dot(jnp.maximum(colx, 0.0), w1_ref[...],              # relu ∘ bf16-cast
                preferred_element_type=jnp.float32) + b1_ref[...]
    r = jnp.maximum(r, 0.0).reshape(H, W, Co)
    colr = _im2col3x3(r, pad_r, col_r, H, W, Co)
    r = jnp.dot(colr, w2_ref[...],
                preferred_element_type=jnp.float32) + b2_ref[...]

    if has_down:
        xd = jnp.dot(colx, wd_ref[...],
                     preferred_element_type=jnp.float32) + bd_ref[...]
    else:
        xd = x.reshape(H * W, Co)                                 # Cu == Co

    o_ref[0] = (xd + r).reshape(H, W, Co).astype(o_ref.dtype)


# ----------------------------------------------------------------------------
# UpsampleBlock forward (Pallas-backed)
# ----------------------------------------------------------------------------
def upsample_block(skip_f, up_f, params, scale_factor=2):
    """skip_f: (N, skip_c, H, W), up_f: (N, up_c, H/sf, W/sf)  -- NCHW."""
    skip = jnp.transpose(skip_f, (0, 2, 3, 1))        # -> NHWC
    up = jnp.transpose(up_f, (0, 2, 3, 1))            # -> NHWC
    N, H, W, Cs = skip.shape
    _, Hin, Win, Cu = up.shape
    assert Hin * scale_factor == H and Win * scale_factor == W

    # Separable 2-tap bilinear upsample (align_corners=False) on the low-res
    # map in plain JAX (exact f32); its add is fused into the kernel.
    up_full = _bilinear_nhwc(up.astype(jnp.float32), H, W)        # (N, H, W, Cu)

    p = params
    Co = p["conv1"]["w"].shape[-1]
    has_down = p["downsample"] is not None

    wsk = p["skip_conv"]["w"].reshape(9 * Cs, Cu).astype(jnp.bfloat16)
    bsk = p["skip_conv"]["b"].reshape(1, Cu).astype(jnp.float32)
    w1 = p["conv1"]["w"].reshape(9 * Cu, Co).astype(jnp.bfloat16)
    b1 = p["conv1"]["b"].reshape(1, Co).astype(jnp.float32)
    w2 = p["conv2"]["w"].reshape(9 * Co, Co).astype(jnp.bfloat16)
    b2 = p["conv2"]["b"].reshape(1, Co).astype(jnp.float32)

    inputs = [skip, up_full, wsk, bsk, w1, b1, w2, b2]
    in_specs = [
        pl.BlockSpec((1, H, W, Cs), lambda n: (n, 0, 0, 0)),
        pl.BlockSpec((1, H, W, Cu), lambda n: (n, 0, 0, 0)),
        pl.BlockSpec((9 * Cs, Cu), lambda n: (0, 0)),
        pl.BlockSpec((1, Cu), lambda n: (0, 0)),
        pl.BlockSpec((9 * Cu, Co), lambda n: (0, 0)),
        pl.BlockSpec((1, Co), lambda n: (0, 0)),
        pl.BlockSpec((9 * Co, Co), lambda n: (0, 0)),
        pl.BlockSpec((1, Co), lambda n: (0, 0)),
    ]
    if has_down:
        wd = p["downsample"]["w"].reshape(9 * Cu, Co).astype(jnp.bfloat16)
        bd = p["downsample"]["b"].reshape(1, Co).astype(jnp.float32)
        inputs += [wd, bd]
        in_specs += [
            pl.BlockSpec((9 * Cu, Co), lambda n: (0, 0)),
            pl.BlockSpec((1, Co), lambda n: (0, 0)),
        ]

    kernel = functools.partial(_upsample_block_kernel, H=H, W=W,
                               Cs=Cs, Cu=Cu, Co=Co, has_down=has_down)

    out = pl.pallas_call(
        kernel,
        out_shape=jax.ShapeDtypeStruct((N, H, W, Co), jnp.float32),
        grid=(N,),
        in_specs=in_specs,
        out_specs=pl.BlockSpec((1, H, W, Co), lambda n: (n, 0, 0, 0)),
        scratch_shapes=[
            pltpu.VMEM((H + 2, W + 2, Cs), jnp.float32),   # pad for skip conv
            pltpu.VMEM((H, W, 9 * Cs), jnp.bfloat16),      # im2col (skip)
            pltpu.VMEM((H + 2, W + 2, Cu), jnp.float32),   # pad for x
            pltpu.VMEM((H, W, 9 * Cu), jnp.bfloat16),      # im2col (x)
            pltpu.VMEM((H + 2, W + 2, Co), jnp.float32),   # pad for r
            pltpu.VMEM((H, W, 9 * Co), jnp.bfloat16),      # im2col (r)
        ],
        compiler_params=pltpu.CompilerParams(
            dimension_semantics=("parallel",)),
    )(*inputs)

    return jnp.transpose(out, (0, 3, 1, 2))           # back to NCHW


# ----------------------------------------------------------------------------
# Pure-JAX reference (bf16-input convs with f32 accumulation, like the kernel)
# ----------------------------------------------------------------------------
def ref_forward(skip_f, up_f, params, scale_factor):
    skip = jnp.transpose(skip_f, (0, 2, 3, 1))
    up = jnp.transpose(up_f, (0, 2, 3, 1))
    _, H, W, _ = skip.shape

    def conv_ref(x, w, b, relu=False):
        if relu:
            x = jnp.maximum(x, 0.0)
        y = jax.lax.conv_general_dilated(
            x.astype(jnp.bfloat16), w.astype(jnp.bfloat16),
            window_strides=(1, 1), padding="SAME",
            dimension_numbers=("NHWC", "HWIO", "NHWC"),
            preferred_element_type=jnp.float32)
        return y + b.astype(jnp.float32)

    x = conv_ref(skip, params["skip_conv"]["w"], params["skip_conv"]["b"])
    x = x + _bilinear_nhwc(up.astype(jnp.float32), H, W)
    r = conv_ref(x, params["conv1"]["w"], params["conv1"]["b"], relu=True)
    r = conv_ref(r, params["conv2"]["w"], params["conv2"]["b"], relu=True)
    if params["downsample"] is not None:
        x = conv_ref(x, params["downsample"]["w"], params["downsample"]["b"])
    return jnp.transpose(x + r, (0, 3, 1, 2))


# ----------------------------------------------------------------------------
if __name__ == "__main__":
    def init_conv(k, cin, cout):
        kw, kb = jax.random.split(k)
        w = jax.random.normal(kw, (3, 3, cin, cout), jnp.float32) / jnp.sqrt(9.0 * cin)
        b = 0.1 * jax.random.normal(kb, (cout,), jnp.float32)
        return {"w": w, "b": b}

    def run_case(N, H, W, skip_c, up_c, out_c, sf):
        ks = jax.random.split(jax.random.PRNGKey(0), 6)
        skip_f = jax.random.normal(ks[0], (N, skip_c, H, W), jnp.float32)
        up_f = jax.random.normal(ks[1], (N, up_c, H // sf, W // sf), jnp.float32)
        params = {
            "skip_conv": init_conv(ks[2], skip_c, up_c),
            "conv1": init_conv(ks[3], up_c, out_c),
            "conv2": init_conv(ks[4], out_c, out_c),
            "downsample": init_conv(ks[5], up_c, out_c) if up_c != out_c else None,
        }
        out = jax.block_until_ready(upsample_block(skip_f, up_f, params, sf))
        assert out.shape == (N, out_c, H, W), out.shape
        ref = ref_forward(skip_f, up_f, params, sf)
        err = float(jnp.max(jnp.abs(out - ref)))
        assert err < 1e-2, f"max abs err = {err}"

    # Case 1: up_c != out_c  -> exercises the fused downsample conv.
    run_case(N=2, H=16, W=16, skip_c=4, up_c=8, out_c=4, sf=2)
    # Case 2: up_c == out_c  -> exercises the identity-residual path.
    run_case(N=2, H=16, W=16, skip_c=4, up_c=8, out_c=8, sf=2)

    print("KERNEL_OK")
</pallas_src>

<mosaic_0001>
module attributes {stable_mosaic.version = 11 : i64} {
  func.func @_upsample_block_kernel(%arg0: i32, %arg1: memref<1x16x16x4xf32, #tpu.memory_space<vmem>>, %arg2: memref<1x16x16x8xf32, #tpu.memory_space<vmem>>, %arg3: memref<36x8xbf16, #tpu.memory_space<vmem>>, %arg4: memref<1x8xf32, #tpu.memory_space<vmem>>, %arg5: memref<72x4xbf16, #tpu.memory_space<vmem>>, %arg6: memref<1x4xf32, #tpu.memory_space<vmem>>, %arg7: memref<36x4xbf16, #tpu.memory_space<vmem>>, %arg8: memref<1x4xf32, #tpu.memory_space<vmem>>, %arg9: memref<72x4xbf16, #tpu.memory_space<vmem>>, %arg10: memref<1x4xf32, #tpu.memory_space<vmem>>, %arg11: memref<1x16x16x4xf32, #tpu.memory_space<vmem>>, %arg12: memref<18x18x4xf32, #tpu.memory_space<vmem>>, %arg13: memref<16x16x36xbf16, #tpu.memory_space<vmem>>, %arg14: memref<18x18x8xf32, #tpu.memory_space<vmem>>, %arg15: memref<16x16x72xbf16, #tpu.memory_space<vmem>>, %arg16: memref<18x18x4xf32, #tpu.memory_space<vmem>>, %arg17: memref<16x16x36xbf16, #tpu.memory_space<vmem>>) attributes {dimension_semantics = [#tpu.dimension_semantics<parallel>], iteration_bounds = array<i64: 2>, scalar_prefetch = 0 : i64, scratch_operands = 6 : i64, tpu.core_type = #tpu.core_type<tc>, window_params = [{transform_indices = @transform_0, window_bounds = array<i64: 1, 16, 16, 4>}, {transform_indices = @transform_1, window_bounds = array<i64: 1, 16, 16, 8>}, {pipeline_mode = #tpu.pipeline_mode<synchronous>, transform_indices = @transform_2, window_bounds = array<i64: 36, 8>}, {pipeline_mode = #tpu.pipeline_mode<synchronous>, transform_indices = @transform_3, window_bounds = array<i64: 1, 8>}, {pipeline_mode = #tpu.pipeline_mode<synchronous>, transform_indices = @transform_4, window_bounds = array<i64: 72, 4>}, {pipeline_mode = #tpu.pipeline_mode<synchronous>, transform_indices = @transform_5, window_bounds = array<i64: 1, 4>}, {pipeline_mode = #tpu.pipeline_mode<synchronous>, transform_indices = @transform_6, window_bounds = array<i64: 36, 4>}, {pipeline_mode = #tpu.pipeline_mode<synchronous>, transform_indices = @transform_7, window_bounds = array<i64: 1, 4>}, {pipeline_mode = #tpu.pipeline_mode<synchronous>, transform_indices = @transform_8, window_bounds = array<i64: 72, 4>}, {pipeline_mode = #tpu.pipeline_mode<synchronous>, transform_indices = @transform_9, window_bounds = array<i64: 1, 4>}, {transform_indices = @transform_10, window_bounds = array<i64: 1, 16, 16, 4>}]} {
    %c0 = arith.constant 0 : index
    %c0_0 = arith.constant 0 : index
    %c0_1 = arith.constant 0 : index
    %c0_2 = arith.constant 0 : index
    %0 = vector.load %arg1[%c0, %c0_0, %c0_1, %c0_2] : memref<1x16x16x4xf32, #tpu.memory_space<vmem>>, vector<1x16x16x4xf32>
    %1 = vector.shape_cast %0 : vector<1x16x16x4xf32> to vector<16x16x4xf32>
    %cst = arith.constant 0.000000e+00 : f32
    %2 = vector.broadcast %cst : f32 to vector<18x18x4xf32>
    %c0_3 = arith.constant 0 : index
    %c0_4 = arith.constant 0 : index
    %c0_5 = arith.constant 0 : index
    %3 = vector.load %arg12[%c0_3, %c0_4, %c0_5] : memref<18x18x4xf32, #tpu.memory_space<vmem>>, vector<18x18x4xf32>
    tpu.vector_store %arg12[%c0_3, %c0_4, %c0_5], %2 {strides = array<i32>} : memref<18x18x4xf32, #tpu.memory_space<vmem>>, vector<18x18x4xf32>,
    %c1 = arith.constant 1 : index
    %c1_6 = arith.constant 1 : index
    %c0_7 = arith.constant 0 : index
    %4 = vector.load %arg12[%c1, %c1_6, %c0_7] : memref<18x18x4xf32, #tpu.memory_space<vmem>>, vector<16x16x4xf32>
    tpu.vector_store %arg12[%c1, %c1_6, %c0_7], %1 {strides = array<i32>} : memref<18x18x4xf32, #tpu.memory_space<vmem>>, vector<16x16x4xf32>,
    %c0_8 = arith.constant 0 : index
    %c0_9 = arith.constant 0 : index
    %c0_10 = arith.constant 0 : index
    %5 = vector.load %arg12[%c0_8, %c0_9, %c0_10] : memref<18x18x4xf32, #tpu.memory_space<vmem>>, vector<18x18x4xf32>
    %6 = vector.extract_strided_slice %5 {offsets = [0, 0, 0], sizes = [16, 16, 4], strides = [1, 1, 1]} : vector<18x18x4xf32> to vector<16x16x4xf32>
    %7 = arith.truncf %6 : vector<16x16x4xf32> to vector<16x16x4xbf16>
    %c0_11 = arith.constant 0 : index
    %c0_12 = arith.constant 0 : index
    %c0_13 = arith.constant 0 : index
    %8 = vector.load %arg13[%c0_11, %c0_12, %c0_13] : memref<16x16x36xbf16, #tpu.memory_space<vmem>>, vector<16x16x4xbf16>
    tpu.vector_store %arg13[%c0_11, %c0_12, %c0_13], %7 {strides = array<i32>} : memref<16x16x36xbf16, #tpu.memory_space<vmem>>, vector<16x16x4xbf16>,
    %9 = vector.extract_strided_slice %5 {offsets = [0, 1, 0], sizes = [16, 16, 4], strides = [1, 1, 1]} : vector<18x18x4xf32> to vector<16x16x4xf32>
    %10 = arith.truncf %9 : vector<16x16x4xf32> to vector<16x16x4xbf16>
    %c0_14 = arith.constant 0 : index
    %c0_15 = arith.constant 0 : index
    %c4 = arith.constant 4 : index
    %11 = vector.load %arg13[%c0_14, %c0_15, %c4] : memref<16x16x36xbf16, #tpu.memory_space<vmem>>, vector<16x16x4xbf16>
    tpu.vector_store %arg13[%c0_14, %c0_15, %c4], %10 {strides = array<i32>} : memref<16x16x36xbf16, #tpu.memory_space<vmem>>, vector<16x16x4xbf16>,
    %12 = vector.extract_strided_slice %5 {offsets = [0, 2, 0], sizes = [16, 16, 4], strides = [1, 1, 1]} : vector<18x18x4xf32> to vector<16x16x4xf32>
    %13 = arith.truncf %12 : vector<16x16x4xf32> to vector<16x16x4xbf16>
    %c0_16 = arith.constant 0 : index
    %c0_17 = arith.constant 0 : index
    %c8 = arith.constant 8 : index
    %14 = vector.load %arg13[%c0_16, %c0_17, %c8] : memref<16x16x36xbf16, #tpu.memory_space<vmem>>, vector<16x16x4xbf16>
    tpu.vector_store %arg13[%c0_16, %c0_17, %c8], %13 {strides = array<i32>} : memref<16x16x36xbf16, #tpu.memory_space<vmem>>, vector<16x16x4xbf16>,
    %15 = vector.extract_strided_slice %5 {offsets = [1, 0, 0], sizes = [16, 16, 4], strides = [1, 1, 1]} : vector<18x18x4xf32> to vector<16x16x4xf32>
    %16 = arith.truncf %15 : vector<16x16x4xf32> to vector<16x16x4xbf16>
    %c0_18 = arith.constant 0 : index
    %c0_19 = arith.constant 0 : index
    %c12 = arith.constant 12 : index
    %17 = vector.load %arg13[%c0_18, %c0_19, %c12] : memref<16x16x36xbf16, #tpu.memory_space<vmem>>, vector<16x16x4xbf16>
    tpu.vector_store %arg13[%c0_18, %c0_19, %c12], %16 {strides = array<i32>} : memref<16x16x36xbf16, #tpu.memory_space<vmem>>, vector<16x16x4xbf16>,
    %18 = vector.extract_strided_slice %5 {offsets = [1, 1, 0], sizes = [16, 16, 4], strides = [1, 1, 1]} : vector<18x18x4xf32> to vector<16x16x4xf32>
    %19 = arith.truncf %18 : vector<16x16x4xf32> to vector<16x16x4xbf16>
    %c0_20 = arith.constant 0 : index
    %c0_21 = arith.constant 0 : index
    %c16 = arith.constant 16 : index
    %20 = vector.load %arg13[%c0_20, %c0_21, %c16] : memref<16x16x36xbf16, #tpu.memory_space<vmem>>, vector<16x16x4xbf16>
    tpu.vector_store %arg13[%c0_20, %c0_21, %c16], %19 {strides = array<i32>} : memref<16x16x36xbf16, #tpu.memory_space<vmem>>, vector<16x16x4xbf16>,
    %21 = vector.extract_strided_slice %5 {offsets = [1, 2, 0], sizes = [16, 16, 4], strides = [1, 1, 1]} : vector<18x18x4xf32> to vector<16x16x4xf32>
    %22 = arith.truncf %21 : vector<16x16x4xf32> to vector<16x16x4xbf16>
    %c0_22 = arith.constant 0 : index
    %c0_23 = arith.constant 0 : index
    %c20 = arith.constant 20 : index
    %23 = vector.load %arg13[%c0_22, %c0_23, %c20] : memref<16x16x36xbf16, #tpu.memory_space<vmem>>, vector<16x16x4xbf16>
    tpu.vector_store %arg13[%c0_22, %c0_23, %c20], %22 {strides = array<i32>} : memref<16x16x36xbf16, #tpu.memory_space<vmem>>, vector<16x16x4xbf16>,
    %24 = vector.extract_strided_slice %5 {offsets = [2, 0, 0], sizes = [16, 16, 4], strides = [1, 1, 1]} : vector<18x18x4xf32> to vector<16x16x4xf32>
    %25 = arith.truncf %24 : vector<16x16x4xf32> to vector<16x16x4xbf16>
    %c0_24 = arith.constant 0 : index
    %c0_25 = arith.constant 0 : index
    %c24 = arith.constant 24 : index
    %26 = vector.load %arg13[%c0_24, %c0_25, %c24] : memref<16x16x36xbf16, #tpu.memory_space<vmem>>, vector<16x16x4xbf16>
    tpu.vector_store %arg13[%c0_24, %c0_25, %c24], %25 {strides = array<i32>} : memref<16x16x36xbf16, #tpu.memory_space<vmem>>, vector<16x16x4xbf16>,
    %27 = vector.extract_strided_slice %5 {offsets = [2, 1, 0], sizes = [16, 16, 4], strides = [1, 1, 1]} : vector<18x18x4xf32> to vector<16x16x4xf32>
    %28 = arith.truncf %27 : vector<16x16x4xf32> to vector<16x16x4xbf16>
    %c0_26 = arith.constant 0 : index
    %c0_27 = arith.constant 0 : index
    %c28 = arith.constant 28 : index
    %29 = vector.load %arg13[%c0_26, %c0_27, %c28] : memref<16x16x36xbf16, #tpu.memory_space<vmem>>, vector<16x16x4xbf16>
    tpu.vector_store %arg13[%c0_26, %c0_27, %c28], %28 {strides = array<i32>} : memref<16x16x36xbf16, #tpu.memory_space<vmem>>, vector<16x16x4xbf16>,
    %30 = vector.extract_strided_slice %5 {offsets = [2, 2, 0], sizes = [16, 16, 4], strides = [1, 1, 1]} : vector<18x18x4xf32> to vector<16x16x4xf32>
    %31 = arith.truncf %30 : vector<16x16x4xf32> to vector<16x16x4xbf16>
    %c0_28 = arith.constant 0 : index
    %c0_29 = arith.constant 0 : index
    %c32 = arith.constant 32 : index
    %32 = vector.load %arg13[%c0_28, %c0_29, %c32] : memref<16x16x36xbf16, #tpu.memory_space<vmem>>, vector<16x16x4xbf16>
    tpu.vector_store %arg13[%c0_28, %c0_29, %c32], %31 {strides = array<i32>} : memref<16x16x36xbf16, #tpu.memory_space<vmem>>, vector<16x16x4xbf16>,
    %c0_30 = arith.constant 0 : index
    %c0_31 = arith.constant 0 : index
    %c0_32 = arith.constant 0 : index
    %33 = vector.load %arg13[%c0_30, %c0_31, %c0_32] : memref<16x16x36xbf16, #tpu.memory_space<vmem>>, vector<16x16x36xbf16>
    %34 = vector.shape_cast %33 : vector<16x16x36xbf16> to vector<256x36xbf16>
    %c0_33 = arith.constant 0 : index
    %c0_34 = arith.constant 0 : index
    %35 = vector.load %arg3[%c0_33, %c0_34] : memref<36x8xbf16, #tpu.memory_space<vmem>>, vector<36x8xbf16>
    %cst_35 = arith.constant dense<0.000000e+00> : vector<256x8xf32>
    %36 = tpu.matmul %34, %35, %cst_35 {dimension_numbers = #tpu.dot_dimension_numbers<[1], [0], [0], [1], [0, 0, 1, 1], [], []>} : vector<256x36xbf16>, vector<36x8xbf16>, vector<256x8xf32> -> vector<256x8xf32>
    %c0_36 = arith.constant 0 : index
    %c0_37 = arith.constant 0 : index
    %37 = vector.load %arg4[%c0_36, %c0_37] : memref<1x8xf32, #tpu.memory_space<vmem>>, vector<1x8xf32>
    %38 = vector.broadcast %37 : vector<1x8xf32> to vector<256x8xf32>
    %39 = arith.addf %36, %38 : vector<256x8xf32>
    %40 = vector.shape_cast %39 : vector<256x8xf32> to vector<16x16x8xf32>
    %c0_38 = arith.constant 0 : index
    %c0_39 = arith.constant 0 : index
    %c0_40 = arith.constant 0 : index
    %c0_41 = arith.constant 0 : index
    %41 = vector.load %arg2[%c0_38, %c0_39, %c0_40, %c0_41] : memref<1x16x16x8xf32, #tpu.memory_space<vmem>>, vector<1x16x16x8xf32>
    %42 = vector.shape_cast %41 : vector<1x16x16x8xf32> to vector<16x16x8xf32>
    %43 = arith.addf %40, %42 : vector<16x16x8xf32>
    %cst_42 = arith.constant 0.000000e+00 : f32
    %44 = vector.broadcast %cst_42 : f32 to vector<18x18x8xf32>
    %c0_43 = arith.constant 0 : index
    %c0_44 = arith.constant 0 : index
    %c0_45 = arith.constant 0 : index
    %45 = vector.load %arg14[%c0_43, %c0_44, %c0_45] : memref<18x18x8xf32, #tpu.memory_space<vmem>>, vector<18x18x8xf32>
    tpu.vector_store %arg14[%c0_43, %c0_44, %c0_45], %44 {strides = array<i32>} : memref<18x18x8xf32, #tpu.memory_space<vmem>>, vector<18x18x8xf32>,
    %c1_46 = arith.constant 1 : index
    %c1_47 = arith.constant 1 : index
    %c0_48 = arith.constant 0 : index
    %46 = vector.load %arg14[%c1_46, %c1_47, %c0_48] : memref<18x18x8xf32, #tpu.memory_space<vmem>>, vector<16x16x8xf32>
    tpu.vector_store %arg14[%c1_46, %c1_47, %c0_48], %43 {strides = array<i32>} : memref<18x18x8xf32, #tpu.memory_space<vmem>>, vector<16x16x8xf32>,
    %c0_49 = arith.constant 0 : index
    %c0_50 = arith.constant 0 : index
    %c0_51 = arith.constant 0 : index
    %47 = vector.load %arg14[%c0_49, %c0_50, %c0_51] : memref<18x18x8xf32, #tpu.memory_space<vmem>>, vector<18x18x8xf32>
    %48 = vector.extract_strided_slice %47 {offsets = [0, 0, 0], sizes = [16, 16, 8], strides = [1, 1, 1]} : vector<18x18x8xf32> to vector<16x16x8xf32>
    %49 = arith.truncf %48 : vector<16x16x8xf32> to vector<16x16x8xbf16>
    %c0_52 = arith.constant 0 : index
    %c0_53 = arith.constant 0 : index
    %c0_54 = arith.constant 0 : index
    %50 = vector.load %arg15[%c0_52, %c0_53, %c0_54] : memref<16x16x72xbf16, #tpu.memory_space<vmem>>, vector<16x16x8xbf16>
    tpu.vector_store %arg15[%c0_52, %c0_53, %c0_54], %49 {strides = array<i32>} : memref<16x16x72xbf16, #tpu.memory_space<vmem>>, vector<16x16x8xbf16>,
    %51 = vector.extract_strided_slice %47 {offsets = [0, 1, 0], sizes = [16, 16, 8], strides = [1, 1, 1]} : vector<18x18x8xf32> to vector<16x16x8xf32>
    %52 = arith.truncf %51 : vector<16x16x8xf32> to vector<16x16x8xbf16>
    %c0_55 = arith.constant 0 : index
    %c0_56 = arith.constant 0 : index
    %c8_57 = arith.constant 8 : index
    %53 = vector.load %arg15[%c0_55, %c0_56, %c8_57] : memref<16x16x72xbf16, #tpu.memory_space<vmem>>, vector<16x16x8xbf16>
    tpu.vector_store %arg15[%c0_55, %c0_56, %c8_57], %52 {strides = array<i32>} : memref<16x16x72xbf16, #tpu.memory_space<vmem>>, vector<16x16x8xbf16>,
    %54 = vector.extract_strided_slice %47 {offsets = [0, 2, 0], sizes = [16, 16, 8], strides = [1, 1, 1]} : vector<18x18x8xf32> to vector<16x16x8xf32>
    %55 = arith.truncf %54 : vector<16x16x8xf32> to vector<16x16x8xbf16>
    %c0_58 = arith.constant 0 : index
    %c0_59 = arith.constant 0 : index
    %c16_60 = arith.constant 16 : index
    %56 = vector.load %arg15[%c0_58, %c0_59, %c16_60] : memref<16x16x72xbf16, #tpu.memory_space<vmem>>, vector<16x16x8xbf16>
    tpu.vector_store %arg15[%c0_58, %c0_59, %c16_60], %55 {strides = array<i32>} : memref<16x16x72xbf16, #tpu.memory_space<vmem>>, vector<16x16x8xbf16>,
    %57 = vector.extract_strided_slice %47 {offsets = [1, 0, 0], sizes = [16, 16, 8], strides = [1, 1, 1]} : vector<18x18x8xf32> to vector<16x16x8xf32>
    %58 = arith.truncf %57 : vector<16x16x8xf32> to vector<16x16x8xbf16>
    %c0_61 = arith.constant 0 : index
    %c0_62 = arith.constant 0 : index
    %c24_63 = arith.constant 24 : index
    %59 = vector.load %arg15[%c0_61, %c0_62, %c24_63] : memref<16x16x72xbf16, #tpu.memory_space<vmem>>, vector<16x16x8xbf16>
    tpu.vector_store %arg15[%c0_61, %c0_62, %c24_63], %58 {strides = array<i32>} : memref<16x16x72xbf16, #tpu.memory_space<vmem>>, vector<16x16x8xbf16>,
    %60 = vector.extract_strided_slice %47 {offsets = [1, 1, 0], sizes = [16, 16, 8], strides = [1, 1, 1]} : vector<18x18x8xf32> to vector<16x16x8xf32>
    %61 = arith.truncf %60 : vector<16x16x8xf32> to vector<16x16x8xbf16>
    %c0_64 = arith.constant 0 : index
    %c0_65 = arith.constant 0 : index
    %c32_66 = arith.constant 32 : index
    %62 = vector.load %arg15[%c0_64, %c0_65, %c32_66] : memref<16x16x72xbf16, #tpu.memory_space<vmem>>, vector<16x16x8xbf16>
    tpu.vector_store %arg15[%c0_64, %c0_65, %c32_66], %61 {strides = array<i32>} : memref<16x16x72xbf16, #tpu.memory_space<vmem>>, vector<16x16x8xbf16>,
    %63 = vector.extract_strided_slice %47 {offsets = [1, 2, 0], sizes = [16, 16, 8], strides = [1, 1, 1]} : vector<18x18x8xf32> to vector<16x16x8xf32>
    %64 = arith.truncf %63 : vector<16x16x8xf32> to vector<16x16x8xbf16>
    %c0_67 = arith.constant 0 : index
    %c0_68 = arith.constant 0 : index
    %c40 = arith.constant 40 : index
    %65 = vector.load %arg15[%c0_67, %c0_68, %c40] : memref<16x16x72xbf16, #tpu.memory_space<vmem>>, vector<16x16x8xbf16>
    tpu.vector_store %arg15[%c0_67, %c0_68, %c40], %64 {strides = array<i32>} : memref<16x16x72xbf16, #tpu.memory_space<vmem>>, vector<16x16x8xbf16>,
    %66 = vector.extract_strided_slice %47 {offsets = [2, 0, 0], sizes = [16, 16, 8], strides = [1, 1, 1]} : vector<18x18x8xf32> to vector<16x16x8xf32>
    %67 = arith.truncf %66 : vector<16x16x8xf32> to vector<16x16x8xbf16>
    %c0_69 = arith.constant 0 : index
    %c0_70 = arith.constant 0 : index
    %c48 = arith.constant 48 : index
    %68 = vector.load %arg15[%c0_69, %c0_70, %c48] : memref<16x16x72xbf16, #tpu.memory_space<vmem>>, vector<16x16x8xbf16>
    tpu.vector_store %arg15[%c0_69, %c0_70, %c48], %67 {strides = array<i32>} : memref<16x16x72xbf16, #tpu.memory_space<vmem>>, vector<16x16x8xbf16>,
    %69 = vector.extract_strided_slice %47 {offsets = [2, 1, 0], sizes = [16, 16, 8], strides = [1, 1, 1]} : vector<18x18x8xf32> to vector<16x16x8xf32>
    %70 = arith.truncf %69 : vector<16x16x8xf32> to vector<16x16x8xbf16>
    %c0_71 = arith.constant 0 : index
    %c0_72 = arith.constant 0 : index
    %c56 = arith.constant 56 : index
    %71 = vector.load %arg15[%c0_71, %c0_72, %c56] : memref<16x16x72xbf16, #tpu.memory_space<vmem>>, vector<16x16x8xbf16>
    tpu.vector_store %arg15[%c0_71, %c0_72, %c56], %70 {strides = array<i32>} : memref<16x16x72xbf16, #tpu.memory_space<vmem>>, vector<16x16x8xbf16>,
    %72 = vector.extract_strided_slice %47 {offsets = [2, 2, 0], sizes = [16, 16, 8], strides = [1, 1, 1]} : vector<18x18x8xf32> to vector<16x16x8xf32>
    %73 = arith.truncf %72 : vector<16x16x8xf32> to vector<16x16x8xbf16>
    %c0_73 = arith.constant 0 : index
    %c0_74 = arith.constant 0 : index
    %c64 = arith.constant 64 : index
    %74 = vector.load %arg15[%c0_73, %c0_74, %c64] : memref<16x16x72xbf16, #tpu.memory_space<vmem>>, vector<16x16x8xbf16>
    tpu.vector_store %arg15[%c0_73, %c0_74, %c64], %73 {strides = array<i32>} : memref<16x16x72xbf16, #tpu.memory_space<vmem>>, vector<16x16x8xbf16>,
    %c0_75 = arith.constant 0 : index
    %c0_76 = arith.constant 0 : index
    %c0_77 = arith.constant 0 : index
    %75 = vector.load %arg15[%c0_75, %c0_76, %c0_77] : memref<16x16x72xbf16, #tpu.memory_space<vmem>>, vector<16x16x72xbf16>
    %76 = vector.shape_cast %75 : vector<16x16x72xbf16> to vector<256x72xbf16>
    %cst_78 = arith.constant 0.000000e+00 : bf16
    %77 = vector.broadcast %cst_78 : bf16 to vector<256x72xbf16>
    %78 = arith.maximumf %76, %77 : vector<256x72xbf16>
    %c0_79 = arith.constant 0 : index
    %c0_80 = arith.constant 0 : index
    %79 = vector.load %arg5[%c0_79, %c0_80] : memref<72x4xbf16, #tpu.memory_space<vmem>>, vector<72x4xbf16>
    %cst_81 = arith.constant dense<0.000000e+00> : vector<256x4xf32>
    %80 = tpu.matmul %78, %79, %cst_81 {dimension_numbers = #tpu.dot_dimension_numbers<[1], [0], [0], [1], [0, 0, 1, 1], [], []>} : vector<256x72xbf16>, vector<72x4xbf16>, vector<256x4xf32> -> vector<256x4xf32>
    %c0_82 = arith.constant 0 : index
    %c0_83 = arith.constant 0 : index
    %81 = vector.load %arg6[%c0_82, %c0_83] : memref<1x4xf32, #tpu.memory_space<vmem>>, vector<1x4xf32>
    %82 = vector.broadcast %81 : vector<1x4xf32> to vector<256x4xf32>
    %83 = arith.addf %80, %82 : vector<256x4xf32>
    %cst_84 = arith.constant 0.000000e+00 : f32
    %84 = vector.broadcast %cst_84 : f32 to vector<256x4xf32>
    %85 = arith.maximumf %83, %84 : vector<256x4xf32>
    %86 = vector.shape_cast %85 : vector<256x4xf32> to vector<16x16x4xf32>
    %cst_85 = arith.constant 0.000000e+00 : f32
    %87 = vector.broadcast %cst_85 : f32 to vector<18x18x4xf32>
    %c0_86 = arith.constant 0 : index
    %c0_87 = arith.constant 0 : index
    %c0_88 = arith.constant 0 : index
    %88 = vector.load %arg16[%c0_86, %c0_87, %c0_88] : memref<18x18x4xf32, #tpu.memory_space<vmem>>, vector<18x18x4xf32>
    tpu.vector_store %arg16[%c0_86, %c0_87, %c0_88], %87 {strides = array<i32>} : memref<18x18x4xf32, #tpu.memory_space<vmem>>, vector<18x18x4xf32>,
    %c1_89 = arith.constant 1 : index
    %c1_90 = arith.constant 1 : index
    %c0_91 = arith.constant 0 : index
    %89 = vector.load %arg16[%c1_89, %c1_90, %c0_91] : memref<18x18x4xf32, #tpu.memory_space<vmem>>, vector<16x16x4xf32>
    tpu.vector_store %arg16[%c1_89, %c1_90, %c0_91], %86 {strides = array<i32>} : memref<18x18x4xf32, #tpu.memory_space<vmem>>, vector<16x16x4xf32>,
    %c0_92 = arith.constant 0 : index
    %c0_93 = arith.constant 0 : index
    %c0_94 = arith.constant 0 : index
    %90 = vector.load %arg16[%c0_92, %c0_93, %c0_94] : memref<18x18x4xf32, #tpu.memory_space<vmem>>, vector<18x18x4xf32>
    %91 = vector.extract_strided_slice %90 {offsets = [0, 0, 0], sizes = [16, 16, 4], strides = [1, 1, 1]} : vector<18x18x4xf32> to vector<16x16x4xf32>
    %92 = arith.truncf %91 : vector<16x16x4xf32> to vector<16x16x4xbf16>
    %c0_95 = arith.constant 0 : index
    %c0_96 = arith.constant 0 : index
    %c0_97 = arith.constant 0 : index
    %93 = vector.load %arg17[%c0_95, %c0_96, %c0_97] : memref<16x16x36xbf16, #tpu.memory_space<vmem>>, vector<16x16x4xbf16>
    tpu.vector_store %arg17[%c0_95, %c0_96, %c0_97], %92 {strides = array<i32>} : memref<16x16x36xbf16, #tpu.memory_space<vmem>>, vector<16x16x4xbf16>,
    %94 = vector.extract_strided_slice %90 {offsets = [0, 1, 0], sizes = [16, 16, 4], strides = [1, 1, 1]} : vector<18x18x4xf32> to vector<16x16x4xf32>
    %95 = arith.truncf %94 : vector<16x16x4xf32> to vector<16x16x4xbf16>
    %c0_98 = arith.constant 0 : index
    %c0_99 = arith.constant 0 : index
    %c4_100 = arith.constant 4 : index
    %96 = vector.load %arg17[%c0_98, %c0_99, %c4_100] : memref<16x16x36xbf16, #tpu.memory_space<vmem>>, vector<16x16x4xbf16>
    tpu.vector_store %arg17[%c0_98, %c0_99, %c4_100], %95 {strides = array<i32>} : memref<16x16x36xbf16, #tpu.memory_space<vmem>>, vector<16x16x4xbf16>,
    %97 = vector.extract_strided_slice %90 {offsets = [0, 2, 0], sizes = [16, 16, 4], strides = [1, 1, 1]} : vector<18x18x4xf32> to vector<16x16x4xf32>
    %98 = arith.truncf %97 : vector<16x16x4xf32> to vector<16x16x4xbf16>
    %c0_101 = arith.constant 0 : index
    %c0_102 = arith.constant 0 : index
    %c8_103 = arith.constant 8 : index
    %99 = vector.load %arg17[%c0_101, %c0_102, %c8_103] : memref<16x16x36xbf16, #tpu.memory_space<vmem>>, vector<16x16x4xbf16>
    tpu.vector_store %arg17[%c0_101, %c0_102, %c8_103], %98 {strides = array<i32>} : memref<16x16x36xbf16, #tpu.memory_space<vmem>>, vector<16x16x4xbf16>,
    %100 = vector.extract_strided_slice %90 {offsets = [1, 0, 0], sizes = [16, 16, 4], strides = [1, 1, 1]} : vector<18x18x4xf32> to vector<16x16x4xf32>
    %101 = arith.truncf %100 : vector<16x16x4xf32> to vector<16x16x4xbf16>
    %c0_104 = arith.constant 0 : index
    %c0_105 = arith.constant 0 : index
    %c12_106 = arith.constant 12 : index
    %102 = vector.load %arg17[%c0_104, %c0_105, %c12_106] : memref<16x16x36xbf16, #tpu.memory_space<vmem>>, vector<16x16x4xbf16>
    tpu.vector_store %arg17[%c0_104, %c0_105, %c12_106], %101 {strides = array<i32>} : memref<16x16x36xbf16, #tpu.memory_space<vmem>>, vector<16x16x4xbf16>,
    %103 = vector.extract_strided_slice %90 {offsets = [1, 1, 0], sizes = [16, 16, 4], strides = [1, 1, 1]} : vector<18x18x4xf32> to vector<16x16x4xf32>
    %104 = arith.truncf %103 : vector<16x16x4xf32> to vector<16x16x4xbf16>
    %c0_107 = arith.constant 0 : index
    %c0_108 = arith.constant 0 : index
    %c16_109 = arith.constant 16 : index
    %105 = vector.load %arg17[%c0_107, %c0_108, %c16_109] : memref<16x16x36xbf16, #tpu.memory_space<vmem>>, vector<16x16x4xbf16>
    tpu.vector_store %arg17[%c0_107, %c0_108, %c16_109], %104 {strides = array<i32>} : memref<16x16x36xbf16, #tpu.memory_space<vmem>>, vector<16x16x4xbf16>,
    %106 = vector.extract_strided_slice %90 {offsets = [1, 2, 0], sizes = [16, 16, 4], strides = [1, 1, 1]} : vector<18x18x4xf32> to vector<16x16x4xf32>
    %107 = arith.truncf %106 : vector<16x16x4xf32> to vector<16x16x4xbf16>
    %c0_110 = arith.constant 0 : index
    %c0_111 = arith.constant 0 : index
    %c20_112 = arith.constant 20 : index
    %108 = vector.load %arg17[%c0_110, %c0_111, %c20_112] : memref<16x16x36xbf16, #tpu.memory_space<vmem>>, vector<16x16x4xbf16>
    tpu.vector_store %arg17[%c0_110, %c0_111, %c20_112], %107 {strides = array<i32>} : memref<16x16x36xbf16, #tpu.memory_space<vmem>>, vector<16x16x4xbf16>,
    %109 = vector.extract_strided_slice %90 {offsets = [2, 0, 0], sizes = [16, 16, 4], strides = [1, 1, 1]} : vector<18x18x4xf32> to vector<16x16x4xf32>
    %110 = arith.truncf %109 : vector<16x16x4xf32> to vector<16x16x4xbf16>
    %c0_113 = arith.constant 0 : index
    %c0_114 = arith.constant 0 : index
    %c24_115 = arith.constant 24 : index
    %111 = vector.load %arg17[%c0_113, %c0_114, %c24_115] : memref<16x16x36xbf16, #tpu.memory_space<vmem>>, vector<16x16x4xbf16>
    tpu.vector_store %arg17[%c0_113, %c0_114, %c24_115], %110 {strides = array<i32>} : memref<16x16x36xbf16, #tpu.memory_space<vmem>>, vector<16x16x4xbf16>,
    %112 = vector.extract_strided_slice %90 {offsets = [2, 1, 0], sizes = [16, 16, 4], strides = [1, 1, 1]} : vector<18x18x4xf32> to vector<16x16x4xf32>
    %113 = arith.truncf %112 : vector<16x16x4xf32> to vector<16x16x4xbf16>
    %c0_116 = arith.constant 0 : index
    %c0_117 = arith.constant 0 : index
    %c28_118 = arith.constant 28 : index
    %114 = vector.load %arg17[%c0_116, %c0_117, %c28_118] : memref<16x16x36xbf16, #tpu.memory_space<vmem>>, vector<16x16x4xbf16>
    tpu.vector_store %arg17[%c0_116, %c0_117, %c28_118], %113 {strides = array<i32>} : memref<16x16x36xbf16, #tpu.memory_space<vmem>>, vector<16x16x4xbf16>,
    %115 = vector.extract_strided_slice %90 {offsets = [2, 2, 0], sizes = [16, 16, 4], strides = [1, 1, 1]} : vector<18x18x4xf32> to vector<16x16x4xf32>
    %116 = arith.truncf %115 : vector<16x16x4xf32> to vector<16x16x4xbf16>
    %c0_119 = arith.constant 0 : index
    %c0_120 = arith.constant 0 : index
    %c32_121 = arith.constant 32 : index
    %117 = vector.load %arg17[%c0_119, %c0_120, %c32_121] : memref<16x16x36xbf16, #tpu.memory_space<vmem>>, vector<16x16x4xbf16>
    tpu.vector_store %arg17[%c0_119, %c0_120, %c32_121], %116 {strides = array<i32>} : memref<16x16x36xbf16, #tpu.memory_space<vmem>>, vector<16x16x4xbf16>,
    %c0_122 = arith.constant 0 : index
    %c0_123 = arith.constant 0 : index
    %c0_124 = arith.constant 0 : index
    %118 = vector.load %arg17[%c0_122, %c0_123, %c0_124] : memref<16x16x36xbf16, #tpu.memory_space<vmem>>, vector<16x16x36xbf16>
    %119 = vector.shape_cast %118 : vector<16x16x36xbf16> to vector<256x36xbf16>
    %c0_125 = arith.constant 0 : index
    %c0_126 = arith.constant 0 : index
    %120 = vector.load %arg7[%c0_125, %c0_126] : memref<36x4xbf16, #tpu.memory_space<vmem>>, vector<36x4xbf16>
    %cst_127 = arith.constant dense<0.000000e+00> : vector<256x4xf32>
    %121 = tpu.matmul %119, %120, %cst_127 {dimension_numbers = #tpu.dot_dimension_numbers<[1], [0], [0], [1], [0, 0, 1, 1], [], []>} : vector<256x36xbf16>, vector<36x4xbf16>, vector<256x4xf32> -> vector<256x4xf32>
    %c0_128 = arith.constant 0 : index
    %c0_129 = arith.constant 0 : index
    %122 = vector.load %arg8[%c0_128, %c0_129] : memref<1x4xf32, #tpu.memory_space<vmem>>, vector<1x4xf32>
    %123 = vector.broadcast %122 : vector<1x4xf32> to vector<256x4xf32>
    %124 = arith.addf %121, %123 : vector<256x4xf32>
    %c0_130 = arith.constant 0 : index
    %c0_131 = arith.constant 0 : index
    %125 = vector.load %arg9[%c0_130, %c0_131] : memref<72x4xbf16, #tpu.memory_space<vmem>>, vector<72x4xbf16>
    %cst_132 = arith.constant dense<0.000000e+00> : vector<256x4xf32>
    %126 = tpu.matmul %76, %125, %cst_132 {dimension_numbers = #tpu.dot_dimension_numbers<[1], [0], [0], [1], [0, 0, 1, 1], [], []>} : vector<256x72xbf16>, vector<72x4xbf16>, vector<256x4xf32> -> vector<256x4xf32>
    %c0_133 = arith.constant 0 : index
    %c0_134 = arith.constant 0 : index
    %127 = vector.load %arg10[%c0_133, %c0_134] : memref<1x4xf32, #tpu.memory_space<vmem>>, vector<1x4xf32>
    %128 = vector.broadcast %127 : vector<1x4xf32> to vector<256x4xf32>
    %129 = arith.addf %126, %128 : vector<256x4xf32>
    %130 = arith.addf %129, %124 : vector<256x4xf32>
    %131 = vector.shape_cast %130 : vector<256x4xf32> to vector<16x16x4xf32>
    %c0_135 = arith.constant 0 : index
    %c0_136 = arith.constant 0 : index
    %c0_137 = arith.constant 0 : index
    %c0_138 = arith.constant 0 : index
    %132 = vector.load %arg11[%c0_135, %c0_136, %c0_137, %c0_138] : memref<1x16x16x4xf32, #tpu.memory_space<vmem>>, vector<1x16x16x4xf32>
    %133 = vector.shape_cast %132 : vector<1x16x16x4xf32> to vector<16x16x4xf32>
    %134 = vector.shape_cast %131 : vector<16x16x4xf32> to vector<1x16x16x4xf32>
    tpu.vector_store %arg11[%c0_135, %c0_136, %c0_137, %c0_138], %134 {strides = array<i32>} : memref<1x16x16x4xf32, #tpu.memory_space<vmem>>, vector<1x16x16x4xf32>,
    return
  }
  func.func @transform_0(%arg0: i32) -> (i32, i32, i32, i32) {
    %c0_i32 = arith.constant 0 : i32
    %c0_i32_0 = arith.constant 0 : i32
    %c0_i32_1 = arith.constant 0 : i32
    %c0_i32_2 = arith.constant 0 : i32
    return %arg0, %c0_i32, %c0_i32_0, %c0_i32_1 : i32, i32, i32, i32
  }
  func.func @transform_1(%arg0: i32) -> (i32, i32, i32, i32) {
    %c0_i32 = arith.constant 0 : i32
    %c0_i32_0 = arith.constant 0 : i32
    %c0_i32_1 = arith.constant 0 : i32
    %c0_i32_2 = arith.constant 0 : i32
    return %arg0, %c0_i32, %c0_i32_0, %c0_i32_1 : i32, i32, i32, i32
  }
  func.func @transform_2(%arg0: i32) -> (i32, i32) {
    %c0_i32 = arith.constant 0 : i32
    %c0_i32_0 = arith.constant 0 : i32
    %c0_i32_1 = arith.constant 0 : i32
    return %c0_i32, %c0_i32_0 : i32, i32
  }
  func.func @transform_3(%arg0: i32) -> (i32, i32) {
    %c0_i32 = arith.constant 0 : i32
    %c0_i32_0 = arith.constant 0 : i32
    %c0_i32_1 = arith.constant 0 : i32
    return %c0_i32, %c0_i32_0 : i32, i32
  }
  func.func @transform_4(%arg0: i32) -> (i32, i32) {
    %c0_i32 = arith.constant 0 : i32
    %c0_i32_0 = arith.constant 0 : i32
    %c0_i32_1 = arith.constant 0 : i32
    return %c0_i32, %c0_i32_0 : i32, i32
  }
  func.func @transform_5(%arg0: i32) -> (i32, i32) {
    %c0_i32 = arith.constant 0 : i32
    %c0_i32_0 = arith.constant 0 : i32
    %c0_i32_1 = arith.constant 0 : i32
    return %c0_i32, %c0_i32_0 : i32, i32
  }
  func.func @transform_6(%arg0: i32) -> (i32, i32) {
    %c0_i32 = arith.constant 0 : i32
    %c0_i32_0 = arith.constant 0 : i32
    %c0_i32_1 = arith.constant 0 : i32
    return %c0_i32, %c0_i32_0 : i32, i32
  }
  func.func @transform_7(%arg0: i32) -> (i32, i32) {
    %c0_i32 = arith.constant 0 : i32
    %c0_i32_0 = arith.constant 0 : i32
    %c0_i32_1 = arith.constant 0 : i32
    return %c0_i32, %c0_i32_0 : i32, i32
  }
  func.func @transform_8(%arg0: i32) -> (i32, i32) {
    %c0_i32 = arith.constant 0 : i32
    %c0_i32_0 = arith.constant 0 : i32
    %c0_i32_1 = arith.constant 0 : i32
    return %c0_i32, %c0_i32_0 : i32, i32
  }
  func.func @transform_9(%arg0: i32) -> (i32, i32) {
    %c0_i32 = arith.constant 0 : i32
    %c0_i32_0 = arith.constant 0 : i32
    %c0_i32_1 = arith.constant 0 : i32
    return %c0_i32, %c0_i32_0 : i32, i32
  }
  func.func @transform_10(%arg0: i32) -> (i32, i32, i32, i32) {
    %c0_i32 = arith.constant 0 : i32
    %c0_i32_0 = arith.constant 0 : i32
    %c0_i32_1 = arith.constant 0 : i32
    %c0_i32_2 = arith.constant 0 : i32
    return %arg0, %c0_i32, %c0_i32_0, %c0_i32_1 : i32, i32, i32, i32
  }
}

</mosaic_0001>

<bundles_post_ra>
// kernel: tpu_custom_call.1
= control target key start
LH: loop header
LB: loop body
LE: loop exit
PB: predicated region body
PF: predicated region fallthrough
CT: control target
= control target key end

     0   :  { %s8946_s13 = smov 0   ;;  %s14025_s0 = inlined_call_operand.vmem [shape: f32[2,16,16,4], index: 0, kind: input, shape index: {}]   ;;  %s14026_s1 = inlined_call_operand.vmem [shape: f32[2,16,16,8], index: 1, kind: input, shape index: {}]   ;;  %s14027_s2 = inlined_call_operand.vmem [shape: bf16[36,8], index: 2, kind: input, shape index: {}]   ;;  %s14028_s3 = inlined_call_operand.vmem [shape: f32[1,8], index: 3, kind: input, shape index: {}]   ;;  %s14029_s4 = inlined_call_operand.vmem [shape: bf16[72,4], index: 4, kind: input, shape index: {}]   ;;  %s14030_s5 = inlined_call_operand.vmem [shape: f32[1,4], index: 5, kind: input, shape index: {}]   ;;  %s14031_s6 = inlined_call_operand.vmem [shape: bf16[36,4], index: 6, kind: input, shape index: {}]   ;;  %s14032_s7 = inlined_call_operand.vmem [shape: f32[1,4], index: 7, kind: input, shape index: {}]   ;;  %s14033_s8 = inlined_call_operand.vmem [shape: bf16[72,4], index: 8, kind: input, shape index: {}]   ;;  %s14034_s9 = inlined_call_operand.vmem [shape: f32[1,4], index: 9, kind: input, shape index: {}]   ;;  %s14035_s10 = inlined_call_operand.vmem [shape: f32[2,16,16,4], index: 10, kind: output, shape index: {}]  }
   0x1 LB: > { %s8009_s14 = sadd.s32 4294967295, %s8875_s13   ;;  %p8013_p0 = scmp.ge.s32.totalorder %s8875_s13, 1  ;;  %s8875_s13 = sphi %s8946_s13, %s20_s13  }
   0x2   : > { %p322_p1 = scmp.lt.s32.totalorder %s8875_s13, 3 }
   0x4   : > { %p323_p2 = pnand %p8013_p0, %p322_p1 }
   0x6   : > { %326 = sbr.rel (%p323_p2) target bundleno = 2536 (0x9e8), region = 60 }
   0xb   : > { %vm413_vm0 = vcmask 31744   ;;  %v14036_v0 = vmov 0.0   ;;  %p9100_p3 = scmp.lt.s32.totalorder %s8009_s14, 1  ;;  %vm416_vm1 = vcmask 25600   ;;  %vm781_vm2 = vsmask.f32 3328 }
   0xc   : > { %414 = vst.msk [vmem:[#allocation2] sm:$0xff] %vm413_vm0, %v14036_v0  ;;  %415 = vst.msk [vmem:[#allocation2 + $0x8] sm:$0xff] %vm413_vm0, %v14036_v0  ;;  %vm782_vm3 = vsmask.f32 7440  ;;  %v14297_v41 = vmov 0  ;;  %s8878_s20 = smov 4  }
   0xd   : > { %418 = vst.msk [vmem:[#allocation2 + $0x18] sm:$0xff] %vm413_vm0, %v14036_v0  ;;  %419 = vst.msk [vmem:[#allocation2 + $0x20] sm:$0xff] %vm413_vm0, %v14036_v0  ;;  %s14689_s14 = smov (!%p9100_p3, %s8009_s14), 1  ;;  %vm1297_vm5 = vcmask 1042432   ;;  %vm1298_vm6 = vcmask 1046532   ;;  %s8879_s21 = smov 8  }
   0xe   : > { %421 = vst.msk [vmem:[#allocation2 + $0x30] sm:$0xff] %vm413_vm0, %v14036_v0  ;;  %422 = vst.msk [vmem:[#allocation2 + $0x38] sm:$0xff] %vm413_vm0, %v14036_v0  ;;  %s9180_s16 = sshll.u32 %s14689_s14, 8  ;;  %vm684_vm8 = vcmask 27648   ;;  %vm1264_vm9 = vcmask 60448   ;;  %s8880_s22 = smov 12  }
   0xf   : > { %424 = vst.msk [vmem:[#allocation2 + $0x48] sm:$0xff] %vm413_vm0, %v14036_v0  ;;  %425 = vst.msk [vmem:[#allocation2 + $0x50] sm:$0xff] %vm413_vm0, %v14036_v0  ;;  %s9186_s19 = scalar_lea.vmem %s14025_s0, %s9180_s16  ;;  %vm1508_vm10 = vcmask 93248   ;;  %s8881_s23 = smov 16   ;;  %vm1643_vm11 = vcmask 126048   ;;  %vm1800_vm12 = vcmask 158848  }
  0x10   : > { %427 = vst.msk [vmem:[#allocation2 + $0x60] sm:$0xff] %vm413_vm0, %v14036_v0  ;;  %428 = vst.msk [vmem:[#allocation2 + $0x68] sm:$0xff] %vm413_vm0, %v14036_v0  ;;  %v381_v1 = vld [vmem:[%s9186_s19] sm:$0xff]  ;;  %v382_v2 = vld [vmem:[%s9186_s19 + $0x8] sm:$0xff]  ;;  %s8882_s24 = smov 20   ;;  %s8883_s25 = smov 24  }
  0x11   : > { %430 = vst.msk [vmem:[#allocation2 + $0x78] sm:$0xff] %vm413_vm0, %v14036_v0  ;;  %431 = vst.msk [vmem:[#allocation2 + $0x80] sm:$0xff] %vm413_vm0, %v14036_v0  ;;  %v383_v3 = vld [vmem:[%s9186_s19 + $0x10] sm:$0xff]  ;;  %v384_v6 = vld [vmem:[%s9186_s19 + $0x18] sm:$0xff]  ;;  %vm1936_vm13 = vcmask 191648   ;;  %s8884_s26 = smov 28   ;;  %s10770_s18 = scalar_lea.vmem %s14026_s1, %s9180_s16 }
  0x12   : > { %433 = vst.msk [vmem:[#allocation2 + $0x90] sm:$0xff] %vm413_vm0, %v14036_v0  ;;  %434 = vst.msk [vmem:[#allocation2 + $0x98] sm:$0xff] %vm413_vm0, %v14036_v0  ;;  %v385_v10 = vld [vmem:[%s9186_s19 + $0x20] sm:$0xff]  ;;  %v386_v11 = vld [vmem:[%s9186_s19 + $0x28] sm:$0xff]  ;;  %vm2071_vm14 = vcmask 224448   ;;  %vm2585_vm15 = vcmask 1041408  }
  0x13   : > { %436 = vst.msk [vmem:[#allocation2 + $0xa8] sm:$0xff] %vm413_vm0, %v14036_v0  ;;  %437 = vst.msk [vmem:[#allocation2 + $0xb0] sm:$0xff] %vm413_vm0, %v14036_v0  ;;  %v502_v4 = vld [vmem:[#allocation2] sm:$0xff]  ;;  %v503_v5 = vld [vmem:[#allocation2 + $0x8] sm:$0xff]  ;;  %s8885_s14 = smov 32   ;;  %s8886_s28 = smov 40  }
  0x14   : > { %439 = vst.msk [vmem:[#allocation2 + $0xc0] sm:$0xff] %vm413_vm0, %v14036_v0  ;;  %440 = vst.msk [vmem:[#allocation2 + $0xc8] sm:$0xff] %vm413_vm0, %v14036_v0  ;;  %v9195_v7 = vpack.c.bf16 %v502_v4, %v502_v4  ;;  %v9197_v8 = vpack.c.bf16 %v503_v5, %v503_v5  ;;  %v387_v13 = vld [vmem:[%s9186_s19 + $0x30] sm:$0xff]  ;;  %v388_v14 = vld [vmem:[%s9186_s19 + $0x38] sm:$0xff]  ;;  %s8887_s29 = smov 48   ;;  %s8888_s12 = smov 56  }
  0x15   : > { %442 = vst.msk [vmem:[#allocation2 + $0xd8] sm:$0xff] %vm413_vm0, %v14036_v0  ;;  %443 = vst.msk [vmem:[#allocation2 + $0xe0] sm:$0xff] %vm413_vm0, %v14036_v0  ;;  %v389_v15 = vld [vmem:[%s9186_s19 + $0x40] sm:$0xff]  ;;  %v390_v20 = vld [vmem:[%s9186_s19 + $0x48] sm:$0xff] }
  0x16   : > { %445 = vst.msk [vmem:[#allocation2 + $0xf0] sm:$0xff] %vm413_vm0, %v14036_v0  ;;  %446 = vst.msk [vmem:[#allocation2 + $0xf8] sm:$0xff] %vm413_vm0, %v14036_v0  ;;  %v785_v16 = vshrl.u32 %v9195_v7, 16  ;;  %v788_v17 = vshll.u32 %v9195_v7, 16  ;;  %v794_v18 = vshll.u32 %v9197_v8, 16  ;;  %v798_v19 = vshrl.u32 %v9197_v8, 16 }
  0x17   : > { %448 = vst.msk [vmem:[#allocation2 + $0x108] sm:$0xff] %vm413_vm0, %v14036_v0  ;;  %449 = vst.msk [vmem:[#allocation2 + $0x110] sm:$0xff] %vm413_vm0, %v14036_v0  ;;  %v391_v21 = vld [vmem:[%s9186_s19 + $0x50] sm:$0xff]  ;;  %v392_v23 = vld [vmem:[%s9186_s19 + $0x58] sm:$0xff] }
  0x18   : > { %451 = vst.msk [vmem:[#allocation2 + $0x120] sm:$0xff] %vm413_vm0, %v14036_v0  ;;  %452 = vst.msk [vmem:[#allocation2 + $0x128] sm:$0xff] %vm413_vm0, %v14036_v0  ;;  %v393_v24 = vld [vmem:[%s9186_s19 + $0x60] sm:$0xff]  ;;  %v394_v25 = vld [vmem:[%s9186_s19 + $0x68] sm:$0xff]  ;;  %v787_v26 = vrot.slane %v785_v16, 4  ;;  %v790_v27 = vrot.slane %v788_v17, 5 }
  0x19   : > { %454 = vst.msk [vmem:[#allocation2 + $0x138] sm:$0xff] %vm413_vm0, %v14036_v0  ;;  %455 = vst.msk [vmem:[#allocation2 + $0x140] sm:$0xff] %vm413_vm0, %v14036_v0  ;;  %v796_v28 = vrot.slane %v794_v18, 5  ;;  %v800_v29 = vrot.slane %v798_v19, 4  ;;  %v395_v30 = vld [vmem:[%s9186_s19 + $0x70] sm:$0xff]  ;;  %v396_v31 = vld [vmem:[%s9186_s19 + $0x78] sm:$0xff] }
  0x1a   : > { %457 = vst.msk [vmem:[#allocation2 + $0x150] sm:$0xff] %vm413_vm0, %v14036_v0  ;;  %458 = vst.msk [vmem:[#allocation2 + $0x158] sm:$0xff] %vm413_vm0, %v14036_v0  ;;  %v397_v32 = vld [vmem:[%s9186_s19 + $0x80] sm:$0xff]  ;;  %v398_v33 = vld [vmem:[%s9186_s19 + $0x88] sm:$0xff]  ;;  %v791_v35 = vor.u32 %v790_v27, %v787_v26 }
  0x1b   : > { %460 = vst.msk [vmem:[#allocation2 + $0x168] sm:$0xff] %vm413_vm0, %v14036_v0  ;;  %461 = vst.msk [vmem:[#allocation2 + $0x170] sm:$0xff] %vm413_vm0, %v14036_v0  ;;  %v399_v34 = vld [vmem:[%s9186_s19 + $0x90] sm:$0xff]  ;;  %v801_v38 = vor.u32 %v800_v29, %v796_v28 }
  0x1c   : > { %463 = vst.msk [vmem:[#allocation2 + $0x180] sm:$0xff] %vm413_vm0, %v14036_v0  ;;  %464 = vst.msk [vmem:[#allocation2 + $0x188] sm:$0xff] %vm413_vm0, %v14036_v0  ;;  %v792_v47 = vrot.slane %v791_v35, 4  ;;  %v401_v35 = vld [vmem:[%s9186_s19 + $0xa0] sm:$0xff] }
  0x1d   : > { %466 = vst.msk [vmem:[#allocation2 + $0x198] sm:$0xff] %vm413_vm0, %v14036_v0  ;;  %467 = vst.msk [vmem:[#allocation2 + $0x1a0] sm:$0xff] %vm413_vm0, %v14036_v0  ;;  %v802_v48 = vrot.slane %v801_v38, 4 }
  0x1e   : > { %5225 = vst.msk [vmem:[#allocation6] sm:$0xff] %vm413_vm0, %v14036_v0  ;;  %5226 = vst.msk [vmem:[#allocation6 + $0x8] sm:$0xff] %vm413_vm0, %v14036_v0 }
  0x1f   : > { %5228 = vst.msk [vmem:[#allocation6 + $0x18] sm:$0xff] %vm413_vm0, %v14036_v0  ;;  %5229 = vst.msk [vmem:[#allocation6 + $0x20] sm:$0xff] %vm413_vm0, %v14036_v0 }
  0x20   : > { %5231 = vst.msk [vmem:[#allocation6 + $0x30] sm:$0xff] %vm413_vm0, %v14036_v0  ;;  %5232 = vst.msk [vmem:[#allocation6 + $0x38] sm:$0xff] %vm413_vm0, %v14036_v0 }
  0x21   : > { %5234 = vst.msk [vmem:[#allocation6 + $0x48] sm:$0xff] %vm413_vm0, %v14036_v0  ;;  %5235 = vst.msk [vmem:[#allocation6 + $0x50] sm:$0xff] %vm413_vm0, %v14036_v0 }
  0x22   : > { %5237 = vst.msk [vmem:[#allocation6 + $0x60] sm:$0xff] %vm413_vm0, %v14036_v0  ;;  %5238 = vst.msk [vmem:[#allocation6 + $0x68] sm:$0xff] %vm413_vm0, %v14036_v0 }
  0x23   : > { %5240 = vst.msk [vmem:[#allocation6 + $0x78] sm:$0xff] %vm413_vm0, %v14036_v0  ;;  %5241 = vst.msk [vmem:[#allocation6 + $0x80] sm:$0xff] %vm413_vm0, %v14036_v0 }
  0x24   : > { %5243 = vst.msk [vmem:[#allocation6 + $0x90] sm:$0xff] %vm413_vm0, %v14036_v0  ;;  %5244 = vst.msk [vmem:[#allocation6 + $0x98] sm:$0xff] %vm413_vm0, %v14036_v0 }
  0x25   : > { %5246 = vst.msk [vmem:[#allocation6 + $0xa8] sm:$0xff] %vm413_vm0, %v14036_v0  ;;  %5247 = vst.msk [vmem:[#allocation6 + $0xb0] sm:$0xff] %vm413_vm0, %v14036_v0 }
  0x26   : > { %5249 = vst.msk [vmem:[#allocation6 + $0xc0] sm:$0xff] %vm413_vm0, %v14036_v0  ;;  %5250 = vst.msk [vmem:[#allocation6 + $0xc8] sm:$0xff] %vm413_vm0, %v14036_v0 }
  0x27   : > { %5252 = vst.msk [vmem:[#allocation6 + $0xd8] sm:$0xff] %vm413_vm0, %v14036_v0  ;;  %5253 = vst.msk [vmem:[#allocation6 + $0xe0] sm:$0xff] %vm413_vm0, %v14036_v0 }
  0x28   : > { %5255 = vst.msk [vmem:[#allocation6 + $0xf0] sm:$0xff] %vm413_vm0, %v14036_v0  ;;  %5256 = vst.msk [vmem:[#allocation6 + $0xf8] sm:$0xff] %vm413_vm0, %v14036_v0 }
  0x29   : > { %5258 = vst.msk [vmem:[#allocation6 + $0x108] sm:$0xff] %vm413_vm0, %v14036_v0  ;;  %5259 = vst.msk [vmem:[#allocation6 + $0x110] sm:$0xff] %vm413_vm0, %v14036_v0 }
  0x2a   : > { %5261 = vst.msk [vmem:[#allocation6 + $0x120] sm:$0xff] %vm413_vm0, %v14036_v0  ;;  %5262 = vst.msk [vmem:[#allocation6 + $0x128] sm:$0xff] %vm413_vm0, %v14036_v0 }
  0x2b   : > { %5264 = vst.msk [vmem:[#allocation6 + $0x138] sm:$0xff] %vm413_vm0, %v14036_v0  ;;  %5265 = vst.msk [vmem:[#allocation6 + $0x140] sm:$0xff] %vm413_vm0, %v14036_v0 }
  0x2c   : > { %5267 = vst.msk [vmem:[#allocation6 + $0x150] sm:$0xff] %vm413_vm0, %v14036_v0  ;;  %5268 = vst.msk [vmem:[#allocation6 + $0x158] sm:$0xff] %vm413_vm0, %v14036_v0 }
  0x2d   : > { %5270 = vst.msk [vmem:[#allocation6 + $0x168] sm:$0xff] %vm413_vm0, %v14036_v0  ;;  %5271 = vst.msk [vmem:[#allocation6 + $0x170] sm:$0xff] %vm413_vm0, %v14036_v0 }
  0x2e   : > { %5273 = vst.msk [vmem:[#allocation6 + $0x180] sm:$0xff] %vm413_vm0, %v14036_v0  ;;  %5274 = vst.msk [vmem:[#allocation6 + $0x188] sm:$0xff] %vm413_vm0, %v14036_v0 }
  0x2f   : > { %5276 = vst.msk [vmem:[#allocation6 + $0x198] sm:$0xff] %vm413_vm0, %v14036_v0  ;;  %5277 = vst.msk [vmem:[#allocation6 + $0x1a0] sm:$0xff] %vm413_vm0, %v14036_v0 }
  0x30   : > { %420 = vst.msk [vmem:[#allocation2 + $0x28] sm:$0x3] %vm416_vm1, %v14036_v0  ;;  %417 = vst.msk [vmem:[#allocation2 + $0x10] sm:$0x3] %vm416_vm1, %v14036_v0 }
  0x31   : > { %423 = vst.msk [vmem:[#allocation2 + $0x40] sm:$0x3] %vm416_vm1, %v14036_v0  ;;  %426 = vst.msk [vmem:[#allocation2 + $0x58] sm:$0x3] %vm416_vm1, %v14036_v0 }
  0x32   : > { %429 = vst.msk [vmem:[#allocation2 + $0x70] sm:$0x3] %vm416_vm1, %v14036_v0  ;;  %432 = vst.msk [vmem:[#allocation2 + $0x88] sm:$0x3] %vm416_vm1, %v14036_v0 }
  0x33   : > { %435 = vst.msk [vmem:[#allocation2 + $0xa0] sm:$0x3] %vm416_vm1, %v14036_v0  ;;  %438 = vst.msk [vmem:[#allocation2 + $0xb8] sm:$0x3] %vm416_vm1, %v14036_v0 }
  0x34   : > { %441 = vst.msk [vmem:[#allocation2 + $0xd0] sm:$0x3] %vm416_vm1, %v14036_v0  ;;  %444 = vst.msk [vmem:[#allocation2 + $0xe8] sm:$0x3] %vm416_vm1, %v14036_v0 }
  0x35   : > { %447 = vst.msk [vmem:[#allocation2 + $0x100] sm:$0x3] %vm416_vm1, %v14036_v0  ;;  %450 = vst.msk [vmem:[#allocation2 + $0x118] sm:$0x3] %vm416_vm1, %v14036_v0 }
  0x36   : > { %453 = vst.msk [vmem:[#allocation2 + $0x130] sm:$0x3] %vm416_vm1, %v14036_v0  ;;  %456 = vst.msk [vmem:[#allocation2 + $0x148] sm:$0x3] %vm416_vm1, %v14036_v0 }
  0x37   : > { %459 = vst.msk [vmem:[#allocation2 + $0x160] sm:$0x3] %vm416_vm1, %v14036_v0  ;;  %462 = vst.msk [vmem:[#allocation2 + $0x178] sm:$0x3] %vm416_vm1, %v14036_v0  ;;  %v504_v9 = vld [vmem:[#allocation2 + $0x10] sm:$0x3] }
  0x38   : > { %465 = vst.msk [vmem:[#allocation2 + $0x190] sm:$0x3] %vm416_vm1, %v14036_v0  ;;  %468 = vst.msk [vmem:[#allocation2 + $0x1a8] sm:$0x3] %vm416_vm1, %v14036_v0  ;;  %v9202_v12 = vpack.c.bf16 %v504_v9, %v504_v9 }
  0x39   : > { %5227 = vst.msk [vmem:[#allocation6 + $0x10] sm:$0x3] %vm416_vm1, %v14036_v0  ;;  %5230 = vst.msk [vmem:[#allocation6 + $0x28] sm:$0x3] %vm416_vm1, %v14036_v0 }
  0x3a   : > { %5233 = vst.msk [vmem:[#allocation6 + $0x40] sm:$0x3] %vm416_vm1, %v14036_v0  ;;  %5236 = vst.msk [vmem:[#allocation6 + $0x58] sm:$0x3] %vm416_vm1, %v14036_v0  ;;  %v804_v22 = vshll.u32 %v9202_v12, 16 }
  0x3b   : > { %5239 = vst.msk [vmem:[#allocation6 + $0x70] sm:$0x3] %vm416_vm1, %v14036_v0  ;;  %5242 = vst.msk [vmem:[#allocation6 + $0x88] sm:$0x3] %vm416_vm1, %v14036_v0 }
  0x3c   : > { %5245 = vst.msk [vmem:[#allocation6 + $0xa0] sm:$0x3] %vm416_vm1, %v14036_v0  ;;  %5248 = vst.msk [vmem:[#allocation6 + $0xb8] sm:$0x3] %vm416_vm1, %v14036_v0  ;;  %v806_v39 = vrot.slane %v804_v22, 5 }
  0x3d   : > { %5251 = vst.msk [vmem:[#allocation6 + $0xd0] sm:$0x3] %vm416_vm1, %v14036_v0  ;;  %5254 = vst.msk [vmem:[#allocation6 + $0xe8] sm:$0x3] %vm416_vm1, %v14036_v0 }
  0x3e   : > { %5257 = vst.msk [vmem:[#allocation6 + $0x100] sm:$0x3] %vm416_vm1, %v14036_v0  ;;  %5260 = vst.msk [vmem:[#allocation6 + $0x118] sm:$0x3] %vm416_vm1, %v14036_v0 }
  0x3f   : > { %5263 = vst.msk [vmem:[#allocation6 + $0x130] sm:$0x3] %vm416_vm1, %v14036_v0  ;;  %5266 = vst.msk [vmem:[#allocation6 + $0x148] sm:$0x3] %vm416_vm1, %v14036_v0 }
  0x40   : > { %5269 = vst.msk [vmem:[#allocation6 + $0x160] sm:$0x3] %vm416_vm1, %v14036_v0  ;;  %5272 = vst.msk [vmem:[#allocation6 + $0x178] sm:$0x3] %vm416_vm1, %v14036_v0 }
  0x41   : > { %5275 = vst.msk [vmem:[#allocation6 + $0x190] sm:$0x3] %vm416_vm1, %v14036_v0  ;;  %5278 = vst.msk [vmem:[#allocation6 + $0x1a8] sm:$0x3] %vm416_vm1, %v14036_v0  ;;  %vm2228_vm1 = vcmask 257248  }
  0x42   : > { %470 = vst.msk [vmem:[#allocation2 + $0x19] sm:$0xff] %vm413_vm0, %v381_v1  ;;  %471 = vst.msk [vmem:[#allocation2 + $0x21] sm:$0xff] %vm413_vm0, %v382_v2 }
  0x43   : > { %472 = vst.msk [vmem:[#allocation2 + $0x31] sm:$0xff] %vm413_vm0, %v383_v3  ;;  %473 = vst.msk [vmem:[#allocation2 + $0x39] sm:$0xff] %vm413_vm0, %v384_v6 }
  0x44   : > { %474 = vst.msk [vmem:[#allocation2 + $0x49] sm:$0xff] %vm413_vm0, %v385_v10  ;;  %475 = vst.msk [vmem:[#allocation2 + $0x51] sm:$0xff] %vm413_vm0, %v386_v11 }
  0x45   : > { %476 = vst.msk [vmem:[#allocation2 + $0x61] sm:$0xff] %vm413_vm0, %v387_v13  ;;  %477 = vst.msk [vmem:[#allocation2 + $0x69] sm:$0xff] %vm413_vm0, %v388_v14 }
  0x46   : > { %478 = vst.msk [vmem:[#allocation2 + $0x79] sm:$0xff] %vm413_vm0, %v389_v15  ;;  %479 = vst.msk [vmem:[#allocation2 + $0x81] sm:$0xff] %vm413_vm0, %v390_v20 }
  0x47   : > { %480 = vst.msk [vmem:[#allocation2 + $0x91] sm:$0xff] %vm413_vm0, %v391_v21  ;;  %481 = vst.msk [vmem:[#allocation2 + $0x99] sm:$0xff] %vm413_vm0, %v392_v23 }
  0x48   : > { %482 = vst.msk [vmem:[#allocation2 + $0xa9] sm:$0xff] %vm413_vm0, %v393_v24  ;;  %483 = vst.msk [vmem:[#allocation2 + $0xb1] sm:$0xff] %vm413_vm0, %v394_v25 }
  0x49   : > { %484 = vst.msk [vmem:[#allocation2 + $0xc1] sm:$0xff] %vm413_vm0, %v395_v30  ;;  %485 = vst.msk [vmem:[#allocation2 + $0xc9] sm:$0xff] %vm413_vm0, %v396_v31  ;;  %v505_v36 = vld [vmem:[#allocation2 + $0x18] sm:$0xff]  ;;  %v506_v37 = vld [vmem:[#allocation2 + $0x20] sm:$0xff] }
  0x4a   : > { %v507_v40 = vld [vmem:[#allocation2 + $0x28] sm:$0x3]  ;;  %486 = vst.msk [vmem:[#allocation2 + $0xd9] sm:$0xff] %vm413_vm0, %v397_v32  ;;  %487 = vst.msk [vmem:[#allocation2 + $0xe1] sm:$0xff] %vm413_vm0, %v398_v33  ;;  %v9243_v42 = vpack.c.bf16 %v505_v36, %v505_v36  ;;  %v9245_v43 = vpack.c.bf16 %v506_v37, %v506_v37  ;;  %v508_v45 = vld [vmem:[#allocation2 + $0x30] sm:$0xff] }
  0x4b   : > { %488 = vst.msk [vmem:[#allocation2 + $0xf1] sm:$0xff] %vm413_vm0, %v399_v34  ;;  %vm9239_vm4 = vmor %vm781_vm2, %vm782_vm3  ;;  %v9247_v44 = vpack.c.bf16 %v507_v40, %v507_v40  ;;  %v509_v46 = vld [vmem:[#allocation2 + $0x38] sm:$0xff]  ;;  %v9249_v49 = vpack.c.bf16 %v508_v45, %v508_v45  ;;  %v510_v59 = vld [vmem:[#allocation2 + $0x40] sm:$0x3]  ;;  %vm14215_vm2 = vcmask 290048   ;;  %vm14214_vm3 = vcmask 293888  }
  0x4c   : > { %v14298_v41 = vsel %vm9239_vm4, 4294967295, %v14297_v41  ;;  %v9251_v50 = vpack.c.bf16 %v509_v46, %v509_v46  ;;  %v809_v51 = vshrl.u32 %v9243_v42, 16  ;;  %v812_v52 = vshll.u32 %v9243_v42, 16  ;;  %v511_v1 = vld [vmem:[#allocation2 + $0x48] sm:$0xff]  ;;  %v512_v2 = vld [vmem:[#allocation2 + $0x50] sm:$0xff]  ;;  %v514_v27 = vld [vmem:[#allocation2 + $0x60] sm:$0xff] }
  0x4d   : > { %14299 = vst [vmem:[#allocation8_spill] sm:$0xff] %v14298_v41  ;;  %v818_v53 = vshll.u32 %v9245_v43, 16  ;;  %v822_v54 = vshrl.u32 %v9245_v43, 16  ;;  %v797_v55 = vsel %vm9239_vm4, %v792_v47, %v796_v28  ;;  %v807_v56 = vsel %vm9239_vm4, %v802_v48, %v806_v39  ;;  %v513_v22 = vld [vmem:[#allocation2 + $0x58] sm:$0x3]  ;;  %v515_v33 = vld [vmem:[#allocation2 + $0x68] sm:$0xff]  ;;  %vm9610_vm7 = vmor %vm1297_vm5, %vm1298_vm6 }
  0x4e   : > { %v828_v57 = vshll.u32 %v9247_v44, 16  ;;  %v833_v58 = vshrl.u32 %v9249_v49, 16  ;;  %1168 = vrot.lane.b32.xlu0 %v797_v55, %s8878_s20  ;;  %v811_v60 = vrot.slane %v809_v51, 4  ;;  %v814_v61 = vrot.slane %v812_v52, 5  ;;  %v400_v28 = vld [vmem:[%s9186_s19 + $0x98] sm:$0xff]  ;;  %v402_v40 = vld [vmem:[%s9186_s19 + $0xa8] sm:$0xff] }
  0x4f   : > { %v820_v62 = vrot.slane %v818_v53, 5  ;;  %v824_v63 = vrot.slane %v822_v54, 4  ;;  %v836_v5 = vshll.u32 %v9249_v49, 16  ;;  %v842_v6 = vshll.u32 %v9251_v50, 16  ;;  %v516_v34 = vld [vmem:[#allocation2 + $0x70] sm:$0x3] }
  0x50   : > { %v830_v3 = vrot.slane %v828_v57, 5  ;;  %v835_v4 = vrot.slane %v833_v58, 4  ;;  %v815_v9 = vor.u32 %v814_v61, %v811_v60  ;;  %v9266_v11 = vpack.c.bf16 %v510_v59, %v510_v59  ;;  %489 = vst.msk [vmem:[#allocation2 + $0xf9] sm:$0xff] %vm413_vm0, %v400_v28  ;;  %490 = vst.msk [vmem:[#allocation2 + $0x109] sm:$0xff] %vm413_vm0, %v401_v35  ;;  %v403_v45 = vld [vmem:[%s9186_s19 + $0xb0] sm:$0xff]  ;;  %v404_v52 = vld [vmem:[%s9186_s19 + $0xb8] sm:$0xff] }
  0x51   : > { %v825_v10 = vor.u32 %v824_v63, %v820_v62  ;;  %v846_v13 = vshrl.u32 %v9251_v50, 16  ;;  %v838_v14 = vrot.slane %v836_v5, 5  ;;  %v844_v15 = vrot.slane %v842_v6, 5  ;;  %491 = vst.msk [vmem:[#allocation2 + $0x111] sm:$0xff] %vm413_vm0, %v402_v40  ;;  %492 = vst.msk [vmem:[#allocation2 + $0x121] sm:$0xff] %vm413_vm0, %v403_v45  ;;  %v405_v53 = vld [vmem:[%s9186_s19 + $0xc0] sm:$0xff] }
  0x52   : > { %v9269_v16 = vpack.c.bf16 %v511_v1, %v511_v1  ;;  %v9271_v17 = vpack.c.bf16 %v512_v2, %v512_v2  ;;  %v816_v18 = vrot.slane %v815_v9, 4  ;;  %1170 = vrot.lane.b32.xlu0 %v807_v56, %s8878_s20  ;;  %v852_v21 = vshll.u32 %v9266_v11, 16  ;;  %v406_v54 = vld [vmem:[%s9186_s19 + $0xc8] sm:$0xff]  ;;  %v517_v59 = vld [vmem:[#allocation2 + $0x78] sm:$0xff]  ;;  %v518_v60 = vld [vmem:[#allocation2 + $0x80] sm:$0xff]  ;;  %493 = vst.msk [vmem:[#allocation2 + $0x129] sm:$0xff] %vm413_vm0, %v404_v52 }
  0x53   : > { %v826_v19 = vrot.slane %v825_v10, 4  ;;  %v848_v20 = vrot.slane %v846_v13, 4  ;;  %v839_v23 = vor.u32 %v838_v14, %v835_v4  ;;  %v9294_v47 = vpack.c.bf16 %v513_v22, %v513_v22  ;;  %494 = vst.msk [vmem:[#allocation2 + $0x139] sm:$0xff] %vm413_vm0, %v405_v53  ;;  %495 = vst.msk [vmem:[#allocation2 + $0x141] sm:$0xff] %vm413_vm0, %v406_v54  ;;  %v407_v61 = vld [vmem:[%s9186_s19 + $0xd0] sm:$0xff]  ;;  %v409_v63 = vld [vmem:[%s9186_s19 + $0xe0] sm:$0xff] }
  0x54   : > { %v857_v24 = vshrl.u32 %v9269_v16, 16  ;;  %v860_v25 = vshll.u32 %v9269_v16, 16  ;;  %v866_v26 = vshll.u32 %v9271_v17, 16  ;;  %v9281_v29 = vsel %vm9239_vm4, %v816_v18, %v820_v62  ;;  %v408_v62 = vld [vmem:[%s9186_s19 + $0xd8] sm:$0xff]  ;;  %v519_v5 = vld [vmem:[#allocation2 + $0x88] sm:$0x3] }
  0x55   : > { %14300 = vst [vmem:[#allocation9_spill] sm:$0xff] %v9281_v29  ;;  %v9285_v30 = vsel %vm9239_vm4, %v826_v19, %v830_v3  ;;  %v849_v31 = vor.u32 %v848_v20, %v844_v15  ;;  %v854_v32 = vrot.slane %v852_v21, 5  ;;  %1172 = vrot.lane.b32.xlu1 %v9281_v29, %s8878_s20  ;;  %v840_v36 = vrot.slane %v839_v23, 4  ;;  %496 = vst.msk [vmem:[#allocation2 + $0x151] sm:$0xff] %vm413_vm0, %v407_v61  ;;  %v410_v6 = vld [vmem:[%s9186_s19 + $0xe8] sm:$0xff]  ;;  %v520_v21 = vld [vmem:[#allocation2 + $0x90] sm:$0xff] }
  0x56   : > { %14301 = vst [vmem:[#allocation10_spill] sm:$0xff] %v9285_v30  ;;  %v859_v37 = vrot.slane %v857_v24, 4  ;;  %v862_v38 = vrot.slane %v860_v25, 5  ;;  %v868_v39 = vrot.slane %v866_v26, 5  ;;  %v870_v48 = vshrl.u32 %v9271_v17, 16  ;;  %497 = vst.msk [vmem:[#allocation2 + $0x159] sm:$0xff] %vm413_vm0, %v408_v62 }
  0x57   : > { %v850_v46 = vrot.slane %v849_v31, 4  ;;  %v9297_v51 = vpack.c.bf16 %v514_v27, %v514_v27  ;;  %v9306_v55 = vsel %vm9239_vm4, %v840_v36, %v844_v15  ;;  %v9308_v57 = vpack.c.bf16 %v515_v33, %v515_v33  ;;  %498 = vst.msk [vmem:[#allocation2 + $0x169] sm:$0xff] %vm413_vm0, %v409_v63  ;;  %499 = vst.msk [vmem:[#allocation2 + $0x171] sm:$0xff] %vm413_vm0, %v410_v6  ;;  %v521_v35 = vld [vmem:[#allocation2 + $0x98] sm:$0xff]  ;;  %v523_v61 = vld [vmem:[#allocation2 + $0xa8] sm:$0xff] }
  0x58   : > { %14302 = vst [vmem:[#allocation11_spill] sm:$0xff] %v9306_v55  ;;  %v863_v56 = vor.u32 %v862_v38, %v859_v37  ;;  %v9310_v58 = vpack.c.bf16 %v516_v34, %v516_v34  ;;  %1176 = vrot.lane.b32.xlu0 %v9306_v55, %s8878_s20  ;;  %v872_v2 = vrot.slane %v870_v48, 4  ;;  %v876_v3 = vshll.u32 %v9294_v47, 16  ;;  %685 = vst.msk [vmem:[#allocation3] sm:$0xf] %vm684_vm8, %v9195_v7 }
  0x59   : > { %v9322_v1 = vsel %vm9239_vm4, %v850_v46, %v854_v32  ;;  %v881_v4 = vshrl.u32 %v9297_v51, 16  ;;  %1174 = vrot.lane.b32.xlu1 %v9285_v30, %s8878_s20  ;;  %v884_v10 = vshll.u32 %v9297_v51, 16  ;;  %v890_v13 = vshll.u32 %v9308_v57, 16  ;;  %686 = vst.msk [vmem:[#allocation3 + $0x4] sm:$0xf] %vm684_vm8, %v9197_v8 }
  0x5a   : > { %14303 = vst [vmem:[#allocation12_spill] sm:$0xff] %v9322_v1  ;;  %v864_v9 = vrot.slane %v863_v56, 4  ;;  %v894_v14 = vshrl.u32 %v9308_v57, 16  ;;  %v873_v15 = vor.u32 %v872_v2, %v868_v39  ;;  %v878_v18 = vrot.slane %v876_v3, 5  ;;  %687 = vst.msk [vmem:[#allocation3 + $0x8] sm:$0xf] %vm684_vm8, %v9243_v42 }
  0x5b   : > { %v883_v19 = vrot.slane %v881_v4, 4  ;;  %v900_v20 = vshll.u32 %v9310_v58, 16  ;;  %v886_v23 = vrot.slane %v884_v10, 5  ;;  %v892_v24 = vrot.slane %v890_v13, 5  ;;  %v524_v10 = vld [vmem:[#allocation2 + $0xb0] sm:$0xff] }
  0x5c   : > { %v9339_v22 = vsel %vm9239_vm4, %v864_v9, %v868_v39  ;;  %v896_v25 = vrot.slane %v894_v14, 4  ;;  %v874_v26 = vrot.slane %v873_v15, 4  ;;  %v9343_v28 = vpack.c.bf16 %v517_v59, %v517_v59  ;;  %688 = vst.msk [vmem:[#allocation3 + $0xc] sm:$0xf] %vm684_vm8, %v9245_v43  ;;  %689 = vst.msk [vmem:[#allocation3 + $0x10] sm:$0xf] %vm684_vm8, %v9249_v49 }
  0x5d   : > { %14304 = vst [vmem:[#allocation13_spill] sm:$0xff] %v9339_v22  ;;  %1180 = vrot.lane.b32.xlu0 %v9339_v22, %s8878_s20  ;;  %v902_v27 = vrot.slane %v900_v20, 5  ;;  %v9345_v31 = vpack.c.bf16 %v518_v60, %v518_v60  ;;  %1178 = vrot.lane.b32.xlu1 %v9322_v1, %s8878_s20  ;;  %v887_v32 = vor.u32 %v886_v23, %v883_v19  ;;  %v522_v60 = vld [vmem:[#allocation2 + $0xa0] sm:$0x3]  ;;  %v525_v19 = vld [vmem:[#allocation2 + $0xb8] sm:$0x3] }
  0x5e   : > { %v897_v33 = vor.u32 %v896_v25, %v892_v24  ;;  %v9349_v34 = vpack.c.bf16 %v519_v5, %v519_v5  ;;  %v9351_v36 = vpack.c.bf16 %v520_v21, %v520_v21  ;;  %v9355_v37 = vsel %vm9239_vm4, %v874_v26, %v878_v18  ;;  %v526_v25 = vld [vmem:[#allocation2 + $0xc0] sm:$0xff]  ;;  %v545_v55 = vld [vmem:[#allocation2 + $0x158] sm:$0xff]  ;;  %690 = vst.msk [vmem:[#allocation3 + $0x14] sm:$0xf] %vm684_vm8, %v9251_v50 }
  0x5f   : > { %14305 = vst [vmem:[#allocation14_spill] sm:$0xff] %v9355_v37  ;;  %v905_v38 = vshrl.u32 %v9343_v28, 16  ;;  %v908_v39 = vshll.u32 %v9343_v28, 16  ;;  %v914_v40 = vshll.u32 %v9345_v31, 16  ;;  %v888_v45 = vrot.slane %v887_v32, 4 }
  0x60   : > { %v898_v46 = vrot.slane %v897_v33, 4  ;;  %v918_v48 = vshrl.u32 %v9345_v31, 16  ;;  %v924_v52 = vshll.u32 %v9349_v34, 16  ;;  %v9362_v59 = vpack.c.bf16 %v521_v35, %v521_v35  ;;  %v527_v35 = vld [vmem:[#allocation2 + $0xc8] sm:$0xff]  ;;  %691 = vst.msk [vmem:[#allocation3 + $0x18] sm:$0xf] %vm684_vm8, %v9269_v16 }
  0x61   : > { %v907_v53 = vrot.slane %v905_v38, 4  ;;  %v910_v54 = vrot.slane %v908_v39, 5  ;;  %v916_v56 = vrot.slane %v914_v40, 5  ;;  %1182 = vrot.lane.b32.xlu1 %v9355_v37, %s8878_s20  ;;  %v9368_v62 = vsel %vm9239_vm4, %v888_v45, %v892_v24  ;;  %692 = vst.msk [vmem:[#allocation3 + $0x1c] sm:$0xf] %vm684_vm8, %v9271_v17 }
  0x62   : > { %14306 = vst [vmem:[#allocation15_spill] sm:$0xff] %v9368_v62  ;;  %v9372_v63 = vsel %vm9239_vm4, %v898_v46, %v902_v27  ;;  %v920_v2 = vrot.slane %v918_v48, 4  ;;  %v926_v3 = vrot.slane %v924_v52, 5  ;;  %1184 = vrot.lane.b32.xlu0 %v9368_v62, %s8878_s20  ;;  %v929_v5 = vshrl.u32 %v9351_v36, 16  ;;  %693 = vst.msk [vmem:[#allocation3 + $0x20] sm:$0xf] %vm684_vm8, %v9297_v51 }
  0x63   : > { %14307 = vst [vmem:[#allocation16_spill] sm:$0xff] %v9372_v63  ;;  %v911_v4 = vor.u32 %v910_v54, %v907_v53  ;;  %v932_v6 = vshll.u32 %v9351_v36, 16  ;;  %v938_v9 = vshll.u32 %v9362_v59, 16  ;;  %v9379_v14 = vpack.c.bf16 %v522_v60, %v522_v60  ;;  %v528_v54 = vld [vmem:[#allocation2 + $0xd0] sm:$0x3] }
  0x64   : > { %v921_v13 = vor.u32 %v920_v2, %v916_v56  ;;  %v942_v15 = vshrl.u32 %v9362_v59, 16  ;;  %v9382_v18 = vpack.c.bf16 %v523_v61, %v523_v61  ;;  %v931_v21 = vrot.slane %v929_v5, 4  ;;  %694 = vst.msk [vmem:[#allocation3 + $0x24] sm:$0xf] %vm684_vm8, %v9308_v57  ;;  %695 = vst.msk [vmem:[#allocation3 + $0x28] sm:$0xf] %vm684_vm8, %v9343_v28 }
  0x65   : > { %v912_v20 = vrot.slane %v911_v4, 4  ;;  %v934_v23 = vrot.slane %v932_v6, 5  ;;  %v940_v24 = vrot.slane %v938_v9, 5  ;;  %1186 = vrot.lane.b32.xlu1 %v9372_v63, %s8878_s20  ;;  %v948_v32 = vshll.u32 %v9379_v14, 16  ;;  %696 = vst.msk [vmem:[#allocation3 + $0x2c] sm:$0xf] %vm684_vm8, %v9345_v31 }
  0x66   : > { %v922_v26 = vrot.slane %v921_v13, 4  ;;  %v944_v27 = vrot.slane %v942_v15, 4  ;;  %v9387_v33 = vpack.c.bf16 %v524_v10, %v524_v10  ;;  %v953_v40 = vshrl.u32 %v9382_v18, 16  ;;  %697 = vst.msk [vmem:[#allocation3 + $0x30] sm:$0xf] %vm684_vm8, %v9351_v36 }
  0x67   : > { %v9391_v38 = vsel %vm9239_vm4, %v912_v20, %v916_v56  ;;  %v935_v39 = vor.u32 %v934_v23, %v931_v21  ;;  %v956_v45 = vshll.u32 %v9382_v18, 16  ;;  %v950_v52 = vrot.slane %v948_v32, 5  ;;  %698 = vst.msk [vmem:[#allocation3 + $0x34] sm:$0xf] %vm684_vm8, %v9362_v59  ;;  %699 = vst.msk [vmem:[#allocation3 + $0x38] sm:$0xf] %vm684_vm8, %v9382_v18 }
  0x68   : > { %14308 = vst [vmem:[#allocation17_spill] sm:$0xff] %v9391_v38  ;;  %1188 = vrot.lane.b32.xlu0 %v9391_v38, %s8878_s20  ;;  %v9399_v46 = vsel %vm9239_vm4, %v922_v26, %v926_v3  ;;  %v945_v48 = vor.u32 %v944_v27, %v940_v24  ;;  %v962_v53 = vshll.u32 %v9387_v33, 16  ;;  %v955_v56 = vrot.slane %v953_v40, 4  ;;  %700 = vst.msk [vmem:[#allocation3 + $0x3c] sm:$0xf] %vm684_vm8, %v9387_v33 }
  0x69   : > { %14309 = vst [vmem:[#allocation18_spill] sm:$0xff] %v9399_v46  ;;  %v936_v60 = vrot.slane %v935_v39, 4  ;;  %v958_v61 = vrot.slane %v956_v45, 5  ;;  %v9402_v2 = vpack.c.bf16 %v525_v19, %v525_v19  ;;  %1190 = vrot.lane.b32.xlu1 %v9399_v46, %s8878_s20  ;;  %v966_v6 = vshrl.u32 %v9387_v33, 16 }
  0x6a   : > { %v946_v4 = vrot.slane %v945_v48, 4  ;;  %v964_v5 = vrot.slane %v962_v53, 5  ;;  %v9407_v9 = vpack.c.bf16 %v526_v25, %v526_v25  ;;  %v9414_v15 = vpack.c.bf16 %v527_v35, %v527_v35  ;;  %v529_v25 = vld [vmem:[#allocation2 + $0xd8] sm:$0xff]  ;;  %v530_v35 = vld [vmem:[#allocation2 + $0xe0] sm:$0xff] }
  0x6b   : > { %v9411_v3 = vsel %vm9239_vm4, %v936_v60, %v940_v24  ;;  %v959_v10 = vor.u32 %v958_v61, %v955_v56  ;;  %v972_v13 = vshll.u32 %v9402_v2, 16  ;;  %v968_v20 = vrot.slane %v966_v6, 4 }
  0x6c   : > { %14310 = vst [vmem:[#allocation19_spill] sm:$0xff] %v9411_v3  ;;  %1192 = vrot.lane.b32.xlu0 %v9411_v3, %s8878_s20  ;;  %v9420_v19 = vsel %vm9239_vm4, %v946_v4, %v950_v52  ;;  %v977_v21 = vshrl.u32 %v9407_v9, 16  ;;  %v980_v23 = vshll.u32 %v9407_v9, 16  ;;  %v986_v27 = vshll.u32 %v9414_v15, 16  ;;  %v531_v52 = vld [vmem:[#allocation2 + $0xe8] sm:$0x3] }
  0x6d   : > { %14311 = vst [vmem:[#allocation20_spill] sm:$0xff] %v9420_v19  ;;  %v960_v24 = vrot.slane %v959_v10, 4  ;;  %v974_v26 = vrot.slane %v972_v13, 5  ;;  %v9425_v32 = vpack.c.bf16 %v528_v54, %v528_v54  ;;  %1194 = vrot.lane.b32.xlu1 %v9420_v19, %s8878_s20  ;;  %v969_v39 = vor.u32 %v968_v20, %v964_v5  ;;  %701 = vst.msk [vmem:[#allocation3 + $0x40] sm:$0xf] %vm684_vm8, %v9407_v9 }
  0x6e   : > { %v979_v40 = vrot.slane %v977_v21, 4  ;;  %v982_v45 = vrot.slane %v980_v23, 5  ;;  %v990_v48 = vshrl.u32 %v9414_v15, 16  ;;  %v988_v60 = vrot.slane %v986_v27, 5  ;;  %v532_v23 = vld [vmem:[#allocation2 + $0xf0] sm:$0xff] }
  0x6f   : > { %v9432_v53 = vsel %vm9239_vm4, %v960_v24, %v964_v5  ;;  %v996_v56 = vshll.u32 %v9425_v32, 16  ;;  %v9435_v61 = vpack.c.bf16 %v529_v25, %v529_v25  ;;  %v970_v54 = vrot.slane %v969_v39, 4  ;;  %702 = vst.msk [vmem:[#allocation3 + $0x44] sm:$0xf] %vm684_vm8, %v9414_v15 }
  0x70   : > { %14312 = vst [vmem:[#allocation21_spill] sm:$0xff] %v9432_v53  ;;  %1196 = vrot.lane.b32.xlu0 %v9432_v53, %s8878_s20  ;;  %v983_v4 = vor.u32 %v982_v45, %v979_v40  ;;  %v992_v6 = vrot.slane %v990_v48, 4  ;;  %v9439_v10 = vpack.c.bf16 %v530_v35, %v530_v35  ;;  %v9443_v5 = vpack.c.bf16 %v531_v52, %v531_v52  ;;  %v533_v40 = vld [vmem:[#allocation2 + $0xf8] sm:$0xff]  ;;  %v535_v53 = vld [vmem:[#allocation2 + $0x108] sm:$0xff] }
  0x71   : > { %v998_v13 = vrot.slane %v996_v56, 5  ;;  %v1001_v20 = vshrl.u32 %v9435_v61, 16  ;;  %v1004_v21 = vshll.u32 %v9435_v61, 16  ;;  %v9447_v25 = vsel %vm9239_vm4, %v970_v54, %v974_v26  ;;  %v534_v56 = vld [vmem:[#allocation2 + $0x100] sm:$0x3] }
  0x72   : > { %14313 = vst [vmem:[#allocation22_spill] sm:$0xff] %v9447_v25  ;;  %v984_v24 = vrot.slane %v983_v4, 4  ;;  %v993_v27 = vor.u32 %v992_v6, %v988_v60  ;;  %v1010_v39 = vshll.u32 %v9439_v10, 16  ;;  %1198 = vrot.lane.b32.xlu1 %v9447_v25, %s8878_s20  ;;  %v1014_v48 = vshrl.u32 %v9439_v10, 16  ;;  %703 = vst.msk [vmem:[#allocation3 + $0x48] sm:$0xf] %vm684_vm8, %v9435_v61 }
  0x73   : > { %v1003_v35 = vrot.slane %v1001_v20, 4  ;;  %v1006_v45 = vrot.slane %v1004_v21, 5  ;;  %v1020_v52 = vshll.u32 %v9443_v5, 16  ;;  %v9458_v4 = vpack.c.bf16 %v532_v23, %v532_v23  ;;  %704 = vst.msk [vmem:[#allocation3 + $0x4c] sm:$0xf] %vm684_vm8, %v9439_v10 }
  0x74   : > { %v9456_v0 = vsel %vm9239_vm4, %v984_v24, %v988_v60  ;;  %v994_v26 = vrot.slane %v993_v27, 4  ;;  %v1012_v54 = vrot.slane %v1010_v39, 5  ;;  %v1016_v25 = vrot.slane %v1014_v48, 4 }
  0x75   : > { %14314 = vst [vmem:[#allocation23_spill] sm:$0xff] %v9456_v0  ;;  %1200 = vrot.lane.b32.xlu0 %v9456_v0, %s8878_s20  ;;  %v1007_v6 = vor.u32 %v1006_v45, %v1003_v35  ;;  %v1022_v20 = vrot.slane %v1020_v52, 5  ;;  %v9462_v21 = vpack.c.bf16 %v533_v40, %v533_v40  ;;  %v1025_v60 = vshrl.u32 %v9458_v4, 16  ;;  %v536_v45 = vld [vmem:[#allocation2 + $0x110] sm:$0xff]  ;;  %v537_v0 = vld [vmem:[#allocation2 + $0x118] sm:$0x3] }
  0x76   : > { %v9466_v19 = vsel %vm9239_vm4, %v994_v26, %v998_v13  ;;  %v1028_v24 = vshll.u32 %v9458_v4, 16  ;;  %v9470_v27 = vpack.c.bf16 %v534_v56, %v534_v56  ;;  %v1017_v39 = vor.u32 %v1016_v25, %v1012_v54  ;;  %705 = vst.msk [vmem:[#allocation3 + $0x50] sm:$0xf] %vm684_vm8, %v9458_v4 }
  0x77   : > { %14315 = vst [vmem:[#allocation24_spill] sm:$0xff] %v9466_v19  ;;  %1202 = vrot.lane.b32.xlu1 %v9466_v19, %s8878_s20  ;;  %v1008_v23 = vrot.slane %v1007_v6, 4  ;;  %v1034_v35 = vshll.u32 %v9462_v21, 16  ;;  %v1038_v40 = vshrl.u32 %v9462_v21, 16  ;;  %v1027_v48 = vrot.slane %v1025_v60, 4 }
  0x78   : > { %v1030_v52 = vrot.slane %v1028_v24, 5  ;;  %v1044_v13 = vshll.u32 %v9470_v27, 16  ;;  %v9477_v26 = vpack.c.bf16 %v535_v53, %v535_v53  ;;  %v1018_v3 = vrot.slane %v1017_v39, 4  ;;  %v538_v24 = vld [vmem:[#allocation2 + $0x120] sm:$0xff]  ;;  %v539_v39 = vld [vmem:[#allocation2 + $0x128] sm:$0xff] }
  0x79   : > { %v9481_v56 = vsel %vm9239_vm4, %v1008_v23, %v1012_v54  ;;  %v1036_v19 = vrot.slane %v1034_v35, 5  ;;  %v1040_v6 = vrot.slane %v1038_v40, 4  ;;  %v9485_v38 = vpack.c.bf16 %v536_v45, %v536_v45  ;;  %706 = vst.msk [vmem:[#allocation3 + $0x54] sm:$0xf] %vm684_vm8, %v9462_v21 }
  0x7a   : > { %14316 = vst [vmem:[#allocation25_spill] sm:$0xff] %v9481_v56  ;;  %1204 = vrot.lane.b32.xlu0 %v9481_v56, %s8878_s20  ;;  %v1031_v25 = vor.u32 %v1030_v52, %v1027_v48  ;;  %v1046_v46 = vrot.slane %v1044_v13, 5  ;;  %v1049_v60 = vshrl.u32 %v9477_v26, 16  ;;  %v9490_v53 = vsel %vm9239_vm4, %v1018_v3, %v1022_v20  ;;  %707 = vst.msk [vmem:[#allocation3 + $0x58] sm:$0xf] %vm684_vm8, %v9477_v26 }
  0x7b   : > { %14317 = vst [vmem:[#allocation26_spill] sm:$0xff] %v9490_v53  ;;  %v1041_v63 = vor.u32 %v1040_v6, %v1036_v19  ;;  %v1052_v54 = vshll.u32 %v9477_v26, 16  ;;  %v9493_v23 = vpack.c.bf16 %v537_v0, %v537_v0  ;;  %1206 = vrot.lane.b32.xlu1 %v9490_v53, %s8878_s20  ;;  %v1058_v45 = vshll.u32 %v9485_v38, 16  ;;  %v540_v6 = vld [vmem:[#allocation2 + $0x130] sm:$0x3] }
  0x7c   : > { %v1032_v35 = vrot.slane %v1031_v25, 4  ;;  %v1051_v40 = vrot.slane %v1049_v60, 4  ;;  %v1062_v48 = vshrl.u32 %v9485_v38, 16  ;;  %v9500_v20 = vpack.c.bf16 %v538_v24, %v538_v24  ;;  %v541_v25 = vld [vmem:[#allocation2 + $0x138] sm:$0xff]  ;;  %708 = vst.msk [vmem:[#allocation3 + $0x5c] sm:$0xf] %vm684_vm8, %v9485_v38 }
  0x7d   : > { %14318 = vst [vmem:[#allocation27_spill] sm:$0xff] %v9493_v23  ;;  %v1042_v52 = vrot.slane %v1041_v63, 4  ;;  %v1054_v13 = vrot.slane %v1052_v54, 5  ;;  %v1068_v3 = vshll.u32 %v9493_v23, 16  ;;  %v1060_v56 = vrot.slane %v1058_v45, 5 }
  0x7e   : > { %v9504_v0 = vsel %vm9239_vm4, %v1032_v35, %v1036_v19  ;;  %v1064_v62 = vrot.slane %v1062_v48, 4  ;;  %v9506_v53 = vpack.c.bf16 %v539_v39, %v539_v39  ;;  %v1073_v54 = vshrl.u32 %v9500_v20, 16  ;;  %v542_v48 = vld [vmem:[#allocation2 + $0x140] sm:$0xff]  ;;  %709 = vst.msk [vmem:[#allocation3 + $0x60] sm:$0xf] %vm684_vm8, %v9500_v20 }
  0x7f   : > { %14319 = vst [vmem:[#allocation28_spill] sm:$0xff] %v9504_v0  ;;  %1208 = vrot.lane.b32.xlu0 %v9504_v0, %s8878_s20  ;;  %v9512_v63 = vsel %vm9239_vm4, %v1042_v52, %v1046_v46  ;;  %v1055_v60 = vor.u32 %v1054_v13, %v1051_v40  ;;  %v1070_v24 = vrot.slane %v1068_v3, 5  ;;  %v1076_v35 = vshll.u32 %v9500_v20, 16 }
  0x80   : > { %14320 = vst [vmem:[#allocation29_spill] sm:$0xff] %v9512_v63  ;;  %1210 = vrot.lane.b32.xlu1 %v9512_v63, %s8878_s20  ;;  %v1065_v19 = vor.u32 %v1064_v62, %v1060_v56  ;;  %v1082_v39 = vshll.u32 %v9506_v53, 16  ;;  %v9519_v45 = vpack.c.bf16 %v540_v6, %v540_v6  ;;  %v1075_v37 = vrot.slane %v1073_v54, 4  ;;  %v543_v63 = vld [vmem:[#allocation2 + $0x148] sm:$0x3]  ;;  %v544_v54 = vld [vmem:[#allocation2 + $0x150] sm:$0xff] }
  0x81   : > { %v1056_v0 = vrot.slane %v1055_v60, 4  ;;  %v1086_v46 = vshrl.u32 %v9506_v53, 16  ;;  %v9522_v52 = vpack.c.bf16 %v541_v25, %v541_v25  ;;  %v1078_v13 = vrot.slane %v1076_v35, 5  ;;  %710 = vst.msk [vmem:[#allocation3 + $0x64] sm:$0xf] %vm684_vm8, %v9506_v53 }
  0x82   : > { %14321 = vst [vmem:[#allocation30_spill] sm:$0xff] %v9519_v45  ;;  %v1066_v40 = vrot.slane %v1065_v19, 4  ;;  %v1084_v3 = vrot.slane %v1082_v39, 5  ;;  %v1092_v22 = vshll.u32 %v9519_v45, 16  ;;  %v9529_v6 = vpack.c.bf16 %v542_v48, %v542_v48  ;;  %v546_v45 = vld [vmem:[#allocation2 + $0x160] sm:$0x3] }
  0x83   : > { %14322 = vst [vmem:[#allocation31_spill] sm:$0xff] %v9522_v52  ;;  %v9527_v62 = vsel %vm9239_vm4, %v1056_v0, %v1060_v56  ;;  %v1088_v1 = vrot.slane %v1086_v46, 4  ;;  %v1097_v60 = vshrl.u32 %v9522_v52, 16  ;;  %v1079_v19 = vor.u32 %v1078_v13, %v1075_v37  ;;  %711 = vst.msk [vmem:[#allocation3 + $0x68] sm:$0xf] %vm684_vm8, %v9522_v52 }
  0x84   : > { %14323 = vst [vmem:[#allocation32_spill] sm:$0xff] %v9527_v62  ;;  %14324 = vst [vmem:[#allocation33_spill] sm:$0xff] %v9529_v6  ;;  %1212 = vrot.lane.b32.xlu0 %v9527_v62, %s8878_s20  ;;  %v9536_v25 = vsel %vm9239_vm4, %v1066_v40, %v1070_v24  ;;  %v1094_v35 = vrot.slane %v1092_v22, 5  ;;  %v1100_v39 = vshll.u32 %v9522_v52, 16  ;;  %v1106_v48 = vshll.u32 %v9529_v6, 16 }
  0x85   : > { %14325 = vst [vmem:[#allocation34_spill] sm:$0xff] %v9536_v25  ;;  %1214 = vrot.lane.b32.xlu1 %v9536_v25, %s8878_s20  ;;  %v1089_v56 = vor.u32 %v1088_v1, %v1084_v3  ;;  %v1099_v0 = vrot.slane %v1097_v60, 4  ;;  %v9542_v46 = vpack.c.bf16 %v543_v63, %v543_v63  ;;  %v1080_v30 = vrot.slane %v1079_v19, 4  ;;  %v548_v25 = vld [vmem:[#allocation2 + $0x170] sm:$0xff]  ;;  %712 = vst.msk [vmem:[#allocation3 + $0x6c] sm:$0xf] %vm684_vm8, %v9529_v6 }
  0x86   : > { %v1102_v62 = vrot.slane %v1100_v39, 5  ;;  %v1110_v29 = vshrl.u32 %v9529_v6, 16  ;;  %v9545_v24 = vpack.c.bf16 %v544_v54, %v544_v54  ;;  %v1108_v22 = vrot.slane %v1106_v48, 5  ;;  %v547_v39 = vld [vmem:[#allocation2 + $0x168] sm:$0xff] }
  0x87   : > { %14326 = vst [vmem:[#allocation35_spill] sm:$0xff] %v9542_v46  ;;  %v1090_v37 = vrot.slane %v1089_v56, 4  ;;  %v1116_v40 = vshll.u32 %v9542_v46, 16  ;;  %v9548_v13 = vpack.c.bf16 %v545_v55, %v545_v55  ;;  %v9552_v1 = vsel %vm9239_vm4, %v1080_v30, %v1084_v3 }
  0x88   : > { %14327 = vst [vmem:[#allocation36_spill] sm:$0xff] %v9545_v24  ;;  %14329 = vst [vmem:[#allocation38_spill] sm:$0xff] %v9552_v1  ;;  %v1103_v60 = vor.u32 %v1102_v62, %v1099_v0  ;;  %v1112_v63 = vrot.slane %v1110_v29, 4  ;;  %v1121_v19 = vshrl.u32 %v9545_v24, 16  ;;  %1216 = vrot.lane.b32.xlu0 %v9552_v1, %s8878_s20  ;;  %v1124_v55 = vshll.u32 %v9545_v24, 16 }
  0x89   : > { %14328 = vst [vmem:[#allocation37_spill] sm:$0xff] %v9548_v13  ;;  %v9559_v54 = vsel %vm9239_vm4, %v1090_v37, %v1094_v35  ;;  %v1118_v56 = vrot.slane %v1116_v40, 5  ;;  %v1130_v48 = vshll.u32 %v9548_v13, 16  ;;  %v9565_v62 = vpack.c.bf16 %v546_v45, %v546_v45  ;;  %v549_v37 = vld [vmem:[#allocation2 + $0x178] sm:$0x3] }
  0x8a   : > { %14330 = vst [vmem:[#allocation39_spill] sm:$0xff] %v9559_v54  ;;  %1218 = vrot.lane.b32.xlu1 %v9559_v54, %s8878_s20  ;;  %v1104_v29 = vrot.slane %v1103_v60, 4  ;;  %v1113_v30 = vor.u32 %v1112_v63, %v1108_v22  ;;  %v1123_v3 = vrot.slane %v1121_v19, 4  ;;  %v1126_v0 = vrot.slane %v1124_v55, 5  ;;  %v412_v54 = vld [vmem:[%s9186_s19 + $0xf8] sm:$0xff] }
  0x8b   : > { %14331 = vst [vmem:[#allocation40_spill] sm:$0xff] %v9565_v62  ;;  %v1132_v1 = vrot.slane %v1130_v48, 5  ;;  %v1134_v46 = vshrl.u32 %v9548_v13, 16  ;;  %v9568_v35 = vpack.c.bf16 %v547_v39, %v547_v39  ;;  %v1140_v60 = vshll.u32 %v9565_v62, 16  ;;  %501 = vst.msk [vmem:[#allocation2 + $0x189] sm:$0xff] %vm413_vm0, %v412_v54 }
  0x8c   : > { %v9572_v40 = vsel %vm9239_vm4, %v1104_v29, %v1108_v22  ;;  %v1114_v23 = vrot.slane %v1113_v30, 4  ;;  %v9575_v63 = vpack.c.bf16 %v548_v25, %v548_v25  ;;  %v1127_v45 = vor.u32 %v1126_v0, %v1123_v3  ;;  %v411_v25 = vld [vmem:[%s9186_s19 + $0xf0] sm:$0xff]  ;;  %713 = vst.msk [vmem:[#allocation3 + $0x70] sm:$0xf] %vm684_vm8, %v9545_v24  ;;  %714 = vst.msk [vmem:[#allocation3 + $0x74] sm:$0xf] %vm684_vm8, %v9548_v13 }
  0x8d   : > { %14332 = vst [vmem:[#allocation41_spill] sm:$0xff] %v9568_v35  ;;  %14333 = vst [vmem:[#allocation42_spill] sm:$0xff] %v9572_v40  ;;  %1220 = vrot.lane.b32.xlu0 %v9572_v40, %s8878_s20  ;;  %v1136_v19 = vrot.slane %v1134_v46, 4  ;;  %v1145_v55 = vshrl.u32 %v9568_v35, 16  ;;  %v1148_v39 = vshll.u32 %v9568_v35, 16  ;;  %v1142_v22 = vrot.slane %v1140_v60, 5 }
  0x8e   : > { %14334 = vst [vmem:[#allocation43_spill] sm:$0xff] %v9575_v63  ;;  %v9583_v48 = vsel %vm9239_vm4, %v1114_v23, %v1118_v56  ;;  %v1154_v29 = vshll.u32 %v9575_v63, 16  ;;  %v9586_v30 = vpack.c.bf16 %v549_v37, %v549_v37  ;;  %v1128_v3 = vrot.slane %v1127_v45, 4  ;;  %500 = vst.msk [vmem:[#allocation2 + $0x181] sm:$0xff] %vm413_vm0, %v411_v25 }
  0x8f   : > { %14335 = vst [vmem:[#allocation44_spill] sm:$0xff] %v9583_v48  ;;  %1222 = vrot.lane.b32.xlu1 %v9583_v48, %s8878_s20  ;;  %v1137_v46 = vor.u32 %v1136_v19, %v1132_v1  ;;  %v1147_v0 = vrot.slane %v1145_v55, 4  ;;  %v1150_v40 = vrot.slane %v1148_v39, 5  ;;  %v1158_v56 = vshrl.u32 %v9575_v63, 16  ;;  %715 = vst.msk [vmem:[#allocation3 + $0x78] sm:$0xf] %vm684_vm8, %v9568_v35 }
  0x90   : > { %v1156_v23 = vrot.slane %v1154_v29, 5  ;;  %v1164_v60 = vshll.u32 %v9586_v30, 16  ;;  %v9598_v37 = vsel %vm9239_vm4, %v1128_v3, %v1132_v1  ;;  %v1302_v19 = vrot.slane %v9197_v8, 5  ;;  %716 = vst.msk [vmem:[#allocation3 + $0x7c] sm:$0xf] %vm684_vm8, %v9575_v63 }
  0x91   : > { %v1138_v62 = vrot.slane %v1137_v46, 4  ;;  %v1151_v48 = vor.u32 %v1150_v40, %v1147_v0  ;;  %1224 = vrot.lane.b32.xlu0 %v9598_v37, %s8878_s20  ;;  %v1160_v45 = vrot.slane %v1158_v56, 4  ;;  %v8068_v39 = vrot.slane %v9195_v7, 9 }
  0x92   : > { %v1166_v29 = vrot.slane %v1164_v60, 5  ;;  %v1309_v3 = vrot.slane %v9245_v43, 5  ;;  %v8069_v0 = vrot.slane %v9243_v42, 9  ;;  %v1312_v60 = vrot.slane %v9247_v44, 5 }
  0x93   : > { %v9605_v54 = vsel %vm9239_vm4, %v1138_v62, %v1142_v22  ;;  %v1152_v55 = vrot.slane %v1151_v48, 4  ;;  %v1161_v1 = vor.u32 %v1160_v45, %v1156_v23  ;;  %v1304_v48 = vrot.slane %v1302_v19, 4 }
  0x94   : > { %1226 = vrot.lane.b32.xlu1 %v9605_v54, %s8878_s20  ;;  %v1305_v22 = vrot.slane %v9202_v12, 5  ;;  %v1303_v46 = vsel %vm9610_vm7, %v8068_v39, %v1302_v19  ;;  %v1316_v45 = vrot.slane %v9251_v50, 5  ;;  %v9638_v19 = vsel %vm9610_vm7, %v8069_v0, %v1309_v3 }
  0x95   : > { %v9616_v25 = vsel %vm9239_vm4, %v1152_v55, %v1156_v23  ;;  %v1162_v62 = vrot.slane %v1161_v1, 4  ;;  %v1311_v23 = vrot.slane %v1309_v3, 4  ;;  %v8070_v55 = vrot.slane %v9249_v49, 9 }
  0x96   : > { %1228 = vrot.lane.b32.xlu0 %v9616_v25, %s8878_s20  ;;  %v1306_v12 = vsel %vm9610_vm7, %v1304_v48, %v1305_v22  ;;  %v1318_v1 = vrot.slane %v1316_v45, 4  ;;  %v1319_v44 = vrot.slane %v9266_v11, 5  ;;  %v8071_v48 = vrot.slane %v9269_v16, 9 }
  0x97   : > { %v9627_v56 = vsel %vm9239_vm4, %v1162_v62, %v1166_v29  ;;  %v9646_v39 = vsel %vm9610_vm7, %v1311_v23, %v1312_v60  ;;  %v1323_v29 = vrot.slane %v9271_v17, 5  ;;  %v9652_v62 = vsel %vm9610_vm7, %v8070_v55, %v1316_v45 }
  0x98   : > { %1230 = vrot.lane.b32.xlu1 %v9627_v56, %s8878_s20  ;;  %v9661_v22 = vsel %vm9610_vm7, %v1318_v1, %v1319_v44  ;;  %v1326_v11 = vrot.slane %v9294_v47, 5  ;;  %v1333_v47 = vrot.slane %v9310_v58, 5  ;;  %v1337_v23 = vrot.slane %v9345_v31, 5 }
  0x99   : > { %v1325_v3 = vrot.slane %v1323_v29, 4  ;;  %v9667_v0 = vsel %vm9610_vm7, %v8071_v48, %v1323_v29  ;;  %v8073_v45 = vrot.slane %v9343_v28, 9  ;;  %v1340_v58 = vrot.slane %v9349_v34, 5 }
  0x9a   : > { %1412 = vrot.lane.b32.xlu0 %v1303_v46, %s8879_s21  ;;  %v1330_v46 = vrot.slane %v9308_v57, 5  ;;  %v1339_v1 = vrot.slane %v1337_v23, 4  ;;  %v1344_v44 = vrot.slane %v9362_v59, 5  ;;  %v8074_v48 = vrot.slane %v9351_v36, 9 }
  0x9b   : > { %v9740_v7 = vsel %vm9610_vm7, %v1325_v3, %v1326_v11  ;;  %v9761_v29 = vsel %vm9610_vm7, %v8073_v45, %v1337_v23  ;;  %v1347_v34 = vrot.slane %v9379_v14, 5  ;;  %v1354_v14 = vrot.slane %v9402_v2, 5 }
  0x9c   : > { %1414 = vrot.lane.b32.xlu1 %v1306_v12, %s8879_s21  ;;  %v8072_v12 = vrot.slane %v9297_v51, 9  ;;  %v1332_v8 = vrot.slane %v1330_v46, 4  ;;  %v9770_v3 = vsel %vm9610_vm7, %v1339_v1, %v1340_v58  ;;  %v1346_v11 = vrot.slane %v1344_v44, 4 }
  0x9d   : > { %v1358_v45 = vrot.slane %v9414_v15, 5  ;;  %v8076_v58 = vrot.slane %v9407_v9, 9  ;;  %v1361_v2 = vrot.slane %v9425_v32, 5  ;;  %v1368_v32 = vrot.slane %v9443_v5, 5 }
  0x9e   : > { %1416 = vrot.lane.b32.xlu0 %v9638_v19, %s8879_s21  ;;  %v9746_v60 = vsel %vm9610_vm7, %v8072_v12, %v1330_v46  ;;  %v9755_v55 = vsel %vm9610_vm7, %v1332_v8, %v1333_v47  ;;  %v1351_v46 = vrot.slane %v9387_v33, 5  ;;  %v9776_v12 = vsel %vm9610_vm7, %v8074_v48, %v1344_v44 }
  0x9f   : > { %v8075_v8 = vrot.slane %v9382_v18, 9  ;;  %v9785_v47 = vsel %vm9610_vm7, %v1346_v11, %v1347_v34  ;;  %v1360_v48 = vrot.slane %v1358_v45, 4  ;;  %v1365_v11 = vrot.slane %v9439_v10, 5 }
  0xa0   : > { %1418 = vrot.lane.b32.xlu1 %v9646_v39, %s8879_s21  ;;  %v1353_v23 = vrot.slane %v1351_v46, 4  ;;  %v9806_v34 = vsel %vm9610_vm7, %v8076_v58, %v1358_v45  ;;  %v8078_v58 = vrot.slane %v9458_v4, 9  ;;  %v1375_v5 = vrot.slane %v9470_v27, 5 }
  0xa1   : > { %v9791_v1 = vsel %vm9610_vm7, %v8075_v8, %v1351_v46  ;;  %14339 = vst [vmem:[#allocation46_spill] sm:$0xff] %v9806_v34  ;;  %v8077_v46 = vrot.slane %v9435_v61, 9  ;;  %v9815_v8 = vsel %vm9610_vm7, %v1360_v48, %v1361_v2  ;;  %vm2814_vm5 = vcmask 64512  }
  0xa2   : > { %1420 = vrot.lane.b32.xlu0 %v9652_v62, %s8879_s21  ;;  %v9800_v44 = vsel %vm9610_vm7, %v1353_v23, %v1354_v14  ;;  %14340 = vst [vmem:[#allocation47_spill] sm:$0xff] %v9815_v8  ;;  %v1367_v23 = vrot.slane %v1365_v11, 4  ;;  %v1372_v14 = vrot.slane %v9462_v21, 5  ;;  %vm2817_vm6 = vcmask 58368  }
  0xa3   : > { %14338 = vst [vmem:[#allocation45_spill] sm:$0xff] %v9800_v44  ;;  %v9821_v45 = vsel %vm9610_vm7, %v8077_v46, %v1365_v11  ;;  %v8079_v46 = vrot.slane %v9477_v26, 9 }
  0xa4   : > { %1422 = vrot.lane.b32.xlu1 %v9661_v22, %s8879_s21  ;;  %14341 = vst [vmem:[#allocation48_spill] sm:$0xff] %v9821_v45  ;;  %v9830_v48 = vsel %vm9610_vm7, %v1367_v23, %v1368_v32  ;;  %v1374_v2 = vrot.slane %v1372_v14, 4  ;;  %v9836_v11 = vsel %vm9610_vm7, %v8078_v58, %v1372_v14  ;;  %v14345_v32 = vld [vmem:[#allocation27_spill] sm:$0xff]  ;;  %v1386_v14 = vrot.slane %v9506_v53, 5 }
  0xa5   : > { %14342 = vst [vmem:[#allocation49_spill] sm:$0xff] %v9830_v48  ;;  %14343 = vst [vmem:[#allocation50_spill] sm:$0xff] %v9836_v11 }
  0xa6   : > { %1424 = vrot.lane.b32.xlu0 %v9667_v0, %s8879_s21  ;;  %v9845_v23 = vsel %vm9610_vm7, %v1374_v2, %v1375_v5  ;;  %v1388_v5 = vrot.slane %v1386_v14, 4 }
  0xa7   : > { %14344 = vst [vmem:[#allocation51_spill] sm:$0xff] %v9845_v23 }
  0xa8   : > { %1426 = vrot.lane.b32.xlu1 %v9740_v7, %s8879_s21 }
  0xaa   : > { %1428 = vrot.lane.b32.xlu0 %v9746_v60, %s8879_s21 }
  0xac   : > { %1430 = vrot.lane.b32.xlu1 %v9755_v55, %s8879_s21 }
  0xae   : > { %1432 = vrot.lane.b32.xlu0 %v9761_v29, %s8879_s21 }
  0xb0   : > { %1434 = vrot.lane.b32.xlu1 %v9770_v3, %s8879_s21 }
  0xb2   : > { %1436 = vrot.lane.b32.xlu0 %v9776_v12, %s8879_s21 }
  0xb4   : > { %1438 = vrot.lane.b32.xlu1 %v9785_v47, %s8879_s21 }
  0xb6   : > { %1440 = vrot.lane.b32.xlu0 %v9791_v1, %s8879_s21 }
  0xb8   : > { %1442 = vrot.lane.b32.xlu1 %v9800_v44, %s8879_s21  ;;  %v1393_v44 = vrot.slane %v9529_v6, 5 }
  0xba   : > { %1444 = vrot.lane.b32.xlu0 %v9806_v34, %s8879_s21  ;;  %v1379_v34 = vrot.slane %v9485_v38, 5 }
  0xbc   : > { %1446 = vrot.lane.b32.xlu1 %v9815_v8, %s8879_s21  ;;  %v1381_v27 = vrot.slane %v1379_v34, 4  ;;  %v1382_v8 = vrot.slane %v14345_v32, 5  ;;  %v9852_v58 = vsel %vm9610_vm7, %v8079_v46, %v1379_v34  ;;  %v14348_v32 = vld [vmem:[#allocation30_spill] sm:$0xff]  ;;  %v8081_v46 = vrot.slane %v9522_v52, 9 }
  0xbd   : > { %14346 = vst [vmem:[#allocation27_spill] sm:$0xff] %v9852_v58 }
  0xbe   : > { %1448 = vrot.lane.b32.xlu0 %v9821_v45, %s8879_s21  ;;  %v9861_v2 = vsel %vm9610_vm7, %v1381_v27, %v1382_v8  ;;  %v14351_v27 = vld [vmem:[#allocation35_spill] sm:$0xff] }
  0xbf   : > { %14347 = vst [vmem:[#allocation52_spill] sm:$0xff] %v9861_v2 }
  0xc0   : > { %1450 = vrot.lane.b32.xlu1 %v9830_v48, %s8879_s21  ;;  %v1169_v45 = vpop.permute.xlu0 %1168  ;;  %v8080_v48 = vrot.slane %v9500_v20, 9 }
  0xc1   : > { %1265 = vst.msk [vmem:[#allocation3] sm:$0xf] %vm1264_vm9, %v1169_v45  ;;  %v1389_v45 = vrot.slane %v14348_v32, 5  ;;  %v1396_v32 = vrot.slane %v14351_v27, 5  ;;  %v1407_v27 = vrot.slane %v9575_v63, 5 }
  0xc2   : > { %1452 = vrot.lane.b32.xlu0 %v9836_v11, %s8879_s21  ;;  %v9868_v34 = vsel %vm9610_vm7, %v8080_v48, %v1386_v14  ;;  %v1400_v48 = vrot.slane %v9548_v13, 5  ;;  %v9884_v14 = vsel %vm9610_vm7, %v8081_v46, %v1393_v44 }
  0xc3   : > { %14349 = vst [vmem:[#allocation30_spill] sm:$0xff] %v9868_v34  ;;  %v9878_v8 = vsel %vm9610_vm7, %v1388_v5, %v1389_v45  ;;  %14352 = vst [vmem:[#allocation35_spill] sm:$0xff] %v9884_v14  ;;  %v14354_v45 = vld [vmem:[#allocation40_spill] sm:$0xff] }
  0xc4   : > { %1454 = vrot.lane.b32.xlu1 %v9845_v23, %s8879_s21  ;;  %v1171_v11 = vpop.permute.xlu0 %1170  ;;  %14350 = vst [vmem:[#allocation53_spill] sm:$0xff] %v9878_v8  ;;  %v1403_v46 = vrot.slane %v14354_v45, 5 }
  0xc5   : > { %1266 = vst.msk [vmem:[#allocation3 + $0x4] sm:$0xf] %vm1264_vm9, %v1171_v11  ;;  %v1395_v11 = vrot.slane %v1393_v44, 4  ;;  %v1402_v44 = vrot.slane %v1400_v48, 4 }
  0xc6   : > { %1456 = vrot.lane.b32.xlu0 %v9852_v58, %s8879_s21 }
  0xc7   : > { %v1173_v23 = vpop.permute.xlu1 %1172  ;;  %v9895_v5 = vsel %vm9610_vm7, %v1395_v11, %v1396_v32  ;;  %v9912_v11 = vsel %vm9610_vm7, %v1402_v44, %v1403_v46  ;;  %v1410_v32 = vrot.slane %v9586_v30, 5 }
  0xc8   : > { %1458 = vrot.lane.b32.xlu1 %v9861_v2, %s8879_s21  ;;  %1267 = vst.msk [vmem:[#allocation3 + $0x8] sm:$0xf] %vm1264_vm9, %v1173_v23  ;;  %v8082_v2 = vrot.slane %v9545_v24, 9  ;;  %14353 = vst [vmem:[#allocation54_spill] sm:$0xff] %v9895_v5 }
  0xca   : > { %1460 = vrot.lane.b32.xlu0 %v9868_v34, %s8879_s21  ;;  %v1177_v58 = vpop.permute.xlu0 %1176 }
  0xcb   : > { %v1175_v23 = vpop.permute.xlu1 %1174  ;;  %1269 = vst.msk [vmem:[#allocation3 + $0x10] sm:$0xf] %vm1264_vm9, %v1177_v58  ;;  %v9901_v58 = vsel %vm9610_vm7, %v8082_v2, %v1400_v48  ;;  %v1409_v2 = vrot.slane %v1407_v27, 4 }
  0xcc   : > { %1462 = vrot.lane.b32.xlu1 %v9878_v8, %s8879_s21  ;;  %1268 = vst.msk [vmem:[#allocation3 + $0xc] sm:$0xf] %vm1264_vm9, %v1175_v23  ;;  %14355 = vst [vmem:[#allocation40_spill] sm:$0xff] %v9901_v58  ;;  %v8083_v8 = vrot.slane %v9568_v35, 9 }
  0xcd   : > { %v9926_v44 = vsel %vm9610_vm7, %v1409_v2, %v1410_v32 }
  0xce   : > { %1464 = vrot.lane.b32.xlu0 %v9884_v14, %s8879_s21  ;;  %v9917_v48 = vsel %vm9610_vm7, %v8083_v8, %v1407_v27 }
  0xcf   : > { %v1181_v34 = vpop.permute.xlu0 %1180  ;;  %v1179_v23 = vpop.permute.xlu1 %1178 }
  0xd0   : > { %1271 = vst.msk [vmem:[#allocation3 + $0x18] sm:$0xf] %vm1264_vm9, %v1181_v34  ;;  %1466 = vrot.lane.b32.xlu1 %v9895_v5, %s8879_s21  ;;  %1270 = vst.msk [vmem:[#allocation3 + $0x14] sm:$0xf] %vm1264_vm9, %v1179_v23 }
  0xd2   : > { %1468 = vrot.lane.b32.xlu0 %v9901_v58, %s8879_s21 }
  0xd3   : > { %v1183_v34 = vpop.permute.xlu1 %1182 }
  0xd4   : > { %1470 = vrot.lane.b32.xlu1 %v9912_v11, %s8879_s21  ;;  %1272 = vst.msk [vmem:[#allocation3 + $0x1c] sm:$0xf] %vm1264_vm9, %v1183_v34  ;;  %v1185_v45 = vpop.permute.xlu0 %1184 }
  0xd5   : > { %1273 = vst.msk [vmem:[#allocation3 + $0x20] sm:$0xf] %vm1264_vm9, %v1185_v45 }
  0xd6   : > { %1472 = vrot.lane.b32.xlu0 %v9917_v48, %s8879_s21 }
  0xd7   : > { %v1187_v30 = vpop.permute.xlu1 %1186 }
  0xd8   : > { %1474 = vrot.lane.b32.xlu1 %v9926_v44, %s8879_s21  ;;  %1274 = vst.msk [vmem:[#allocation3 + $0x24] sm:$0xf] %vm1264_vm9, %v1187_v30 }
  0xda   : > { %1547 = vrot.lane.b32.xlu0 %v9243_v42, %s8880_s22  ;;  %v1189_v8 = vpop.permute.xlu0 %1188 }
  0xdb   : > { %1275 = vst.msk [vmem:[#allocation3 + $0x28] sm:$0xf] %vm1264_vm9, %v1189_v8  ;;  %v1191_v46 = vpop.permute.xlu1 %1190 }
  0xdc   : > { %1549 = vrot.lane.b32.xlu1 %v9245_v43, %s8880_s22  ;;  %1276 = vst.msk [vmem:[#allocation3 + $0x2c] sm:$0xf] %vm1264_vm9, %v1191_v46 }
  0xde   : > { %1551 = vrot.lane.b32.xlu0 %v9249_v49, %s8880_s22  ;;  %v1193_v27 = vpop.permute.xlu0 %1192 }
  0xdf   : > { %1277 = vst.msk [vmem:[#allocation3 + $0x30] sm:$0xf] %vm1264_vm9, %v1193_v27  ;;  %v1195_v23 = vpop.permute.xlu1 %1194 }
  0xe0   : > { %1553 = vrot.lane.b32.xlu1 %v9251_v50, %s8880_s22  ;;  %1278 = vst.msk [vmem:[#allocation3 + $0x34] sm:$0xf] %vm1264_vm9, %v1195_v23 }
  0xe2   : > { %1555 = vrot.lane.b32.xlu0 %v9269_v16, %s8880_s22  ;;  %v1197_v42 = vpop.permute.xlu0 %1196 }
  0xe3   : > { %1279 = vst.msk [vmem:[#allocation3 + $0x38] sm:$0xf] %vm1264_vm9, %v1197_v42 }
  0xe4   : > { %1557 = vrot.lane.b32.xlu1 %v9271_v17, %s8880_s22  ;;  %v1199_v43 = vpop.permute.xlu1 %1198 }
  0xe5   : > { %1280 = vst.msk [vmem:[#allocation3 + $0x3c] sm:$0xf] %vm1264_vm9, %v1199_v43 }
  0xe6   : > { %1559 = vrot.lane.b32.xlu0 %v9297_v51, %s8880_s22 }
  0xe7   : > { %v1201_v2 = vpop.permute.xlu0 %1200 }
  0xe8   : > { %1281 = vst.msk [vmem:[#allocation3 + $0x40] sm:$0xf] %vm1264_vm9, %v1201_v2  ;;  %1561 = vrot.lane.b32.xlu1 %v9308_v57, %s8880_s22 }
  0xe9   : > { %v1203_v32 = vpop.permute.xlu1 %1202 }
  0xea   : > { %1563 = vrot.lane.b32.xlu0 %v9343_v28, %s8880_s22  ;;  %1282 = vst.msk [vmem:[#allocation3 + $0x44] sm:$0xf] %vm1264_vm9, %v1203_v32 }
  0xec   : > { %v1205_v34 = vpop.permute.xlu0 %1204  ;;  %1565 = vrot.lane.b32.xlu1 %v9345_v31, %s8880_s22 }
  0xed   : > { %1283 = vst.msk [vmem:[#allocation3 + $0x48] sm:$0xf] %vm1264_vm9, %v1205_v34  ;;  %v1207_v45 = vpop.permute.xlu1 %1206 }
  0xee   : > { %1567 = vrot.lane.b32.xlu0 %v9351_v36, %s8880_s22  ;;  %1284 = vst.msk [vmem:[#allocation3 + $0x4c] sm:$0xf] %vm1264_vm9, %v1207_v45 }
  0xf0   : > { %1569 = vrot.lane.b32.xlu1 %v9362_v59, %s8880_s22 }
  0xf1   : > { %v1209_v30 = vpop.permute.xlu0 %1208 }
  0xf2   : > { %1571 = vrot.lane.b32.xlu0 %v9382_v18, %s8880_s22  ;;  %1285 = vst.msk [vmem:[#allocation3 + $0x50] sm:$0xf] %vm1264_vm9, %v1209_v30  ;;  %v1211_v8 = vpop.permute.xlu1 %1210 }
  0xf3   : > { %1286 = vst.msk [vmem:[#allocation3 + $0x54] sm:$0xf] %vm1264_vm9, %v1211_v8 }
  0xf4   : > { %1573 = vrot.lane.b32.xlu1 %v9387_v33, %s8880_s22 }
  0xf6   : > { %1575 = vrot.lane.b32.xlu0 %v9407_v9, %s8880_s22  ;;  %v1213_v46 = vpop.permute.xlu0 %1212 }
  0xf7   : > { %1287 = vst.msk [vmem:[#allocation3 + $0x58] sm:$0xf] %vm1264_vm9, %v1213_v46  ;;  %v1215_v27 = vpop.permute.xlu1 %1214 }
  0xf8   : > { %1288 = vst.msk [vmem:[#allocation3 + $0x5c] sm:$0xf] %vm1264_vm9, %v1215_v27  ;;  %1577 = vrot.lane.b32.xlu1 %v9414_v15, %s8880_s22  ;;  %v550_v27 = vld [vmem:[#allocation2 + $0x180] sm:$0xff] }
  0xfa   : > { %1579 = vrot.lane.b32.xlu0 %v9435_v61, %s8880_s22  ;;  %v1217_v23 = vpop.permute.xlu0 %1216 }
  0xfb   : > { %1289 = vst.msk [vmem:[#allocation3 + $0x60] sm:$0xf] %vm1264_vm9, %v1217_v23 }
  0xfc   : > { %v1219_v42 = vpop.permute.xlu1 %1218  ;;  %1581 = vrot.lane.b32.xlu1 %v9439_v10, %s8880_s22 }
  0xfd   : > { %1290 = vst.msk [vmem:[#allocation3 + $0x64] sm:$0xf] %vm1264_vm9, %v1219_v42  ;;  %v10015_v42 = vpack.c.bf16 %v550_v27, %v550_v27 }
  0xfe   : > { %1583 = vrot.lane.b32.xlu0 %v9458_v4, %s8880_s22 }
  0xff   : > { %v1221_v43 = vpop.permute.xlu0 %1220 }
 0x100   : > { %1291 = vst.msk [vmem:[#allocation3 + $0x68] sm:$0xf] %vm1264_vm9, %v1221_v43  ;;  %1585 = vrot.lane.b32.xlu1 %v9462_v21, %s8880_s22  ;;  %v551_v43 = vld [vmem:[#allocation2 + $0x188] sm:$0xff] }
 0x101   : > { %v1223_v2 = vpop.permute.xlu1 %1222 }
 0x102   : > { %1292 = vst.msk [vmem:[#allocation3 + $0x6c] sm:$0xf] %vm1264_vm9, %v1223_v2  ;;  %1587 = vrot.lane.b32.xlu0 %v9477_v26, %s8880_s22 }
 0x103   : > { %v1225_v32 = vpop.permute.xlu0 %1224 }
 0x104   : > { %1589 = vrot.lane.b32.xlu1 %v9485_v38, %s8880_s22  ;;  %1293 = vst.msk [vmem:[#allocation3 + $0x70] sm:$0xf] %vm1264_vm9, %v1225_v32 }
 0x106   : > { %v1227_v34 = vpop.permute.xlu1 %1226  ;;  %1591 = vrot.lane.b32.xlu0 %v9500_v20, %s8880_s22 }
 0x107   : > { %1294 = vst.msk [vmem:[#allocation3 + $0x74] sm:$0xf] %vm1264_vm9, %v1227_v34  ;;  %v10021_v34 = vpack.c.bf16 %v551_v43, %v551_v43  ;;  %v14358_v43 = vld [vmem:[#allocation11_spill] sm:$0xff] }
 0x108   : > { %v1229_v45 = vpop.permute.xlu0 %1228  ;;  %1593 = vrot.lane.b32.xlu1 %v9506_v53, %s8880_s22 }
 0x109   : > { %1295 = vst.msk [vmem:[#allocation3 + $0x78] sm:$0xf] %vm1264_vm9, %v1229_v45 }
 0x10a   : > { %1595 = vrot.lane.b32.xlu0 %v9522_v52, %s8880_s22  ;;  %v1231_v30 = vpop.permute.xlu1 %1230 }
 0x10b   : > { %1296 = vst.msk [vmem:[#allocation3 + $0x7c] sm:$0xf] %vm1264_vm9, %v1231_v30 }
 0x10c   : > { %v1413_v8 = vpop.permute.xlu0 %1412  ;;  %1597 = vrot.lane.b32.xlu1 %v9529_v6, %s8880_s22 }
 0x10d   : > { %1509 = vst.msk [vmem:[#allocation3] sm:$0xf] %vm1508_vm10, %v1413_v8  ;;  %v14356_v8 = vld [vmem:[#allocation9_spill] sm:$0xff] }
 0x10e   : > { %1599 = vrot.lane.b32.xlu0 %v9545_v24, %s8880_s22  ;;  %v1415_v46 = vpop.permute.xlu1 %1414  ;;  %v14379_v24 = vld [vmem:[#allocation39_spill] sm:$0xff] }
 0x10f   : > { %1510 = vst.msk [vmem:[#allocation3 + $0x4] sm:$0xf] %vm1508_vm10, %v1415_v46 }
 0x110   : > { %v1417_v23 = vpop.permute.xlu0 %1416  ;;  %1601 = vrot.lane.b32.xlu1 %v9548_v13, %s8880_s22  ;;  %v552_v13 = vld [vmem:[#allocation2 + $0x190] sm:$0x3] }
 0x111   : > { %1511 = vst.msk [vmem:[#allocation3 + $0x8] sm:$0xf] %vm1508_vm10, %v1417_v23  ;;  %v14357_v23 = vld [vmem:[#allocation10_spill] sm:$0xff] }
 0x112   : > { %1603 = vrot.lane.b32.xlu0 %v9568_v35, %s8880_s22  ;;  %v1419_v2 = vpop.permute.xlu1 %1418 }
 0x113   : > { %1512 = vst.msk [vmem:[#allocation3 + $0xc] sm:$0xf] %vm1508_vm10, %v1419_v2 }
 0x114   : > { %v1421_v32 = vpop.permute.xlu0 %1420  ;;  %1605 = vrot.lane.b32.xlu1 %v9575_v63, %s8880_s22 }
 0x115   : > { %1513 = vst.msk [vmem:[#allocation3 + $0x10] sm:$0xf] %vm1508_vm10, %v1421_v32 }
 0x116   : > { %1607 = vrot.lane.b32.xlu0 %v10015_v42, %s8880_s22  ;;  %v1423_v45 = vpop.permute.xlu1 %1422 }
 0x117   : > { %1514 = vst.msk [vmem:[#allocation3 + $0x14] sm:$0xf] %vm1508_vm10, %v1423_v45  ;;  %v14359_v45 = vld [vmem:[#allocation12_spill] sm:$0xff] }
 0x118   : > { %v1425_v30 = vpop.permute.xlu0 %1424  ;;  %1609 = vrot.lane.b32.xlu1 %v10021_v34, %s8880_s22 }
 0x119   : > { %1515 = vst.msk [vmem:[#allocation3 + $0x18] sm:$0xf] %vm1508_vm10, %v1425_v30  ;;  %v14360_v30 = vld [vmem:[#allocation13_spill] sm:$0xff] }
 0x11a   : > { %1704 = vrot.lane.b32.xlu0 %v14356_v8, %s8881_s23  ;;  %v1427_v46 = vpop.permute.xlu1 %1426 }
 0x11b   : > { %1516 = vst.msk [vmem:[#allocation3 + $0x1c] sm:$0xf] %vm1508_vm10, %v1427_v46 }
 0x11c   : > { %v1429_v27 = vpop.permute.xlu0 %1428  ;;  %1706 = vrot.lane.b32.xlu1 %v14357_v23, %s8881_s23  ;;  %v14362_v23 = vld [vmem:[#allocation15_spill] sm:$0xff] }
 0x11d   : > { %1517 = vst.msk [vmem:[#allocation3 + $0x20] sm:$0xf] %vm1508_vm10, %v1429_v27  ;;  %v14361_v27 = vld [vmem:[#allocation14_spill] sm:$0xff] }
 0x11e   : > { %1708 = vrot.lane.b32.xlu0 %v14358_v43, %s8881_s23  ;;  %v1431_v2 = vpop.permute.xlu1 %1430  ;;  %v14377_v43 = vld [vmem:[#allocation34_spill] sm:$0xff] }
 0x11f   : > { %1518 = vst.msk [vmem:[#allocation3 + $0x24] sm:$0xf] %vm1508_vm10, %v1431_v2 }
 0x120   : > { %v1433_v32 = vpop.permute.xlu0 %1432  ;;  %1710 = vrot.lane.b32.xlu1 %v14359_v45, %s8881_s23 }
 0x121   : > { %1519 = vst.msk [vmem:[#allocation3 + $0x28] sm:$0xf] %vm1508_vm10, %v1433_v32  ;;  %v14363_v32 = vld [vmem:[#allocation16_spill] sm:$0xff] }
 0x122   : > { %1712 = vrot.lane.b32.xlu0 %v14360_v30, %s8881_s23  ;;  %v1435_v8 = vpop.permute.xlu1 %1434 }
 0x123   : > { %1520 = vst.msk [vmem:[#allocation3 + $0x2c] sm:$0xf] %vm1508_vm10, %v1435_v8  ;;  %v14364_v8 = vld [vmem:[#allocation17_spill] sm:$0xff] }
 0x124   : > { %v1437_v46 = vpop.permute.xlu0 %1436  ;;  %1714 = vrot.lane.b32.xlu1 %v14361_v27, %s8881_s23 }
 0x125   : > { %1521 = vst.msk [vmem:[#allocation3 + $0x30] sm:$0xf] %vm1508_vm10, %v1437_v46  ;;  %v14365_v46 = vld [vmem:[#allocation18_spill] sm:$0xff] }
 0x126   : > { %1716 = vrot.lane.b32.xlu0 %v14362_v23, %s8881_s23  ;;  %v1439_v2 = vpop.permute.xlu1 %1438 }
 0x127   : > { %1522 = vst.msk [vmem:[#allocation3 + $0x34] sm:$0xf] %vm1508_vm10, %v1439_v2  ;;  %v14366_v2 = vld [vmem:[#allocation19_spill] sm:$0xff] }
 0x128   : > { %v1441_v45 = vpop.permute.xlu0 %1440  ;;  %1718 = vrot.lane.b32.xlu1 %v14363_v32, %s8881_s23 }
 0x129   : > { %1523 = vst.msk [vmem:[#allocation3 + $0x38] sm:$0xf] %vm1508_vm10, %v1441_v45  ;;  %v14367_v45 = vld [vmem:[#allocation20_spill] sm:$0xff] }
 0x12a   : > { %1720 = vrot.lane.b32.xlu0 %v14364_v8, %s8881_s23  ;;  %v1443_v30 = vpop.permute.xlu1 %1442 }
 0x12b   : > { %1524 = vst.msk [vmem:[#allocation3 + $0x3c] sm:$0xf] %vm1508_vm10, %v1443_v30  ;;  %v14368_v30 = vld [vmem:[#allocation21_spill] sm:$0xff] }
 0x12c   : > { %v1445_v27 = vpop.permute.xlu0 %1444  ;;  %1722 = vrot.lane.b32.xlu1 %v14365_v46, %s8881_s23 }
 0x12d   : > { %1525 = vst.msk [vmem:[#allocation3 + $0x40] sm:$0xf] %vm1508_vm10, %v1445_v27  ;;  %v14369_v27 = vld [vmem:[#allocation22_spill] sm:$0xff] }
 0x12e   : > { %1724 = vrot.lane.b32.xlu0 %v14366_v2, %s8881_s23  ;;  %v1447_v23 = vpop.permute.xlu1 %1446 }
 0x12f   : > { %1526 = vst.msk [vmem:[#allocation3 + $0x44] sm:$0xf] %vm1508_vm10, %v1447_v23  ;;  %v14370_v23 = vld [vmem:[#allocation23_spill] sm:$0xff] }
 0x130   : > { %v1449_v32 = vpop.permute.xlu0 %1448  ;;  %1726 = vrot.lane.b32.xlu1 %v14367_v45, %s8881_s23 }
 0x131   : > { %1527 = vst.msk [vmem:[#allocation3 + $0x48] sm:$0xf] %vm1508_vm10, %v1449_v32  ;;  %v14371_v32 = vld [vmem:[#allocation24_spill] sm:$0xff] }
 0x132   : > { %1728 = vrot.lane.b32.xlu0 %v14368_v30, %s8881_s23  ;;  %v1451_v8 = vpop.permute.xlu1 %1450 }
 0x133   : > { %1528 = vst.msk [vmem:[#allocation3 + $0x4c] sm:$0xf] %vm1508_vm10, %v1451_v8  ;;  %v14372_v8 = vld [vmem:[#allocation25_spill] sm:$0xff] }
 0x134   : > { %v1453_v46 = vpop.permute.xlu0 %1452  ;;  %1730 = vrot.lane.b32.xlu1 %v14369_v27, %s8881_s23 }
 0x135   : > { %1529 = vst.msk [vmem:[#allocation3 + $0x50] sm:$0xf] %vm1508_vm10, %v1453_v46  ;;  %v14373_v46 = vld [vmem:[#allocation26_spill] sm:$0xff] }
 0x136   : > { %1732 = vrot.lane.b32.xlu0 %v14370_v23, %s8881_s23  ;;  %v1455_v2 = vpop.permute.xlu1 %1454 }
 0x137   : > { %1530 = vst.msk [vmem:[#allocation3 + $0x54] sm:$0xf] %vm1508_vm10, %v1455_v2  ;;  %v14374_v2 = vld [vmem:[#allocation28_spill] sm:$0xff] }
 0x138   : > { %v1457_v45 = vpop.permute.xlu0 %1456  ;;  %1734 = vrot.lane.b32.xlu1 %v14371_v32, %s8881_s23 }
 0x139   : > { %1531 = vst.msk [vmem:[#allocation3 + $0x58] sm:$0xf] %vm1508_vm10, %v1457_v45  ;;  %v14375_v45 = vld [vmem:[#allocation29_spill] sm:$0xff] }
 0x13a   : > { %1736 = vrot.lane.b32.xlu0 %v14372_v8, %s8881_s23  ;;  %v1459_v30 = vpop.permute.xlu1 %1458 }
 0x13b   : > { %1532 = vst.msk [vmem:[#allocation3 + $0x5c] sm:$0xf] %vm1508_vm10, %v1459_v30  ;;  %v14376_v30 = vld [vmem:[#allocation32_spill] sm:$0xff] }
 0x13c   : > { %v1461_v27 = vpop.permute.xlu0 %1460  ;;  %1738 = vrot.lane.b32.xlu1 %v14373_v46, %s8881_s23  ;;  %v1681_v46 = vshrl.u32 %v10015_v42, 16 }
 0x13d   : > { %1533 = vst.msk [vmem:[#allocation3 + $0x60] sm:$0xf] %vm1508_vm10, %v1461_v27  ;;  %v1684_v27 = vshll.u32 %v10015_v42, 16 }
 0x13e   : > { %1740 = vrot.lane.b32.xlu0 %v14374_v2, %s8881_s23  ;;  %v1463_v23 = vpop.permute.xlu1 %1462  ;;  %v1683_v63 = vrot.slane %v1681_v46, 4 }
 0x13f   : > { %1534 = vst.msk [vmem:[#allocation3 + $0x64] sm:$0xf] %vm1508_vm10, %v1463_v23  ;;  %v14378_v23 = vld [vmem:[#allocation38_spill] sm:$0xff]  ;;  %v1686_v35 = vrot.slane %v1684_v27, 5 }
 0x140   : > { %v1465_v32 = vpop.permute.xlu0 %1464  ;;  %1742 = vrot.lane.b32.xlu1 %v14375_v45, %s8881_s23 }
 0x141   : > { %1535 = vst.msk [vmem:[#allocation3 + $0x68] sm:$0xf] %vm1508_vm10, %v1465_v32  ;;  %v1690_v32 = vshll.u32 %v10021_v34, 16  ;;  %v1687_v46 = vor.u32 %v1686_v35, %v1683_v63 }
 0x142   : > { %1744 = vrot.lane.b32.xlu0 %v14376_v30, %s8881_s23  ;;  %v1467_v8 = vpop.permute.xlu1 %1466  ;;  %v1694_v30 = vshrl.u32 %v10021_v34, 16 }
 0x143   : > { %1536 = vst.msk [vmem:[#allocation3 + $0x6c] sm:$0xf] %vm1508_vm10, %v1467_v8 }
 0x144   : > { %v1469_v2 = vpop.permute.xlu0 %1468  ;;  %1746 = vrot.lane.b32.xlu1 %v14377_v43, %s8881_s23  ;;  %v10107_v43 = vpack.c.bf16 %v552_v13, %v552_v13  ;;  %v1696_v6 = vrot.slane %v1694_v30, 4  ;;  %v1688_v13 = vrot.slane %v1687_v46, 4 }
 0x145   : > { %1537 = vst.msk [vmem:[#allocation3 + $0x70] sm:$0xf] %vm1508_vm10, %v1469_v2  ;;  %v14380_v2 = vld [vmem:[#allocation42_spill] sm:$0xff] }
 0x146   : > { %1748 = vrot.lane.b32.xlu0 %v14378_v23, %s8881_s23  ;;  %v1471_v45 = vpop.permute.xlu1 %1470  ;;  %v1692_v23 = vrot.slane %v1690_v32, 5 }
 0x147   : > { %1538 = vst.msk [vmem:[#allocation3 + $0x74] sm:$0xf] %vm1508_vm10, %v1471_v45  ;;  %v14381_v45 = vld [vmem:[#allocation44_spill] sm:$0xff] }
 0x148   : > { %v1473_v8 = vpop.permute.xlu0 %1472  ;;  %1750 = vrot.lane.b32.xlu1 %v14379_v24, %s8881_s23 }
 0x149   : > { %1539 = vst.msk [vmem:[#allocation3 + $0x78] sm:$0xf] %vm1508_vm10, %v1473_v8  ;;  %v1697_v8 = vor.u32 %v1696_v6, %v1692_v23  ;;  %v10124_v6 = vsel %vm9239_vm4, %v1688_v13, %v1692_v23 }
 0x14a   : > { %1752 = vrot.lane.b32.xlu0 %v14380_v2, %s8881_s23  ;;  %v1475_v52 = vpop.permute.xlu1 %1474  ;;  %v1700_v2 = vshll.u32 %v10107_v43, 16 }
 0x14b   : > { %1540 = vst.msk [vmem:[#allocation3 + $0x7c] sm:$0xf] %vm1508_vm10, %v1475_v52  ;;  %v1698_v52 = vrot.slane %v1697_v8, 4 }
 0x14c   : > { %v1548_v27 = vpop.permute.xlu0 %1547  ;;  %1754 = vrot.lane.b32.xlu1 %v14381_v45, %s8881_s23  ;;  %v1702_v35 = vrot.slane %v1700_v2, 5 }
 0x14d   : > { %1644 = vst.msk [vmem:[#allocation3] sm:$0xf] %vm1643_vm11, %v1548_v27 }
 0x14e   : > { %1756 = vrot.lane.b32.xlu0 %v9598_v37, %s8881_s23  ;;  %v1550_v32 = vpop.permute.xlu1 %1549  ;;  %v10134_v27 = vsel %vm9239_vm4, %v1698_v52, %v1702_v35 }
 0x14f   : > { %1645 = vst.msk [vmem:[#allocation3 + $0x4] sm:$0xf] %vm1643_vm11, %v1550_v32 }
 0x150   : > { %v1552_v30 = vpop.permute.xlu0 %1551  ;;  %1758 = vrot.lane.b32.xlu1 %v9605_v54, %s8881_s23 }
 0x151   : > { %1646 = vst.msk [vmem:[#allocation3 + $0x8] sm:$0xf] %vm1643_vm11, %v1552_v30 }
 0x152   : > { %1760 = vrot.lane.b32.xlu0 %v9616_v25, %s8881_s23  ;;  %v1554_v63 = vpop.permute.xlu1 %1553 }
 0x153   : > { %1647 = vst.msk [vmem:[#allocation3 + $0xc] sm:$0xf] %vm1643_vm11, %v1554_v63 }
 0x154   : > { %v1556_v46 = vpop.permute.xlu0 %1555  ;;  %1762 = vrot.lane.b32.xlu1 %v9627_v56, %s8881_s23 }
 0x155   : > { %1648 = vst.msk [vmem:[#allocation3 + $0x10] sm:$0xf] %vm1643_vm11, %v1556_v46 }
 0x156   : > { %1764 = vrot.lane.b32.xlu0 %v10124_v6, %s8881_s23  ;;  %v1558_v2 = vpop.permute.xlu1 %1557 }
 0x157   : > { %1649 = vst.msk [vmem:[#allocation3 + $0x14] sm:$0xf] %vm1643_vm11, %v1558_v2 }
 0x158   : > { %v1560_v23 = vpop.permute.xlu0 %1559  ;;  %1766 = vrot.lane.b32.xlu1 %v10134_v27, %s8881_s23 }
 0x159   : > { %1650 = vst.msk [vmem:[#allocation3 + $0x18] sm:$0xf] %vm1643_vm11, %v1560_v23 }
 0x15a   : > { %1840 = vrot.lane.b32.xlu0 %v9638_v19, %s8882_s24  ;;  %v1562_v8 = vpop.permute.xlu1 %1561 }
 0x15b   : > { %1651 = vst.msk [vmem:[#allocation3 + $0x1c] sm:$0xf] %vm1643_vm11, %v1562_v8 }
 0x15c   : > { %v1564_v32 = vpop.permute.xlu0 %1563  ;;  %1842 = vrot.lane.b32.xlu1 %v9646_v39, %s8882_s24 }
 0x15d   : > { %1652 = vst.msk [vmem:[#allocation3 + $0x20] sm:$0xf] %vm1643_vm11, %v1564_v32 }
 0x15e   : > { %1844 = vrot.lane.b32.xlu0 %v9652_v62, %s8882_s24  ;;  %v1566_v13 = vpop.permute.xlu1 %1565 }
 0x15f   : > { %1653 = vst.msk [vmem:[#allocation3 + $0x24] sm:$0xf] %vm1643_vm11, %v1566_v13  ;;  %v14382_v13 = vld [vmem:[#allocation45_spill] sm:$0xff] }
 0x160   : > { %v1568_v30 = vpop.permute.xlu0 %1567  ;;  %1846 = vrot.lane.b32.xlu1 %v9661_v22, %s8882_s24 }
 0x161   : > { %1654 = vst.msk [vmem:[#allocation3 + $0x28] sm:$0xf] %vm1643_vm11, %v1568_v30  ;;  %v14383_v30 = vld [vmem:[#allocation46_spill] sm:$0xff] }
 0x162   : > { %1848 = vrot.lane.b32.xlu0 %v9667_v0, %s8882_s24  ;;  %v1570_v19 = vpop.permute.xlu1 %1569 }
 0x163   : > { %1655 = vst.msk [vmem:[#allocation3 + $0x2c] sm:$0xf] %vm1643_vm11, %v1570_v19 }
 0x164   : > { %v1572_v39 = vpop.permute.xlu0 %1571  ;;  %1850 = vrot.lane.b32.xlu1 %v9740_v7, %s8882_s24 }
 0x165   : > { %1656 = vst.msk [vmem:[#allocation3 + $0x30] sm:$0xf] %vm1643_vm11, %v1572_v39 }
 0x166   : > { %1852 = vrot.lane.b32.xlu0 %v9746_v60, %s8882_s24  ;;  %v1574_v52 = vpop.permute.xlu1 %1573 }
 0x167   : > { %1657 = vst.msk [vmem:[#allocation3 + $0x34] sm:$0xf] %vm1643_vm11, %v1574_v52  ;;  %v14384_v52 = vld [vmem:[#allocation47_spill] sm:$0xff] }
 0x168   : > { %v1576_v35 = vpop.permute.xlu0 %1575  ;;  %1854 = vrot.lane.b32.xlu1 %v9755_v55, %s8882_s24 }
 0x169   : > { %1658 = vst.msk [vmem:[#allocation3 + $0x38] sm:$0xf] %vm1643_vm11, %v1576_v35  ;;  %v14385_v35 = vld [vmem:[#allocation48_spill] sm:$0xff] }
 0x16a   : > { %1856 = vrot.lane.b32.xlu0 %v9761_v29, %s8882_s24  ;;  %v1578_v63 = vpop.permute.xlu1 %1577 }
 0x16b   : > { %1659 = vst.msk [vmem:[#allocation3 + $0x3c] sm:$0xf] %vm1643_vm11, %v1578_v63 }
 0x16c   : > { %v1580_v46 = vpop.permute.xlu0 %1579  ;;  %1858 = vrot.lane.b32.xlu1 %v9770_v3, %s8882_s24 }
 0x16d   : > { %1660 = vst.msk [vmem:[#allocation3 + $0x40] sm:$0xf] %vm1643_vm11, %v1580_v46 }
 0x16e   : > { %1860 = vrot.lane.b32.xlu0 %v9776_v12, %s8882_s24  ;;  %v1582_v2 = vpop.permute.xlu1 %1581 }
 0x16f   : > { %1661 = vst.msk [vmem:[#allocation3 + $0x44] sm:$0xf] %vm1643_vm11, %v1582_v2  ;;  %v14386_v2 = vld [vmem:[#allocation49_spill] sm:$0xff] }
 0x170   : > { %v1584_v23 = vpop.permute.xlu0 %1583  ;;  %1862 = vrot.lane.b32.xlu1 %v9785_v47, %s8882_s24 }
 0x171   : > { %1662 = vst.msk [vmem:[#allocation3 + $0x48] sm:$0xf] %vm1643_vm11, %v1584_v23  ;;  %v14387_v23 = vld [vmem:[#allocation50_spill] sm:$0xff] }
 0x172   : > { %1864 = vrot.lane.b32.xlu0 %v9791_v1, %s8882_s24  ;;  %v1586_v8 = vpop.permute.xlu1 %1585 }
 0x173   : > { %1663 = vst.msk [vmem:[#allocation3 + $0x4c] sm:$0xf] %vm1643_vm11, %v1586_v8 }
 0x174   : > { %v1588_v32 = vpop.permute.xlu0 %1587  ;;  %1866 = vrot.lane.b32.xlu1 %v14382_v13, %s8882_s24 }
 0x175   : > { %1664 = vst.msk [vmem:[#allocation3 + $0x50] sm:$0xf] %vm1643_vm11, %v1588_v32 }
 0x176   : > { %1868 = vrot.lane.b32.xlu0 %v14383_v30, %s8882_s24  ;;  %v1590_v19 = vpop.permute.xlu1 %1589 }
 0x177   : > { %1665 = vst.msk [vmem:[#allocation3 + $0x54] sm:$0xf] %vm1643_vm11, %v1590_v19  ;;  %v14388_v19 = vld [vmem:[#allocation51_spill] sm:$0xff] }
 0x178   : > { %v1592_v39 = vpop.permute.xlu0 %1591  ;;  %1870 = vrot.lane.b32.xlu1 %v14384_v52, %s8882_s24 }
 0x179   : > { %1666 = vst.msk [vmem:[#allocation3 + $0x58] sm:$0xf] %vm1643_vm11, %v1592_v39  ;;  %v14389_v39 = vld [vmem:[#allocation27_spill] sm:$0xff] }
 0x17a   : > { %1872 = vrot.lane.b32.xlu0 %v14385_v35, %s8882_s24  ;;  %v1594_v63 = vpop.permute.xlu1 %1593 }
 0x17b   : > { %1667 = vst.msk [vmem:[#allocation3 + $0x5c] sm:$0xf] %vm1643_vm11, %v1594_v63 }
 0x17c   : > { %v1596_v46 = vpop.permute.xlu0 %1595  ;;  %1874 = vrot.lane.b32.xlu1 %v14386_v2, %s8882_s24 }
 0x17d   : > { %1668 = vst.msk [vmem:[#allocation3 + $0x60] sm:$0xf] %vm1643_vm11, %v1596_v46  ;;  %v14390_v46 = vld [vmem:[#allocation52_spill] sm:$0xff] }
 0x17e   : > { %1876 = vrot.lane.b32.xlu0 %v14387_v23, %s8882_s24  ;;  %v1598_v8 = vpop.permute.xlu1 %1597 }
 0x17f   : > { %1669 = vst.msk [vmem:[#allocation3 + $0x64] sm:$0xf] %vm1643_vm11, %v1598_v8  ;;  %v14391_v8 = vld [vmem:[#allocation30_spill] sm:$0xff] }
 0x180   : > { %v1600_v32 = vpop.permute.xlu0 %1599  ;;  %1878 = vrot.lane.b32.xlu1 %v14388_v19, %s8882_s24 }
 0x181   : > { %1670 = vst.msk [vmem:[#allocation3 + $0x68] sm:$0xf] %vm1643_vm11, %v1600_v32  ;;  %v14392_v32 = vld [vmem:[#allocation53_spill] sm:$0xff] }
 0x182   : > { %1880 = vrot.lane.b32.xlu0 %v14389_v39, %s8882_s24  ;;  %v1602_v63 = vpop.permute.xlu1 %1601 }
 0x183   : > { %1671 = vst.msk [vmem:[#allocation3 + $0x6c] sm:$0xf] %vm1643_vm11, %v1602_v63 }
 0x184   : > { %v1604_v2 = vpop.permute.xlu0 %1603  ;;  %1882 = vrot.lane.b32.xlu1 %v14390_v46, %s8882_s24 }
 0x185   : > { %1672 = vst.msk [vmem:[#allocation3 + $0x70] sm:$0xf] %vm1643_vm11, %v1604_v2 }
 0x186   : > { %1884 = vrot.lane.b32.xlu0 %v14391_v8, %s8882_s24  ;;  %v1606_v23 = vpop.permute.xlu1 %1605 }
 0x187   : > { %1673 = vst.msk [vmem:[#allocation3 + $0x74] sm:$0xf] %vm1643_vm11, %v1606_v23  ;;  %v1835_v23 = vrot.slane %v10021_v34, 5 }
 0x188   : > { %v1608_v19 = vpop.permute.xlu0 %1607  ;;  %1886 = vrot.lane.b32.xlu1 %v14392_v32, %s8882_s24 }
 0x189   : > { %1674 = vst.msk [vmem:[#allocation3 + $0x78] sm:$0xf] %vm1643_vm11, %v1608_v19  ;;  %v8087_v19 = vrot.slane %v10015_v42, 9 }
 0x18a   : > { %1888 = vrot.lane.b32.xlu0 %v9884_v14, %s8882_s24  ;;  %v1610_v63 = vpop.permute.xlu1 %1609 }
 0x18b   : > { %1675 = vst.msk [vmem:[#allocation3 + $0x7c] sm:$0xf] %vm1643_vm11, %v1610_v63  ;;  %v1837_v63 = vrot.slane %v1835_v23, 4 }
 0x18c   : > { %v1705_v2 = vpop.permute.xlu0 %1704  ;;  %1890 = vrot.lane.b32.xlu1 %v9895_v5, %s8882_s24  ;;  %v10231_v5 = vsel %vm9610_vm7, %v8087_v19, %v1835_v23 }
 0x18d   : > { %1801 = vst.msk [vmem:[#allocation3] sm:$0xf] %vm1800_vm12, %v1705_v2  ;;  %v1838_v2 = vrot.slane %v10107_v43, 5 }
 0x18e   : > { %1892 = vrot.lane.b32.xlu0 %v9901_v58, %s8882_s24  ;;  %v1707_v32 = vpop.permute.xlu1 %1706 }
 0x18f   : > { %1802 = vst.msk [vmem:[#allocation3 + $0x4] sm:$0xf] %vm1800_vm12, %v1707_v32 }
 0x190   : > { %v1709_v14 = vpop.permute.xlu0 %1708  ;;  %1894 = vrot.lane.b32.xlu1 %v9912_v11, %s8882_s24 }
 0x191   : > { %1803 = vst.msk [vmem:[#allocation3 + $0x8] sm:$0xf] %vm1800_vm12, %v1709_v14  ;;  %v10241_v14 = vsel %vm9610_vm7, %v1837_v63, %v1838_v2 }
 0x192   : > { %1896 = vrot.lane.b32.xlu0 %v9917_v48, %s8882_s24  ;;  %v1711_v58 = vpop.permute.xlu1 %1710 }
 0x193   : > { %1804 = vst.msk [vmem:[#allocation3 + $0xc] sm:$0xf] %vm1800_vm12, %v1711_v58 }
 0x194   : > { %v1713_v32 = vpop.permute.xlu0 %1712  ;;  %1898 = vrot.lane.b32.xlu1 %v9926_v44, %s8882_s24 }
 0x195   : > { %1805 = vst.msk [vmem:[#allocation3 + $0x10] sm:$0xf] %vm1800_vm12, %v1713_v32 }
 0x196   : > { %1900 = vrot.lane.b32.xlu0 %v10231_v5, %s8882_s24  ;;  %v1715_v43 = vpop.permute.xlu1 %1714 }
 0x197   : > { %1806 = vst.msk [vmem:[#allocation3 + $0x14] sm:$0xf] %vm1800_vm12, %v1715_v43  ;;  %v14394_v43 = vld [vmem:[#allocation33_spill] sm:$0xff] }
 0x198   : > { %v1717_v23 = vpop.permute.xlu0 %1716  ;;  %1902 = vrot.lane.b32.xlu1 %v10241_v14, %s8882_s24 }
 0x199   : > { %1807 = vst.msk [vmem:[#allocation3 + $0x18] sm:$0xf] %vm1800_vm12, %v1717_v23 }
 0x19a   : > { %1975 = vrot.lane.b32.xlu0 %v9249_v49, %s8883_s25  ;;  %v1719_v58 = vpop.permute.xlu1 %1718 }
 0x19b   : > { %1808 = vst.msk [vmem:[#allocation3 + $0x1c] sm:$0xf] %vm1800_vm12, %v1719_v58  ;;  %v14396_v58 = vld [vmem:[#allocation37_spill] sm:$0xff] }
 0x19c   : > { %v1721_v19 = vpop.permute.xlu0 %1720  ;;  %1977 = vrot.lane.b32.xlu1 %v9251_v50, %s8883_s25 }
 0x19d   : > { %1809 = vst.msk [vmem:[#allocation3 + $0x20] sm:$0xf] %vm1800_vm12, %v1721_v19  ;;  %v14397_v19 = vld [vmem:[#allocation41_spill] sm:$0xff] }
 0x19e   : > { %1979 = vrot.lane.b32.xlu0 %v9269_v16, %s8883_s25  ;;  %v1723_v63 = vpop.permute.xlu1 %1722 }
 0x19f   : > { %1810 = vst.msk [vmem:[#allocation3 + $0x24] sm:$0xf] %vm1800_vm12, %v1723_v63 }
 0x1a0   : > { %v1725_v2 = vpop.permute.xlu0 %1724  ;;  %1981 = vrot.lane.b32.xlu1 %v9271_v17, %s8883_s25 }
 0x1a1   : > { %1811 = vst.msk [vmem:[#allocation3 + $0x28] sm:$0xf] %vm1800_vm12, %v1725_v2  ;;  %v553_v2 = vld [vmem:[#allocation2 + $0x198] sm:$0xff] }
 0x1a2   : > { %1983 = vrot.lane.b32.xlu0 %v9297_v51, %s8883_s25  ;;  %v1727_v49 = vpop.permute.xlu1 %1726 }
 0x1a3   : > { %1812 = vst.msk [vmem:[#allocation3 + $0x2c] sm:$0xf] %vm1800_vm12, %v1727_v49 }
 0x1a4   : > { %v1729_v50 = vpop.permute.xlu0 %1728  ;;  %1985 = vrot.lane.b32.xlu1 %v9308_v57, %s8883_s25 }
 0x1a5   : > { %1813 = vst.msk [vmem:[#allocation3 + $0x30] sm:$0xf] %vm1800_vm12, %v1729_v50  ;;  %v14398_v50 = vld [vmem:[#allocation43_spill] sm:$0xff] }
 0x1a6   : > { %1987 = vrot.lane.b32.xlu0 %v9343_v28, %s8883_s25  ;;  %v1731_v16 = vpop.permute.xlu1 %1730 }
 0x1a7   : > { %1814 = vst.msk [vmem:[#allocation3 + $0x34] sm:$0xf] %vm1800_vm12, %v1731_v16  ;;  %v10333_v16 = vpack.c.bf16 %v553_v2, %v553_v2 }
 0x1a8   : > { %v1733_v17 = vpop.permute.xlu0 %1732  ;;  %1989 = vrot.lane.b32.xlu1 %v9345_v31, %s8883_s25 }
 0x1a9   : > { %1815 = vst.msk [vmem:[#allocation3 + $0x38] sm:$0xf] %vm1800_vm12, %v1733_v17  ;;  %v554_v17 = vld [vmem:[#allocation2 + $0x1a0] sm:$0xff] }
 0x1aa   : > { %1991 = vrot.lane.b32.xlu0 %v9351_v36, %s8883_s25  ;;  %v1735_v51 = vpop.permute.xlu1 %1734 }
 0x1ab   : > { %1816 = vst.msk [vmem:[#allocation3 + $0x3c] sm:$0xf] %vm1800_vm12, %v1735_v51 }
 0x1ac   : > { %v1737_v57 = vpop.permute.xlu0 %1736  ;;  %1993 = vrot.lane.b32.xlu1 %v9362_v59, %s8883_s25 }
 0x1ad   : > { %1817 = vst.msk [vmem:[#allocation3 + $0x40] sm:$0xf] %vm1800_vm12, %v1737_v57 }
 0x1ae   : > { %1995 = vrot.lane.b32.xlu0 %v9382_v18, %s8883_s25  ;;  %v1739_v28 = vpop.permute.xlu1 %1738 }
 0x1af   : > { %1818 = vst.msk [vmem:[#allocation3 + $0x44] sm:$0xf] %vm1800_vm12, %v1739_v28  ;;  %v10339_v28 = vpack.c.bf16 %v554_v17, %v554_v17  ;;  %v14411_v17 = vld [vmem:[#allocation23_spill] sm:$0xff] }
 0x1b0   : > { %v1741_v31 = vpop.permute.xlu0 %1740  ;;  %1997 = vrot.lane.b32.xlu1 %v9387_v33, %s8883_s25 }
 0x1b1   : > { %1819 = vst.msk [vmem:[#allocation3 + $0x48] sm:$0xf] %vm1800_vm12, %v1741_v31 }
 0x1b2   : > { %1999 = vrot.lane.b32.xlu0 %v9407_v9, %s8883_s25  ;;  %v1743_v36 = vpop.permute.xlu1 %1742 }
 0x1b3   : > { %1820 = vst.msk [vmem:[#allocation3 + $0x4c] sm:$0xf] %vm1800_vm12, %v1743_v36  ;;  %v14399_v36 = vld [vmem:[#allocation11_spill] sm:$0xff] }
 0x1b4   : > { %v1745_v59 = vpop.permute.xlu0 %1744  ;;  %2001 = vrot.lane.b32.xlu1 %v9414_v15, %s8883_s25 }
 0x1b5   : > { %1821 = vst.msk [vmem:[#allocation3 + $0x50] sm:$0xf] %vm1800_vm12, %v1745_v59 }
 0x1b6   : > { %2003 = vrot.lane.b32.xlu0 %v9435_v61, %s8883_s25  ;;  %v1747_v18 = vpop.permute.xlu1 %1746 }
 0x1b7   : > { %1822 = vst.msk [vmem:[#allocation3 + $0x54] sm:$0xf] %vm1800_vm12, %v1747_v18  ;;  %v14400_v18 = vld [vmem:[#allocation12_spill] sm:$0xff] }
 0x1b8   : > { %v1749_v33 = vpop.permute.xlu0 %1748  ;;  %2005 = vrot.lane.b32.xlu1 %v9439_v10, %s8883_s25 }
 0x1b9   : > { %1823 = vst.msk [vmem:[#allocation3 + $0x58] sm:$0xf] %vm1800_vm12, %v1749_v33  ;;  %v14401_v33 = vld [vmem:[#allocation13_spill] sm:$0xff] }
 0x1ba   : > { %2007 = vrot.lane.b32.xlu0 %v9458_v4, %s8883_s25  ;;  %v1751_v9 = vpop.permute.xlu1 %1750 }
 0x1bb   : > { %1824 = vst.msk [vmem:[#allocation3 + $0x5c] sm:$0xf] %vm1800_vm12, %v1751_v9 }
 0x1bc   : > { %v1753_v15 = vpop.permute.xlu0 %1752  ;;  %2009 = vrot.lane.b32.xlu1 %v9462_v21, %s8883_s25 }
 0x1bd   : > { %1825 = vst.msk [vmem:[#allocation3 + $0x60] sm:$0xf] %vm1800_vm12, %v1753_v15 }
 0x1be   : > { %2011 = vrot.lane.b32.xlu0 %v9477_v26, %s8883_s25  ;;  %v1755_v61 = vpop.permute.xlu1 %1754  ;;  %v14393_v26 = vld [vmem:[#allocation31_spill] sm:$0xff] }
 0x1bf   : > { %1826 = vst.msk [vmem:[#allocation3 + $0x64] sm:$0xf] %vm1800_vm12, %v1755_v61  ;;  %v14402_v61 = vld [vmem:[#allocation14_spill] sm:$0xff] }
 0x1c0   : > { %v1757_v10 = vpop.permute.xlu0 %1756  ;;  %2013 = vrot.lane.b32.xlu1 %v9485_v38, %s8883_s25 }
 0x1c1   : > { %1827 = vst.msk [vmem:[#allocation3 + $0x68] sm:$0xf] %vm1800_vm12, %v1757_v10  ;;  %v14403_v10 = vld [vmem:[#allocation15_spill] sm:$0xff] }
 0x1c2   : > { %2015 = vrot.lane.b32.xlu0 %v9500_v20, %s8883_s25  ;;  %v1759_v4 = vpop.permute.xlu1 %1758  ;;  %v14395_v20 = vld [vmem:[#allocation36_spill] sm:$0xff] }
 0x1c3   : > { %1828 = vst.msk [vmem:[#allocation3 + $0x6c] sm:$0xf] %vm1800_vm12, %v1759_v4 }
 0x1c4   : > { %v1761_v21 = vpop.permute.xlu0 %1760  ;;  %2017 = vrot.lane.b32.xlu1 %v9506_v53, %s8883_s25 }
 0x1c5   : > { %1829 = vst.msk [vmem:[#allocation3 + $0x70] sm:$0xf] %vm1800_vm12, %v1761_v21 }
 0x1c6   : > { %2019 = vrot.lane.b32.xlu0 %v14393_v26, %s8883_s25  ;;  %v1763_v32 = vpop.permute.xlu1 %1762  ;;  %v14404_v26 = vld [vmem:[#allocation16_spill] sm:$0xff] }
 0x1c7   : > { %1830 = vst.msk [vmem:[#allocation3 + $0x74] sm:$0xf] %vm1800_vm12, %v1763_v32  ;;  %v14405_v32 = vld [vmem:[#allocation17_spill] sm:$0xff] }
 0x1c8   : > { %v1765_v38 = vpop.permute.xlu0 %1764  ;;  %2021 = vrot.lane.b32.xlu1 %v14394_v43, %s8883_s25 }
 0x1c9   : > { %1831 = vst.msk [vmem:[#allocation3 + $0x78] sm:$0xf] %vm1800_vm12, %v1765_v38 }
 0x1ca   : > { %2023 = vrot.lane.b32.xlu0 %v14395_v20, %s8883_s25  ;;  %v1767_v23 = vpop.permute.xlu1 %1766  ;;  %v14406_v20 = vld [vmem:[#allocation18_spill] sm:$0xff] }
 0x1cb   : > { %1832 = vst.msk [vmem:[#allocation3 + $0x7c] sm:$0xf] %vm1800_vm12, %v1767_v23  ;;  %v14407_v23 = vld [vmem:[#allocation19_spill] sm:$0xff] }
 0x1cc   : > { %v1841_v53 = vpop.permute.xlu0 %1840  ;;  %2025 = vrot.lane.b32.xlu1 %v14396_v58, %s8883_s25 }
 0x1cd   : > { %1937 = vst.msk [vmem:[#allocation3] sm:$0xf] %vm1936_vm13, %v1841_v53 }
 0x1ce   : > { %2027 = vrot.lane.b32.xlu0 %v14397_v19, %s8883_s25  ;;  %v1843_v63 = vpop.permute.xlu1 %1842  ;;  %v14408_v19 = vld [vmem:[#allocation20_spill] sm:$0xff] }
 0x1cf   : > { %1938 = vst.msk [vmem:[#allocation3 + $0x4] sm:$0xf] %vm1936_vm13, %v1843_v63  ;;  %v14409_v63 = vld [vmem:[#allocation21_spill] sm:$0xff] }
 0x1d0   : > { %v1845_v49 = vpop.permute.xlu0 %1844  ;;  %2029 = vrot.lane.b32.xlu1 %v14398_v50, %s8883_s25  ;;  %v14410_v50 = vld [vmem:[#allocation22_spill] sm:$0xff] }
 0x1d1   : > { %1939 = vst.msk [vmem:[#allocation3 + $0x8] sm:$0xf] %vm1936_vm13, %v1845_v49 }
 0x1d2   : > { %2031 = vrot.lane.b32.xlu0 %v10015_v42, %s8883_s25  ;;  %v1847_v51 = vpop.permute.xlu1 %1846 }
 0x1d3   : > { %1940 = vst.msk [vmem:[#allocation3 + $0xc] sm:$0xf] %vm1936_vm13, %v1847_v51 }
 0x1d4   : > { %v1849_v57 = vpop.permute.xlu0 %1848  ;;  %2033 = vrot.lane.b32.xlu1 %v10021_v34, %s8883_s25 }
 0x1d5   : > { %1941 = vst.msk [vmem:[#allocation3 + $0x10] sm:$0xf] %vm1936_vm13, %v1849_v57 }
 0x1d6   : > { %2035 = vrot.lane.b32.xlu0 %v10333_v16, %s8883_s25  ;;  %v1851_v31 = vpop.permute.xlu1 %1850 }
 0x1d7   : > { %1942 = vst.msk [vmem:[#allocation3 + $0x14] sm:$0xf] %vm1936_vm13, %v1851_v31  ;;  %v14412_v31 = vld [vmem:[#allocation24_spill] sm:$0xff] }
 0x1d8   : > { %v1853_v42 = vpop.permute.xlu0 %1852  ;;  %2037 = vrot.lane.b32.xlu1 %v10339_v28, %s8883_s25 }
 0x1d9   : > { %1943 = vst.msk [vmem:[#allocation3 + $0x18] sm:$0xf] %vm1936_vm13, %v1853_v42  ;;  %v14413_v42 = vld [vmem:[#allocation25_spill] sm:$0xff] }
 0x1da   : > { %2132 = vrot.lane.b32.xlu0 %v14399_v36, %s8884_s26  ;;  %v1855_v34 = vpop.permute.xlu1 %1854 }
 0x1db   : > { %1944 = vst.msk [vmem:[#allocation3 + $0x1c] sm:$0xf] %vm1936_vm13, %v1855_v34 }
 0x1dc   : > { %v1857_v59 = vpop.permute.xlu0 %1856  ;;  %2134 = vrot.lane.b32.xlu1 %v14400_v18, %s8884_s26  ;;  %v14415_v18 = vld [vmem:[#allocation28_spill] sm:$0xff] }
 0x1dd   : > { %1945 = vst.msk [vmem:[#allocation3 + $0x20] sm:$0xf] %vm1936_vm13, %v1857_v59  ;;  %v14414_v59 = vld [vmem:[#allocation26_spill] sm:$0xff] }
 0x1de   : > { %2136 = vrot.lane.b32.xlu0 %v14401_v33, %s8884_s26  ;;  %v1859_v9 = vpop.permute.xlu1 %1858 }
 0x1df   : > { %1946 = vst.msk [vmem:[#allocation3 + $0x24] sm:$0xf] %vm1936_vm13, %v1859_v9 }
 0x1e0   : > { %v1861_v15 = vpop.permute.xlu0 %1860  ;;  %2138 = vrot.lane.b32.xlu1 %v14402_v61, %s8884_s26  ;;  %v14417_v61 = vld [vmem:[#allocation32_spill] sm:$0xff] }
 0x1e1   : > { %1947 = vst.msk [vmem:[#allocation3 + $0x28] sm:$0xf] %vm1936_vm13, %v1861_v15  ;;  %v14416_v15 = vld [vmem:[#allocation29_spill] sm:$0xff] }
 0x1e2   : > { %2140 = vrot.lane.b32.xlu0 %v14403_v10, %s8884_s26  ;;  %v1863_v4 = vpop.permute.xlu1 %1862 }
 0x1e3   : > { %1948 = vst.msk [vmem:[#allocation3 + $0x2c] sm:$0xf] %vm1936_vm13, %v1863_v4 }
 0x1e4   : > { %v1865_v21 = vpop.permute.xlu0 %1864  ;;  %2142 = vrot.lane.b32.xlu1 %v14404_v26, %s8884_s26  ;;  %v14419_v26 = vld [vmem:[#allocation38_spill] sm:$0xff] }
 0x1e5   : > { %1949 = vst.msk [vmem:[#allocation3 + $0x30] sm:$0xf] %vm1936_vm13, %v1865_v21  ;;  %v14418_v21 = vld [vmem:[#allocation34_spill] sm:$0xff] }
 0x1e6   : > { %2144 = vrot.lane.b32.xlu0 %v14405_v32, %s8884_s26  ;;  %v1867_v38 = vpop.permute.xlu1 %1866 }
 0x1e7   : > { %1950 = vst.msk [vmem:[#allocation3 + $0x34] sm:$0xf] %vm1936_vm13, %v1867_v38  ;;  %v2109_v38 = vshrl.u32 %v10333_v16, 16 }
 0x1e8   : > { %v1869_v43 = vpop.permute.xlu0 %1868  ;;  %2146 = vrot.lane.b32.xlu1 %v14406_v20, %s8884_s26 }
 0x1e9   : > { %1951 = vst.msk [vmem:[#allocation3 + $0x38] sm:$0xf] %vm1936_vm13, %v1869_v43  ;;  %v2112_v43 = vshll.u32 %v10333_v16, 16 }
 0x1ea   : > { %2148 = vrot.lane.b32.xlu0 %v14407_v23, %s8884_s26  ;;  %v1871_v53 = vpop.permute.xlu1 %1870  ;;  %v14420_v23 = vld [vmem:[#allocation42_spill] sm:$0xff] }
 0x1eb   : > { %1952 = vst.msk [vmem:[#allocation3 + $0x3c] sm:$0xf] %vm1936_vm13, %v1871_v53  ;;  %v2118_v53 = vshll.u32 %v10339_v28, 16 }
 0x1ec   : > { %v1873_v58 = vpop.permute.xlu0 %1872  ;;  %2150 = vrot.lane.b32.xlu1 %v14408_v19, %s8884_s26 }
 0x1ed   : > { %1953 = vst.msk [vmem:[#allocation3 + $0x40] sm:$0xf] %vm1936_vm13, %v1873_v58  ;;  %v2122_v58 = vshrl.u32 %v10339_v28, 16 }
 0x1ee   : > { %2152 = vrot.lane.b32.xlu0 %v14409_v63, %s8884_s26  ;;  %v1875_v2 = vpop.permute.xlu1 %1874  ;;  %v2111_v63 = vrot.slane %v2109_v38, 4 }
 0x1ef   : > { %1954 = vst.msk [vmem:[#allocation3 + $0x44] sm:$0xf] %vm1936_vm13, %v1875_v2  ;;  %v2114_v2 = vrot.slane %v2112_v43, 5  ;;  %v14421_v43 = vld [vmem:[#allocation49_spill] sm:$0xff] }
 0x1f0   : > { %v1877_v49 = vpop.permute.xlu0 %1876  ;;  %2154 = vrot.lane.b32.xlu1 %v14410_v50, %s8884_s26 }
 0x1f1   : > { %1955 = vst.msk [vmem:[#allocation3 + $0x48] sm:$0xf] %vm1936_vm13, %v1877_v49  ;;  %v555_v49 = vld [vmem:[#allocation2 + $0x1a8] sm:$0x3] }
 0x1f2   : > { %2156 = vrot.lane.b32.xlu0 %v14411_v17, %s8884_s26  ;;  %v1879_v51 = vpop.permute.xlu1 %1878  ;;  %v10425_v17 = vpack.c.bf16 %v555_v49, %v555_v49  ;;  %v14426_v49 = vld [vmem:[#allocation54_spill] sm:$0xff] }
 0x1f3   : > { %1956 = vst.msk [vmem:[#allocation3 + $0x4c] sm:$0xf] %vm1936_vm13, %v1879_v51  ;;  %v2124_v51 = vrot.slane %v2122_v58, 4 }
 0x1f4   : > { %v1881_v57 = vpop.permute.xlu0 %1880  ;;  %2158 = vrot.lane.b32.xlu1 %v14412_v31, %s8884_s26  ;;  %v2115_v31 = vor.u32 %v2114_v2, %v2111_v63  ;;  %v14424_v63 = vld [vmem:[#allocation53_spill] sm:$0xff] }
 0x1f5   : > { %1957 = vst.msk [vmem:[#allocation3 + $0x50] sm:$0xf] %vm1936_vm13, %v1881_v57 }
 0x1f6   : > { %2160 = vrot.lane.b32.xlu0 %v14413_v42, %s8884_s26  ;;  %v1883_v36 = vpop.permute.xlu1 %1882 }
 0x1f7   : > { %1958 = vst.msk [vmem:[#allocation3 + $0x54] sm:$0xf] %vm1936_vm13, %v1883_v36 }
 0x1f8   : > { %v1885_v34 = vpop.permute.xlu0 %1884  ;;  %2162 = vrot.lane.b32.xlu1 %v14414_v59, %s8884_s26  ;;  %v8817_v59 = vld [vmem:[%s14027_s2 + $0x10] ss:$0 sps:$4 sm:$0x33]  }
 0x1f9   : > { %1959 = vst.msk [vmem:[#allocation3 + $0x58] sm:$0xf] %vm1936_vm13, %v1885_v34  ;;  %v2116_v34 = vrot.slane %v2115_v31, 4  ;;  %8791 = vmatprep.subr.msk.bf16.mxu0 %vm2585_vm15, %v8817_v59  ;;  %v8091_v31 = vrot.slane %v10333_v16, 9 }
 0x1fa   : > { %2164 = vrot.lane.b32.xlu0 %v14415_v18, %s8884_s26  ;;  %v1887_v33 = vpop.permute.xlu1 %1886 }
 0x1fb   : > { %1960 = vst.msk [vmem:[#allocation3 + $0x5c] sm:$0xf] %vm1936_vm13, %v1887_v33 }
 0x1fc   : > { %v1889_v9 = vpop.permute.xlu0 %1888  ;;  %2166 = vrot.lane.b32.xlu1 %v14416_v15, %s8884_s26 }
 0x1fd   : > { %1961 = vst.msk [vmem:[#allocation3 + $0x60] sm:$0xf] %vm1936_vm13, %v1889_v9 }
 0x1fe   : > { %2168 = vrot.lane.b32.xlu0 %v14417_v61, %s8884_s26  ;;  %v1891_v10 = vpop.permute.xlu1 %1890 }
 0x1ff   : > { %1962 = vst.msk [vmem:[#allocation3 + $0x64] sm:$0xf] %vm1936_vm13, %v1891_v10 }
 0x200   : > { %v1893_v4 = vpop.permute.xlu0 %1892  ;;  %2170 = vrot.lane.b32.xlu1 %v14418_v21, %s8884_s26 }
 0x201   : > { %1963 = vst.msk [vmem:[#allocation3 + $0x68] sm:$0xf] %vm1936_vm13, %v1893_v4  ;;  %v8819_v4 = vld [vmem:[%s14027_s2] sm:$0xff]  }
 0x202   : > { %2172 = vrot.lane.b32.xlu0 %v14419_v26, %s8884_s26  ;;  %v1895_v32 = vpop.permute.xlu1 %1894 }
 0x203   : > { %1964 = vst.msk [vmem:[#allocation3 + $0x6c] sm:$0xf] %vm1936_vm13, %v1895_v32 }
 0x204   : > { %v1897_v20 = vpop.permute.xlu0 %1896  ;;  %2174 = vrot.lane.b32.xlu1 %v14379_v24, %s8884_s26  ;;  %v2120_v24 = vrot.slane %v2118_v53, 5 }
 0x205   : > { %1965 = vst.msk [vmem:[#allocation3 + $0x70] sm:$0xf] %vm1936_vm13, %v1897_v20 }
 0x206   : > { %2176 = vrot.lane.b32.xlu0 %v14420_v23, %s8884_s26  ;;  %v1899_v19 = vpop.permute.xlu1 %1898  ;;  %v2121_v15 = vsel %vm9239_vm4, %v2116_v34, %v2120_v24  ;;  %v14423_v23 = vld [vmem:[#allocation51_spill] sm:$0xff] }
 0x207   : > { %1966 = vst.msk [vmem:[#allocation3 + $0x74] sm:$0xf] %vm1936_vm13, %v1899_v19 }
 0x208   : > { %v1901_v50 = vpop.permute.xlu0 %1900  ;;  %2178 = vrot.lane.b32.xlu1 %v14381_v45, %s8884_s26  ;;  %v2125_v45 = vor.u32 %v2124_v51, %v2120_v24  ;;  %v2263_v51 = vrot.slane %v10339_v28, 5 }
 0x209   : > { %1967 = vst.msk [vmem:[#allocation3 + $0x78] sm:$0xf] %vm1936_vm13, %v1901_v50 }
 0x20a   : > { %2180 = vrot.lane.b32.xlu0 %v9598_v37, %s8884_s26  ;;  %v1903_v57 = vpop.permute.xlu1 %1902  ;;  %v2128_v37 = vshll.u32 %v10425_v17, 16  ;;  %v2264_v28 = vsel %vm9610_vm7, %v8091_v31, %v2263_v51 }
 0x20b   : > { %1968 = vst.msk [vmem:[#allocation3 + $0x7c] sm:$0xf] %vm1936_vm13, %v1903_v57 }
 0x20c   : > { %v1976_v42 = vpop.permute.xlu0 %1975  ;;  %2182 = vrot.lane.b32.xlu1 %v9605_v54, %s8884_s26  ;;  %v2587_v54 = vsel %vm2585_vm15, %v8817_v59, 0  ;;  %v2130_v33 = vrot.slane %v2128_v37, 5 }
 0x20d   : > { %2072 = vst.msk [vmem:[#allocation3] sm:$0xf] %vm2071_vm14, %v1976_v42  ;;  %8632 = vmatpush3.bf16.msra.mxu0 %v2587_v54 }
 0x20e   : > { %2184 = vrot.lane.b32.xlu0 %v9616_v25, %s8884_s26  ;;  %v1978_v36 = vpop.permute.xlu1 %1977  ;;  %v2126_v25 = vrot.slane %v2125_v45, 4  ;;  %v2266_v45 = vrot.slane %v10425_v17, 5 }
 0x20f   : > { %2073 = vst.msk [vmem:[#allocation3 + $0x4] sm:$0xf] %vm2071_vm14, %v1978_v36 }
 0x210   : > { %v1980_v18 = vpop.permute.xlu0 %1979  ;;  %2186 = vrot.lane.b32.xlu1 %v9627_v56, %s8884_s26  ;;  %v8818_v56 = vld [vmem:[%s14027_s2 + $0x8] sm:$0xff]  }
 0x211   : > { %2074 = vst.msk [vmem:[#allocation3 + $0x8] sm:$0xf] %vm2071_vm14, %v1980_v18  ;;  %8633 = vmatprep.subr.bf16.mxu0 %v8818_v56 }
 0x212   : > { %2188 = vrot.lane.b32.xlu0 %v10124_v6, %s8884_s26  ;;  %v1982_v9 = vpop.permute.xlu1 %1981  ;;  %v2131_v6 = vsel %vm9239_vm4, %v2126_v25, %v2130_v33  ;;  %8634 = vmatpush3.bf16.msra.mxu0 %v8818_v56 }
 0x213   : > { %2075 = vst.msk [vmem:[#allocation3 + $0xc] sm:$0xf] %vm2071_vm14, %v1982_v9  ;;  %8635 = vmatprep.subr.bf16.mxu0 %v8819_v4 }
 0x214   : > { %v1984_v61 = vpop.permute.xlu0 %1983  ;;  %2190 = vrot.lane.b32.xlu1 %v10134_v27, %s8884_s26 }
 0x215   : > { %2076 = vst.msk [vmem:[#allocation3 + $0x10] sm:$0xf] %vm2071_vm14, %v1984_v61 }
 0x216   : > { %2192 = vrot.lane.b32.xlu0 %v2121_v15, %s8884_s26  ;;  %v1986_v10 = vpop.permute.xlu1 %1985  ;;  %8636 = vmatpush3.bf16.msra.mxu0 %v8819_v4 }
 0x217   : > { %2077 = vst.msk [vmem:[#allocation3 + $0x14] sm:$0xf] %vm2071_vm14, %v1986_v10 }
 0x218   : > { %v1988_v21 = vpop.permute.xlu0 %1987  ;;  %2194 = vrot.lane.b32.xlu1 %v2131_v6, %s8884_s26 }
 0x219   : > { %2078 = vst.msk [vmem:[#allocation3 + $0x18] sm:$0xf] %vm2071_vm14, %v1988_v21 }
 0x21a   : > { %2268 = vrot.lane.b32.xlu0 %v9652_v62, %s8885_s14  ;;  %v1990_v27 = vpop.permute.xlu1 %1989 }
 0x21b   : > { %2079 = vst.msk [vmem:[#allocation3 + $0x1c] sm:$0xf] %vm2071_vm14, %v1990_v27 }
 0x21c   : > { %v1992_v26 = vpop.permute.xlu0 %1991  ;;  %2270 = vrot.lane.b32.xlu1 %v9661_v22, %s8885_s14 }
 0x21d   : > { %2080 = vst.msk [vmem:[#allocation3 + $0x20] sm:$0xf] %vm2071_vm14, %v1992_v26 }
 0x21e   : > { %2272 = vrot.lane.b32.xlu0 %v9667_v0, %s8885_s14  ;;  %v1994_v32 = vpop.permute.xlu1 %1993 }
 0x21f   : > { %2081 = vst.msk [vmem:[#allocation3 + $0x24] sm:$0xf] %vm2071_vm14, %v1994_v32 }
 0x220   : > { %v1996_v38 = vpop.permute.xlu0 %1995  ;;  %2274 = vrot.lane.b32.xlu1 %v9740_v7, %s8885_s14 }
 0x221   : > { %2082 = vst.msk [vmem:[#allocation3 + $0x28] sm:$0xf] %vm2071_vm14, %v1996_v38 }
 0x222   : > { %2276 = vrot.lane.b32.xlu0 %v9746_v60, %s8885_s14  ;;  %v1998_v62 = vpop.permute.xlu1 %1997 }
 0x223   : > { %2083 = vst.msk [vmem:[#allocation3 + $0x2c] sm:$0xf] %vm2071_vm14, %v1998_v62 }
 0x224   : > { %v2000_v22 = vpop.permute.xlu0 %1999  ;;  %2278 = vrot.lane.b32.xlu1 %v9755_v55, %s8885_s14 }
 0x225   : > { %2084 = vst.msk [vmem:[#allocation3 + $0x30] sm:$0xf] %vm2071_vm14, %v2000_v22 }
 0x226   : > { %2280 = vrot.lane.b32.xlu0 %v9761_v29, %s8885_s14  ;;  %v2002_v0 = vpop.permute.xlu1 %2001 }
 0x227   : > { %2085 = vst.msk [vmem:[#allocation3 + $0x34] sm:$0xf] %vm2071_vm14, %v2002_v0 }
 0x228   : > { %v2004_v7 = vpop.permute.xlu0 %2003  ;;  %2282 = vrot.lane.b32.xlu1 %v9770_v3, %s8885_s14 }
 0x229   : > { %2086 = vst.msk [vmem:[#allocation3 + $0x38] sm:$0xf] %vm2071_vm14, %v2004_v7 }
 0x22a   : > { %2284 = vrot.lane.b32.xlu0 %v9776_v12, %s8885_s14  ;;  %v2006_v60 = vpop.permute.xlu1 %2005 }
 0x22b   : > { %2087 = vst.msk [vmem:[#allocation3 + $0x3c] sm:$0xf] %vm2071_vm14, %v2006_v60 }
 0x22c   : > { %v2008_v55 = vpop.permute.xlu0 %2007  ;;  %2286 = vrot.lane.b32.xlu1 %v9785_v47, %s8885_s14 }
 0x22d   : > { %2088 = vst.msk [vmem:[#allocation3 + $0x40] sm:$0xf] %vm2071_vm14, %v2008_v55 }
 0x22e   : > { %2288 = vrot.lane.b32.xlu0 %v9791_v1, %s8885_s14  ;;  %v2010_v29 = vpop.permute.xlu1 %2009 }
 0x22f   : > { %2089 = vst.msk [vmem:[#allocation3 + $0x44] sm:$0xf] %vm2071_vm14, %v2010_v29 }
 0x230   : > { %v2012_v3 = vpop.permute.xlu0 %2011  ;;  %2290 = vrot.lane.b32.xlu1 %v14382_v13, %s8885_s14 }
 0x231   : > { %2090 = vst.msk [vmem:[#allocation3 + $0x48] sm:$0xf] %vm2071_vm14, %v2012_v3 }
 0x232   : > { %2292 = vrot.lane.b32.xlu0 %v14383_v30, %s8885_s14  ;;  %v2014_v12 = vpop.permute.xlu1 %2013  ;;  %v14422_v30 = vld [vmem:[#allocation50_spill] sm:$0xff] }
 0x233   : > { %2091 = vst.msk [vmem:[#allocation3 + $0x4c] sm:$0xf] %vm2071_vm14, %v2014_v12 }
 0x234   : > { %v2016_v47 = vpop.permute.xlu0 %2015  ;;  %2294 = vrot.lane.b32.xlu1 %v14384_v52, %s8885_s14 }
 0x235   : > { %2092 = vst.msk [vmem:[#allocation3 + $0x50] sm:$0xf] %vm2071_vm14, %v2016_v47 }
 0x236   : > { %2296 = vrot.lane.b32.xlu0 %v14385_v35, %s8885_s14  ;;  %v2018_v1 = vpop.permute.xlu1 %2017 }
 0x237   : > { %2093 = vst.msk [vmem:[#allocation3 + $0x54] sm:$0xf] %vm2071_vm14, %v2018_v1 }
 0x238   : > { %v2020_v13 = vpop.permute.xlu0 %2019  ;;  %2298 = vrot.lane.b32.xlu1 %v14421_v43, %s8885_s14 }
 0x239   : > { %2094 = vst.msk [vmem:[#allocation3 + $0x58] sm:$0xf] %vm2071_vm14, %v2020_v13 }
 0x23a   : > { %2300 = vrot.lane.b32.xlu0 %v14422_v30, %s8885_s14  ;;  %v2022_v20 = vpop.permute.xlu1 %2021 }
 0x23b   : > { %2095 = vst.msk [vmem:[#allocation3 + $0x5c] sm:$0xf] %vm2071_vm14, %v2022_v20 }
 0x23c   : > { %v2024_v52 = vpop.permute.xlu0 %2023  ;;  %2302 = vrot.lane.b32.xlu1 %v14423_v23, %s8885_s14 }
 0x23d   : > { %2096 = vst.msk [vmem:[#allocation3 + $0x60] sm:$0xf] %vm2071_vm14, %v2024_v52 }
 0x23e   : > { %2304 = vrot.lane.b32.xlu0 %v14389_v39, %s8885_s14  ;;  %v2026_v35 = vpop.permute.xlu1 %2025  ;;  %v14425_v39 = vld [vmem:[#allocation35_spill] sm:$0xff] }
 0x23f   : > { %2097 = vst.msk [vmem:[#allocation3 + $0x64] sm:$0xf] %vm2071_vm14, %v2026_v35 }
 0x240   : > { %v2028_v53 = vpop.permute.xlu0 %2027  ;;  %2306 = vrot.lane.b32.xlu1 %v14390_v46, %s8885_s14 }
 0x241   : > { %2098 = vst.msk [vmem:[#allocation3 + $0x68] sm:$0xf] %vm2071_vm14, %v2028_v53 }
 0x242   : > { %2308 = vrot.lane.b32.xlu0 %v14391_v8, %s8885_s14  ;;  %v2030_v58 = vpop.permute.xlu1 %2029  ;;  %v14427_v8 = vld [vmem:[#allocation40_spill] sm:$0xff] }
 0x243   : > { %2099 = vst.msk [vmem:[#allocation3 + $0x6c] sm:$0xf] %vm2071_vm14, %v2030_v58 }
 0x244   : > { %v2032_v19 = vpop.permute.xlu0 %2031  ;;  %2310 = vrot.lane.b32.xlu1 %v14424_v63, %s8885_s14 }
 0x245   : > { %2100 = vst.msk [vmem:[#allocation3 + $0x70] sm:$0xf] %vm2071_vm14, %v2032_v19 }
 0x246   : > { %2312 = vrot.lane.b32.xlu0 %v14425_v39, %s8885_s14  ;;  %v2034_v2 = vpop.permute.xlu1 %2033 }
 0x247   : > { %2101 = vst.msk [vmem:[#allocation3 + $0x74] sm:$0xf] %vm2071_vm14, %v2034_v2 }
 0x248   : > { %v2036_v46 = vpop.permute.xlu0 %2035  ;;  %2314 = vrot.lane.b32.xlu1 %v14426_v49, %s8885_s14 }
 0x249   : > { %2102 = vst.msk [vmem:[#allocation3 + $0x78] sm:$0xf] %vm2071_vm14, %v2036_v46 }
 0x24a   : > { %2316 = vrot.lane.b32.xlu0 %v14427_v8, %s8885_s14  ;;  %v2038_v50 = vpop.permute.xlu1 %2037 }
 0x24b   : > { %2103 = vst.msk [vmem:[#allocation3 + $0x7c] sm:$0xf] %vm2071_vm14, %v2038_v50 }
 0x24c   : > { %v2133_v24 = vpop.permute.xlu0 %2132  ;;  %2318 = vrot.lane.b32.xlu1 %v9912_v11, %s8885_s14  ;;  %v2265_v11 = vrot.slane %v2263_v51, 4 }
 0x24d   : > { %2229 = vst.msk [vmem:[#allocation3] sm:$0xf] %vm2228_vm1, %v2133_v24 }
 0x24e   : > { %2320 = vrot.lane.b32.xlu0 %v9917_v48, %s8885_s14  ;;  %v2135_v57 = vpop.permute.xlu1 %2134 }
 0x24f   : > { %2230 = vst.msk [vmem:[#allocation3 + $0x4] sm:$0xf] %vm2228_vm1, %v2135_v57 }
 0x250   : > { %v2137_v42 = vpop.permute.xlu0 %2136  ;;  %2322 = vrot.lane.b32.xlu1 %v9926_v44, %s8885_s14 }
 0x251   : > { %2231 = vst.msk [vmem:[#allocation3 + $0x8] sm:$0xf] %vm2228_vm1, %v2137_v42 }
 0x252   : > { %2324 = vrot.lane.b32.xlu0 %v10231_v5, %s8885_s14  ;;  %v2139_v48 = vpop.permute.xlu1 %2138  ;;  %v2267_v5 = vsel %vm9610_vm7, %v2265_v11, %v2266_v45 }
 0x253   : > { %2232 = vst.msk [vmem:[#allocation3 + $0xc] sm:$0xf] %vm2228_vm1, %v2139_v48 }
 0x254   : > { %v2141_v16 = vpop.permute.xlu0 %2140  ;;  %2326 = vrot.lane.b32.xlu1 %v10241_v14, %s8885_s14 }
 0x255   : > { %2233 = vst.msk [vmem:[#allocation3 + $0x10] sm:$0xf] %vm2228_vm1, %v2141_v16 }
 0x256   : > { %2328 = vrot.lane.b32.xlu0 %v2264_v28, %s8885_s14  ;;  %v2143_v44 = vpop.permute.xlu1 %2142 }
 0x257   : > { %2234 = vst.msk [vmem:[#allocation3 + $0x14] sm:$0xf] %vm2228_vm1, %v2143_v44 }
 0x258   : > { %v2145_v17 = vpop.permute.xlu0 %2144  ;;  %2330 = vrot.lane.b32.xlu1 %v2267_v5, %s8885_s14 }
 0x259   : > { %2235 = vst.msk [vmem:[#allocation3 + $0x18] sm:$0xf] %vm2228_vm1, %v2145_v17 }
 0x25a   : > { %v2147_v37 = vpop.permute.xlu1 %2146 }
 0x25b   : > { %2236 = vst.msk [vmem:[#allocation3 + $0x1c] sm:$0xf] %vm2228_vm1, %v2147_v37 }
 0x25c   : > { %v2149_v36 = vpop.permute.xlu0 %2148 }
 0x25d   : > { %2237 = vst.msk [vmem:[#allocation3 + $0x20] sm:$0xf] %vm2228_vm1, %v2149_v36 }
 0x25e   : > { %v2151_v14 = vpop.permute.xlu1 %2150 }
 0x25f   : > { %2238 = vst.msk [vmem:[#allocation3 + $0x24] sm:$0xf] %vm2228_vm1, %v2151_v14 }
 0x260   : > { %v2153_v34 = vpop.permute.xlu0 %2152 }
 0x261   : > { %2239 = vst.msk [vmem:[#allocation3 + $0x28] sm:$0xf] %vm2228_vm1, %v2153_v34 }
 0x262   : > { %v2155_v59 = vpop.permute.xlu1 %2154 }
 0x263   : > { %2240 = vst.msk [vmem:[#allocation3 + $0x2c] sm:$0xf] %vm2228_vm1, %v2155_v59 }
 0x264   : > { %v2157_v18 = vpop.permute.xlu0 %2156 }
 0x265   : > { %2241 = vst.msk [vmem:[#allocation3 + $0x30] sm:$0xf] %vm2228_vm1, %v2157_v18 }
 0x266   : > { %v2159_v54 = vpop.permute.xlu1 %2158 }
 0x267   : > { %2242 = vst.msk [vmem:[#allocation3 + $0x34] sm:$0xf] %vm2228_vm1, %v2159_v54 }
 0x268   : > { %v2161_v25 = vpop.permute.xlu0 %2160 }
 0x269   : > { %2243 = vst.msk [vmem:[#allocation3 + $0x38] sm:$0xf] %vm2228_vm1, %v2161_v25 }
 0x26a   : > { %v2163_v33 = vpop.permute.xlu1 %2162 }
 0x26b   : > { %2244 = vst.msk [vmem:[#allocation3 + $0x3c] sm:$0xf] %vm2228_vm1, %v2163_v33 }
 0x26c   : > { %v2165_v9 = vpop.permute.xlu0 %2164 }
 0x26d   : > { %2245 = vst.msk [vmem:[#allocation3 + $0x40] sm:$0xf] %vm2228_vm1, %v2165_v9 }
 0x26e   : > { %v2167_v15 = vpop.permute.xlu1 %2166 }
 0x26f   : > { %2246 = vst.msk [vmem:[#allocation3 + $0x44] sm:$0xf] %vm2228_vm1, %v2167_v15 }
 0x270   : > { %v2169_v56 = vpop.permute.xlu0 %2168 }
 0x271   : > { %2247 = vst.msk [vmem:[#allocation3 + $0x48] sm:$0xf] %vm2228_vm1, %v2169_v56  ;;  %v14428_v56 = vmov 0.0  }
 0x272   : > { %v2171_v61 = vpop.permute.xlu1 %2170  ;;  %2822 = vst.msk [vmem:[#allocation4 + $0x30] sm:$0xff] %vm2814_vm5, %v14428_v56  ;;  %2823 = vst.msk [vmem:[#allocation4 + $0x38] sm:$0xff] %vm2814_vm5, %v14428_v56 }
 0x273   : > { %2248 = vst.msk [vmem:[#allocation3 + $0x4c] sm:$0xf] %vm2228_vm1, %v2171_v61 }
 0x274   : > { %v2173_v6 = vpop.permute.xlu0 %2172  ;;  %2815 = vst.msk [vmem:[#allocation4] sm:$0xff] %vm2814_vm5, %v14428_v56  ;;  %2816 = vst.msk [vmem:[#allocation4 + $0x8] sm:$0xff] %vm2814_vm5, %v14428_v56 }
 0x275   : > { %2249 = vst.msk [vmem:[#allocation3 + $0x50] sm:$0xf] %vm2228_vm1, %v2173_v6 }
 0x276   : > { %v2175_v10 = vpop.permute.xlu1 %2174  ;;  %2819 = vst.msk [vmem:[#allocation4 + $0x18] sm:$0xff] %vm2814_vm5, %v14428_v56  ;;  %2820 = vst.msk [vmem:[#allocation4 + $0x20] sm:$0xff] %vm2814_vm5, %v14428_v56 }
 0x277   : > { %2250 = vst.msk [vmem:[#allocation3 + $0x54] sm:$0xf] %vm2228_vm1, %v2175_v10 }
 0x278   : > { %v2177_v4 = vpop.permute.xlu0 %2176  ;;  %2825 = vst.msk [vmem:[#allocation4 + $0x48] sm:$0xff] %vm2814_vm5, %v14428_v56  ;;  %2826 = vst.msk [vmem:[#allocation4 + $0x50] sm:$0xff] %vm2814_vm5, %v14428_v56 }
 0x279   : > { %2251 = vst.msk [vmem:[#allocation3 + $0x58] sm:$0xf] %vm2228_vm1, %v2177_v4 }
 0x27a   : > { %v2179_v21 = vpop.permute.xlu1 %2178  ;;  %2828 = vst.msk [vmem:[#allocation4 + $0x60] sm:$0xff] %vm2814_vm5, %v14428_v56  ;;  %2829 = vst.msk [vmem:[#allocation4 + $0x68] sm:$0xff] %vm2814_vm5, %v14428_v56 }
 0x27b   : > { %2252 = vst.msk [vmem:[#allocation3 + $0x5c] sm:$0xf] %vm2228_vm1, %v2179_v21  ;;  %v2903_v61 = vld [vmem:[#allocation4] sm:$0xff]  ;;  %v2904_v21 = vld [vmem:[#allocation4 + $0x8] sm:$0xff] }
 0x27c   : > { %v2181_v27 = vpop.permute.xlu0 %2180  ;;  %2831 = vst.msk [vmem:[#allocation4 + $0x78] sm:$0xff] %vm2814_vm5, %v14428_v56  ;;  %2832 = vst.msk [vmem:[#allocation4 + $0x80] sm:$0xff] %vm2814_vm5, %v14428_v56  ;;  %v10745_v6 = vpack.c.bf16 %v2903_v61, %v2903_v61 }
 0x27d   : > { %2253 = vst.msk [vmem:[#allocation3 + $0x60] sm:$0xf] %vm2228_vm1, %v2181_v27  ;;  %v10749_v27 = vpack.c.bf16 %v2904_v21, %v2904_v21 }
 0x27e   : > { %v2183_v26 = vpop.permute.xlu1 %2182  ;;  %2834 = vst.msk [vmem:[#allocation4 + $0x90] sm:$0xff] %vm2814_vm5, %v14428_v56  ;;  %2835 = vst.msk [vmem:[#allocation4 + $0x98] sm:$0xff] %vm2814_vm5, %v14428_v56  ;;  %v3183_v10 = vshrl.u32 %v10745_v6, 16  ;;  %v3186_v4 = vshll.u32 %v10745_v6, 16 }
 0x27f   : > { %2254 = vst.msk [vmem:[#allocation3 + $0x64] sm:$0xf] %vm2228_vm1, %v2183_v26 }
 0x280   : > { %v2185_v32 = vpop.permute.xlu0 %2184  ;;  %2837 = vst.msk [vmem:[#allocation4 + $0xa8] sm:$0xff] %vm2814_vm5, %v14428_v56  ;;  %2838 = vst.msk [vmem:[#allocation4 + $0xb0] sm:$0xff] %vm2814_vm5, %v14428_v56  ;;  %v3185_v26 = vrot.slane %v3183_v10, 4 }
 0x281   : > { %2255 = vst.msk [vmem:[#allocation3 + $0x68] sm:$0xf] %vm2228_vm1, %v2185_v32  ;;  %v3188_v32 = vrot.slane %v3186_v4, 5 }
 0x282   : > { %v2187_v38 = vpop.permute.xlu1 %2186  ;;  %2840 = vst.msk [vmem:[#allocation4 + $0xc0] sm:$0xff] %vm2814_vm5, %v14428_v56  ;;  %2841 = vst.msk [vmem:[#allocation4 + $0xc8] sm:$0xff] %vm2814_vm5, %v14428_v56 }
 0x283   : > { %2256 = vst.msk [vmem:[#allocation3 + $0x6c] sm:$0xf] %vm2228_vm1, %v2187_v38  ;;  %v3189_v38 = vor.u32 %v3188_v32, %v3185_v26 }
 0x284   : > { %v2189_v62 = vpop.permute.xlu0 %2188  ;;  %2843 = vst.msk [vmem:[#allocation4 + $0xd8] sm:$0xff] %vm2814_vm5, %v14428_v56  ;;  %2844 = vst.msk [vmem:[#allocation4 + $0xe0] sm:$0xff] %vm2814_vm5, %v14428_v56 }
 0x285   : > { %2257 = vst.msk [vmem:[#allocation3 + $0x70] sm:$0xf] %vm2228_vm1, %v2189_v62  ;;  %v3192_v62 = vshll.u32 %v10749_v27, 16 }
 0x286   : > { %v2191_v22 = vpop.permute.xlu1 %2190  ;;  %2846 = vst.msk [vmem:[#allocation4 + $0xf0] sm:$0xff] %vm2814_vm5, %v14428_v56  ;;  %2847 = vst.msk [vmem:[#allocation4 + $0xf8] sm:$0xff] %vm2814_vm5, %v14428_v56 }
 0x287   : > { %2258 = vst.msk [vmem:[#allocation3 + $0x74] sm:$0xf] %vm2228_vm1, %v2191_v22  ;;  %v3196_v22 = vshrl.u32 %v10749_v27, 16 }
 0x288   : > { %v2193_v0 = vpop.permute.xlu0 %2192  ;;  %2849 = vst.msk [vmem:[#allocation4 + $0x108] sm:$0xff] %vm2814_vm5, %v14428_v56  ;;  %2850 = vst.msk [vmem:[#allocation4 + $0x110] sm:$0xff] %vm2814_vm5, %v14428_v56 }
 0x289   : > { %2259 = vst.msk [vmem:[#allocation3 + $0x78] sm:$0xf] %vm2228_vm1, %v2193_v0 }
 0x28a   : > { %v2195_v7 = vpop.permute.xlu1 %2194  ;;  %2852 = vst.msk [vmem:[#allocation4 + $0x120] sm:$0xff] %vm2814_vm5, %v14428_v56  ;;  %2853 = vst.msk [vmem:[#allocation4 + $0x128] sm:$0xff] %vm2814_vm5, %v14428_v56 }
 0x28b   : > { %2260 = vst.msk [vmem:[#allocation3 + $0x7c] sm:$0xf] %vm2228_vm1, %v2195_v7  ;;  %v3190_v7 = vrot.slane %v3189_v38, 4 }
 0x28c   : > { %v2269_v60 = vpop.permute.xlu0 %2268  ;;  %2855 = vst.msk [vmem:[#allocation4 + $0x138] sm:$0xff] %vm2814_vm5, %v14428_v56  ;;  %2856 = vst.msk [vmem:[#allocation4 + $0x140] sm:$0xff] %vm2814_vm5, %v14428_v56 }
 0x28d   : > { %2365 = vst.msk [vmem:[#allocation3] sm:$0xf] %vm14215_vm2, %v2269_v60  ;;  %v3194_v60 = vrot.slane %v3192_v62, 5  ;;  %v2758_v62 = vld [vmem:[%s10770_s18 + $0x40] sm:$0xff] }
 0x28e   : > { %v2271_v55 = vpop.permute.xlu1 %2270  ;;  %2858 = vst.msk [vmem:[#allocation4 + $0x150] sm:$0xff] %vm2814_vm5, %v14428_v56  ;;  %2859 = vst.msk [vmem:[#allocation4 + $0x158] sm:$0xff] %vm2814_vm5, %v14428_v56 }
 0x28f   : > { %2366 = vst.msk [vmem:[#allocation3 + $0x4] sm:$0xf] %vm14215_vm2, %v2271_v55 }
 0x290   : > { %v2273_v29 = vpop.permute.xlu0 %2272  ;;  %2861 = vst.msk [vmem:[#allocation4 + $0x168] sm:$0xff] %vm2814_vm5, %v14428_v56  ;;  %2862 = vst.msk [vmem:[#allocation4 + $0x170] sm:$0xff] %vm2814_vm5, %v14428_v56 }
 0x291   : > { %2367 = vst.msk [vmem:[#allocation3 + $0x8] sm:$0xf] %vm14215_vm2, %v2273_v29  ;;  %v3198_v29 = vrot.slane %v3196_v22, 4 }
 0x292   : > { %v2275_v3 = vpop.permute.xlu1 %2274  ;;  %2864 = vst.msk [vmem:[#allocation4 + $0x180] sm:$0xff] %vm2814_vm5, %v14428_v56  ;;  %2865 = vst.msk [vmem:[#allocation4 + $0x188] sm:$0xff] %vm2814_vm5, %v14428_v56 }
 0x293   : > { %2368 = vst.msk [vmem:[#allocation3 + $0xc] sm:$0xf] %vm14215_vm2, %v2275_v3  ;;  %v3195_v3 = vsel %vm9239_vm4, %v3190_v7, %v3194_v60 }
 0x294   : > { %v2277_v12 = vpop.permute.xlu0 %2276  ;;  %2867 = vst.msk [vmem:[#allocation4 + $0x198] sm:$0xff] %vm2814_vm5, %v14428_v56  ;;  %2868 = vst.msk [vmem:[#allocation4 + $0x1a0] sm:$0xff] %vm2814_vm5, %v14428_v56  ;;  %3566 = vrot.lane.b32.xlu0 %v3195_v3, %s8879_s21 }
 0x295   : > { %2369 = vst.msk [vmem:[#allocation3 + $0x10] sm:$0xf] %vm14215_vm2, %v2277_v12  ;;  %v3199_v12 = vor.u32 %v3198_v29, %v3194_v60 }
 0x296   : > { %v2279_v47 = vpop.permute.xlu1 %2278  ;;  %v8820_v1 = vld [vmem:[#allocation3] sm:$0xff]   ;;  %2824 = vst.msk [vmem:[#allocation4 + $0x40] sm:$0x3] %vm2817_vm6, %v14428_v56  ;;  %2818 = vst.msk [vmem:[#allocation4 + $0x10] sm:$0x3] %vm2817_vm6, %v14428_v56 }
 0x297   : > { %2370 = vst.msk [vmem:[#allocation3 + $0x14] sm:$0xf] %vm14215_vm2, %v2279_v47  ;;  %8637 = vmatprep.mubr.msk.bf16.mxu0 %vm14214_vm3, %v8820_v1  ;;  %v3200_v1 = vrot.slane %v3199_v12, 4 }
 0x298   : > { %v2281_v13 = vpop.permute.xlu0 %2280  ;;  %2821 = vst.msk [vmem:[#allocation4 + $0x28] sm:$0x3] %vm2817_vm6, %v14428_v56  ;;  %2827 = vst.msk [vmem:[#allocation4 + $0x58] sm:$0x3] %vm2817_vm6, %v14428_v56 }
 0x299   : > { %2371 = vst.msk [vmem:[#allocation3 + $0x18] sm:$0xf] %vm14215_vm2, %v2281_v13 }
 0x29a   : > { %v2283_v43 = vpop.permute.xlu1 %2282  ;;  %v8821_v30 = vld [vmem:[#allocation3 + $0x8] sm:$0xff]   ;;  %2830 = vst.msk [vmem:[#allocation4 + $0x70] sm:$0x3] %vm2817_vm6, %v14428_v56  ;;  %2833 = vst.msk [vmem:[#allocation4 + $0x88] sm:$0x3] %vm2817_vm6, %v14428_v56 }
 0x29b   : > { %2372 = vst.msk [vmem:[#allocation3 + $0x1c] sm:$0xf] %vm14215_vm2, %v2283_v43  ;;  %8638 = vmatmul.mubr.msk.bf16.vlgmr.msra.gmra.mxu0 %vm14214_vm3, %v8821_v30  ;;  %v10775_v30 = vld [vmem:[%s14028_s3] ss:$0 sm:$0xff] }
 0x29c   : > { %v2285_v20 = vpop.permute.xlu0 %2284  ;;  %2836 = vst.msk [vmem:[#allocation4 + $0xa0] sm:$0x3] %vm2817_vm6, %v14428_v56  ;;  %2839 = vst.msk [vmem:[#allocation4 + $0xb8] sm:$0x3] %vm2817_vm6, %v14428_v56 }
 0x29d   : > { %2373 = vst.msk [vmem:[#allocation3 + $0x20] sm:$0xf] %vm14215_vm2, %v2285_v20  ;;  %v2905_v0 = vld [vmem:[#allocation4 + $0x10] sm:$0x3] }
 0x29e   : > { %v2287_v52 = vpop.permute.xlu1 %2286  ;;  %v8822_v23 = vld [vmem:[#allocation3 + $0x10] sm:$0xff]   ;;  %2842 = vst.msk [vmem:[#allocation4 + $0xd0] sm:$0x3] %vm2817_vm6, %v14428_v56  ;;  %2845 = vst.msk [vmem:[#allocation4 + $0xe8] sm:$0x3] %vm2817_vm6, %v14428_v56  ;;  %v10753_v55 = vpack.c.bf16 %v2905_v0, %v2905_v0 }
 0x29f   : > { %2374 = vst.msk [vmem:[#allocation3 + $0x24] sm:$0xf] %vm14215_vm2, %v2287_v52  ;;  %8641 = vmatprep.mubr.msk.bf16.mxu0 %vm14214_vm3, %v8822_v23  ;;  %v2752_v52 = vld [vmem:[%s10770_s18 + $0x10] sm:$0xff] }
 0x2a0   : > { %v2289_v35 = vpop.permute.xlu0 %2288  ;;  %2848 = vst.msk [vmem:[#allocation4 + $0x100] sm:$0x3] %vm2817_vm6, %v14428_v56  ;;  %2851 = vst.msk [vmem:[#allocation4 + $0x118] sm:$0x3] %vm2817_vm6, %v14428_v56  ;;  %v3202_v47 = vshll.u32 %v10753_v55, 16 }
 0x2a1   : > { %2375 = vst.msk [vmem:[#allocation3 + $0x28] sm:$0xf] %vm14215_vm2, %v2289_v35 }
 0x2a2   : > { %v2291_v53 = vpop.permute.xlu1 %2290  ;;  %v8823_v58 = vld [vmem:[#allocation3 + $0x18] sm:$0xff]   ;;  %2854 = vst.msk [vmem:[#allocation4 + $0x130] sm:$0x3] %vm2817_vm6, %v14428_v56  ;;  %2857 = vst.msk [vmem:[#allocation4 + $0x148] sm:$0x3] %vm2817_vm6, %v14428_v56  ;;  %v3204_v13 = vrot.slane %v3202_v47, 5 }
 0x2a3   : > { %2376 = vst.msk [vmem:[#allocation3 + $0x2c] sm:$0xf] %vm14215_vm2, %v2291_v53  ;;  %8642 = vmatmul.mubr.msk.bf16.gmra.mxu0 %vm14214_vm3, %v8823_v58  ;;  %v2750_v53 = vld [vmem:[%s10770_s18] sm:$0xff] }
 0x2a4   : > { %v2293_v19 = vpop.permute.xlu0 %2292  ;;  %2860 = vst.msk [vmem:[#allocation4 + $0x160] sm:$0x3] %vm2817_vm6, %v14428_v56  ;;  %2863 = vst.msk [vmem:[#allocation4 + $0x178] sm:$0x3] %vm2817_vm6, %v14428_v56  ;;  %v3205_v43 = vsel %vm9239_vm4, %v3200_v1, %v3204_v13 }
 0x2a5   : > { %2377 = vst.msk [vmem:[#allocation3 + $0x30] sm:$0xf] %vm14215_vm2, %v2293_v19  ;;  %3568 = vrot.lane.b32.xlu1 %v3205_v43, %s8879_s21 }
 0x2a6   : > { %v2295_v63 = vpop.permute.xlu1 %2294  ;;  %v8824_v39 = vld [vmem:[#allocation3 + $0x20] sm:$0xff]   ;;  %2866 = vst.msk [vmem:[#allocation4 + $0x190] sm:$0x3] %vm2817_vm6, %v14428_v56  ;;  %2869 = vst.msk [vmem:[#allocation4 + $0x1a8] sm:$0x3] %vm2817_vm6, %v14428_v56  ;;  %vm3085_vm6 = vcmask 60416  }
 0x2a7   : > { %2378 = vst.msk [vmem:[#allocation3 + $0x34] sm:$0xf] %vm14215_vm2, %v2295_v63  ;;  %8645 = vmatprep.mubr.msk.bf16.mxu0 %vm14214_vm3, %v8824_v39  ;;  %v2753_v39 = vld [vmem:[%s10770_s18 + $0x18] sm:$0xff] }
 0x2a8   : > { %v2297_v2 = vpop.permute.xlu0 %2296  ;;  %3086 = vst.msk [vmem:[#allocation5] sm:$0xf] %vm3085_vm6, %v10745_v6  ;;  %3087 = vst.msk [vmem:[#allocation5 + $0x4] sm:$0xf] %vm3085_vm6, %v10749_v27 }
 0x2a9   : > { %2379 = vst.msk [vmem:[#allocation3 + $0x38] sm:$0xf] %vm14215_vm2, %v2297_v2 }
 0x2aa   : > { %v2299_v46 = vpop.permute.xlu1 %2298  ;;  %v8825_v49 = vld [vmem:[#allocation3 + $0x28] sm:$0xff]  }
 0x2ab   : > { %2380 = vst.msk [vmem:[#allocation3 + $0x3c] sm:$0xf] %vm14215_vm2, %v2299_v46  ;;  %8646 = vmatmul.mubr.msk.bf16.gmra.mxu0 %vm14214_vm3, %v8825_v49 }
 0x2ac   : > { %v2301_v8 = vpop.permute.xlu0 %2300 }
 0x2ad   : > { %2381 = vst.msk [vmem:[#allocation3 + $0x40] sm:$0xf] %vm14215_vm2, %v2301_v8  ;;  %v2751_v8 = vld [vmem:[%s10770_s18 + $0x8] sm:$0xff] }
 0x2ae   : > { %v2303_v50 = vpop.permute.xlu1 %2302  ;;  %v8826_v24 = vld [vmem:[#allocation3 + $0x30] sm:$0xff]  }
 0x2af   : > { %2382 = vst.msk [vmem:[#allocation3 + $0x44] sm:$0xf] %vm14215_vm2, %v2303_v50  ;;  %8649 = vmatprep.mubr.msk.bf16.mxu0 %vm14214_vm3, %v8826_v24 }
 0x2b0   : > { %v2305_v51 = vpop.permute.xlu0 %2304 }
 0x2b1   : > { %2383 = vst.msk [vmem:[#allocation3 + $0x48] sm:$0xf] %vm14215_vm2, %v2305_v51 }
 0x2b2   : > { %v2307_v57 = vpop.permute.xlu1 %2306  ;;  %v8827_v31 = vld [vmem:[#allocation3 + $0x38] sm:$0xff]  }
 0x2b3   : > { %2384 = vst.msk [vmem:[#allocation3 + $0x4c] sm:$0xf] %vm14215_vm2, %v2307_v57  ;;  %8650 = vmatmul.mubr.msk.bf16.gmra.mxu0 %vm14214_vm3, %v8827_v31  ;;  %v2756_v57 = vld [vmem:[%s10770_s18 + $0x30] sm:$0xff] }
 0x2b4   : > { %v2309_v42 = vpop.permute.xlu0 %2308 }
 0x2b5   : > { %2385 = vst.msk [vmem:[#allocation3 + $0x50] sm:$0xf] %vm14215_vm2, %v2309_v42 }
 0x2b6   : > { %v2311_v11 = vpop.permute.xlu1 %2310  ;;  %v8828_v45 = vld [vmem:[#allocation3 + $0x40] sm:$0xff]  }
 0x2b7   : > { %2386 = vst.msk [vmem:[#allocation3 + $0x54] sm:$0xf] %vm14215_vm2, %v2311_v11  ;;  %8653 = vmatprep.mubr.msk.bf16.mxu0 %vm14214_vm3, %v8828_v45  ;;  %v2754_v45 = vld [vmem:[%s10770_s18 + $0x20] sm:$0xff] }
 0x2b8   : > { %v2313_v48 = vpop.permute.xlu0 %2312 }
 0x2b9   : > { %2387 = vst.msk [vmem:[#allocation3 + $0x58] sm:$0xf] %vm14215_vm2, %v2313_v48 }
 0x2ba   : > { %v2315_v28 = vpop.permute.xlu1 %2314  ;;  %v8829_v16 = vld [vmem:[#allocation3 + $0x48] sm:$0xff]  }
 0x2bb   : > { %2388 = vst.msk [vmem:[#allocation3 + $0x5c] sm:$0xf] %vm14215_vm2, %v2315_v28  ;;  %8654 = vmatmul.mubr.msk.bf16.gmra.mxu0 %vm14214_vm3, %v8829_v16 }
 0x2bc   : > { %v2317_v5 = vpop.permute.xlu0 %2316 }
 0x2bd   : > { %2389 = vst.msk [vmem:[#allocation3 + $0x60] sm:$0xf] %vm14215_vm2, %v2317_v5  ;;  %v2757_v5 = vld [vmem:[%s10770_s18 + $0x38] sm:$0xff] }
 0x2be   : > { %v2319_v44 = vpop.permute.xlu1 %2318  ;;  %v8830_v17 = vld [vmem:[#allocation3 + $0x50] sm:$0xff]  }
 0x2bf   : > { %2390 = vst.msk [vmem:[#allocation3 + $0x64] sm:$0xf] %vm14215_vm2, %v2319_v44  ;;  %8657 = vmatprep.mubr.msk.bf16.mxu0 %vm14214_vm3, %v8830_v17 }
 0x2c0   : > { %v2321_v37 = vpop.permute.xlu0 %2320 }
 0x2c1   : > { %2391 = vst.msk [vmem:[#allocation3 + $0x68] sm:$0xf] %vm14215_vm2, %v2321_v37 }
 0x2c2   : > { %v2323_v36 = vpop.permute.xlu1 %2322  ;;  %v8831_v14 = vld [vmem:[#allocation3 + $0x58] sm:$0xff]  }
 0x2c3   : > { %2392 = vst.msk [vmem:[#allocation3 + $0x6c] sm:$0xf] %vm14215_vm2, %v2323_v36  ;;  %8658 = vmatmul.mubr.msk.bf16.gmra.mxu0 %vm14214_vm3, %v8831_v14 }
 0x2c4   : > { %v2325_v34 = vpop.permute.xlu0 %2324 }
 0x2c5   : > { %2393 = vst.msk [vmem:[#allocation3 + $0x70] sm:$0xf] %vm14215_vm2, %v2325_v34  ;;  %v2755_v34 = vld [vmem:[%s10770_s18 + $0x28] sm:$0xff] }
 0x2c6   : > { %v2327_v59 = vpop.permute.xlu1 %2326  ;;  %v8832_v18 = vld [vmem:[#allocation3 + $0x60] sm:$0xff]  }
 0x2c7   : > { %2394 = vst.msk [vmem:[#allocation3 + $0x74] sm:$0xf] %vm14215_vm2, %v2327_v59  ;;  %8661 = vmatprep.mubr.msk.bf16.mxu0 %vm14214_vm3, %v8832_v18 }
 0x2c8   : > { %v2329_v54 = vpop.permute.xlu0 %2328 }
 0x2c9   : > { %2395 = vst.msk [vmem:[#allocation3 + $0x78] sm:$0xf] %vm14215_vm2, %v2329_v54 }
 0x2ca   : > { %v2331_v25 = vpop.permute.xlu1 %2330  ;;  %v8833_v33 = vld [vmem:[#allocation3 + $0x68] sm:$0xff]  }
 0x2cb   : > { %2396 = vst.msk [vmem:[#allocation3 + $0x7c] sm:$0xf] %vm14215_vm2, %v2331_v25  ;;  %8662 = vmatmul.mubr.msk.bf16.gmra.mxu0 %vm14214_vm3, %v8833_v33  ;;  %vm4979_vm2 = vcmask 588800  }
 0x2ce   : > { %v8834_v9 = vld [vmem:[#allocation3 + $0x70] sm:$0xff]  }
 0x2cf   : > { %8665 = vmatprep.mubr.msk.bf16.mxu0 %vm14214_vm3, %v8834_v9 }
 0x2d2   : > { %v8835_v15 = vld [vmem:[#allocation3 + $0x78] sm:$0xff]  }
 0x2d3   : > { %8666 = vmatmul.mubr.msk.bf16.gmra.mxu0 %vm14214_vm3, %v8835_v15  ;;  %v2760_v15 = vld [vmem:[%s10770_s18 + $0x50] sm:$0xff]  ;;  %vm4466_vm3 = vcmask 454016  }
 0x35b   : > { %v8639_v20 = vpop.f32.mrf.mxu0 }
 0x35c   : > { %v2632_v23 = vadd.f32 %v8639_v20, %v10775_v30  ;;  %v2761_v20 = vld [vmem:[%s10770_s18 + $0x58] sm:$0xff] }
 0x35d   : > { %v2623_v35 = vpop.f32.mrf.mxu0 }
 0x35e   : > { %v2784_v58 = vadd.f32 %v2752_v52, %v2632_v23  ;;  %v2624_v19 = vadd.f32 %v10775_v30, %v2623_v35 }
 0x35f   : > { %v8640_v63 = vpop.f32.mrf.mxu0 }
 0x360   : > { %2873 = vst.msk [vmem:[#allocation4 + $0x31] sm:$0xff] %vm2814_vm5, %v2784_v58  ;;  %v2782_v2 = vadd.f32 %v2750_v53, %v2624_v19  ;;  %v2635_v46 = vadd.f32 %v8640_v63, %v10775_v30 }
 0x361   : > { %v2626_v49 = vpop.f32.mrf.mxu0 }
 0x362   : > { %2871 = vst.msk [vmem:[#allocation4 + $0x19] sm:$0xff] %vm2814_vm5, %v2782_v2  ;;  %v2785_v50 = vadd.f32 %v2753_v39, %v2635_v46  ;;  %v2627_v24 = vadd.f32 %v10775_v30, %v2626_v49  ;;  %v2759_v46 = vld [vmem:[%s10770_s18 + $0x48] sm:$0xff] }
 0x363   : > { %v8643_v51 = vpop.f32.mrf.mxu0 }
 0x364   : > { %2874 = vst.msk [vmem:[#allocation4 + $0x39] sm:$0xff] %vm2814_vm5, %v2785_v50  ;;  %v2783_v31 = vadd.f32 %v2751_v8, %v2627_v24  ;;  %v2648_v42 = vadd.f32 %v8643_v51, %v10775_v30 }
 0x365   : > { %v2639_v11 = vpop.f32.mrf.mxu0 }
 0x366   : > { %2872 = vst.msk [vmem:[#allocation4 + $0x21] sm:$0xff] %vm2814_vm5, %v2783_v31  ;;  %v2788_v48 = vadd.f32 %v2756_v57, %v2648_v42  ;;  %v2640_v28 = vadd.f32 %v10775_v30, %v2639_v11 }
 0x367   : > { %v8644_v16 = vpop.f32.mrf.mxu0  ;;  %v2909_v44 = vld [vmem:[#allocation4 + $0x30] sm:$0xff] }
 0x368   : > { %2877 = vst.msk [vmem:[#allocation4 + $0x61] sm:$0xff] %vm2814_vm5, %v2788_v48  ;;  %v2786_v17 = vadd.f32 %v2754_v45, %v2640_v28  ;;  %v2651_v37 = vadd.f32 %v8644_v16, %v10775_v30  ;;  %v10796_v36 = vpack.c.bf16 %v2909_v44, %v2909_v44  ;;  %v2764_v28 = vld [vmem:[%s10770_s18 + $0x70] sm:$0xff] }
 0x369   : > { %v2642_v14 = vpop.f32.mrf.mxu0  ;;  %v2906_v59 = vld [vmem:[#allocation4 + $0x18] sm:$0xff] }
 0x36a   : > { %2875 = vst.msk [vmem:[#allocation4 + $0x49] sm:$0xff] %vm2814_vm5, %v2786_v17  ;;  %v2789_v18 = vadd.f32 %v2757_v5, %v2651_v37  ;;  %v2643_v54 = vadd.f32 %v10775_v30, %v2642_v14  ;;  %v10801_v25 = vpack.c.bf16 %v2906_v59, %v2906_v59  ;;  %v3231_v33 = vshrl.u32 %v10796_v36, 16 }
 0x36b   : > { %3090 = vst.msk [vmem:[#allocation5 + $0x10] sm:$0xf] %vm3085_vm6, %v10796_v36  ;;  %v8647_v9 = vpop.f32.mrf.mxu0  ;;  %v2910_v56 = vld [vmem:[#allocation4 + $0x38] sm:$0xff]  ;;  %v3234_v61 = vshll.u32 %v10796_v36, 16  ;;  %v2911_v10 = vld [vmem:[#allocation4 + $0x40] sm:$0x3] }
 0x36c   : > { %2878 = vst.msk [vmem:[#allocation4 + $0x69] sm:$0xff] %vm2814_vm5, %v2789_v18  ;;  %v2787_v4 = vadd.f32 %v2755_v34, %v2643_v54  ;;  %v2664_v21 = vadd.f32 %v8647_v9, %v10775_v30  ;;  %v3207_v26 = vshrl.u32 %v10801_v25, 16  ;;  %v3210_v32 = vshll.u32 %v10801_v25, 16  ;;  %v2762_v54 = vld [vmem:[%s10770_s18 + $0x60] sm:$0xff] }
 0x36d   : > { %3088 = vst.msk [vmem:[#allocation5 + $0x8] sm:$0xf] %vm3085_vm6, %v10801_v25  ;;  %v2655_v38 = vpop.f32.mrf.mxu0  ;;  %v2907_v22 = vld [vmem:[#allocation4 + $0x20] sm:$0xff]  ;;  %v2908_v0 = vld [vmem:[#allocation4 + $0x28] sm:$0x3]  ;;  %v10815_v7 = vpack.c.bf16 %v2910_v56, %v2910_v56  ;;  %v3233_v60 = vrot.slane %v3231_v33, 4  ;;  %v10817_v3 = vpack.c.bf16 %v2911_v10, %v2911_v10 }
 0x36e   : > { %v3236_v29 = vrot.slane %v3234_v61, 5  ;;  %2876 = vst.msk [vmem:[#allocation4 + $0x51] sm:$0xff] %vm2814_vm5, %v2787_v4  ;;  %v2792_v12 = vadd.f32 %v2760_v15, %v2664_v21  ;;  %v2656_v47 = vadd.f32 %v10775_v30, %v2655_v38  ;;  %v10821_v1 = vpack.c.bf16 %v2907_v22, %v2907_v22 }
 0x36f   : > { %v3209_v13 = vrot.slane %v3207_v26, 4  ;;  %v8648_v43 = vpop.f32.mrf.mxu0  ;;  %v3212_v52 = vrot.slane %v3210_v32, 5  ;;  %v10824_v23 = vpack.c.bf16 %v2908_v0, %v2908_v0  ;;  %v3240_v53 = vshll.u32 %v10815_v7, 16  ;;  %3091 = vst.msk [vmem:[#allocation5 + $0x14] sm:$0xf] %vm3085_vm6, %v10815_v7  ;;  %v2915_v45 = vld [vmem:[#allocation4 + $0x60] sm:$0xff] }
 0x370   : > { %v3237_v35 = vor.u32 %v3236_v29, %v3233_v60  ;;  %2881 = vst.msk [vmem:[#allocation4 + $0x91] sm:$0xff] %vm2814_vm5, %v2792_v12  ;;  %v2790_v58 = vadd.f32 %v2758_v62, %v2656_v47  ;;  %v2667_v19 = vadd.f32 %v8648_v43, %v10775_v30  ;;  %v3216_v63 = vshll.u32 %v10821_v1, 16  ;;  %v2765_v62 = vld [vmem:[%s10770_s18 + $0x78] sm:$0xff] }
 0x371   : > { %v3220_v39 = vshrl.u32 %v10821_v1, 16  ;;  %3089 = vst.msk [vmem:[#allocation5 + $0xc] sm:$0xf] %vm3085_vm6, %v10821_v1  ;;  %v2658_v2 = vpop.f32.mrf.mxu0  ;;  %v3213_v49 = vor.u32 %v3212_v52, %v3209_v13  ;;  %v3226_v8 = vshll.u32 %v10824_v23, 16  ;;  %v3242_v24 = vrot.slane %v3240_v53, 5  ;;  %v2912_v11 = vld [vmem:[#allocation4 + $0x48] sm:$0xff] }
 0x372   : > { %v3238_v50 = vrot.slane %v3237_v35, 4  ;;  %2879 = vst.msk [vmem:[#allocation4 + $0x79] sm:$0xff] %vm2814_vm5, %v2790_v58  ;;  %v2793_v51 = vadd.f32 %v2761_v20, %v2667_v19  ;;  %v2659_v57 = vadd.f32 %v10775_v30, %v2658_v2  ;;  %v3218_v31 = vrot.slane %v3216_v63, 5  ;;  %v2763_v35 = vld [vmem:[%s10770_s18 + $0x68] sm:$0xff] }
 0x373   : > { %v3222_v42 = vrot.slane %v3220_v39, 4  ;;  %v8651_v48 = vpop.f32.mrf.mxu0  ;;  %v3214_v16 = vrot.slane %v3213_v49, 4  ;;  %v3228_v5 = vrot.slane %v3226_v8, 5  ;;  %v3244_v17 = vshrl.u32 %v10815_v7, 16  ;;  %v2916_v20 = vld [vmem:[#allocation4 + $0x68] sm:$0xff] }
 0x374   : > { %v10842_v44 = vsel %vm9239_vm4, %v3238_v50, %v3242_v24  ;;  %2882 = vst.msk [vmem:[#allocation4 + $0x99] sm:$0xff] %vm2814_vm5, %v2793_v51  ;;  %v2791_v37 = vadd.f32 %v2759_v46, %v2659_v57  ;;  %v2680_v14 = vadd.f32 %v8651_v48, %v10775_v30  ;;  %v3250_v59 = vshll.u32 %v10817_v3, 16  ;;  %v2768_v50 = vld [vmem:[%s10770_s18 + $0x90] sm:$0xff] }
 0x375   : > { %14429 = vst [vmem:[#allocation9_spill] sm:$0xff] %v10842_v44  ;;  %v3223_v34 = vor.u32 %v3222_v42, %v3218_v31  ;;  %v2671_v18 = vpop.f32.mrf.mxu0  ;;  %v10851_v33 = vsel %vm9239_vm4, %v3214_v16, %v3218_v31  ;;  %v3246_v9 = vrot.slane %v3244_v17, 4  ;;  %v2913_v15 = vld [vmem:[#allocation4 + $0x50] sm:$0xff]  ;;  %v10853_v56 = vpack.c.bf16 %v2912_v11, %v2912_v11  ;;  %v2914_v61 = vld [vmem:[#allocation4 + $0x58] sm:$0x3] }
 0x376   : > { %14430 = vst [vmem:[#allocation10_spill] sm:$0xff] %v10851_v33  ;;  %v10855_v10 = vpack.c.bf16 %v2915_v45, %v2915_v45  ;;  %2880 = vst.msk [vmem:[#allocation4 + $0x81] sm:$0xff] %vm2814_vm5, %v2791_v37  ;;  %v2796_v4 = vadd.f32 %v2764_v28, %v2680_v14  ;;  %v2672_v21 = vadd.f32 %v10775_v30, %v2671_v18  ;;  %3570 = vrot.lane.b32.xlu0 %v10851_v33, %s8879_s21  ;;  %v2917_v42 = vld [vmem:[#allocation4 + $0x70] sm:$0x3] }
 0x377   : > { %v3224_v26 = vrot.slane %v3223_v34, 4  ;;  %v3252_v32 = vrot.slane %v3250_v59, 5  ;;  %v8652_v38 = vpop.f32.mrf.mxu0  ;;  %v3247_v22 = vor.u32 %v3246_v9, %v3242_v24  ;;  %v10862_v0 = vpack.c.bf16 %v2913_v15, %v2913_v15  ;;  %3092 = vst.msk [vmem:[#allocation5 + $0x18] sm:$0xf] %vm3085_vm6, %v10853_v56 }
 0x378   : > { %v3255_v60 = vshrl.u32 %v10853_v56, 16  ;;  %v3258_v29 = vshll.u32 %v10853_v56, 16  ;;  %3094 = vst.msk [vmem:[#allocation5 + $0x20] sm:$0xf] %vm3085_vm6, %v10855_v10  ;;  %v2794_v12 = vadd.f32 %v2762_v54, %v2672_v21  ;;  %v2683_v47 = vadd.f32 %v8652_v38, %v10775_v30 }
 0x379   : > { %2885 = vst.msk [vmem:[#allocation4 + $0xc1] sm:$0xff] %vm2814_vm5, %v2796_v4  ;;  %v10874_v13 = vsel %vm9239_vm4, %v3224_v26, %v3228_v5  ;;  %v10876_v43 = vpack.c.bf16 %v2914_v61, %v2914_v61  ;;  %v2674_v52 = vpop.f32.mrf.mxu0  ;;  %v3248_v53 = vrot.slane %v3247_v22, 4  ;;  %v3264_v63 = vshll.u32 %v10862_v0, 16  ;;  %v2766_v5 = vld [vmem:[%s10770_s18 + $0x80] sm:$0xff]  ;;  %v2918_v15 = vld [vmem:[#allocation4 + $0x78] sm:$0xff]  ;;  %v2769_v26 = vld [vmem:[%s10770_s18 + $0x98] sm:$0xff] }
 0x37a   : > { %14431 = vst [vmem:[#allocation39_spill] sm:$0xff] %v10874_v13  ;;  %3572 = vrot.lane.b32.xlu1 %v10874_v13, %s8879_s21  ;;  %v3257_v58 = vrot.slane %v3255_v60, 4  ;;  %v3260_v19 = vrot.slane %v3258_v29, 5  ;;  %3093 = vst.msk [vmem:[#allocation5 + $0x1c] sm:$0xf] %vm3085_vm6, %v10862_v0  ;;  %v2797_v39 = vadd.f32 %v2765_v62, %v2683_v47  ;;  %v2675_v2 = vadd.f32 %v10775_v30, %v2674_v52 }
 0x37b   : > { %2883 = vst.msk [vmem:[#allocation4 + $0xa9] sm:$0xff] %vm2814_vm5, %v2794_v12  ;;  %3574 = vrot.lane.b32.xlu0 %v10842_v44, %s8879_s21  ;;  %v3268_v46 = vshrl.u32 %v10862_v0, 16  ;;  %v3274_v49 = vshll.u32 %v10876_v43, 16  ;;  %v8655_v8 = vpop.f32.mrf.mxu0  ;;  %v10893_v24 = vsel %vm9239_vm4, %v3248_v53, %v3252_v32  ;;  %v3266_v57 = vrot.slane %v3264_v63, 5 }
 0x37c   : > { %14432 = vst [vmem:[#allocation44_spill] sm:$0xff] %v10893_v24  ;;  %v3261_v51 = vor.u32 %v3260_v19, %v3257_v58  ;;  %v10895_v31 = vpack.c.bf16 %v2916_v20, %v2916_v20  ;;  %2886 = vst.msk [vmem:[#allocation4 + $0xc9] sm:$0xff] %vm2814_vm5, %v2797_v39  ;;  %v2795_v11 = vadd.f32 %v2763_v35, %v2675_v2  ;;  %v3279_v37 = vshrl.u32 %v10855_v10, 16  ;;  %v2767_v20 = vld [vmem:[%s10770_s18 + $0x88] sm:$0xff] }
 0x37d   : > { %v2696_v45 = vadd.f32 %v8655_v8, %v10775_v30  ;;  %v3270_v48 = vrot.slane %v3268_v46, 4  ;;  %v3276_v28 = vrot.slane %v3274_v49, 5  ;;  %v2687_v16 = vpop.f32.mrf.mxu0  ;;  %v3282_v14 = vshll.u32 %v10855_v10, 16  ;;  %v2919_v61 = vld [vmem:[#allocation4 + $0x80] sm:$0xff]  ;;  %v2920_v46 = vld [vmem:[#allocation4 + $0x88] sm:$0x3] }
 0x37e   : > { %3576 = vrot.lane.b32.xlu1 %v10893_v24, %s8879_s21  ;;  %v3262_v17 = vrot.slane %v3261_v51, 4  ;;  %v3288_v34 = vshll.u32 %v10895_v31, 16  ;;  %3095 = vst.msk [vmem:[#allocation5 + $0x24] sm:$0xf] %vm3085_vm6, %v10895_v31  ;;  %v2688_v18 = vadd.f32 %v10775_v30, %v2687_v16  ;;  %v10909_v9 = vpack.c.bf16 %v2917_v42, %v2917_v42  ;;  %v2921_v16 = vld [vmem:[#allocation4 + $0x90] sm:$0xff] }
 0x37f   : > { %2884 = vst.msk [vmem:[#allocation4 + $0xb1] sm:$0xff] %vm2814_vm5, %v2795_v11  ;;  %v2800_v59 = vadd.f32 %v2768_v50, %v2696_v45  ;;  %v3271_v54 = vor.u32 %v3270_v48, %v3266_v57  ;;  %v8656_v21 = vpop.f32.mrf.mxu0  ;;  %v3281_v32 = vrot.slane %v3279_v37, 4  ;;  %v3284_v38 = vrot.slane %v3282_v14, 5  ;;  %v2772_v50 = vld [vmem:[%s10770_s18 + $0xb0] sm:$0xff]  ;;  %v2770_v37 = vld [vmem:[%s10770_s18 + $0xa0] sm:$0xff] }
 0x380   : > { %v10913_v4 = vsel %vm9239_vm4, %v3262_v17, %v3266_v57  ;;  %v3290_v62 = vrot.slane %v3288_v34, 5  ;;  %v2798_v22 = vadd.f32 %v2766_v5, %v2688_v18  ;;  %v2699_v60 = vadd.f32 %v8656_v21, %v10775_v30  ;;  %v2922_v18 = vld [vmem:[#allocation4 + $0x98] sm:$0xff] }
 0x381   : > { %14433 = vst [vmem:[#allocation45_spill] sm:$0xff] %v10913_v4  ;;  %2889 = vst.msk [vmem:[#allocation4 + $0xf1] sm:$0xff] %vm2814_vm5, %v2800_v59  ;;  %3578 = vrot.lane.b32.xlu0 %v10913_v4, %s8879_s21  ;;  %v3272_v29 = vrot.slane %v3271_v54, 4  ;;  %v3292_v12 = vshrl.u32 %v10895_v31, 16  ;;  %v2690_v47 = vpop.f32.mrf.mxu0  ;;  %v3285_v52 = vor.u32 %v3284_v38, %v3281_v32  ;;  %v3298_v35 = vshll.u32 %v10909_v9, 16  ;;  %v2773_v38 = vld [vmem:[%s10770_s18 + $0xb8] sm:$0xff] }
 0x382   : > { %v10923_v53 = vpack.c.bf16 %v2918_v15, %v2918_v15  ;;  %v10925_v58 = vpack.c.bf16 %v2919_v61, %v2919_v61  ;;  %2887 = vst.msk [vmem:[#allocation4 + $0xd9] sm:$0xff] %vm2814_vm5, %v2798_v22  ;;  %v2801_v19 = vadd.f32 %v2769_v26, %v2699_v60  ;;  %v2691_v63 = vadd.f32 %v10775_v30, %v2690_v47 }
 0x383   : > { %v10931_v39 = vsel %vm9239_vm4, %v3272_v29, %v3276_v28  ;;  %v3294_v2 = vrot.slane %v3292_v12, 4  ;;  %v3286_v49 = vrot.slane %v3285_v52, 4  ;;  %v8659_v8 = vpop.f32.mrf.mxu0  ;;  %v3300_v51 = vrot.slane %v3298_v35, 5  ;;  %v2923_v52 = vld [vmem:[#allocation4 + $0xa0] sm:$0x3] }
 0x384   : > { %14434 = vst [vmem:[#allocation46_spill] sm:$0xff] %v10931_v39  ;;  %3580 = vrot.lane.b32.xlu1 %v10931_v39, %s8879_s21  ;;  %v3303_v57 = vshrl.u32 %v10923_v53, 16  ;;  %v3306_v42 = vshll.u32 %v10923_v53, 16  ;;  %3096 = vst.msk [vmem:[#allocation5 + $0x28] sm:$0xf] %vm3085_vm6, %v10923_v53  ;;  %v2799_v11 = vadd.f32 %v2767_v20, %v2691_v63  ;;  %v2712_v45 = vadd.f32 %v8659_v8, %v10775_v30  ;;  %v2771_v63 = vld [vmem:[%s10770_s18 + $0xa8] sm:$0xff] }
 0x385   : > { %3097 = vst.msk [vmem:[#allocation5 + $0x2c] sm:$0xf] %vm3085_vm6, %v10925_v58  ;;  %v3295_v48 = vor.u32 %v3294_v2, %v3290_v62  ;;  %v3312_v28 = vshll.u32 %v10925_v58, 16  ;;  %v10947_v5 = vsel %vm9239_vm4, %v3286_v49, %v3290_v62  ;;  %v2703_v17 = vpop.f32.mrf.mxu0  ;;  %v10950_v59 = vpack.c.bf16 %v2920_v46, %v2920_v46 }
 0x386   : > { %2890 = vst.msk [vmem:[#allocation4 + $0xf9] sm:$0xff] %vm2814_vm5, %v2801_v19  ;;  %14435 = vst [vmem:[#allocation47_spill] sm:$0xff] %v10947_v5  ;;  %v3305_v14 = vrot.slane %v3303_v57, 4  ;;  %v3308_v34 = vrot.slane %v3306_v42, 5  ;;  %3582 = vrot.lane.b32.xlu0 %v10947_v5, %s8879_s21  ;;  %v2804_v54 = vadd.f32 %v2772_v50, %v2712_v45  ;;  %v2704_v15 = vadd.f32 %v10775_v30, %v2703_v17  ;;  %v2924_v42 = vld [vmem:[#allocation4 + $0xa8] sm:$0xff] }
 0x387   : > { %2888 = vst.msk [vmem:[#allocation4 + $0xe1] sm:$0xff] %vm2814_vm5, %v2799_v11  ;;  %v3296_v61 = vrot.slane %v3295_v48, 4  ;;  %v3314_v21 = vrot.slane %v3312_v28, 5  ;;  %v8660_v32 = vpop.f32.mrf.mxu0  ;;  %v3316_v62 = vshrl.u32 %v10925_v58, 16  ;;  %v3322_v22 = vshll.u32 %v10950_v59, 16 }
 0x388   : > { %v3309_v26 = vor.u32 %v3308_v34, %v3305_v14  ;;  %v10959_v60 = vpack.c.bf16 %v2921_v16, %v2921_v16  ;;  %2893 = vst.msk [vmem:[#allocation4 + $0x121] sm:$0xff] %vm2814_vm5, %v2804_v54  ;;  %v2802_v29 = vadd.f32 %v2770_v37, %v2704_v15  ;;  %v2715_v47 = vadd.f32 %v8660_v32, %v10775_v30  ;;  %v2776_v16 = vld [vmem:[%s10770_s18 + $0xd0] sm:$0xff]  ;;  %v2925_v37 = vld [vmem:[#allocation4 + $0xb0] sm:$0xff] }
 0x389   : > { %v10964_v12 = vsel %vm9239_vm4, %v3296_v61, %v3300_v51  ;;  %v10967_v20 = vpack.c.bf16 %v2922_v18, %v2922_v18  ;;  %v2706_v19 = vpop.f32.mrf.mxu0  ;;  %v3318_v2 = vrot.slane %v3316_v62, 4  ;;  %v3324_v46 = vrot.slane %v3322_v22, 5 }
 0x38a   : > { %14436 = vst [vmem:[#allocation48_spill] sm:$0xff] %v10964_v12  ;;  %3584 = vrot.lane.b32.xlu1 %v10964_v12, %s8879_s21  ;;  %v3310_v35 = vrot.slane %v3309_v26, 4  ;;  %v3327_v49 = vshrl.u32 %v10959_v60, 16  ;;  %3098 = vst.msk [vmem:[#allocation5 + $0x30] sm:$0xf] %vm3085_vm6, %v10959_v60  ;;  %v2805_v8 = vadd.f32 %v2773_v38, %v2715_v47  ;;  %v2707_v50 = vadd.f32 %v10775_v30, %v2706_v19  ;;  %v2774_v26 = vld [vmem:[%s10770_s18 + $0xc0] sm:$0xff] }
 0x38b   : > { %2891 = vst.msk [vmem:[#allocation4 + $0x109] sm:$0xff] %vm2814_vm5, %v2802_v29  ;;  %v3330_v51 = vshll.u32 %v10959_v60, 16  ;;  %v3336_v57 = vshll.u32 %v10967_v20, 16  ;;  %v3319_v45 = vor.u32 %v3318_v2, %v3314_v21  ;;  %v8663_v28 = vpop.f32.mrf.mxu0  ;;  %v10986_v17 = vpack.c.bf16 %v2923_v52, %v2923_v52  ;;  %v2926_v52 = vld [vmem:[#allocation4 + $0xb8] sm:$0x3] }
 0x38c   : > { %3099 = vst.msk [vmem:[#allocation5 + $0x34] sm:$0xf] %vm3085_vm6, %v10967_v20  ;;  %v10983_v11 = vsel %vm9239_vm4, %v3310_v35, %v3314_v21  ;;  %v3329_v48 = vrot.slane %v3327_v49, 4  ;;  %v2803_v14 = vadd.f32 %v2771_v63, %v2707_v50  ;;  %v2728_v54 = vadd.f32 %v8663_v28, %v10775_v30 }
 0x38d   : > { %14437 = vst [vmem:[#allocation27_spill] sm:$0xff] %v10983_v11  ;;  %3586 = vrot.lane.b32.xlu0 %v10983_v11, %s8879_s21  ;;  %2894 = vst.msk [vmem:[#allocation4 + $0x129] sm:$0xff] %vm2814_vm5, %v2805_v8  ;;  %v3332_v34 = vrot.slane %v3330_v51, 5  ;;  %v3338_v18 = vrot.slane %v3336_v57, 5  ;;  %v3320_v15 = vrot.slane %v3319_v45, 4  ;;  %v2719_v61 = vpop.f32.mrf.mxu0  ;;  %v3340_v21 = vshrl.u32 %v10967_v20, 16 }
 0x38e   : > { %v3346_v32 = vshll.u32 %v10986_v17, 16  ;;  %v10995_v38 = vpack.c.bf16 %v2924_v42, %v2924_v42  ;;  %2892 = vst.msk [vmem:[#allocation4 + $0x111] sm:$0xff] %vm2814_vm5, %v2803_v14  ;;  %v2808_v22 = vadd.f32 %v2776_v16, %v2728_v54  ;;  %v2720_v29 = vadd.f32 %v10775_v30, %v2719_v61  ;;  %v2777_v57 = vld [vmem:[%s10770_s18 + $0xd8] sm:$0xff]  ;;  %v2775_v16 = vld [vmem:[%s10770_s18 + $0xc8] sm:$0xff]  ;;  %v2927_v14 = vld [vmem:[#allocation4 + $0xc0] sm:$0xff] }
 0x38f   : > { %v3333_v62 = vor.u32 %v3332_v34, %v3329_v48  ;;  %v10999_v47 = vpack.c.bf16 %v2925_v37, %v2925_v37  ;;  %v11003_v35 = vsel %vm9239_vm4, %v3320_v15, %v3324_v46  ;;  %v3342_v19 = vrot.slane %v3340_v21, 4  ;;  %v8664_v49 = vpop.f32.mrf.mxu0  ;;  %v2928_v34 = vld [vmem:[#allocation4 + $0xc8] sm:$0xff] }
 0x390   : > { %14438 = vst [vmem:[#allocation52_spill] sm:$0xff] %v11003_v35  ;;  %v3348_v63 = vrot.slane %v3346_v32, 5  ;;  %v3351_v2 = vshrl.u32 %v10995_v38, 16  ;;  %3100 = vst.msk [vmem:[#allocation5 + $0x38] sm:$0xf] %vm3085_vm6, %v10995_v38  ;;  %3588 = vrot.lane.b32.xlu1 %v11003_v35, %s8879_s21  ;;  %v2806_v50 = vadd.f32 %v2774_v26, %v2720_v29  ;;  %v3354_v51 = vshll.u32 %v10995_v38, 16 }
 0x391   : > { %v3334_v8 = vrot.slane %v3333_v62, 4  ;;  %2897 = vst.msk [vmem:[#allocation4 + $0x151] sm:$0xff] %vm2814_vm5, %v2808_v22  ;;  %v3360_v46 = vshll.u32 %v10999_v47, 16  ;;  %v3343_v42 = vor.u32 %v3342_v19, %v3338_v18  ;;  %v2731_v48 = vadd.f32 %v8664_v49, %v10775_v30  ;;  %v2722_v28 = vpop.f32.mrf.mxu0  ;;  %v2780_v49 = vld [vmem:[%s10770_s18 + $0xf0] sm:$0xff] }
 0x392   : > { %3101 = vst.msk [vmem:[#allocation5 + $0x3c] sm:$0xf] %vm3085_vm6, %v10999_v47  ;;  %v3353_v45 = vrot.slane %v3351_v2, 4  ;;  %v11018_v37 = vpack.c.bf16 %v2926_v52, %v2926_v52  ;;  %v3356_v15 = vrot.slane %v3354_v51, 5  ;;  %v2723_v26 = vadd.f32 %v10775_v30, %v2722_v28 }
 0x393   : > { %v11022_v54 = vsel %vm9239_vm4, %v3334_v8, %v3338_v18  ;;  %2895 = vst.msk [vmem:[#allocation4 + $0x139] sm:$0xff] %vm2814_vm5, %v2806_v50  ;;  %v3362_v61 = vrot.slane %v3360_v46, 5  ;;  %v3344_v21 = vrot.slane %v3343_v42, 4  ;;  %v2809_v32 = vadd.f32 %v2777_v57, %v2731_v48  ;;  %v8667_v29 = vpop.f32.mrf.mxu0  ;;  %v2929_v8 = vld [vmem:[#allocation4 + $0xd0] sm:$0x3] }
 0x394   : > { %14439 = vst [vmem:[#allocation30_spill] sm:$0xff] %v11022_v54  ;;  %3590 = vrot.lane.b32.xlu0 %v11022_v54, %s8879_s21  ;;  %v3364_v62 = vshrl.u32 %v10999_v47, 16  ;;  %v3370_v22 = vshll.u32 %v11018_v37, 16  ;;  %v3357_v52 = vor.u32 %v3356_v15, %v3353_v45  ;;  %v2807_v19 = vadd.f32 %v2775_v16, %v2723_v26  ;;  %v2778_v16 = vld [vmem:[%s10770_s18 + $0xe0] sm:$0xff] }
 0x395   : > { %v11030_v18 = vpack.c.bf16 %v2927_v14, %v2927_v14  ;;  %v11032_v2 = vpack.c.bf16 %v2928_v34, %v2928_v34  ;;  %v11037_v50 = vsel %vm9239_vm4, %v3344_v21, %v3348_v63  ;;  %2898 = vst.msk [vmem:[#allocation4 + $0x159] sm:$0xff] %vm2814_vm5, %v2809_v32  ;;  %v2744_v57 = vadd.f32 %v8667_v29, %v10775_v30  ;;  %v2735_v42 = vpop.f32.mrf.mxu0  ;;  %v2930_v21 = vld [vmem:[#allocation4 + $0xd8] sm:$0xff]  ;;  %v2931_v32 = vld [vmem:[#allocation4 + $0xe0] sm:$0xff]  ;;  %v2941_v5 = vld [vmem:[#allocation4 + $0x130] sm:$0x3] }
 0x396   : > { %14440 = vst [vmem:[#allocation31_spill] sm:$0xff] %v11037_v50  ;;  %v3366_v51 = vrot.slane %v3364_v62, 4  ;;  %v3372_v46 = vrot.slane %v3370_v22, 5  ;;  %3592 = vrot.lane.b32.xlu1 %v11037_v50, %s8879_s21  ;;  %v3358_v45 = vrot.slane %v3357_v52, 4  ;;  %2896 = vst.msk [vmem:[#allocation4 + $0x141] sm:$0xff] %vm2814_vm5, %v2807_v19  ;;  %v2736_v15 = vadd.f32 %v10775_v30, %v2735_v42 }
 0x397   : > { %v3375_v48 = vshrl.u32 %v11030_v18, 16  ;;  %v3378_v28 = vshll.u32 %v11030_v18, 16  ;;  %v3384_v63 = vshll.u32 %v11032_v2, 16  ;;  %3102 = vst.msk [vmem:[#allocation5 + $0x40] sm:$0xf] %vm3085_vm6, %v11030_v18  ;;  %v2812_v34 = vadd.f32 %v2780_v49, %v2744_v57  ;;  %v8668_v62 = vpop.f32.mrf.mxu0 }
 0x398   : > { %3103 = vst.msk [vmem:[#allocation5 + $0x44] sm:$0xf] %vm3085_vm6, %v11032_v2  ;;  %v3367_v14 = vor.u32 %v3366_v51, %v3362_v61  ;;  %v11053_v26 = vpack.c.bf16 %v2929_v8, %v2929_v8  ;;  %v11057_v22 = vsel %vm9239_vm4, %v3358_v45, %v3362_v61  ;;  %v2810_v8 = vadd.f32 %v2778_v16, %v2736_v15  ;;  %v2945_v13 = vld [vmem:[#allocation4 + $0x150] sm:$0xff] }
 0x399   : > { %14441 = vst [vmem:[#allocation33_spill] sm:$0xff] %v11057_v22  ;;  %v3377_v29 = vrot.slane %v3375_v48, 4  ;;  %v3380_v52 = vrot.slane %v3378_v28, 5  ;;  %v3386_v19 = vrot.slane %v3384_v63, 5  ;;  %3594 = vrot.lane.b32.xlu0 %v11057_v22, %s8879_s21  ;;  %2901 = vst.msk [vmem:[#allocation4 + $0x181] sm:$0xff] %vm2814_vm5, %v2812_v34  ;;  %v3388_v51 = vshrl.u32 %v11032_v2, 16  ;;  %v2738_v42 = vpop.f32.mrf.mxu0 }
 0x39a   : > { %v3368_v49 = vrot.slane %v3367_v14, 4  ;;  %v3394_v57 = vshll.u32 %v11053_v26, 16  ;;  %v11064_v54 = vpack.c.bf16 %v2930_v21, %v2930_v21  ;;  %v11066_v61 = vpack.c.bf16 %v2931_v32, %v2931_v32  ;;  %v2781_v48 = vld [vmem:[%s10770_s18 + $0xf8] sm:$0xff]  ;;  %v2779_v28 = vld [vmem:[%s10770_s18 + $0xe8] sm:$0xff]  ;;  %2899 = vst.msk [vmem:[#allocation4 + $0x169] sm:$0xff] %vm2814_vm5, %v2810_v8 }
 0x39b   : > { %v3381_v50 = vor.u32 %v3380_v52, %v3377_v29  ;;  %v2747_v45 = vadd.f32 %v8668_v62, %v10775_v30  ;;  %v2932_v63 = vld [vmem:[#allocation4 + $0xe8] sm:$0x3]  ;;  %v3390_v16 = vrot.slane %v3388_v51, 4  ;;  %v2739_v15 = vadd.f32 %v10775_v30, %v2738_v42  ;;  %v2933_v52 = vld [vmem:[#allocation4 + $0xf0] sm:$0xff]  ;;  %v2934_v51 = vld [vmem:[#allocation4 + $0xf8] sm:$0xff] }
 0x39c   : > { %v11073_v14 = vsel %vm9239_vm4, %v3368_v49, %v3372_v46  ;;  %v3396_v34 = vrot.slane %v3394_v57, 5  ;;  %v3399_v32 = vshrl.u32 %v11064_v54, 16  ;;  %v3402_v62 = vshll.u32 %v11064_v54, 16  ;;  %3104 = vst.msk [vmem:[#allocation5 + $0x48] sm:$0xf] %vm3085_vm6, %v11064_v54  ;;  %v2936_v57 = vld [vmem:[#allocation4 + $0x108] sm:$0xff] }
 0x39d   : > { %14442 = vst [vmem:[#allocation36_spill] sm:$0xff] %v11073_v14  ;;  %3596 = vrot.lane.b32.xlu1 %v11073_v14, %s8879_s21  ;;  %v3382_v21 = vrot.slane %v3381_v50, 4  ;;  %v3408_v29 = vshll.u32 %v11066_v61, 16  ;;  %3105 = vst.msk [vmem:[#allocation5 + $0x4c] sm:$0xf] %vm3085_vm6, %v11066_v61  ;;  %v3391_v46 = vor.u32 %v3390_v16, %v3386_v19  ;;  %v2813_v49 = vadd.f32 %v2781_v48, %v2747_v45 }
 0x39e   : > { %v2811_v30 = vadd.f32 %v2779_v28, %v2739_v15  ;;  %v11086_v8 = vpack.c.bf16 %v2932_v63, %v2932_v63  ;;  %v2935_v50 = vld [vmem:[#allocation4 + $0x100] sm:$0x3]  ;;  %v3401_v14 = vrot.slane %v3399_v32, 4  ;;  %v3404_v22 = vrot.slane %v3402_v62, 5  ;;  %v2937_v15 = vld [vmem:[#allocation4 + $0x110] sm:$0xff] }
 0x39f   : > { %v11090_v42 = vsel %vm9239_vm4, %v3382_v21, %v3386_v19  ;;  %v3410_v35 = vrot.slane %v3408_v29, 5  ;;  %v3392_v11 = vrot.slane %v3391_v46, 4  ;;  %2902 = vst.msk [vmem:[#allocation4 + $0x189] sm:$0xff] %vm2814_vm5, %v2813_v49  ;;  %v3412_v45 = vshrl.u32 %v11066_v61, 16 }
 0x3a0   : > { %14443 = vst [vmem:[#allocation37_spill] sm:$0xff] %v11090_v42  ;;  %3598 = vrot.lane.b32.xlu0 %v11090_v42, %s8879_s21  ;;  %2900 = vst.msk [vmem:[#allocation4 + $0x171] sm:$0xff] %vm2814_vm5, %v2811_v30  ;;  %v3418_v48 = vshll.u32 %v11086_v8, 16  ;;  %v11098_v28 = vpack.c.bf16 %v2933_v52, %v2933_v52  ;;  %v3405_v63 = vor.u32 %v3404_v22, %v3401_v14  ;;  %vm3662_vm5 = vcmask 126016  }
 0x3a1   : > { %v11100_v19 = vpack.c.bf16 %v2934_v51, %v2934_v51  ;;  %v11102_v16 = vpack.c.bf16 %v2935_v50, %v2935_v50  ;;  %v11104_v21 = vpack.c.bf16 %v2936_v57, %v2936_v57  ;;  %v11108_v32 = vsel %vm9239_vm4, %v3392_v11, %v3396_v34  ;;  %v2938_v50 = vld [vmem:[#allocation4 + $0x118] sm:$0x3] }
 0x3a2   : > { %14444 = vst [vmem:[#allocation41_spill] sm:$0xff] %v11108_v32  ;;  %v3414_v62 = vrot.slane %v3412_v45, 4  ;;  %v3420_v29 = vrot.slane %v3418_v48, 5  ;;  %v3423_v46 = vshrl.u32 %v11098_v28, 16  ;;  %3106 = vst.msk [vmem:[#allocation5 + $0x50] sm:$0xf] %vm3085_vm6, %v11098_v28  ;;  %3600 = vrot.lane.b32.xlu1 %v11108_v32, %s8879_s21  ;;  %v11123_v51 = vpack.c.bf16 %v2937_v15, %v2937_v15 }
 0x3a3   : > { %v3406_v22 = vrot.slane %v3405_v63, 4  ;;  %v3426_v14 = vshll.u32 %v11098_v28, 16  ;;  %v3432_v52 = vshll.u32 %v11100_v19, 16  ;;  %v3436_v49 = vshrl.u32 %v11100_v19, 16  ;;  %3107 = vst.msk [vmem:[#allocation5 + $0x54] sm:$0xf] %vm3085_vm6, %v11100_v19 }
 0x3a4   : > { %3108 = vst.msk [vmem:[#allocation5 + $0x58] sm:$0xf] %vm3085_vm6, %v11104_v21  ;;  %v3415_v11 = vor.u32 %v3414_v62, %v3410_v35  ;;  %v3425_v34 = vrot.slane %v3423_v46, 4  ;;  %v3442_v30 = vshll.u32 %v11102_v16, 16  ;;  %v3447_v62 = vshrl.u32 %v11104_v21, 16 }
 0x3a5   : > { %v11127_v57 = vsel %vm9239_vm4, %v3406_v22, %v3410_v35  ;;  %v3428_v45 = vrot.slane %v3426_v14, 5  ;;  %v3434_v48 = vrot.slane %v3432_v52, 5  ;;  %v3438_v63 = vrot.slane %v3436_v49, 4  ;;  %3109 = vst.msk [vmem:[#allocation5 + $0x5c] sm:$0xf] %vm3085_vm6, %v11123_v51  ;;  %v2939_v14 = vld [vmem:[#allocation4 + $0x120] sm:$0xff] }
 0x3a6   : > { %14445 = vst [vmem:[#allocation43_spill] sm:$0xff] %v11127_v57  ;;  %3602 = vrot.lane.b32.xlu0 %v11127_v57, %s8879_s21  ;;  %v3416_v32 = vrot.slane %v3415_v11, 4  ;;  %v3444_v42 = vrot.slane %v3442_v30, 5  ;;  %v3450_v46 = vshll.u32 %v11104_v21, 16  ;;  %v3456_v35 = vshll.u32 %v11123_v51, 16  ;;  %v2940_v52 = vld [vmem:[#allocation4 + $0x128] sm:$0xff] }
 0x3a7   : > { %v3429_v15 = vor.u32 %v3428_v45, %v3425_v34  ;;  %v3439_v12 = vor.u32 %v3438_v63, %v3434_v48  ;;  %v11136_v22 = vpack.c.bf16 %v2938_v50, %v2938_v50  ;;  %v3449_v11 = vrot.slane %v3447_v62, 4 }
 0x3a8   : > { %v11140_v49 = vsel %vm9239_vm4, %v3416_v32, %v3420_v29  ;;  %v3452_v30 = vrot.slane %v3450_v46, 5  ;;  %v3460_v57 = vshrl.u32 %v11123_v51, 16  ;;  %v3458_v63 = vrot.slane %v3456_v35, 5  ;;  %v2942_v32 = vld [vmem:[#allocation4 + $0x138] sm:$0xff] }
 0x3a9   : > { %14446 = vst [vmem:[#allocation11_spill] sm:$0xff] %v11140_v49  ;;  %3604 = vrot.lane.b32.xlu1 %v11140_v49, %s8879_s21  ;;  %v3430_v34 = vrot.slane %v3429_v15, 4  ;;  %v3440_v45 = vrot.slane %v3439_v12, 4  ;;  %v3466_v50 = vshll.u32 %v11136_v22, 16  ;;  %v11146_v24 = vpack.c.bf16 %v2939_v14, %v2939_v14 }
 0x3aa   : > { %v3453_v39 = vor.u32 %v3452_v30, %v3449_v11  ;;  %v3462_v4 = vrot.slane %v3460_v57, 4  ;;  %v11148_v44 = vpack.c.bf16 %v2940_v52, %v2940_v52  ;;  %v11158_v12 = vpack.c.bf16 %v2941_v5, %v2941_v5  ;;  %v2943_v52 = vld [vmem:[#allocation4 + $0x140] sm:$0xff] }
 0x3ab   : > { %14447 = vst [vmem:[#allocation12_spill] sm:$0xff] %v11146_v24  ;;  %v11152_v29 = vsel %vm9239_vm4, %v3430_v34, %v3434_v48  ;;  %v11156_v62 = vsel %vm9239_vm4, %v3440_v45, %v3444_v42  ;;  %v3468_v46 = vrot.slane %v3466_v50, 5  ;;  %v3471_v35 = vshrl.u32 %v11146_v24, 16  ;;  %3110 = vst.msk [vmem:[#allocation5 + $0x60] sm:$0xf] %vm3085_vm6, %v11146_v24 }
 0x3ac   : > { %14448 = vst [vmem:[#allocation13_spill] sm:$0xff] %v11148_v44  ;;  %14449 = vst [vmem:[#allocation14_spill] sm:$0xff] %v11152_v29  ;;  %3606 = vrot.lane.b32.xlu0 %v11152_v29, %s8879_s21  ;;  %v3454_v57 = vrot.slane %v3453_v39, 4  ;;  %v3463_v15 = vor.u32 %v3462_v4, %v3458_v63  ;;  %v3474_v14 = vshll.u32 %v11146_v24, 16  ;;  %v3480_v5 = vshll.u32 %v11148_v44, 16 }
 0x3ad   : > { %14450 = vst [vmem:[#allocation15_spill] sm:$0xff] %v11156_v62  ;;  %14451 = vst [vmem:[#allocation16_spill] sm:$0xff] %v11158_v12  ;;  %3608 = vrot.lane.b32.xlu1 %v11156_v62, %s8879_s21  ;;  %v3484_v42 = vshrl.u32 %v11148_v44, 16  ;;  %v3490_v4 = vshll.u32 %v11158_v12, 16  ;;  %v11173_v39 = vpack.c.bf16 %v2942_v32, %v2942_v32  ;;  %v3473_v30 = vrot.slane %v3471_v35, 4 }
 0x3ae   : > { %3111 = vst.msk [vmem:[#allocation5 + $0x64] sm:$0xf] %vm3085_vm6, %v11148_v44  ;;  %v11177_v48 = vsel %vm9239_vm4, %v3454_v57, %v3458_v63  ;;  %v3464_v11 = vrot.slane %v3463_v15, 4  ;;  %v3476_v34 = vrot.slane %v3474_v14, 5  ;;  %v2944_v45 = vld [vmem:[#allocation4 + $0x148] sm:$0x3]  ;;  %v11179_v62 = vpack.c.bf16 %v2943_v52, %v2943_v52 }
 0x3af   : > { %14452 = vst [vmem:[#allocation17_spill] sm:$0xff] %v11173_v39  ;;  %14453 = vst [vmem:[#allocation18_spill] sm:$0xff] %v11177_v48  ;;  %v3482_v50 = vrot.slane %v3480_v5, 5  ;;  %v3486_v29 = vrot.slane %v3484_v42, 4  ;;  %v3492_v49 = vrot.slane %v3490_v4, 5  ;;  %v3495_v57 = vshrl.u32 %v11173_v39, 16 }
 0x3b0   : > { %14454 = vst [vmem:[#allocation19_spill] sm:$0xff] %v11179_v62  ;;  %3112 = vst.msk [vmem:[#allocation5 + $0x68] sm:$0xf] %vm3085_vm6, %v11173_v39  ;;  %3610 = vrot.lane.b32.xlu0 %v11177_v48, %s8879_s21  ;;  %v11187_v63 = vsel %vm9239_vm4, %v3464_v11, %v3468_v46  ;;  %v3477_v32 = vor.u32 %v3476_v34, %v3473_v30  ;;  %v3498_v15 = vshll.u32 %v11173_v39, 16  ;;  %v3504_v14 = vshll.u32 %v11179_v62, 16  ;;  %v2946_v42 = vld [vmem:[#allocation4 + $0x158] sm:$0xff] }
 0x3b1   : > { %14455 = vst [vmem:[#allocation20_spill] sm:$0xff] %v11187_v63  ;;  %3612 = vrot.lane.b32.xlu1 %v11187_v63, %s8879_s21  ;;  %v3487_v35 = vor.u32 %v3486_v29, %v3482_v50  ;;  %v11194_v52 = vpack.c.bf16 %v2944_v45, %v2944_v45  ;;  %v3508_v5 = vshrl.u32 %v11179_v62, 16  ;;  %3113 = vst.msk [vmem:[#allocation5 + $0x6c] sm:$0xf] %vm3085_vm6, %v11179_v62  ;;  %v3497_v4 = vrot.slane %v3495_v57, 4 }
 0x3b2   : > { %v3478_v46 = vrot.slane %v3477_v32, 4  ;;  %v3500_v11 = vrot.slane %v3498_v15, 5  ;;  %v11199_v30 = vpack.c.bf16 %v2945_v13, %v2945_v13  ;;  %v3506_v48 = vrot.slane %v3504_v14, 5  ;;  %v2947_v63 = vld [vmem:[#allocation4 + $0x160] sm:$0x3]  ;;  %v2948_v32 = vld [vmem:[#allocation4 + $0x168] sm:$0xff] }
 0x3b3   : > { %v3488_v34 = vrot.slane %v3487_v35, 4  ;;  %v3510_v33 = vrot.slane %v3508_v5, 4  ;;  %v3514_v29 = vshll.u32 %v11194_v52, 16  ;;  %v11206_v12 = vpack.c.bf16 %v2946_v42, %v2946_v42  ;;  %v2949_v35 = vld [vmem:[#allocation4 + $0x170] sm:$0xff] }
 0x3b4   : > { %14456 = vst [vmem:[#allocation21_spill] sm:$0xff] %v11199_v30  ;;  %v11204_v45 = vsel %vm9239_vm4, %v3478_v46, %v3482_v50  ;;  %v3501_v39 = vor.u32 %v3500_v11, %v3497_v4  ;;  %v3519_v24 = vshrl.u32 %v11199_v30, 16  ;;  %3114 = vst.msk [vmem:[#allocation5 + $0x70] sm:$0xf] %vm3085_vm6, %v11199_v30  ;;  %v3522_v50 = vshll.u32 %v11199_v30, 16 }
 0x3b5   : > { %14457 = vst [vmem:[#allocation22_spill] sm:$0xff] %v11204_v45  ;;  %14458 = vst [vmem:[#allocation23_spill] sm:$0xff] %v11206_v12  ;;  %3614 = vrot.lane.b32.xlu0 %v11204_v45, %s8879_s21  ;;  %v11215_v13 = vsel %vm9239_vm4, %v3488_v34, %v3492_v49  ;;  %v3511_v57 = vor.u32 %v3510_v33, %v3506_v48  ;;  %v3516_v15 = vrot.slane %v3514_v29, 5  ;;  %v3528_v42 = vshll.u32 %v11206_v12, 16  ;;  %v2950_v34 = vld [vmem:[#allocation4 + $0x178] sm:$0x3] }
 0x3b6   : > { %14459 = vst [vmem:[#allocation24_spill] sm:$0xff] %v11215_v13  ;;  %3616 = vrot.lane.b32.xlu1 %v11215_v13, %s8879_s21  ;;  %v3502_v14 = vrot.slane %v3501_v39, 4  ;;  %v3521_v5 = vrot.slane %v3519_v24, 4  ;;  %v11221_v46 = vpack.c.bf16 %v2947_v63, %v2947_v63  ;;  %3115 = vst.msk [vmem:[#allocation5 + $0x74] sm:$0xf] %vm3085_vm6, %v11206_v12  ;;  %v3524_v49 = vrot.slane %v3522_v50, 5 }
 0x3b7   : > { %v3512_v4 = vrot.slane %v3511_v57, 4  ;;  %v3532_v33 = vshrl.u32 %v11206_v12, 16  ;;  %v11226_v11 = vpack.c.bf16 %v2948_v32, %v2948_v32  ;;  %v3530_v39 = vrot.slane %v3528_v42, 5 }
 0x3b8   : > { %14460 = vst [vmem:[#allocation25_spill] sm:$0xff] %v11221_v46  ;;  %v11230_v29 = vsel %vm9239_vm4, %v3502_v14, %v3506_v48  ;;  %v3538_v24 = vshll.u32 %v11221_v46, 16  ;;  %v11233_v13 = vpack.c.bf16 %v2949_v35, %v2949_v35  ;;  %v3525_v57 = vor.u32 %v3524_v49, %v3521_v5 }
 0x3b9   : > { %14461 = vst [vmem:[#allocation26_spill] sm:$0xff] %v11226_v11  ;;  %14462 = vst [vmem:[#allocation28_spill] sm:$0xff] %v11230_v29  ;;  %3618 = vrot.lane.b32.xlu0 %v11230_v29, %s8879_s21  ;;  %v11239_v63 = vsel %vm9239_vm4, %v3512_v4, %v3516_v15  ;;  %v3534_v32 = vrot.slane %v3532_v33, 4  ;;  %v3543_v50 = vshrl.u32 %v11226_v11, 16  ;;  %v3546_v48 = vshll.u32 %v11226_v11, 16 }
 0x3ba   : > { %14463 = vst [vmem:[#allocation29_spill] sm:$0xff] %v11233_v13  ;;  %14464 = vst [vmem:[#allocation32_spill] sm:$0xff] %v11239_v63  ;;  %3620 = vrot.lane.b32.xlu1 %v11239_v63, %s8879_s21  ;;  %v3552_v35 = vshll.u32 %v11233_v13, 16  ;;  %v11248_v14 = vpack.c.bf16 %v2950_v34, %v2950_v34  ;;  %v3526_v15 = vrot.slane %v3525_v57, 4  ;;  %v3556_v4 = vshrl.u32 %v11233_v13, 16 }
 0x3bb   : > { %3116 = vst.msk [vmem:[#allocation5 + $0x78] sm:$0xf] %vm3085_vm6, %v11226_v11  ;;  %3117 = vst.msk [vmem:[#allocation5 + $0x7c] sm:$0xf] %vm3085_vm6, %v11233_v13  ;;  %v3535_v5 = vor.u32 %v3534_v32, %v3530_v39  ;;  %v3545_v42 = vrot.slane %v3543_v50, 4  ;;  %v3540_v49 = vrot.slane %v3538_v24, 5 }
 0x3bc   : > { %v3548_v33 = vrot.slane %v3546_v48, 5  ;;  %v3554_v29 = vrot.slane %v3552_v35, 5  ;;  %v11255_v63 = vsel %vm9239_vm4, %v3526_v15, %v3530_v39  ;;  %v3558_v11 = vrot.slane %v3556_v4, 4 }
 0x3bd   : > { %v3536_v45 = vrot.slane %v3535_v5, 4  ;;  %v3562_v34 = vshll.u32 %v11248_v14, 16  ;;  %3622 = vrot.lane.b32.xlu0 %v11255_v63, %s8879_s21  ;;  %v3697_v24 = vrot.slane %v10749_v27, 5  ;;  %v8176_v50 = vrot.slane %v10745_v6, 9 }
 0x3be   : > { %v3549_v46 = vor.u32 %v3548_v33, %v3545_v42  ;;  %v3559_v32 = vor.u32 %v3558_v11, %v3554_v29  ;;  %v3700_v5 = vrot.slane %v10753_v55, 5  ;;  %v3711_v11 = vrot.slane %v10815_v7, 5 }
 0x3bf   : > { %v11262_v57 = vsel %vm9239_vm4, %v3536_v45, %v3540_v49  ;;  %v3564_v35 = vrot.slane %v3562_v34, 5  ;;  %v3699_v15 = vrot.slane %v3697_v24, 4  ;;  %v3704_v45 = vrot.slane %v10821_v1, 5 }
 0x3c0   : > { %3624 = vrot.lane.b32.xlu1 %v11262_v57, %s8879_s21  ;;  %v3550_v39 = vrot.slane %v3549_v46, 4  ;;  %v3560_v48 = vrot.slane %v3559_v32, 4  ;;  %v3698_v6 = vsel %vm9610_vm7, %v8176_v50, %v3697_v24  ;;  %v3707_v4 = vrot.slane %v10824_v23, 5 }
 0x3c1   : > { %v3701_v55 = vsel %vm9610_vm7, %v3699_v15, %v3700_v5  ;;  %v3706_v46 = vrot.slane %v3704_v45, 4  ;;  %v3713_v34 = vrot.slane %v3711_v11, 4  ;;  %v3718_v32 = vrot.slane %v10862_v0, 5  ;;  %v3567_v5 = vpop.permute.xlu0 %3566 }
 0x3c2   : > { %v11271_v42 = vsel %vm9239_vm4, %v3550_v39, %v3554_v29  ;;  %v11277_v27 = vsel %vm9239_vm4, %v3560_v48, %v3564_v35  ;;  %v8177_v29 = vrot.slane %v10801_v25, 9  ;;  %v8178_v24 = vrot.slane %v10796_v36, 9  ;;  %v3569_v39 = vpop.permute.xlu1 %3568  ;;  %3663 = vst.msk [vmem:[#allocation5] sm:$0xf] %vm3662_vm5, %v3567_v5 }
 0x3c3   : > { %14465 = vst [vmem:[#allocation34_spill] sm:$0xff] %v11271_v42  ;;  %3626 = vrot.lane.b32.xlu0 %v11271_v42, %s8879_s21  ;;  %14466 = vst [vmem:[#allocation38_spill] sm:$0xff] %v11277_v27  ;;  %v11299_v33 = vsel %vm9610_vm7, %v3706_v46, %v3707_v4  ;;  %v3714_v23 = vrot.slane %v10817_v3, 5  ;;  %v3720_v35 = vrot.slane %v3718_v32, 4  ;;  %v3725_v15 = vrot.slane %v10895_v31, 5 }
 0x3c4   : > { %3628 = vrot.lane.b32.xlu1 %v11277_v27, %s8879_s21  ;;  %v11293_v49 = vsel %vm9610_vm7, %v8177_v29, %v3704_v45  ;;  %v11308_v50 = vsel %vm9610_vm7, %v8178_v24, %v3711_v11  ;;  %v8179_v3 = vrot.slane %v10853_v56, 9  ;;  %3664 = vst.msk [vmem:[#allocation5 + $0x4] sm:$0xf] %vm3662_vm5, %v3569_v39  ;;  %v3721_v45 = vrot.slane %v10876_v43, 5 }
 0x3c5   : > { %v11314_v48 = vsel %vm9610_vm7, %v3713_v34, %v3714_v23  ;;  %v3727_v46 = vrot.slane %v3725_v15, 4  ;;  %v3732_v11 = vrot.slane %v10925_v58, 5  ;;  %v8180_v29 = vrot.slane %v10855_v10, 9 }
 0x3c6   : > { %v3728_v43 = vrot.slane %v10909_v9, 5  ;;  %v3739_v24 = vrot.slane %v10967_v20, 5  ;;  %v8181_v23 = vrot.slane %v10923_v53, 9  ;;  %v3735_v9 = vrot.slane %v10950_v59, 5 }
 0x3c7   : > { %3807 = vrot.lane.b32.xlu0 %v3698_v6, %s8881_s23  ;;  %v11325_v6 = vsel %vm9610_vm7, %v8179_v3, %v3718_v32  ;;  %v11340_v4 = vsel %vm9610_vm7, %v8180_v29, %v3725_v15  ;;  %v3734_v32 = vrot.slane %v3732_v11, 4  ;;  %v3746_v5 = vrot.slane %v10999_v47, 5 }
 0x3c8   : > { %3809 = vrot.lane.b32.xlu1 %v3701_v55, %s8881_s23  ;;  %v11331_v55 = vsel %vm9610_vm7, %v3720_v35, %v3721_v45  ;;  %v11346_v34 = vsel %vm9610_vm7, %v3727_v46, %v3728_v43  ;;  %v11355_v39 = vsel %vm9610_vm7, %v8181_v23, %v3732_v11  ;;  %v3741_v15 = vrot.slane %v3739_v24, 4 }
 0x3c9   : > { %v11361_v35 = vsel %vm9610_vm7, %v3734_v32, %v3735_v9  ;;  %v8182_v3 = vrot.slane %v10959_v60, 9  ;;  %v3742_v59 = vrot.slane %v10986_v17, 5  ;;  %v3748_v11 = vrot.slane %v3746_v5, 4 }
 0x3ca   : > { %v3753_v29 = vrot.slane %v11032_v2, 5  ;;  %v8183_v43 = vrot.slane %v10995_v38, 9  ;;  %v3749_v17 = vrot.slane %v11018_v37, 5  ;;  %v3760_v9 = vrot.slane %v11066_v61, 5 }
 0x3cb   : > { %3811 = vrot.lane.b32.xlu0 %v11293_v49, %s8881_s23  ;;  %v11370_v45 = vsel %vm9610_vm7, %v8182_v3, %v3739_v24  ;;  %v11376_v46 = vsel %vm9610_vm7, %v3741_v15, %v3742_v59  ;;  %v8184_v15 = vrot.slane %v11030_v18, 9  ;;  %v3756_v37 = vrot.slane %v11053_v26, 5 }
 0x3cc   : > { %3813 = vrot.lane.b32.xlu1 %v11299_v33, %s8881_s23  ;;  %v11385_v32 = vsel %vm9610_vm7, %v8183_v43, %v3746_v5  ;;  %v11391_v24 = vsel %vm9610_vm7, %v3748_v11, %v3749_v17  ;;  %v3755_v23 = vrot.slane %v3753_v29, 4  ;;  %v3762_v59 = vrot.slane %v3760_v9, 4 }
 0x3cd   : > { %v11400_v5 = vsel %vm9610_vm7, %v8184_v15, %v3753_v29  ;;  %v3767_v11 = vrot.slane %v11100_v19, 5  ;;  %v8185_v43 = vrot.slane %v11064_v54, 9  ;;  %v3763_v26 = vrot.slane %v11086_v8, 5 }
 0x3ce   : > { %v11406_v3 = vsel %vm9610_vm7, %v3755_v23, %v3756_v37  ;;  %v3774_v37 = vrot.slane %v11123_v51, 5  ;;  %v8186_v8 = vrot.slane %v11098_v28, 9  ;;  %vm3903_vm6 = vcmask 191616  }
 0x3cf   : > { %3815 = vrot.lane.b32.xlu0 %v11308_v50, %s8881_s23  ;;  %14467 = vst [vmem:[#allocation42_spill] sm:$0xff] %v11406_v3  ;;  %v11415_v29 = vsel %vm9610_vm7, %v8185_v43, %v3760_v9  ;;  %v11422_v23 = vsel %vm9610_vm7, %v3762_v59, %v3763_v26  ;;  %v3769_v15 = vrot.slane %v3767_v11, 4  ;;  %v3770_v9 = vrot.slane %v11102_v16, 5 }
 0x3d0   : > { %3817 = vrot.lane.b32.xlu1 %v11314_v48, %s8881_s23  ;;  %14468 = vst [vmem:[#allocation49_spill] sm:$0xff] %v11422_v23  ;;  %v3776_v26 = vrot.slane %v3774_v37, 4  ;;  %v8187_v16 = vrot.slane %v11104_v21, 9 }
 0x3d1   : > { %v11439_v59 = vsel %vm9610_vm7, %v3769_v15, %v3770_v9 }
 0x3d2   : > { %14470 = vst [vmem:[#allocation51_spill] sm:$0xff] %v11439_v59 }
 0x3d3   : > { %3819 = vrot.lane.b32.xlu0 %v11325_v6, %s8881_s23 }
 0x3d4   : > { %3821 = vrot.lane.b32.xlu1 %v11331_v55, %s8881_s23 }
 0x3d7   : > { %3823 = vrot.lane.b32.xlu0 %v11340_v4, %s8881_s23 }
 0x3d8   : > { %3825 = vrot.lane.b32.xlu1 %v11346_v34, %s8881_s23 }
 0x3db   : > { %3827 = vrot.lane.b32.xlu0 %v11355_v39, %s8881_s23 }
 0x3dc   : > { %3829 = vrot.lane.b32.xlu1 %v11361_v35, %s8881_s23 }
 0x3df   : > { %3831 = vrot.lane.b32.xlu0 %v11370_v45, %s8881_s23 }
 0x3e0   : > { %3833 = vrot.lane.b32.xlu1 %v11376_v46, %s8881_s23 }
 0x3e3   : > { %3835 = vrot.lane.b32.xlu0 %v11385_v32, %s8881_s23 }
 0x3e4   : > { %3837 = vrot.lane.b32.xlu1 %v11391_v24, %s8881_s23 }
 0x3e7   : > { %3839 = vrot.lane.b32.xlu0 %v11400_v5, %s8881_s23 }
 0x3e8   : > { %3841 = vrot.lane.b32.xlu1 %v11406_v3, %s8881_s23  ;;  %v3571_v17 = vpop.permute.xlu0 %3570 }
 0x3e9   : > { %3665 = vst.msk [vmem:[#allocation5 + $0x8] sm:$0xf] %vm3662_vm5, %v3571_v17  ;;  %v11432_v17 = vsel %vm9610_vm7, %v8186_v8, %v3767_v11  ;;  %v3777_v11 = vrot.slane %v11136_v22, 5  ;;  %v11449_v8 = vsel %vm9610_vm7, %v8187_v16, %v3774_v37  ;;  %v14473_v22 = vld [vmem:[#allocation12_spill] sm:$0xff] }
 0x3ea   : > { %14469 = vst [vmem:[#allocation50_spill] sm:$0xff] %v11432_v17  ;;  %14471 = vst [vmem:[#allocation53_spill] sm:$0xff] %v11449_v8  ;;  %v14474_v37 = vld [vmem:[#allocation16_spill] sm:$0xff] }
 0x3eb   : > { %3843 = vrot.lane.b32.xlu0 %v11415_v29, %s8881_s23  ;;  %v11455_v15 = vsel %vm9610_vm7, %v3776_v26, %v3777_v11  ;;  %v3784_v16 = vrot.slane %v14474_v37, 5 }
 0x3ec   : > { %3845 = vrot.lane.b32.xlu1 %v11422_v23, %s8881_s23  ;;  %v3573_v3 = vpop.permute.xlu1 %3572  ;;  %v3781_v23 = vrot.slane %v11148_v44, 5  ;;  %14472 = vst [vmem:[#allocation35_spill] sm:$0xff] %v11455_v15 }
 0x3ed   : > { %3666 = vst.msk [vmem:[#allocation5 + $0xc] sm:$0xf] %vm3662_vm5, %v3573_v3  ;;  %v3575_v43 = vpop.permute.xlu0 %3574 }
 0x3ee   : > { %3667 = vst.msk [vmem:[#allocation5 + $0x10] sm:$0xf] %vm3662_vm5, %v3575_v43  ;;  %v3783_v9 = vrot.slane %v3781_v23, 4  ;;  %v3788_v43 = vrot.slane %v11179_v62, 5 }
 0x3ef   : > { %3847 = vrot.lane.b32.xlu0 %v11432_v17, %s8881_s23 }
 0x3f0   : > { %3849 = vrot.lane.b32.xlu1 %v11439_v59, %s8881_s23  ;;  %v3577_v3 = vpop.permute.xlu1 %3576  ;;  %v11471_v26 = vsel %vm9610_vm7, %v3783_v9, %v3784_v16  ;;  %v3790_v11 = vrot.slane %v3788_v43, 4  ;;  %v3802_v16 = vrot.slane %v11233_v13, 5 }
 0x3f1   : > { %3668 = vst.msk [vmem:[#allocation5 + $0x14] sm:$0xf] %vm3662_vm5, %v3577_v3  ;;  %v8188_v3 = vrot.slane %v14473_v22, 9  ;;  %14476 = vst [vmem:[#allocation40_spill] sm:$0xff] %v11471_v26 }
 0x3f3   : > { %3851 = vrot.lane.b32.xlu0 %v11449_v8, %s8881_s23  ;;  %v3579_v59 = vpop.permute.xlu0 %3578  ;;  %v11465_v8 = vsel %vm9610_vm7, %v8188_v3, %v3781_v23  ;;  %v3791_v23 = vrot.slane %v11194_v52, 5  ;;  %v8190_v52 = vrot.slane %v11199_v30, 9 }
 0x3f4   : > { %3853 = vrot.lane.b32.xlu1 %v11455_v15, %s8881_s23  ;;  %3669 = vst.msk [vmem:[#allocation5 + $0x18] sm:$0xf] %vm3662_vm5, %v3579_v59  ;;  %14475 = vst [vmem:[#allocation54_spill] sm:$0xff] %v11465_v8  ;;  %v3795_v15 = vrot.slane %v11206_v12, 5  ;;  %v14477_v59 = vld [vmem:[#allocation17_spill] sm:$0xff] }
 0x3f5   : > { %v8189_v37 = vrot.slane %v14477_v59, 9 }
 0x3f6   : > { %v3581_v17 = vpop.permute.xlu1 %3580  ;;  %v3797_v9 = vrot.slane %v3795_v15, 4 }
 0x3f7   : > { %3855 = vrot.lane.b32.xlu0 %v11465_v8, %s8881_s23  ;;  %3670 = vst.msk [vmem:[#allocation5 + $0x1c] sm:$0xf] %vm3662_vm5, %v3581_v17  ;;  %v11481_v8 = vsel %vm9610_vm7, %v8189_v37, %v3788_v43  ;;  %v11488_v17 = vsel %vm9610_vm7, %v3790_v11, %v3791_v23  ;;  %v14480_v43 = vld [vmem:[#allocation25_spill] sm:$0xff]  ;;  %v3804_v23 = vrot.slane %v3802_v16, 4 }
 0x3f8   : > { %3857 = vrot.lane.b32.xlu1 %v11471_v26, %s8881_s23  ;;  %v3583_v3 = vpop.permute.xlu0 %3582  ;;  %14478 = vst [vmem:[#allocation12_spill] sm:$0xff] %v11481_v8  ;;  %14479 = vst [vmem:[#allocation16_spill] sm:$0xff] %v11488_v17  ;;  %v3798_v37 = vrot.slane %v14480_v43, 5 }
 0x3f9   : > { %3671 = vst.msk [vmem:[#allocation5 + $0x20] sm:$0xf] %vm3662_vm5, %v3583_v3  ;;  %v11498_v3 = vsel %vm9610_vm7, %v8190_v52, %v3795_v15 }
 0x3fa   : > { %14481 = vst [vmem:[#allocation25_spill] sm:$0xff] %v11498_v3  ;;  %v11504_v11 = vsel %vm9610_vm7, %v3797_v9, %v3798_v37 }
 0x3fb   : > { %3859 = vrot.lane.b32.xlu0 %v11481_v8, %s8881_s23  ;;  %14482 = vst [vmem:[#allocation55_spill] sm:$0xff] %v11504_v11  ;;  %v14483_v8 = vld [vmem:[#allocation26_spill] sm:$0xff] }
 0x3fc   : > { %3861 = vrot.lane.b32.xlu1 %v11488_v17, %s8881_s23  ;;  %v3585_v26 = vpop.permute.xlu1 %3584  ;;  %v8191_v43 = vrot.slane %v14483_v8, 9 }
 0x3fd   : > { %3672 = vst.msk [vmem:[#allocation5 + $0x24] sm:$0xf] %vm3662_vm5, %v3585_v26  ;;  %v3805_v26 = vrot.slane %v11248_v14, 5 }
 0x3fe   : > { %v11513_v15 = vsel %vm9610_vm7, %v8191_v43, %v3802_v16 }
 0x3ff   : > { %3863 = vrot.lane.b32.xlu0 %v11498_v3, %s8881_s23  ;;  %v3587_v17 = vpop.permute.xlu0 %3586  ;;  %v11519_v9 = vsel %vm9610_vm7, %v3804_v23, %v3805_v26 }
 0x400   : > { %3865 = vrot.lane.b32.xlu1 %v11504_v11, %s8881_s23  ;;  %3673 = vst.msk [vmem:[#allocation5 + $0x28] sm:$0xf] %vm3662_vm5, %v3587_v17 }
 0x402   : > { %v3589_v52 = vpop.permute.xlu1 %3588 }
 0x403   : > { %3867 = vrot.lane.b32.xlu0 %v11513_v15, %s8881_s23  ;;  %3674 = vst.msk [vmem:[#allocation5 + $0x2c] sm:$0xf] %vm3662_vm5, %v3589_v52 }
 0x404   : > { %3869 = vrot.lane.b32.xlu1 %v11519_v9, %s8881_s23 }
 0x406   : > { %v3591_v17 = vpop.permute.xlu0 %3590 }
 0x407   : > { %3942 = vrot.lane.b32.xlu0 %v10801_v25, %s8883_s25  ;;  %3675 = vst.msk [vmem:[#allocation5 + $0x30] sm:$0xf] %vm3662_vm5, %v3591_v17 }
 0x408   : > { %3944 = vrot.lane.b32.xlu1 %v10821_v1, %s8883_s25  ;;  %v3593_v14 = vpop.permute.xlu1 %3592 }
 0x409   : > { %3676 = vst.msk [vmem:[#allocation5 + $0x34] sm:$0xf] %vm3662_vm5, %v3593_v14 }
 0x40b   : > { %3946 = vrot.lane.b32.xlu0 %v10796_v36, %s8883_s25  ;;  %v3595_v16 = vpop.permute.xlu0 %3594 }
 0x40c   : > { %3948 = vrot.lane.b32.xlu1 %v10815_v7, %s8883_s25  ;;  %3677 = vst.msk [vmem:[#allocation5 + $0x38] sm:$0xf] %vm3662_vm5, %v3595_v16 }
 0x40f   : > { %3950 = vrot.lane.b32.xlu0 %v10853_v56, %s8883_s25  ;;  %v3597_v25 = vpop.permute.xlu1 %3596 }
 0x410   : > { %3952 = vrot.lane.b32.xlu1 %v10862_v0, %s8883_s25  ;;  %3678 = vst.msk [vmem:[#allocation5 + $0x3c] sm:$0xf] %vm3662_vm5, %v3597_v25 }
 0x412   : > { %v3599_v1 = vpop.permute.xlu0 %3598 }
 0x413   : > { %3954 = vrot.lane.b32.xlu0 %v10855_v10, %s8883_s25  ;;  %3679 = vst.msk [vmem:[#allocation5 + $0x40] sm:$0xf] %vm3662_vm5, %v3599_v1 }
 0x414   : > { %3956 = vrot.lane.b32.xlu1 %v10895_v31, %s8883_s25  ;;  %v3601_v37 = vpop.permute.xlu1 %3600 }
 0x415   : > { %3680 = vst.msk [vmem:[#allocation5 + $0x44] sm:$0xf] %vm3662_vm5, %v3601_v37 }
 0x417   : > { %3958 = vrot.lane.b32.xlu0 %v10923_v53, %s8883_s25 }
 0x418   : > { %3960 = vrot.lane.b32.xlu1 %v10925_v58, %s8883_s25  ;;  %v3603_v23 = vpop.permute.xlu0 %3602 }
 0x419   : > { %3681 = vst.msk [vmem:[#allocation5 + $0x48] sm:$0xf] %vm3662_vm5, %v3603_v23 }
 0x41b   : > { %3962 = vrot.lane.b32.xlu0 %v10959_v60, %s8883_s25  ;;  %v3605_v43 = vpop.permute.xlu1 %3604 }
 0x41c   : > { %3964 = vrot.lane.b32.xlu1 %v10967_v20, %s8883_s25  ;;  %3682 = vst.msk [vmem:[#allocation5 + $0x4c] sm:$0xf] %vm3662_vm5, %v3605_v43 }
 0x41e   : > { %v3607_v26 = vpop.permute.xlu0 %3606 }
 0x41f   : > { %3966 = vrot.lane.b32.xlu0 %v10995_v38, %s8883_s25  ;;  %3683 = vst.msk [vmem:[#allocation5 + $0x50] sm:$0xf] %vm3662_vm5, %v3607_v26  ;;  %v3609_v52 = vpop.permute.xlu1 %3608 }
 0x420   : > { %3968 = vrot.lane.b32.xlu1 %v10999_v47, %s8883_s25  ;;  %3684 = vst.msk [vmem:[#allocation5 + $0x54] sm:$0xf] %vm3662_vm5, %v3609_v52 }
 0x422   : > { %v3611_v17 = vpop.permute.xlu0 %3610 }
 0x423   : > { %3970 = vrot.lane.b32.xlu0 %v11030_v18, %s8883_s25  ;;  %3685 = vst.msk [vmem:[#allocation5 + $0x58] sm:$0xf] %vm3662_vm5, %v3611_v17  ;;  %v3613_v14 = vpop.permute.xlu1 %3612 }
 0x424   : > { %3972 = vrot.lane.b32.xlu1 %v11032_v2, %s8883_s25  ;;  %3686 = vst.msk [vmem:[#allocation5 + $0x5c] sm:$0xf] %vm3662_vm5, %v3613_v14 }
 0x427   : > { %3974 = vrot.lane.b32.xlu0 %v11064_v54, %s8883_s25  ;;  %v3615_v16 = vpop.permute.xlu0 %3614 }
 0x428   : > { %3687 = vst.msk [vmem:[#allocation5 + $0x60] sm:$0xf] %vm3662_vm5, %v3615_v16  ;;  %3976 = vrot.lane.b32.xlu1 %v11066_v61, %s8883_s25  ;;  %v3617_v25 = vpop.permute.xlu1 %3616 }
 0x429   : > { %3688 = vst.msk [vmem:[#allocation5 + $0x64] sm:$0xf] %vm3662_vm5, %v3617_v25 }
 0x42b   : > { %3978 = vrot.lane.b32.xlu0 %v11098_v28, %s8883_s25  ;;  %v3619_v1 = vpop.permute.xlu0 %3618 }
 0x42c   : > { %3689 = vst.msk [vmem:[#allocation5 + $0x68] sm:$0xf] %vm3662_vm5, %v3619_v1  ;;  %3980 = vrot.lane.b32.xlu1 %v11100_v19, %s8883_s25  ;;  %v3621_v37 = vpop.permute.xlu1 %3620  ;;  %v2951_v1 = vld [vmem:[#allocation4 + $0x180] sm:$0xff] }
 0x42d   : > { %3690 = vst.msk [vmem:[#allocation5 + $0x6c] sm:$0xf] %vm3662_vm5, %v3621_v37  ;;  %v2952_v37 = vld [vmem:[#allocation4 + $0x188] sm:$0xff] }
 0x42f   : > { %3982 = vrot.lane.b32.xlu0 %v11104_v21, %s8883_s25  ;;  %v3623_v23 = vpop.permute.xlu0 %3622 }
 0x430   : > { %3984 = vrot.lane.b32.xlu1 %v11123_v51, %s8883_s25  ;;  %3691 = vst.msk [vmem:[#allocation5 + $0x70] sm:$0xf] %vm3662_vm5, %v3623_v23 }
 0x432   : > { %v3625_v43 = vpop.permute.xlu1 %3624 }
 0x433   : > { %3986 = vrot.lane.b32.xlu0 %v14473_v22, %s8883_s25  ;;  %3692 = vst.msk [vmem:[#allocation5 + $0x74] sm:$0xf] %vm3662_vm5, %v3625_v43  ;;  %v11608_v43 = vpack.c.bf16 %v2951_v1, %v2951_v1 }
 0x434   : > { %3988 = vrot.lane.b32.xlu1 %v11148_v44, %s8883_s25 }
 0x435   : > { %v3627_v26 = vpop.permute.xlu0 %3626 }
 0x436   : > { %3693 = vst.msk [vmem:[#allocation5 + $0x78] sm:$0xf] %vm3662_vm5, %v3627_v26  ;;  %v3629_v52 = vpop.permute.xlu1 %3628 }
 0x437   : > { %3990 = vrot.lane.b32.xlu0 %v14477_v59, %s8883_s25  ;;  %3694 = vst.msk [vmem:[#allocation5 + $0x7c] sm:$0xf] %vm3662_vm5, %v3629_v52  ;;  %v11611_v52 = vpack.c.bf16 %v2952_v37, %v2952_v37  ;;  %vm4038_vm5 = vcmask 257216   ;;  %v14509_v59 = vld [vmem:[#allocation32_spill] sm:$0xff] }
 0x438   : > { %3992 = vrot.lane.b32.xlu1 %v11179_v62, %s8883_s25  ;;  %v14508_v62 = vld [vmem:[#allocation28_spill] sm:$0xff] }
 0x439   : > { %v3808_v17 = vpop.permute.xlu0 %3807 }
 0x43a   : > { %3904 = vst.msk [vmem:[#allocation5] sm:$0xf] %vm3903_vm6, %v3808_v17  ;;  %v3810_v14 = vpop.permute.xlu1 %3809 }
 0x43b   : > { %3994 = vrot.lane.b32.xlu0 %v11199_v30, %s8883_s25  ;;  %3905 = vst.msk [vmem:[#allocation5 + $0x4] sm:$0xf] %vm3903_vm6, %v3810_v14  ;;  %v2953_v30 = vld [vmem:[#allocation4 + $0x190] sm:$0x3] }
 0x43c   : > { %3996 = vrot.lane.b32.xlu1 %v11206_v12, %s8883_s25 }
 0x43d   : > { %v3812_v16 = vpop.permute.xlu0 %3811 }
 0x43e   : > { %3906 = vst.msk [vmem:[#allocation5 + $0x8] sm:$0xf] %vm3903_vm6, %v3812_v16  ;;  %v3814_v25 = vpop.permute.xlu1 %3813  ;;  %v14484_v16 = vld [vmem:[#allocation10_spill] sm:$0xff] }
 0x43f   : > { %3998 = vrot.lane.b32.xlu0 %v14483_v8, %s8883_s25  ;;  %3907 = vst.msk [vmem:[#allocation5 + $0xc] sm:$0xf] %vm3903_vm6, %v3814_v25  ;;  %v14485_v25 = vld [vmem:[#allocation39_spill] sm:$0xff] }
 0x440   : > { %4000 = vrot.lane.b32.xlu1 %v11233_v13, %s8883_s25  ;;  %v14506_v13 = vld [vmem:[#allocation22_spill] sm:$0xff] }
 0x441   : > { %v3816_v23 = vpop.permute.xlu0 %3815 }
 0x442   : > { %3908 = vst.msk [vmem:[#allocation5 + $0x10] sm:$0xf] %vm3903_vm6, %v3816_v23  ;;  %v3818_v26 = vpop.permute.xlu1 %3817  ;;  %v14486_v23 = vld [vmem:[#allocation9_spill] sm:$0xff] }
 0x443   : > { %4002 = vrot.lane.b32.xlu0 %v11608_v43, %s8883_s25  ;;  %3909 = vst.msk [vmem:[#allocation5 + $0x14] sm:$0xf] %vm3903_vm6, %v3818_v26  ;;  %v14487_v26 = vld [vmem:[#allocation44_spill] sm:$0xff] }
 0x444   : > { %4004 = vrot.lane.b32.xlu1 %v11611_v52, %s8883_s25 }
 0x445   : > { %v3820_v17 = vpop.permute.xlu0 %3819 }
 0x446   : > { %3910 = vst.msk [vmem:[#allocation5 + $0x18] sm:$0xf] %vm3903_vm6, %v3820_v17  ;;  %v3822_v14 = vpop.permute.xlu1 %3821 }
 0x447   : > { %4099 = vrot.lane.b32.xlu0 %v14484_v16, %s8885_s14  ;;  %3911 = vst.msk [vmem:[#allocation5 + $0x1c] sm:$0xf] %vm3903_vm6, %v3822_v14  ;;  %v14488_v14 = vld [vmem:[#allocation45_spill] sm:$0xff] }
 0x448   : > { %4101 = vrot.lane.b32.xlu1 %v14485_v25, %s8885_s14  ;;  %v14489_v25 = vld [vmem:[#allocation46_spill] sm:$0xff] }
 0x449   : > { %v3824_v1 = vpop.permute.xlu0 %3823 }
 0x44a   : > { %3912 = vst.msk [vmem:[#allocation5 + $0x20] sm:$0xf] %vm3903_vm6, %v3824_v1  ;;  %v3826_v37 = vpop.permute.xlu1 %3825 }
 0x44b   : > { %4103 = vrot.lane.b32.xlu0 %v14486_v23, %s8885_s14  ;;  %3913 = vst.msk [vmem:[#allocation5 + $0x24] sm:$0xf] %vm3903_vm6, %v3826_v37  ;;  %v14490_v37 = vld [vmem:[#allocation47_spill] sm:$0xff] }
 0x44c   : > { %4105 = vrot.lane.b32.xlu1 %v14487_v26, %s8885_s14 }
 0x44d   : > { %v3828_v17 = vpop.permute.xlu0 %3827 }
 0x44e   : > { %3914 = vst.msk [vmem:[#allocation5 + $0x28] sm:$0xf] %vm3903_vm6, %v3828_v17  ;;  %v3830_v16 = vpop.permute.xlu1 %3829  ;;  %v14491_v17 = vld [vmem:[#allocation48_spill] sm:$0xff] }
 0x44f   : > { %4107 = vrot.lane.b32.xlu0 %v14488_v14, %s8885_s14  ;;  %3915 = vst.msk [vmem:[#allocation5 + $0x2c] sm:$0xf] %vm3903_vm6, %v3830_v16  ;;  %v14492_v16 = vld [vmem:[#allocation27_spill] sm:$0xff] }
 0x450   : > { %4109 = vrot.lane.b32.xlu1 %v14489_v25, %s8885_s14 }
 0x451   : > { %v3832_v1 = vpop.permute.xlu0 %3831 }
 0x452   : > { %3916 = vst.msk [vmem:[#allocation5 + $0x30] sm:$0xf] %vm3903_vm6, %v3832_v1  ;;  %v3834_v23 = vpop.permute.xlu1 %3833  ;;  %v14493_v1 = vld [vmem:[#allocation52_spill] sm:$0xff] }
 0x453   : > { %4111 = vrot.lane.b32.xlu0 %v14490_v37, %s8885_s14  ;;  %3917 = vst.msk [vmem:[#allocation5 + $0x34] sm:$0xf] %vm3903_vm6, %v3834_v23  ;;  %v14494_v23 = vld [vmem:[#allocation30_spill] sm:$0xff] }
 0x454   : > { %4113 = vrot.lane.b32.xlu1 %v14491_v17, %s8885_s14 }
 0x455   : > { %v3836_v26 = vpop.permute.xlu0 %3835 }
 0x456   : > { %3918 = vst.msk [vmem:[#allocation5 + $0x38] sm:$0xf] %vm3903_vm6, %v3836_v26  ;;  %v3838_v14 = vpop.permute.xlu1 %3837  ;;  %v14495_v26 = vld [vmem:[#allocation31_spill] sm:$0xff] }
 0x457   : > { %4115 = vrot.lane.b32.xlu0 %v14492_v16, %s8885_s14  ;;  %3919 = vst.msk [vmem:[#allocation5 + $0x3c] sm:$0xf] %vm3903_vm6, %v3838_v14  ;;  %v14496_v14 = vld [vmem:[#allocation33_spill] sm:$0xff] }
 0x458   : > { %4117 = vrot.lane.b32.xlu1 %v14493_v1, %s8885_s14 }
 0x459   : > { %v3840_v25 = vpop.permute.xlu0 %3839 }
 0x45a   : > { %3920 = vst.msk [vmem:[#allocation5 + $0x40] sm:$0xf] %vm3903_vm6, %v3840_v25  ;;  %v3842_v37 = vpop.permute.xlu1 %3841  ;;  %v14497_v25 = vld [vmem:[#allocation36_spill] sm:$0xff] }
 0x45b   : > { %4119 = vrot.lane.b32.xlu0 %v14494_v23, %s8885_s14  ;;  %3921 = vst.msk [vmem:[#allocation5 + $0x44] sm:$0xf] %vm3903_vm6, %v3842_v37  ;;  %v14498_v37 = vld [vmem:[#allocation37_spill] sm:$0xff] }
 0x45c   : > { %4121 = vrot.lane.b32.xlu1 %v14495_v26, %s8885_s14 }
 0x45d   : > { %v3844_v17 = vpop.permute.xlu0 %3843 }
 0x45e   : > { %3922 = vst.msk [vmem:[#allocation5 + $0x48] sm:$0xf] %vm3903_vm6, %v3844_v17  ;;  %v3846_v16 = vpop.permute.xlu1 %3845  ;;  %v14499_v17 = vld [vmem:[#allocation41_spill] sm:$0xff] }
 0x45f   : > { %4123 = vrot.lane.b32.xlu0 %v14496_v14, %s8885_s14  ;;  %3923 = vst.msk [vmem:[#allocation5 + $0x4c] sm:$0xf] %vm3903_vm6, %v3846_v16  ;;  %v14500_v16 = vld [vmem:[#allocation43_spill] sm:$0xff] }
 0x460   : > { %4125 = vrot.lane.b32.xlu1 %v14497_v25, %s8885_s14 }
 0x461   : > { %v3848_v1 = vpop.permute.xlu0 %3847 }
 0x462   : > { %3924 = vst.msk [vmem:[#allocation5 + $0x50] sm:$0xf] %vm3903_vm6, %v3848_v1  ;;  %v3850_v23 = vpop.permute.xlu1 %3849  ;;  %v14501_v1 = vld [vmem:[#allocation11_spill] sm:$0xff] }
 0x463   : > { %4127 = vrot.lane.b32.xlu0 %v14498_v37, %s8885_s14  ;;  %3925 = vst.msk [vmem:[#allocation5 + $0x54] sm:$0xf] %vm3903_vm6, %v3850_v23  ;;  %v14502_v23 = vld [vmem:[#allocation14_spill] sm:$0xff] }
 0x464   : > { %4129 = vrot.lane.b32.xlu1 %v14499_v17, %s8885_s14 }
 0x465   : > { %v3852_v26 = vpop.permute.xlu0 %3851 }
 0x466   : > { %3926 = vst.msk [vmem:[#allocation5 + $0x58] sm:$0xf] %vm3903_vm6, %v3852_v26  ;;  %v3854_v14 = vpop.permute.xlu1 %3853  ;;  %v14503_v26 = vld [vmem:[#allocation15_spill] sm:$0xff] }
 0x467   : > { %4131 = vrot.lane.b32.xlu0 %v14500_v16, %s8885_s14  ;;  %3927 = vst.msk [vmem:[#allocation5 + $0x5c] sm:$0xf] %vm3903_vm6, %v3854_v14  ;;  %v14504_v14 = vld [vmem:[#allocation18_spill] sm:$0xff] }
 0x468   : > { %4133 = vrot.lane.b32.xlu1 %v14501_v1, %s8885_s14 }
 0x469   : > { %v3856_v25 = vpop.permute.xlu0 %3855 }
 0x46a   : > { %3928 = vst.msk [vmem:[#allocation5 + $0x60] sm:$0xf] %vm3903_vm6, %v3856_v25  ;;  %v3858_v37 = vpop.permute.xlu1 %3857  ;;  %v14505_v25 = vld [vmem:[#allocation20_spill] sm:$0xff] }
 0x46b   : > { %4135 = vrot.lane.b32.xlu0 %v14502_v23, %s8885_s14  ;;  %3929 = vst.msk [vmem:[#allocation5 + $0x64] sm:$0xf] %vm3903_vm6, %v3858_v37  ;;  %v4076_v37 = vshrl.u32 %v11608_v43, 16 }
 0x46c   : > { %4137 = vrot.lane.b32.xlu1 %v14503_v26, %s8885_s14  ;;  %v4079_v26 = vshll.u32 %v11608_v43, 16 }
 0x46d   : > { %v3860_v17 = vpop.permute.xlu0 %3859  ;;  %v4078_v8 = vrot.slane %v4076_v37, 4 }
 0x46e   : > { %3930 = vst.msk [vmem:[#allocation5 + $0x68] sm:$0xf] %vm3903_vm6, %v3860_v17  ;;  %v3862_v16 = vpop.permute.xlu1 %3861  ;;  %v4085_v17 = vshll.u32 %v11611_v52, 16  ;;  %v4081_v12 = vrot.slane %v4079_v26, 5 }
 0x46f   : > { %4139 = vrot.lane.b32.xlu0 %v14504_v14, %s8885_s14  ;;  %3931 = vst.msk [vmem:[#allocation5 + $0x6c] sm:$0xf] %vm3903_vm6, %v3862_v16  ;;  %v4089_v16 = vshrl.u32 %v11611_v52, 16  ;;  %v14507_v14 = vld [vmem:[#allocation24_spill] sm:$0xff] }
 0x470   : > { %4141 = vrot.lane.b32.xlu1 %v14505_v25, %s8885_s14  ;;  %v4082_v37 = vor.u32 %v4081_v12, %v4078_v8 }
 0x471   : > { %v3864_v1 = vpop.permute.xlu0 %3863 }
 0x472   : > { %3932 = vst.msk [vmem:[#allocation5 + $0x70] sm:$0xf] %vm3903_vm6, %v3864_v1  ;;  %v3866_v23 = vpop.permute.xlu1 %3865 }
 0x473   : > { %4143 = vrot.lane.b32.xlu0 %v14506_v13, %s8885_s14  ;;  %3933 = vst.msk [vmem:[#allocation5 + $0x74] sm:$0xf] %vm3903_vm6, %v3866_v23  ;;  %v4087_v23 = vrot.slane %v4085_v17, 5  ;;  %v4091_v13 = vrot.slane %v4089_v16, 4 }
 0x474   : > { %4145 = vrot.lane.b32.xlu1 %v14507_v14, %s8885_s14  ;;  %v11700_v14 = vpack.c.bf16 %v2953_v30, %v2953_v30 }
 0x475   : > { %v3868_v25 = vpop.permute.xlu0 %3867  ;;  %v4092_v26 = vor.u32 %v4091_v13, %v4087_v23 }
 0x476   : > { %3934 = vst.msk [vmem:[#allocation5 + $0x78] sm:$0xf] %vm3903_vm6, %v3868_v25  ;;  %v3870_v1 = vpop.permute.xlu1 %3869  ;;  %v4095_v16 = vshll.u32 %v11700_v14, 16 }
 0x477   : > { %4147 = vrot.lane.b32.xlu0 %v14508_v62, %s8885_s14  ;;  %3935 = vst.msk [vmem:[#allocation5 + $0x7c] sm:$0xf] %vm3903_vm6, %v3870_v1  ;;  %v4083_v1 = vrot.slane %v4082_v37, 4  ;;  %vm4195_vm6 = vcmask 322816  }
 0x478   : > { %4149 = vrot.lane.b32.xlu1 %v14509_v59, %s8885_s14  ;;  %v4097_v13 = vrot.slane %v4095_v16, 5 }
 0x479   : > { %v3943_v44 = vpop.permute.xlu0 %3942  ;;  %v11718_v8 = vsel %vm9239_vm4, %v4083_v1, %v4087_v23 }
 0x47a   : > { %4039 = vst.msk [vmem:[#allocation5] sm:$0xf] %vm4038_vm5, %v3943_v44  ;;  %v3945_v25 = vpop.permute.xlu1 %3944  ;;  %v4093_v44 = vrot.slane %v4092_v26, 4  ;;  %14510 = vst [vmem:[#allocation10_spill] sm:$0xff] %v11718_v8 }
 0x47b   : > { %4151 = vrot.lane.b32.xlu0 %v11255_v63, %s8885_s14  ;;  %4040 = vst.msk [vmem:[#allocation5 + $0x4] sm:$0xf] %vm4038_vm5, %v3945_v25 }
 0x47c   : > { %4153 = vrot.lane.b32.xlu1 %v11262_v57, %s8885_s14  ;;  %v11725_v37 = vsel %vm9239_vm4, %v4093_v44, %v4097_v13 }
 0x47d   : > { %v3947_v17 = vpop.permute.xlu0 %3946  ;;  %14511 = vst [vmem:[#allocation39_spill] sm:$0xff] %v11725_v37 }
 0x47e   : > { %4041 = vst.msk [vmem:[#allocation5 + $0x8] sm:$0xf] %vm4038_vm5, %v3947_v17  ;;  %v3949_v30 = vpop.permute.xlu1 %3948 }
 0x47f   : > { %4155 = vrot.lane.b32.xlu0 %v11271_v42, %s8885_s14  ;;  %4042 = vst.msk [vmem:[#allocation5 + $0xc] sm:$0xf] %vm4038_vm5, %v3949_v30  ;;  %v4233_v42 = vrot.slane %v11700_v14, 5 }
 0x480   : > { %4157 = vrot.lane.b32.xlu1 %v11277_v27, %s8885_s14 }
 0x481   : > { %v3951_v12 = vpop.permute.xlu0 %3950 }
 0x482   : > { %4043 = vst.msk [vmem:[#allocation5 + $0x10] sm:$0xf] %vm4038_vm5, %v3951_v12  ;;  %v3953_v25 = vpop.permute.xlu1 %3952 }
 0x483   : > { %4159 = vrot.lane.b32.xlu0 %v11718_v8, %s8885_s14  ;;  %4044 = vst.msk [vmem:[#allocation5 + $0x14] sm:$0xf] %vm4038_vm5, %v3953_v25 }
 0x484   : > { %4161 = vrot.lane.b32.xlu1 %v11725_v37, %s8885_s14 }
 0x485   : > { %v3955_v26 = vpop.permute.xlu0 %3954 }
 0x486   : > { %4045 = vst.msk [vmem:[#allocation5 + $0x18] sm:$0xf] %vm4038_vm5, %v3955_v26  ;;  %v3957_v17 = vpop.permute.xlu1 %3956 }
 0x487   : > { %4235 = vrot.lane.b32.xlu0 %v11293_v49, %s8886_s28  ;;  %4046 = vst.msk [vmem:[#allocation5 + $0x1c] sm:$0xf] %vm4038_vm5, %v3957_v17 }
 0x488   : > { %4237 = vrot.lane.b32.xlu1 %v11299_v33, %s8886_s28 }
 0x489   : > { %v3959_v23 = vpop.permute.xlu0 %3958 }
 0x48a   : > { %4047 = vst.msk [vmem:[#allocation5 + $0x20] sm:$0xf] %vm4038_vm5, %v3959_v23  ;;  %v3961_v16 = vpop.permute.xlu1 %3960 }
 0x48b   : > { %4239 = vrot.lane.b32.xlu0 %v11308_v50, %s8886_s28  ;;  %4048 = vst.msk [vmem:[#allocation5 + $0x24] sm:$0xf] %vm4038_vm5, %v3961_v16 }
 0x48c   : > { %4241 = vrot.lane.b32.xlu1 %v11314_v48, %s8886_s28 }
 0x48d   : > { %v3963_v30 = vpop.permute.xlu0 %3962 }
 0x48e   : > { %4049 = vst.msk [vmem:[#allocation5 + $0x28] sm:$0xf] %vm4038_vm5, %v3963_v30  ;;  %v3965_v49 = vpop.permute.xlu1 %3964  ;;  %v14512_v30 = vld [vmem:[#allocation42_spill] sm:$0xff] }
 0x48f   : > { %4243 = vrot.lane.b32.xlu0 %v11325_v6, %s8886_s28  ;;  %4050 = vst.msk [vmem:[#allocation5 + $0x2c] sm:$0xf] %vm4038_vm5, %v3965_v49 }
 0x490   : > { %4245 = vrot.lane.b32.xlu1 %v11331_v55, %s8886_s28 }
 0x491   : > { %v3967_v33 = vpop.permute.xlu0 %3966 }
 0x492   : > { %4051 = vst.msk [vmem:[#allocation5 + $0x30] sm:$0xf] %vm4038_vm5, %v3967_v33  ;;  %v3969_v1 = vpop.permute.xlu1 %3968 }
 0x493   : > { %4247 = vrot.lane.b32.xlu0 %v11340_v4, %s8886_s28  ;;  %4052 = vst.msk [vmem:[#allocation5 + $0x34] sm:$0xf] %vm4038_vm5, %v3969_v1  ;;  %v14513_v1 = vld [vmem:[#allocation49_spill] sm:$0xff] }
 0x494   : > { %4249 = vrot.lane.b32.xlu1 %v11346_v34, %s8886_s28 }
 0x495   : > { %v3971_v44 = vpop.permute.xlu0 %3970 }
 0x496   : > { %4053 = vst.msk [vmem:[#allocation5 + $0x38] sm:$0xf] %vm4038_vm5, %v3971_v44  ;;  %v3973_v12 = vpop.permute.xlu1 %3972 }
 0x497   : > { %4251 = vrot.lane.b32.xlu0 %v11355_v39, %s8886_s28  ;;  %4054 = vst.msk [vmem:[#allocation5 + $0x3c] sm:$0xf] %vm4038_vm5, %v3973_v12 }
 0x498   : > { %4253 = vrot.lane.b32.xlu1 %v11361_v35, %s8886_s28 }
 0x499   : > { %v3975_v13 = vpop.permute.xlu0 %3974 }
 0x49a   : > { %4055 = vst.msk [vmem:[#allocation5 + $0x40] sm:$0xf] %vm4038_vm5, %v3975_v13  ;;  %v3977_v25 = vpop.permute.xlu1 %3976  ;;  %v14514_v13 = vld [vmem:[#allocation50_spill] sm:$0xff] }
 0x49b   : > { %4255 = vrot.lane.b32.xlu0 %v11370_v45, %s8886_s28  ;;  %4056 = vst.msk [vmem:[#allocation5 + $0x44] sm:$0xf] %vm4038_vm5, %v3977_v25  ;;  %v14515_v25 = vld [vmem:[#allocation51_spill] sm:$0xff] }
 0x49c   : > { %4257 = vrot.lane.b32.xlu1 %v11376_v46, %s8886_s28 }
 0x49d   : > { %v3979_v26 = vpop.permute.xlu0 %3978 }
 0x49e   : > { %4057 = vst.msk [vmem:[#allocation5 + $0x48] sm:$0xf] %vm4038_vm5, %v3979_v26  ;;  %v3981_v17 = vpop.permute.xlu1 %3980 }
 0x49f   : > { %4259 = vrot.lane.b32.xlu0 %v11385_v32, %s8886_s28  ;;  %4058 = vst.msk [vmem:[#allocation5 + $0x4c] sm:$0xf] %vm4038_vm5, %v3981_v17 }
 0x4a0   : > { %4261 = vrot.lane.b32.xlu1 %v11391_v24, %s8886_s28 }
 0x4a1   : > { %v3983_v23 = vpop.permute.xlu0 %3982 }
 0x4a2   : > { %4059 = vst.msk [vmem:[#allocation5 + $0x50] sm:$0xf] %vm4038_vm5, %v3983_v23  ;;  %v3985_v16 = vpop.permute.xlu1 %3984  ;;  %v14516_v23 = vld [vmem:[#allocation53_spill] sm:$0xff] }
 0x4a3   : > { %4263 = vrot.lane.b32.xlu0 %v11400_v5, %s8886_s28  ;;  %4060 = vst.msk [vmem:[#allocation5 + $0x54] sm:$0xf] %vm4038_vm5, %v3985_v16  ;;  %v14517_v16 = vld [vmem:[#allocation35_spill] sm:$0xff] }
 0x4a4   : > { %4265 = vrot.lane.b32.xlu1 %v14512_v30, %s8886_s28 }
 0x4a5   : > { %v3987_v49 = vpop.permute.xlu0 %3986 }
 0x4a6   : > { %4061 = vst.msk [vmem:[#allocation5 + $0x58] sm:$0xf] %vm4038_vm5, %v3987_v49  ;;  %v3989_v33 = vpop.permute.xlu1 %3988 }
 0x4a7   : > { %4267 = vrot.lane.b32.xlu0 %v11415_v29, %s8886_s28  ;;  %4062 = vst.msk [vmem:[#allocation5 + $0x5c] sm:$0xf] %vm4038_vm5, %v3989_v33 }
 0x4a8   : > { %4269 = vrot.lane.b32.xlu1 %v14513_v1, %s8886_s28 }
 0x4a9   : > { %v3991_v44 = vpop.permute.xlu0 %3990 }
 0x4aa   : > { %4063 = vst.msk [vmem:[#allocation5 + $0x60] sm:$0xf] %vm4038_vm5, %v3991_v44  ;;  %v3993_v12 = vpop.permute.xlu1 %3992  ;;  %v14518_v44 = vld [vmem:[#allocation54_spill] sm:$0xff] }
 0x4ab   : > { %4271 = vrot.lane.b32.xlu0 %v14514_v13, %s8886_s28  ;;  %4064 = vst.msk [vmem:[#allocation5 + $0x64] sm:$0xf] %vm4038_vm5, %v3993_v12  ;;  %v14519_v12 = vld [vmem:[#allocation40_spill] sm:$0xff] }
 0x4ac   : > { %4273 = vrot.lane.b32.xlu1 %v14515_v25, %s8886_s28 }
 0x4ad   : > { %v3995_v26 = vpop.permute.xlu0 %3994 }
 0x4ae   : > { %4065 = vst.msk [vmem:[#allocation5 + $0x68] sm:$0xf] %vm4038_vm5, %v3995_v26  ;;  %v3997_v17 = vpop.permute.xlu1 %3996 }
 0x4af   : > { %4275 = vrot.lane.b32.xlu0 %v14516_v23, %s8886_s28  ;;  %4066 = vst.msk [vmem:[#allocation5 + $0x6c] sm:$0xf] %vm4038_vm5, %v3997_v17  ;;  %v14520_v17 = vld [vmem:[#allocation12_spill] sm:$0xff] }
 0x4b0   : > { %4277 = vrot.lane.b32.xlu1 %v14517_v16, %s8886_s28 }
 0x4b1   : > { %v3999_v49 = vpop.permute.xlu0 %3998 }
 0x4b2   : > { %4067 = vst.msk [vmem:[#allocation5 + $0x70] sm:$0xf] %vm4038_vm5, %v3999_v49  ;;  %v4001_v33 = vpop.permute.xlu1 %4000  ;;  %v14521_v49 = vld [vmem:[#allocation16_spill] sm:$0xff] }
 0x4b3   : > { %4279 = vrot.lane.b32.xlu0 %v14518_v44, %s8886_s28  ;;  %4068 = vst.msk [vmem:[#allocation5 + $0x74] sm:$0xf] %vm4038_vm5, %v4001_v33 }
 0x4b4   : > { %4281 = vrot.lane.b32.xlu1 %v14519_v12, %s8886_s28 }
 0x4b5   : > { %v4003_v26 = vpop.permute.xlu0 %4002 }
 0x4b6   : > { %4069 = vst.msk [vmem:[#allocation5 + $0x78] sm:$0xf] %vm4038_vm5, %v4003_v26  ;;  %v4005_v37 = vpop.permute.xlu1 %4004  ;;  %v4230_v26 = vrot.slane %v11611_v52, 5 }
 0x4b7   : > { %4283 = vrot.lane.b32.xlu0 %v14520_v17, %s8886_s28  ;;  %4070 = vst.msk [vmem:[#allocation5 + $0x7c] sm:$0xf] %vm4038_vm5, %v4005_v37  ;;  %vm4331_vm5 = vcmask 388416  }
 0x4b8   : > { %4285 = vrot.lane.b32.xlu1 %v14521_v49, %s8886_s28 }
 0x4b9   : > { %v4100_v8 = vpop.permute.xlu0 %4099 }
 0x4ba   : > { %4196 = vst.msk [vmem:[#allocation5] sm:$0xf] %vm4195_vm6, %v4100_v8  ;;  %v4102_v33 = vpop.permute.xlu1 %4101  ;;  %v4232_v8 = vrot.slane %v4230_v26, 4 }
 0x4bb   : > { %4287 = vrot.lane.b32.xlu0 %v11498_v3, %s8886_s28  ;;  %4197 = vst.msk [vmem:[#allocation5 + $0x4] sm:$0xf] %vm4195_vm6, %v4102_v33  ;;  %v8195_v33 = vrot.slane %v11608_v43, 9 }
 0x4bc   : > { %4289 = vrot.lane.b32.xlu1 %v11504_v11, %s8886_s28 }
 0x4bd   : > { %v4104_v27 = vpop.permute.xlu0 %4103 }
 0x4be   : > { %4198 = vst.msk [vmem:[#allocation5 + $0x8] sm:$0xf] %vm4195_vm6, %v4104_v27  ;;  %v4106_v37 = vpop.permute.xlu1 %4105  ;;  %v11825_v27 = vsel %vm9610_vm7, %v8195_v33, %v4230_v26  ;;  %v14523_v33 = vld [vmem:[#allocation17_spill] sm:$0xff] }
 0x4bf   : > { %4291 = vrot.lane.b32.xlu0 %v11513_v15, %s8886_s28  ;;  %4199 = vst.msk [vmem:[#allocation5 + $0xc] sm:$0xf] %vm4195_vm6, %v4106_v37  ;;  %v11832_v37 = vsel %vm9610_vm7, %v4232_v8, %v4233_v42 }
 0x4c0   : > { %4293 = vrot.lane.b32.xlu1 %v11519_v9, %s8886_s28 }
 0x4c1   : > { %v4108_v3 = vpop.permute.xlu0 %4107 }
 0x4c2   : > { %4200 = vst.msk [vmem:[#allocation5 + $0x10] sm:$0xf] %vm4195_vm6, %v4108_v3  ;;  %v4110_v11 = vpop.permute.xlu1 %4109 }
 0x4c3   : > { %4295 = vrot.lane.b32.xlu0 %v11825_v27, %s8886_s28  ;;  %4201 = vst.msk [vmem:[#allocation5 + $0x14] sm:$0xf] %vm4195_vm6, %v4110_v11 }
 0x4c4   : > { %4297 = vrot.lane.b32.xlu1 %v11832_v37, %s8886_s28  ;;  %s13843_s28 = scalar_lea.vmem %s14035_s10, %s9180_s16 }
 0x4c5   : > { %v4112_v14 = vpop.permute.xlu0 %4111 }
 0x4c6   : > { %4202 = vst.msk [vmem:[#allocation5 + $0x18] sm:$0xf] %vm4195_vm6, %v4112_v14  ;;  %v4114_v3 = vpop.permute.xlu1 %4113 }
 0x4c7   : > { %4370 = vrot.lane.b32.xlu0 %v10796_v36, %s8887_s29  ;;  %4203 = vst.msk [vmem:[#allocation5 + $0x1c] sm:$0xf] %vm4195_vm6, %v4114_v3  ;;  %v2954_v3 = vld [vmem:[#allocation4 + $0x198] sm:$0xff] }
 0x4c8   : > { %4372 = vrot.lane.b32.xlu1 %v10815_v7, %s8887_s29 }
 0x4c9   : > { %v4116_v11 = vpop.permute.xlu0 %4115 }
 0x4ca   : > { %4204 = vst.msk [vmem:[#allocation5 + $0x20] sm:$0xf] %vm4195_vm6, %v4116_v11  ;;  %v4118_v42 = vpop.permute.xlu1 %4117 }
 0x4cb   : > { %4374 = vrot.lane.b32.xlu0 %v10853_v56, %s8887_s29  ;;  %4205 = vst.msk [vmem:[#allocation5 + $0x24] sm:$0xf] %vm4195_vm6, %v4118_v42  ;;  %v14525_v42 = vld [vmem:[#allocation21_spill] sm:$0xff] }
 0x4cc   : > { %4376 = vrot.lane.b32.xlu1 %v10862_v0, %s8887_s29 }
 0x4cd   : > { %v4120_v26 = vpop.permute.xlu0 %4119 }
 0x4ce   : > { %4206 = vst.msk [vmem:[#allocation5 + $0x28] sm:$0xf] %vm4195_vm6, %v4120_v26  ;;  %v4122_v36 = vpop.permute.xlu1 %4121  ;;  %v14526_v26 = vld [vmem:[#allocation23_spill] sm:$0xff] }
 0x4cf   : > { %4378 = vrot.lane.b32.xlu0 %v10855_v10, %s8887_s29  ;;  %4207 = vst.msk [vmem:[#allocation5 + $0x2c] sm:$0xf] %vm4195_vm6, %v4122_v36  ;;  %v8494_v36 = vpack.c.bf16 %v2954_v3, %v2954_v3  ;;  %v14530_v3 = vld [vmem:[#allocation44_spill] sm:$0xff] }
 0x4d0   : > { %4380 = vrot.lane.b32.xlu1 %v10895_v31, %s8887_s29 }
 0x4d1   : > { %v4124_v7 = vpop.permute.xlu0 %4123 }
 0x4d2   : > { %4208 = vst.msk [vmem:[#allocation5 + $0x30] sm:$0xf] %vm4195_vm6, %v4124_v7  ;;  %v4126_v56 = vpop.permute.xlu1 %4125 }
 0x4d3   : > { %4382 = vrot.lane.b32.xlu0 %v10923_v53, %s8887_s29  ;;  %4209 = vst.msk [vmem:[#allocation5 + $0x34] sm:$0xf] %vm4195_vm6, %v4126_v56 }
 0x4d4   : > { %4384 = vrot.lane.b32.xlu1 %v10925_v58, %s8887_s29 }
 0x4d5   : > { %v4128_v0 = vpop.permute.xlu0 %4127 }
 0x4d6   : > { %4210 = vst.msk [vmem:[#allocation5 + $0x38] sm:$0xf] %vm4195_vm6, %v4128_v0  ;;  %v4130_v10 = vpop.permute.xlu1 %4129 }
 0x4d7   : > { %4386 = vrot.lane.b32.xlu0 %v10959_v60, %s8887_s29  ;;  %4211 = vst.msk [vmem:[#allocation5 + $0x3c] sm:$0xf] %vm4195_vm6, %v4130_v10  ;;  %v4504_v10 = vshrl.u32 %v8494_v36, 16 }
 0x4d8   : > { %4388 = vrot.lane.b32.xlu1 %v10967_v20, %s8887_s29 }
 0x4d9   : > { %v4132_v31 = vpop.permute.xlu0 %4131 }
 0x4da   : > { %4212 = vst.msk [vmem:[#allocation5 + $0x40] sm:$0xf] %vm4195_vm6, %v4132_v31  ;;  %v4134_v53 = vpop.permute.xlu1 %4133  ;;  %v4507_v31 = vshll.u32 %v8494_v36, 16 }
 0x4db   : > { %4390 = vrot.lane.b32.xlu0 %v10995_v38, %s8887_s29  ;;  %4213 = vst.msk [vmem:[#allocation5 + $0x44] sm:$0xf] %vm4195_vm6, %v4134_v53 }
 0x4dc   : > { %4392 = vrot.lane.b32.xlu1 %v10999_v47, %s8887_s29 }
 0x4dd   : > { %v4136_v58 = vpop.permute.xlu0 %4135 }
 0x4de   : > { %4214 = vst.msk [vmem:[#allocation5 + $0x48] sm:$0xf] %vm4195_vm6, %v4136_v58  ;;  %v4138_v60 = vpop.permute.xlu1 %4137  ;;  %v14527_v58 = vld [vmem:[#allocation26_spill] sm:$0xff] }
 0x4df   : > { %4394 = vrot.lane.b32.xlu0 %v11030_v18, %s8887_s29  ;;  %4215 = vst.msk [vmem:[#allocation5 + $0x4c] sm:$0xf] %vm4195_vm6, %v4138_v60  ;;  %v14528_v60 = vld [vmem:[#allocation29_spill] sm:$0xff] }
 0x4e0   : > { %4396 = vrot.lane.b32.xlu1 %v11032_v2, %s8887_s29 }
 0x4e1   : > { %v4140_v20 = vpop.permute.xlu0 %4139 }
 0x4e2   : > { %4216 = vst.msk [vmem:[#allocation5 + $0x50] sm:$0xf] %vm4195_vm6, %v4140_v20  ;;  %v4142_v38 = vpop.permute.xlu1 %4141  ;;  %v4506_v20 = vrot.slane %v4504_v10, 4 }
 0x4e3   : > { %4398 = vrot.lane.b32.xlu0 %v11064_v54, %s8887_s29  ;;  %4217 = vst.msk [vmem:[#allocation5 + $0x54] sm:$0xf] %vm4195_vm6, %v4142_v38  ;;  %v4509_v38 = vrot.slane %v4507_v31, 5 }
 0x4e4   : > { %4400 = vrot.lane.b32.xlu1 %v11066_v61, %s8887_s29 }
 0x4e5   : > { %v4144_v47 = vpop.permute.xlu0 %4143 }
 0x4e6   : > { %4218 = vst.msk [vmem:[#allocation5 + $0x58] sm:$0xf] %vm4195_vm6, %v4144_v47  ;;  %v4146_v18 = vpop.permute.xlu1 %4145 }
 0x4e7   : > { %4402 = vrot.lane.b32.xlu0 %v11098_v28, %s8887_s29  ;;  %4219 = vst.msk [vmem:[#allocation5 + $0x5c] sm:$0xf] %vm4195_vm6, %v4146_v18 }
 0x4e8   : > { %4404 = vrot.lane.b32.xlu1 %v11100_v19, %s8887_s29  ;;  %v14522_v19 = vld [vmem:[#allocation13_spill] sm:$0xff] }
 0x4e9   : > { %v4148_v2 = vpop.permute.xlu0 %4147 }
 0x4ea   : > { %4220 = vst.msk [vmem:[#allocation5 + $0x60] sm:$0xf] %vm4195_vm6, %v4148_v2  ;;  %v4150_v54 = vpop.permute.xlu1 %4149  ;;  %v4510_v2 = vor.u32 %v4509_v38, %v4506_v20 }
 0x4eb   : > { %4406 = vrot.lane.b32.xlu0 %v11104_v21, %s8887_s29  ;;  %4221 = vst.msk [vmem:[#allocation5 + $0x64] sm:$0xf] %vm4195_vm6, %v4150_v54 }
 0x4ec   : > { %4408 = vrot.lane.b32.xlu1 %v11123_v51, %s8887_s29  ;;  %v14524_v51 = vld [vmem:[#allocation19_spill] sm:$0xff] }
 0x4ed   : > { %v4152_v61 = vpop.permute.xlu0 %4151 }
 0x4ee   : > { %4222 = vst.msk [vmem:[#allocation5 + $0x68] sm:$0xf] %vm4195_vm6, %v4152_v61  ;;  %v4154_v28 = vpop.permute.xlu1 %4153  ;;  %v11931_v61 = vrot.slane %v4510_v2, 4 }
 0x4ef   : > { %4410 = vrot.lane.b32.xlu0 %v14473_v22, %s8887_s29  ;;  %4223 = vst.msk [vmem:[#allocation5 + $0x6c] sm:$0xf] %vm4195_vm6, %v4154_v28  ;;  %v2955_v22 = vld [vmem:[#allocation4 + $0x1a0] sm:$0xff] }
 0x4f0   : > { %4412 = vrot.lane.b32.xlu1 %v14522_v19, %s8887_s29  ;;  %v11914_v7 = vpack.c.bf16 %v2955_v22, %v2955_v22 }
 0x4f1   : > { %v4156_v8 = vpop.permute.xlu0 %4155 }
 0x4f2   : > { %4224 = vst.msk [vmem:[#allocation5 + $0x70] sm:$0xf] %vm4195_vm6, %v4156_v8  ;;  %v4158_v21 = vpop.permute.xlu1 %4157  ;;  %v4513_v53 = vshll.u32 %v11914_v7, 16 }
 0x4f3   : > { %4414 = vrot.lane.b32.xlu0 %v14523_v33, %s8887_s29  ;;  %4225 = vst.msk [vmem:[#allocation5 + $0x74] sm:$0xf] %vm4195_vm6, %v4158_v21  ;;  %v8836_v21 = vld [vmem:[%s14029_s4 + $0x20] ss:$0 sps:$4 sm:$0xff]   ;;  %v14529_v33 = vld [vmem:[#allocation9_spill] sm:$0xff] }
 0x4f4   : > { %4416 = vrot.lane.b32.xlu1 %v14524_v51, %s8887_s29  ;;  %v11924_v54 = vrot.slane %v4513_v53, 5  ;;  %v4658_v51 = vrot.slane %v11914_v7, 5  ;;  %v8838_v53 = vld [vmem:[%s14029_s4 + $0x10] sm:$0xff]  }
 0x4f5   : > { %v4160_v14 = vpop.permute.xlu0 %4159 }
 0x4f6   : > { %4226 = vst.msk [vmem:[#allocation5 + $0x78] sm:$0xf] %vm4195_vm6, %v4160_v14  ;;  %v4162_v11 = vpop.permute.xlu1 %4161  ;;  %v4516_v8 = vsel %vm9239_vm4, %v11931_v61, %v11924_v54  ;;  %v8199_v14 = vrot.slane %v8494_v36, 9 }
 0x4f7   : > { %4418 = vrot.lane.b32.xlu0 %v14525_v42, %s8887_s29  ;;  %4227 = vst.msk [vmem:[#allocation5 + $0x7c] sm:$0xf] %vm4195_vm6, %v4162_v11  ;;  %vm5028_vm6 = vcmask 1043456  }
 0x4f8   : > { %4420 = vrot.lane.b32.xlu1 %v14526_v26, %s8887_s29  ;;  %8792 = vmatprep.subr.msk.bf16.mxu1 %vm5028_vm6, %v8836_v21  ;;  %v5030_v22 = vsel %vm5028_vm6, %v8836_v21, 0  ;;  %v11958_v42 = vsel %vm9610_vm7, %v8199_v14, %v4658_v51  ;;  %v14537_v14 = vld [vmem:[#allocation30_spill] sm:$0xff] }
 0x4f9   : > { %v4236_v56 = vpop.permute.xlu0 %4235  ;;  %8670 = vmatpush3.bf16.msra.mxu1 %v5030_v22  ;;  %v14539_v22 = vld [vmem:[#allocation33_spill] sm:$0xff] }
 0x4fa   : > { %4332 = vst.msk [vmem:[#allocation5] sm:$0xf] %vm4331_vm5, %v4236_v56  ;;  %v4238_v0 = vpop.permute.xlu1 %4237  ;;  %v14531_v56 = vld [vmem:[#allocation45_spill] sm:$0xff] }
 0x4fb   : > { %4422 = vrot.lane.b32.xlu0 %v14527_v58, %s8887_s29  ;;  %4333 = vst.msk [vmem:[#allocation5 + $0x4] sm:$0xf] %vm4331_vm5, %v4238_v0  ;;  %v14532_v0 = vld [vmem:[#allocation46_spill] sm:$0xff]  ;;  %v14533_v58 = vld [vmem:[#allocation47_spill] sm:$0xff] }
 0x4fc   : > { %4424 = vrot.lane.b32.xlu1 %v14528_v60, %s8887_s29  ;;  %v14534_v60 = vld [vmem:[#allocation48_spill] sm:$0xff] }
 0x4fd   : > { %v4240_v47 = vpop.permute.xlu0 %4239 }
 0x4fe   : > { %4334 = vst.msk [vmem:[#allocation5 + $0x8] sm:$0xf] %vm4331_vm5, %v4240_v47  ;;  %v4242_v18 = vpop.permute.xlu1 %4241  ;;  %v8839_v47 = vld [vmem:[%s14029_s4 + $0x8] sm:$0xff]  }
 0x4ff   : > { %4426 = vrot.lane.b32.xlu0 %v11608_v43, %s8887_s29  ;;  %4335 = vst.msk [vmem:[#allocation5 + $0xc] sm:$0xf] %vm4331_vm5, %v4242_v18 }
 0x500   : > { %4428 = vrot.lane.b32.xlu1 %v11611_v52, %s8887_s29 }
 0x501   : > { %v4244_v28 = vpop.permute.xlu0 %4243 }
 0x502   : > { %4336 = vst.msk [vmem:[#allocation5 + $0x10] sm:$0xf] %vm4331_vm5, %v4244_v28  ;;  %v4246_v19 = vpop.permute.xlu1 %4245  ;;  %v8840_v28 = vld [vmem:[%s14029_s4] sm:$0xff]  }
 0x503   : > { %4430 = vrot.lane.b32.xlu0 %v8494_v36, %s8887_s29  ;;  %4337 = vst.msk [vmem:[#allocation5 + $0x14] sm:$0xf] %vm4331_vm5, %v4246_v19  ;;  %v8837_v36 = vld [vmem:[%s14029_s4 + $0x18] sm:$0xff]   ;;  %v14535_v19 = vld [vmem:[#allocation27_spill] sm:$0xff] }
 0x504   : > { %4432 = vrot.lane.b32.xlu1 %v11914_v7, %s8887_s29  ;;  %8671 = vmatprep.subr.bf16.mxu1 %v8837_v36  ;;  %s8889_s29 = smov 64  }
 0x505   : > { %v4248_v43 = vpop.permute.xlu0 %4247  ;;  %8672 = vmatpush3.bf16.msra.mxu1 %v8837_v36 }
 0x506   : > { %4338 = vst.msk [vmem:[#allocation5 + $0x18] sm:$0xf] %vm4331_vm5, %v4248_v43  ;;  %v4250_v52 = vpop.permute.xlu1 %4249  ;;  %8673 = vmatprep.subr.bf16.mxu1 %v8838_v53  ;;  %v14536_v43 = vld [vmem:[#allocation52_spill] sm:$0xff] }
 0x507   : > { %4527 = vrot.lane.b32.xlu0 %v14529_v33, %s8888_s12  ;;  %4339 = vst.msk [vmem:[#allocation5 + $0x1c] sm:$0xf] %vm4331_vm5, %v4250_v52 }
 0x508   : > { %4529 = vrot.lane.b32.xlu1 %v14530_v3, %s8888_s12 }
 0x509   : > { %v4252_v11 = vpop.permute.xlu0 %4251  ;;  %8674 = vmatpush3.bf16.msra.mxu1 %v8838_v53  ;;  %v14543_v53 = vld [vmem:[#allocation43_spill] sm:$0xff] }
 0x50a   : > { %4340 = vst.msk [vmem:[#allocation5 + $0x20] sm:$0xf] %vm4331_vm5, %v4252_v11  ;;  %v4254_v26 = vpop.permute.xlu1 %4253  ;;  %8675 = vmatprep.subr.bf16.mxu1 %v8839_v47 }
 0x50b   : > { %4531 = vrot.lane.b32.xlu0 %v14531_v56, %s8888_s12  ;;  %4341 = vst.msk [vmem:[#allocation5 + $0x24] sm:$0xf] %vm4331_vm5, %v4254_v26 }
 0x50c   : > { %4533 = vrot.lane.b32.xlu1 %v14532_v0, %s8888_s12 }
 0x50d   : > { %v4256_v10 = vpop.permute.xlu0 %4255  ;;  %8676 = vmatpush3.bf16.msra.mxu1 %v8839_v47 }
 0x50e   : > { %4342 = vst.msk [vmem:[#allocation5 + $0x28] sm:$0xf] %vm4331_vm5, %v4256_v10  ;;  %v4258_v31 = vpop.permute.xlu1 %4257  ;;  %8677 = vmatprep.subr.bf16.mxu1 %v8840_v28  ;;  %v14541_v10 = vld [vmem:[#allocation37_spill] sm:$0xff] }
 0x50f   : > { %4535 = vrot.lane.b32.xlu0 %v14533_v58, %s8888_s12  ;;  %4343 = vst.msk [vmem:[#allocation5 + $0x2c] sm:$0xf] %vm4331_vm5, %v4258_v31 }
 0x510   : > { %4537 = vrot.lane.b32.xlu1 %v14534_v60, %s8888_s12 }
 0x511   : > { %v4260_v20 = vpop.permute.xlu0 %4259  ;;  %8678 = vmatpush3.bf16.msra.mxu1 %v8840_v28  ;;  %v14547_v28 = vld [vmem:[#allocation18_spill] sm:$0xff] }
 0x512   : > { %4344 = vst.msk [vmem:[#allocation5 + $0x30] sm:$0xf] %vm4331_vm5, %v4260_v20  ;;  %v4262_v38 = vpop.permute.xlu1 %4261 }
 0x513   : > { %4663 = vrot.lane.b32.xlu0 %v11308_v50, %s8889_s29  ;;  %4345 = vst.msk [vmem:[#allocation5 + $0x34] sm:$0xf] %vm4331_vm5, %v4262_v38 }
 0x514   : > { %4665 = vrot.lane.b32.xlu1 %v11314_v48, %s8889_s29 }
 0x515   : > { %v4264_v18 = vpop.permute.xlu0 %4263 }
 0x516   : > { %4346 = vst.msk [vmem:[#allocation5 + $0x38] sm:$0xf] %vm4331_vm5, %v4264_v18  ;;  %v4266_v2 = vpop.permute.xlu1 %4265  ;;  %v14545_v18 = vld [vmem:[#allocation14_spill] sm:$0xff] }
 0x517   : > { %4667 = vrot.lane.b32.xlu0 %v11325_v6, %s8889_s29  ;;  %4347 = vst.msk [vmem:[#allocation5 + $0x3c] sm:$0xf] %vm4331_vm5, %v4266_v2 }
 0x518   : > { %4669 = vrot.lane.b32.xlu1 %v11331_v55, %s8889_s29 }
 0x519   : > { %v4268_v50 = vpop.permute.xlu0 %4267 }
 0x51a   : > { %4348 = vst.msk [vmem:[#allocation5 + $0x40] sm:$0xf] %vm4331_vm5, %v4268_v50  ;;  %v4270_v48 = vpop.permute.xlu1 %4269 }
 0x51b   : > { %4539 = vrot.lane.b32.xlu0 %v14535_v19, %s8888_s12  ;;  %4349 = vst.msk [vmem:[#allocation5 + $0x44] sm:$0xf] %vm4331_vm5, %v4270_v48 }
 0x51c   : > { %4541 = vrot.lane.b32.xlu1 %v14536_v43, %s8888_s12 }
 0x51d   : > { %v4272_v6 = vpop.permute.xlu0 %4271 }
 0x51e   : > { %4350 = vst.msk [vmem:[#allocation5 + $0x48] sm:$0xf] %vm4331_vm5, %v4272_v6  ;;  %v4274_v52 = vpop.permute.xlu1 %4273 }
 0x51f   : > { %4671 = vrot.lane.b32.xlu0 %v11340_v4, %s8889_s29  ;;  %4351 = vst.msk [vmem:[#allocation5 + $0x4c] sm:$0xf] %vm4331_vm5, %v4274_v52  ;;  %v14549_v52 = vld [vmem:[#allocation22_spill] sm:$0xff] }
 0x520   : > { %4673 = vrot.lane.b32.xlu1 %v11346_v34, %s8889_s29  ;;  %v14538_v34 = vld [vmem:[#allocation31_spill] sm:$0xff] }
 0x521   : > { %v4276_v55 = vpop.permute.xlu0 %4275 }
 0x522   : > { %4352 = vst.msk [vmem:[#allocation5 + $0x50] sm:$0xf] %vm4331_vm5, %v4276_v55  ;;  %v4278_v21 = vpop.permute.xlu1 %4277 }
 0x523   : > { %4675 = vrot.lane.b32.xlu0 %v11355_v39, %s8889_s29  ;;  %4353 = vst.msk [vmem:[#allocation5 + $0x54] sm:$0xf] %vm4331_vm5, %v4278_v21 }
 0x524   : > { %4677 = vrot.lane.b32.xlu1 %v11361_v35, %s8889_s29  ;;  %v14540_v35 = vld [vmem:[#allocation36_spill] sm:$0xff] }
 0x525   : > { %v4280_v33 = vpop.permute.xlu0 %4279 }
 0x526   : > { %4354 = vst.msk [vmem:[#allocation5 + $0x58] sm:$0xf] %vm4331_vm5, %v4280_v33  ;;  %v4282_v4 = vpop.permute.xlu1 %4281 }
 0x527   : > { %4543 = vrot.lane.b32.xlu0 %v14537_v14, %s8888_s12  ;;  %4355 = vst.msk [vmem:[#allocation5 + $0x5c] sm:$0xf] %vm4331_vm5, %v4282_v4  ;;  %v2956_v14 = vld [vmem:[#allocation4 + $0x1a8] sm:$0x3] }
 0x528   : > { %4545 = vrot.lane.b32.xlu1 %v14538_v34, %s8888_s12  ;;  %v14552_v34 = vld [vmem:[#allocation38_spill] sm:$0xff] }
 0x529   : > { %v4284_v3 = vpop.permute.xlu0 %4283 }
 0x52a   : > { %4356 = vst.msk [vmem:[#allocation5 + $0x60] sm:$0xf] %vm4331_vm5, %v4284_v3  ;;  %v4286_v39 = vpop.permute.xlu1 %4285  ;;  %v8496_v3 = vpack.c.bf16 %v2956_v14, %v2956_v14 }
 0x52b   : > { %4547 = vrot.lane.b32.xlu0 %v14539_v22, %s8888_s12  ;;  %4357 = vst.msk [vmem:[#allocation5 + $0x64] sm:$0xf] %vm4331_vm5, %v4286_v39  ;;  %v14553_v22 = vld [vmem:[#allocation25_spill] sm:$0xff] }
 0x52c   : > { %4549 = vrot.lane.b32.xlu1 %v14540_v35, %s8888_s12  ;;  %v14554_v35 = vld [vmem:[#allocation55_spill] sm:$0xff] }
 0x52d   : > { %v4288_v11 = vpop.permute.xlu0 %4287 }
 0x52e   : > { %4358 = vst.msk [vmem:[#allocation5 + $0x68] sm:$0xf] %vm4331_vm5, %v4288_v11  ;;  %v4290_v26 = vpop.permute.xlu1 %4289 }
 0x52f   : > { %4679 = vrot.lane.b32.xlu0 %v11370_v45, %s8889_s29  ;;  %4359 = vst.msk [vmem:[#allocation5 + $0x6c] sm:$0xf] %vm4331_vm5, %v4290_v26 }
 0x530   : > { %4681 = vrot.lane.b32.xlu1 %v11376_v46, %s8889_s29  ;;  %v14542_v46 = vld [vmem:[#allocation41_spill] sm:$0xff] }
 0x531   : > { %v4292_v36 = vpop.permute.xlu0 %4291 }
 0x532   : > { %4360 = vst.msk [vmem:[#allocation5 + $0x70] sm:$0xf] %vm4331_vm5, %v4292_v36  ;;  %v4294_v56 = vpop.permute.xlu1 %4293  ;;  %v4523_v36 = vshll.u32 %v8496_v3, 16 }
 0x533   : > { %4683 = vrot.lane.b32.xlu0 %v11385_v32, %s8889_s29  ;;  %4361 = vst.msk [vmem:[#allocation5 + $0x74] sm:$0xf] %vm4331_vm5, %v4294_v56 }
 0x534   : > { %4685 = vrot.lane.b32.xlu1 %v11391_v24, %s8889_s29  ;;  %v14544_v24 = vld [vmem:[#allocation11_spill] sm:$0xff] }
 0x535   : > { %v4296_v0 = vpop.permute.xlu0 %4295 }
 0x536   : > { %4362 = vst.msk [vmem:[#allocation5 + $0x78] sm:$0xf] %vm4331_vm5, %v4296_v0  ;;  %v4298_v45 = vpop.permute.xlu1 %4297 }
 0x537   : > { %4551 = vrot.lane.b32.xlu0 %v14541_v10, %s8888_s12  ;;  %4363 = vst.msk [vmem:[#allocation5 + $0x7c] sm:$0xf] %vm4331_vm5, %v4298_v45  ;;  %v4525_v10 = vrot.slane %v4523_v36, 5  ;;  %vm4623_vm5 = vcmask 519616  }
 0x538   : > { %4553 = vrot.lane.b32.xlu1 %v14542_v46, %s8888_s12 }
 0x539   : > { %v4371_v31 = vpop.permute.xlu0 %4370 }
 0x53a   : > { %4467 = vst.msk [vmem:[#allocation5] sm:$0xf] %vm4466_vm3, %v4371_v31  ;;  %v4373_v32 = vpop.permute.xlu1 %4372  ;;  %v14555_v31 = vld [vmem:[#allocation10_spill] sm:$0xff] }
 0x53b   : > { %4555 = vrot.lane.b32.xlu0 %v14543_v53, %s8888_s12  ;;  %4468 = vst.msk [vmem:[#allocation5 + $0x4] sm:$0xf] %vm4466_vm3, %v4373_v32  ;;  %v14556_v32 = vld [vmem:[#allocation39_spill] sm:$0xff] }
 0x53c   : > { %4557 = vrot.lane.b32.xlu1 %v14544_v24, %s8888_s12 }
 0x53d   : > { %v4375_v58 = vpop.permute.xlu0 %4374 }
 0x53e   : > { %4469 = vst.msk [vmem:[#allocation5 + $0x8] sm:$0xf] %vm4466_vm3, %v4375_v58  ;;  %v4377_v60 = vpop.permute.xlu1 %4376 }
 0x53f   : > { %4687 = vrot.lane.b32.xlu0 %v11400_v5, %s8889_s29  ;;  %4470 = vst.msk [vmem:[#allocation5 + $0xc] sm:$0xf] %vm4466_vm3, %v4377_v60  ;;  %v4660_v60 = vrot.slane %v4658_v51, 4 }
 0x540   : > { %4689 = vrot.lane.b32.xlu1 %v14512_v30, %s8889_s29  ;;  %v14546_v30 = vld [vmem:[#allocation15_spill] sm:$0xff] }
 0x541   : > { %v4379_v20 = vpop.permute.xlu0 %4378 }
 0x542   : > { %4471 = vst.msk [vmem:[#allocation5 + $0x10] sm:$0xf] %vm4466_vm3, %v4379_v20  ;;  %v4381_v38 = vpop.permute.xlu1 %4380  ;;  %v4661_v20 = vrot.slane %v8496_v3, 5  ;;  %v8846_v3 = vld [vmem:[%s14033_s8 + $0x8] sm:$0xff]  }
 0x543   : > { %4691 = vrot.lane.b32.xlu0 %v11415_v29, %s8889_s29  ;;  %4472 = vst.msk [vmem:[#allocation5 + $0x14] sm:$0xf] %vm4466_vm3, %v4381_v38 }
 0x544   : > { %4693 = vrot.lane.b32.xlu1 %v14513_v1, %s8889_s29  ;;  %v14548_v1 = vld [vmem:[#allocation20_spill] sm:$0xff]  ;;  %v4662_v61 = vsel %vm9610_vm7, %v4660_v60, %v4661_v20 }
 0x545   : > { %v4383_v47 = vpop.permute.xlu0 %4382 }
 0x546   : > { %4473 = vst.msk [vmem:[#allocation5 + $0x18] sm:$0xf] %vm4466_vm3, %v4383_v47  ;;  %v4385_v5 = vpop.permute.xlu1 %4384 }
 0x547   : > { %4559 = vrot.lane.b32.xlu0 %v14545_v18, %s8888_s12  ;;  %4474 = vst.msk [vmem:[#allocation5 + $0x1c] sm:$0xf] %vm4466_vm3, %v4385_v5 }
 0x548   : > { %4561 = vrot.lane.b32.xlu1 %v14546_v30, %s8888_s12  ;;  %v8890_v30 = vmov 0  }
 0x549   : > { %v4387_v2 = vpop.permute.xlu0 %4386 }
 0x54a   : > { %4475 = vst.msk [vmem:[#allocation5 + $0x20] sm:$0xf] %vm4466_vm3, %v4387_v2  ;;  %v4389_v29 = vpop.permute.xlu1 %4388 }
 0x54b   : > { %4563 = vrot.lane.b32.xlu0 %v14547_v28, %s8888_s12  ;;  %4476 = vst.msk [vmem:[#allocation5 + $0x24] sm:$0xf] %vm4466_vm3, %v4389_v29 }
 0x54c   : > { %4565 = vrot.lane.b32.xlu1 %v14548_v1, %s8888_s12 }
 0x54d   : > { %v4391_v50 = vpop.permute.xlu0 %4390 }
 0x54e   : > { %4477 = vst.msk [vmem:[#allocation5 + $0x28] sm:$0xf] %vm4466_vm3, %v4391_v50  ;;  %v4393_v48 = vpop.permute.xlu1 %4392 }
 0x54f   : > { %4695 = vrot.lane.b32.xlu0 %v14514_v13, %s8889_s29  ;;  %4478 = vst.msk [vmem:[#allocation5 + $0x2c] sm:$0xf] %vm4466_vm3, %v4393_v48 }
 0x550   : > { %4697 = vrot.lane.b32.xlu1 %v14515_v25, %s8889_s29  ;;  %v14550_v25 = vld [vmem:[#allocation24_spill] sm:$0xff] }
 0x551   : > { %v4395_v19 = vpop.permute.xlu0 %4394 }
 0x552   : > { %4479 = vst.msk [vmem:[#allocation5 + $0x30] sm:$0xf] %vm4466_vm3, %v4395_v19  ;;  %v4397_v43 = vpop.permute.xlu1 %4396 }
 0x553   : > { %4699 = vrot.lane.b32.xlu0 %v14516_v23, %s8889_s29  ;;  %4480 = vst.msk [vmem:[#allocation5 + $0x34] sm:$0xf] %vm4466_vm3, %v4397_v43 }
 0x554   : > { %4701 = vrot.lane.b32.xlu1 %v14517_v16, %s8889_s29 }
 0x555   : > { %v4399_v6 = vpop.permute.xlu0 %4398 }
 0x556   : > { %4481 = vst.msk [vmem:[#allocation5 + $0x38] sm:$0xf] %vm4466_vm3, %v4399_v6  ;;  %v4401_v13 = vpop.permute.xlu1 %4400 }
 0x557   : > { %4567 = vrot.lane.b32.xlu0 %v14549_v52, %s8888_s12  ;;  %4482 = vst.msk [vmem:[#allocation5 + $0x3c] sm:$0xf] %vm4466_vm3, %v4401_v13 }
 0x558   : > { %4569 = vrot.lane.b32.xlu1 %v14550_v25, %s8888_s12 }
 0x559   : > { %v4403_v55 = vpop.permute.xlu0 %4402 }
 0x55a   : > { %4483 = vst.msk [vmem:[#allocation5 + $0x40] sm:$0xf] %vm4466_vm3, %v4403_v55  ;;  %v4405_v23 = vpop.permute.xlu1 %4404 }
 0x55b   : > { %4571 = vrot.lane.b32.xlu0 %v14508_v62, %s8888_s12  ;;  %4484 = vst.msk [vmem:[#allocation5 + $0x44] sm:$0xf] %vm4466_vm3, %v4405_v23 }
 0x55c   : > { %4573 = vrot.lane.b32.xlu1 %v14509_v59, %s8888_s12 }
 0x55d   : > { %v4407_v16 = vpop.permute.xlu0 %4406 }
 0x55e   : > { %4485 = vst.msk [vmem:[#allocation5 + $0x48] sm:$0xf] %vm4466_vm3, %v4407_v16  ;;  %v4409_v21 = vpop.permute.xlu1 %4408  ;;  %v8844_v16 = vld [vmem:[%s14033_s8 + $0x18] sm:$0xff]  }
 0x55f   : > { %4703 = vrot.lane.b32.xlu0 %v14518_v44, %s8889_s29  ;;  %4486 = vst.msk [vmem:[#allocation5 + $0x4c] sm:$0xf] %vm4466_vm3, %v4409_v21 }
 0x560   : > { %4705 = vrot.lane.b32.xlu1 %v14519_v12, %s8889_s29 }
 0x561   : > { %v4411_v33 = vpop.permute.xlu0 %4410 }
 0x562   : > { %4487 = vst.msk [vmem:[#allocation5 + $0x50] sm:$0xf] %vm4466_vm3, %v4411_v33  ;;  %v4413_v62 = vpop.permute.xlu1 %4412 }
 0x563   : > { %4707 = vrot.lane.b32.xlu0 %v14520_v17, %s8889_s29  ;;  %4488 = vst.msk [vmem:[#allocation5 + $0x54] sm:$0xf] %vm4466_vm3, %v4413_v62  ;;  %v4517_v17 = vshrl.u32 %v11914_v7, 16 }
 0x564   : > { %4709 = vrot.lane.b32.xlu1 %v14521_v49, %s8889_s29  ;;  %v14551_v49 = vld [vmem:[#allocation34_spill] sm:$0xff] }
 0x565   : > { %v4415_v59 = vpop.permute.xlu0 %4414  ;;  %v4519_v39 = vrot.slane %v4517_v17, 4 }
 0x566   : > { %4489 = vst.msk [vmem:[#allocation5 + $0x58] sm:$0xf] %vm4466_vm3, %v4415_v59  ;;  %v4417_v44 = vpop.permute.xlu1 %4416  ;;  %v8845_v59 = vld [vmem:[%s14033_s8 + $0x10] sm:$0xff]  }
 0x567   : > { %4575 = vrot.lane.b32.xlu0 %v11255_v63, %s8888_s12  ;;  %4490 = vst.msk [vmem:[#allocation5 + $0x5c] sm:$0xf] %vm4466_vm3, %v4417_v44  ;;  %v4520_v26 = vor.u32 %v4519_v39, %v11924_v54 }
 0x568   : > { %4577 = vrot.lane.b32.xlu1 %v11262_v57, %s8888_s12 }
 0x569   : > { %v4419_v12 = vpop.permute.xlu0 %4418  ;;  %v4521_v45 = vrot.slane %v4520_v26, 4 }
 0x56a   : > { %4491 = vst.msk [vmem:[#allocation5 + $0x60] sm:$0xf] %vm4466_vm3, %v4419_v12  ;;  %v4421_v4 = vpop.permute.xlu1 %4420 }
 0x56b   : > { %4579 = vrot.lane.b32.xlu0 %v14551_v49, %s8888_s12  ;;  %4492 = vst.msk [vmem:[#allocation5 + $0x64] sm:$0xf] %vm4466_vm3, %v4421_v4  ;;  %v4526_v53 = vsel %vm9239_vm4, %v4521_v45, %v4525_v10 }
 0x56c   : > { %4581 = vrot.lane.b32.xlu1 %v14552_v34, %s8888_s12 }
 0x56d   : > { %v4423_v63 = vpop.permute.xlu0 %4422 }
 0x56e   : > { %4493 = vst.msk [vmem:[#allocation5 + $0x68] sm:$0xf] %vm4466_vm3, %v4423_v63  ;;  %v4425_v57 = vpop.permute.xlu1 %4424 }
 0x56f   : > { %4711 = vrot.lane.b32.xlu0 %v14553_v22, %s8889_s29  ;;  %4494 = vst.msk [vmem:[#allocation5 + $0x6c] sm:$0xf] %vm4466_vm3, %v4425_v57 }
 0x570   : > { %4713 = vrot.lane.b32.xlu1 %v14554_v35, %s8889_s29 }
 0x571   : > { %v4427_v11 = vpop.permute.xlu0 %4426 }
 0x572   : > { %4495 = vst.msk [vmem:[#allocation5 + $0x70] sm:$0xf] %vm4466_vm3, %v4427_v11  ;;  %v4429_v56 = vpop.permute.xlu1 %4428 }
 0x573   : > { %4715 = vrot.lane.b32.xlu0 %v11513_v15, %s8889_s29  ;;  %4496 = vst.msk [vmem:[#allocation5 + $0x74] sm:$0xf] %vm4466_vm3, %v4429_v56  ;;  %v8843_v15 = vld [vmem:[%s14033_s8 + $0x20] ss:$0 sps:$4 sm:$0xff]  }
 0x574   : > { %4717 = vrot.lane.b32.xlu1 %v11519_v9, %s8889_s29  ;;  %8794 = vmatprep.subr.msk.bf16.mxu1 %vm5028_vm6, %v8843_v15  ;;  %v7715_v23 = vsel %vm5028_vm6, %v8843_v15, 0  ;;  %v8847_v56 = vld [vmem:[%s14033_s8] sm:$0xff]  }
 0x575   : > { %v4431_v0 = vpop.permute.xlu0 %4430 }
 0x576   : > { %4497 = vst.msk [vmem:[#allocation5 + $0x78] sm:$0xf] %vm4466_vm3, %v4431_v0  ;;  %v4433_v46 = vpop.permute.xlu1 %4432 }
 0x577   : > { %4583 = vrot.lane.b32.xlu0 %v14555_v31, %s8888_s12  ;;  %4498 = vst.msk [vmem:[#allocation5 + $0x7c] sm:$0xf] %vm4466_vm3, %v4433_v46  ;;  %vm4759_vm3 = vcmask 585216  }
 0x578   : > { %4585 = vrot.lane.b32.xlu1 %v14556_v32, %s8888_s12 }
 0x579   : > { %v4528_v9 = vpop.permute.xlu0 %4527 }
 0x57a   : > { %4624 = vst.msk [vmem:[#allocation5] sm:$0xf] %vm4623_vm5, %v4528_v9  ;;  %v4530_v24 = vpop.permute.xlu1 %4529 }
 0x57b   : > { %4587 = vrot.lane.b32.xlu0 %v4516_v8, %s8888_s12  ;;  %4625 = vst.msk [vmem:[#allocation5 + $0x4] sm:$0xf] %vm4623_vm5, %v4530_v24 }
 0x57c   : > { %4589 = vrot.lane.b32.xlu1 %v4526_v53, %s8888_s12 }
 0x57d   : > { %v4532_v58 = vpop.permute.xlu0 %4531 }
 0x57e   : > { %4626 = vst.msk [vmem:[#allocation5 + $0x8] sm:$0xf] %vm4623_vm5, %v4532_v58  ;;  %v4534_v38 = vpop.permute.xlu1 %4533 }
 0x57f   : > { %4719 = vrot.lane.b32.xlu0 %v11825_v27, %s8889_s29  ;;  %4627 = vst.msk [vmem:[#allocation5 + $0xc] sm:$0xf] %vm4623_vm5, %v4534_v38 }
 0x580   : > { %4721 = vrot.lane.b32.xlu1 %v11832_v37, %s8889_s29 }
 0x581   : > { %v4536_v54 = vpop.permute.xlu0 %4535 }
 0x582   : > { %4628 = vst.msk [vmem:[#allocation5 + $0x10] sm:$0xf] %vm4623_vm5, %v4536_v54  ;;  %v4538_v7 = vpop.permute.xlu1 %4537 }
 0x583   : > { %4629 = vst.msk [vmem:[#allocation5 + $0x14] sm:$0xf] %vm4623_vm5, %v4538_v7  ;;  %4723 = vrot.lane.b32.xlu0 %v11958_v42, %s8889_s29 }
 0x584   : > { %4725 = vrot.lane.b32.xlu1 %v4662_v61, %s8889_s29 }
 0x585   : > { %v4664_v27 = vpop.permute.xlu0 %4663 }
 0x586   : > { %4760 = vst.msk [vmem:[#allocation5] sm:$0xf] %vm4759_vm3, %v4664_v27  ;;  %v4666_v8 = vpop.permute.xlu1 %4665 }
 0x587   : > { %4761 = vst.msk [vmem:[#allocation5 + $0x4] sm:$0xf] %vm4759_vm3, %v4666_v8 }
 0x589   : > { %v4668_v37 = vpop.permute.xlu0 %4667 }
 0x58a   : > { %4762 = vst.msk [vmem:[#allocation5 + $0x8] sm:$0xf] %vm4759_vm3, %v4668_v37  ;;  %v4670_v51 = vpop.permute.xlu1 %4669 }
 0x58b   : > { %4763 = vst.msk [vmem:[#allocation5 + $0xc] sm:$0xf] %vm4759_vm3, %v4670_v51 }
 0x58d   : > { %v4540_v47 = vpop.permute.xlu0 %4539  ;;  %v12176_v5 = vld [vmem:[#allocation5] sm:$0xf] }
 0x58e   : > { %4630 = vst.msk [vmem:[#allocation5 + $0x18] sm:$0xf] %vm4623_vm5, %v4540_v47  ;;  %v4542_v42 = vpop.permute.xlu1 %4541  ;;  %v12179_v18 = vld [vmem:[#allocation5 + $0x4] sm:$0xf]  ;;  %v4824_v2 = vmax.bf16 %v8890_v30, %v12176_v5 }
 0x58f   : > { %4631 = vst.msk [vmem:[#allocation5 + $0x1c] sm:$0xf] %vm4623_vm5, %v4542_v42  ;;  %v4825_v29 = vmax.bf16 %v8890_v30, %v12179_v18  ;;  %v8347_v28 = vcombine.low %v12176_v5, %v12179_v18 }
 0x591   : > { %v4672_v1 = vpop.permute.xlu0 %4671  ;;  %v8201_v50 = vcombine.low %v4824_v2, %v4825_v29  ;;  %v12188_v48 = vld [vmem:[#allocation5 + $0x8] sm:$0xf] }
 0x592   : > { %4764 = vst.msk [vmem:[#allocation5 + $0x10] sm:$0xf] %vm4759_vm3, %v4672_v1  ;;  %v4674_v19 = vpop.permute.xlu1 %4673  ;;  %v12191_v43 = vld [vmem:[#allocation5 + $0xc] sm:$0xf]  ;;  %v4826_v6 = vmax.bf16 %v8890_v30, %v12188_v48 }
 0x593   : > { %4765 = vst.msk [vmem:[#allocation5 + $0x14] sm:$0xf] %vm4759_vm3, %v4674_v19  ;;  %8679 = vmatprep.mubr.msk.bf16.mxu1 %vm4979_vm2, %v8201_v50  ;;  %v4827_v13 = vmax.bf16 %v8890_v30, %v12191_v43  ;;  %v8348_v52 = vcombine.low %v12188_v48, %v12191_v43 }
 0x595   : > { %v4676_v25 = vpop.permute.xlu0 %4675  ;;  %v8202_v55 = vcombine.low %v4826_v6, %v4827_v13 }
 0x596   : > { %4766 = vst.msk [vmem:[#allocation5 + $0x18] sm:$0xf] %vm4759_vm3, %v4676_v25  ;;  %v4678_v21 = vpop.permute.xlu1 %4677 }
 0x597   : > { %4767 = vst.msk [vmem:[#allocation5 + $0x1c] sm:$0xf] %vm4759_vm3, %v4678_v21  ;;  %8680 = vmatmul.mubr.msk.bf16.vlgmr.msra.gmra.mxu1 %vm4979_vm2, %v8202_v55 }
 0x598   : > { %8750 = vmatpush3.bf16.msra.mxu1 %v7715_v23 }
 0x599   : > { %v4544_v33 = vpop.permute.xlu0 %4543  ;;  %v12208_v62 = vld [vmem:[#allocation5 + $0x10] sm:$0xf]  ;;  %8751 = vmatprep.subr.bf16.mxu1 %v8844_v16 }
 0x59a   : > { %4632 = vst.msk [vmem:[#allocation5 + $0x20] sm:$0xf] %vm4623_vm5, %v4544_v33  ;;  %v4546_v44 = vpop.permute.xlu1 %4545  ;;  %v12214_v12 = vld [vmem:[#allocation5 + $0x14] sm:$0xf]  ;;  %v4828_v17 = vmax.bf16 %v8890_v30, %v12208_v62 }
 0x59b   : > { %4633 = vst.msk [vmem:[#allocation5 + $0x24] sm:$0xf] %vm4623_vm5, %v4546_v44  ;;  %v4829_v4 = vmax.bf16 %v8890_v30, %v12214_v12  ;;  %v8349_v14 = vcombine.low %v12208_v62, %v12214_v12 }
 0x59c   : > { %8752 = vmatpush3.bf16.msra.mxu1 %v8844_v16 }
 0x59d   : > { %v4548_v49 = vpop.permute.xlu0 %4547  ;;  %v8203_v34 = vcombine.low %v4828_v17, %v4829_v4  ;;  %v12223_v63 = vld [vmem:[#allocation5 + $0x18] sm:$0xf]  ;;  %8753 = vmatprep.subr.bf16.mxu1 %v8845_v59 }
 0x59e   : > { %4634 = vst.msk [vmem:[#allocation5 + $0x28] sm:$0xf] %vm4623_vm5, %v4548_v49  ;;  %v4550_v39 = vpop.permute.xlu1 %4549  ;;  %v12229_v57 = vld [vmem:[#allocation5 + $0x1c] sm:$0xf]  ;;  %v4830_v22 = vmax.bf16 %v8890_v30, %v12223_v63 }
 0x59f   : > { %4635 = vst.msk [vmem:[#allocation5 + $0x2c] sm:$0xf] %vm4623_vm5, %v4550_v39  ;;  %8683 = vmatprep.mubr.msk.bf16.mxu1 %vm4979_vm2, %v8203_v34  ;;  %v4831_v35 = vmax.bf16 %v8890_v30, %v12229_v57  ;;  %v8350_v11 = vcombine.low %v12223_v63, %v12229_v57 }
 0x5a0   : > { %8754 = vmatpush3.bf16.msra.mxu1 %v8845_v59 }
 0x5a1   : > { %v4680_v26 = vpop.permute.xlu0 %4679  ;;  %v8204_v36 = vcombine.low %v4830_v22, %v4831_v35  ;;  %8755 = vmatprep.subr.bf16.mxu1 %v8846_v3 }
 0x5a2   : > { %4768 = vst.msk [vmem:[#allocation5 + $0x20] sm:$0xf] %vm4759_vm3, %v4680_v26  ;;  %v4682_v0 = vpop.permute.xlu1 %4681 }
 0x5a3   : > { %4769 = vst.msk [vmem:[#allocation5 + $0x24] sm:$0xf] %vm4759_vm3, %v4682_v0  ;;  %8684 = vmatmul.mubr.msk.bf16.gmra.mxu1 %vm4979_vm2, %v8204_v36 }
 0x5a4   : > { %8756 = vmatpush3.bf16.msra.mxu1 %v8846_v3 }
 0x5a5   : > { %v4684_v45 = vpop.permute.xlu0 %4683  ;;  %8757 = vmatprep.subr.bf16.mxu1 %v8847_v56 }
 0x5a6   : > { %4770 = vst.msk [vmem:[#allocation5 + $0x28] sm:$0xf] %vm4759_vm3, %v4684_v45  ;;  %v4686_v10 = vpop.permute.xlu1 %4685 }
 0x5a7   : > { %4771 = vst.msk [vmem:[#allocation5 + $0x2c] sm:$0xf] %vm4759_vm3, %v4686_v10 }
 0x5a8   : > { %8758 = vmatpush3.bf16.msra.mxu1 %v8847_v56 }
 0x5a9   : > { %v4552_v46 = vpop.permute.xlu0 %4551  ;;  %v12247_v31 = vld [vmem:[#allocation5 + $0x20] sm:$0xf] }
 0x5aa   : > { %4636 = vst.msk [vmem:[#allocation5 + $0x30] sm:$0xf] %vm4623_vm5, %v4552_v46  ;;  %v4554_v15 = vpop.permute.xlu1 %4553  ;;  %v12250_v32 = vld [vmem:[#allocation5 + $0x24] sm:$0xf]  ;;  %v4832_v9 = vmax.bf16 %v8890_v30, %v12247_v31 }
 0x5ab   : > { %4637 = vst.msk [vmem:[#allocation5 + $0x34] sm:$0xf] %vm4623_vm5, %v4554_v15  ;;  %v4833_v53 = vmax.bf16 %v8890_v30, %v12250_v32  ;;  %v8351_v24 = vcombine.low %v12247_v31, %v12250_v32 }
 0x5ad   : > { %v4556_v58 = vpop.permute.xlu0 %4555  ;;  %v8205_v60 = vcombine.low %v4832_v9, %v4833_v53  ;;  %v12259_v20 = vld [vmem:[#allocation5 + $0x28] sm:$0xf] }
 0x5ae   : > { %4638 = vst.msk [vmem:[#allocation5 + $0x38] sm:$0xf] %vm4623_vm5, %v4556_v58  ;;  %v4558_v38 = vpop.permute.xlu1 %4557  ;;  %v12262_v54 = vld [vmem:[#allocation5 + $0x2c] sm:$0xf]  ;;  %v4834_v61 = vmax.bf16 %v8890_v30, %v12259_v20 }
 0x5af   : > { %4639 = vst.msk [vmem:[#allocation5 + $0x3c] sm:$0xf] %vm4623_vm5, %v4558_v38  ;;  %8687 = vmatprep.mubr.msk.bf16.mxu1 %vm4979_vm2, %v8205_v60  ;;  %v4835_v7 = vmax.bf16 %v8890_v30, %v12262_v54  ;;  %v8352_v27 = vcombine.low %v12259_v20, %v12262_v54 }
 0x5b1   : > { %v4688_v8 = vpop.permute.xlu0 %4687  ;;  %v8206_v37 = vcombine.low %v4834_v61, %v4835_v7 }
 0x5b2   : > { %4772 = vst.msk [vmem:[#allocation5 + $0x30] sm:$0xf] %vm4759_vm3, %v4688_v8  ;;  %v4690_v51 = vpop.permute.xlu1 %4689 }
 0x5b3   : > { %4773 = vst.msk [vmem:[#allocation5 + $0x34] sm:$0xf] %vm4759_vm3, %v4690_v51  ;;  %8688 = vmatmul.mubr.msk.bf16.gmra.mxu1 %vm4979_vm2, %v8206_v37 }
 0x5b5   : > { %v4692_v47 = vpop.permute.xlu0 %4691 }
 0x5b6   : > { %4774 = vst.msk [vmem:[#allocation5 + $0x38] sm:$0xf] %vm4759_vm3, %v4692_v47  ;;  %v4694_v42 = vpop.permute.xlu1 %4693 }
 0x5b7   : > { %4775 = vst.msk [vmem:[#allocation5 + $0x3c] sm:$0xf] %vm4759_vm3, %v4694_v42 }
 0x5b9   : > { %v4560_v2 = vpop.permute.xlu0 %4559  ;;  %v12277_v29 = vld [vmem:[#allocation5 + $0x30] sm:$0xf] }
 0x5ba   : > { %4640 = vst.msk [vmem:[#allocation5 + $0x40] sm:$0xf] %vm4623_vm5, %v4560_v2  ;;  %v4562_v1 = vpop.permute.xlu1 %4561  ;;  %v12280_v50 = vld [vmem:[#allocation5 + $0x34] sm:$0xf]  ;;  %v4836_v19 = vmax.bf16 %v8890_v30, %v12277_v29 }
 0x5bb   : > { %4641 = vst.msk [vmem:[#allocation5 + $0x44] sm:$0xf] %vm4623_vm5, %v4562_v1  ;;  %v4837_v6 = vmax.bf16 %v8890_v30, %v12280_v50  ;;  %v8353_v13 = vcombine.low %v12277_v29, %v12280_v50 }
 0x5bd   : > { %v4564_v25 = vpop.permute.xlu0 %4563  ;;  %v8207_v55 = vcombine.low %v4836_v19, %v4837_v6  ;;  %v12289_v23 = vld [vmem:[#allocation5 + $0x38] sm:$0xf] }
 0x5be   : > { %4642 = vst.msk [vmem:[#allocation5 + $0x48] sm:$0xf] %vm4623_vm5, %v4564_v25  ;;  %v4566_v16 = vpop.permute.xlu1 %4565  ;;  %v12292_v21 = vld [vmem:[#allocation5 + $0x3c] sm:$0xf]  ;;  %v4838_v33 = vmax.bf16 %v8890_v30, %v12289_v23 }
 0x5bf   : > { %4643 = vst.msk [vmem:[#allocation5 + $0x4c] sm:$0xf] %vm4623_vm5, %v4566_v16  ;;  %8691 = vmatprep.mubr.msk.bf16.mxu1 %vm4979_vm2, %v8207_v55  ;;  %v4839_v59 = vmax.bf16 %v8890_v30, %v12292_v21  ;;  %v8354_v44 = vcombine.low %v12289_v23, %v12292_v21 }
 0x5c1   : > { %v4696_v17 = vpop.permute.xlu0 %4695  ;;  %v8208_v4 = vcombine.low %v4838_v33, %v4839_v59 }
 0x5c2   : > { %4776 = vst.msk [vmem:[#allocation5 + $0x40] sm:$0xf] %vm4759_vm3, %v4696_v17  ;;  %v4698_v49 = vpop.permute.xlu1 %4697 }
 0x5c3   : > { %4777 = vst.msk [vmem:[#allocation5 + $0x44] sm:$0xf] %vm4759_vm3, %v4698_v49  ;;  %8692 = vmatmul.mubr.msk.bf16.gmra.mxu1 %vm4979_vm2, %v8208_v4 }
 0x5c5   : > { %v4700_v34 = vpop.permute.xlu0 %4699 }
 0x5c6   : > { %4778 = vst.msk [vmem:[#allocation5 + $0x48] sm:$0xf] %vm4759_vm3, %v4700_v34  ;;  %v4702_v3 = vpop.permute.xlu1 %4701 }
 0x5c7   : > { %4779 = vst.msk [vmem:[#allocation5 + $0x4c] sm:$0xf] %vm4759_vm3, %v4702_v3 }
 0x5c9   : > { %v4568_v39 = vpop.permute.xlu0 %4567  ;;  %v12307_v22 = vld [vmem:[#allocation5 + $0x40] sm:$0xf] }
 0x5ca   : > { %4644 = vst.msk [vmem:[#allocation5 + $0x50] sm:$0xf] %vm4623_vm5, %v4568_v39  ;;  %v4570_v35 = vpop.permute.xlu1 %4569  ;;  %v12310_v26 = vld [vmem:[#allocation5 + $0x44] sm:$0xf]  ;;  %v4840_v36 = vmax.bf16 %v8890_v30, %v12307_v22 }
 0x5cb   : > { %4645 = vst.msk [vmem:[#allocation5 + $0x54] sm:$0xf] %vm4623_vm5, %v4570_v35  ;;  %v4841_v56 = vmax.bf16 %v8890_v30, %v12310_v26  ;;  %v8355_v0 = vcombine.low %v12307_v22, %v12310_v26 }
 0x5cd   : > { %v4572_v45 = vpop.permute.xlu0 %4571  ;;  %v8209_v10 = vcombine.low %v4840_v36, %v4841_v56  ;;  %v12319_v46 = vld [vmem:[#allocation5 + $0x48] sm:$0xf] }
 0x5ce   : > { %4646 = vst.msk [vmem:[#allocation5 + $0x58] sm:$0xf] %vm4623_vm5, %v4572_v45  ;;  %v4574_v15 = vpop.permute.xlu1 %4573  ;;  %v12322_v9 = vld [vmem:[#allocation5 + $0x4c] sm:$0xf]  ;;  %v4842_v53 = vmax.bf16 %v8890_v30, %v12319_v46 }
 0x5cf   : > { %4647 = vst.msk [vmem:[#allocation5 + $0x5c] sm:$0xf] %vm4623_vm5, %v4574_v15  ;;  %8695 = vmatprep.mubr.msk.bf16.mxu1 %vm4979_vm2, %v8209_v10  ;;  %v4843_v58 = vmax.bf16 %v8890_v30, %v12322_v9  ;;  %v8356_v60 = vcombine.low %v12319_v46, %v12322_v9 }
 0x5d1   : > { %v4704_v38 = vpop.permute.xlu0 %4703  ;;  %v8210_v61 = vcombine.low %v4842_v53, %v4843_v58 }
 0x5d2   : > { %4780 = vst.msk [vmem:[#allocation5 + $0x50] sm:$0xf] %vm4759_vm3, %v4704_v38  ;;  %v4706_v7 = vpop.permute.xlu1 %4705 }
 0x5d3   : > { %4781 = vst.msk [vmem:[#allocation5 + $0x54] sm:$0xf] %vm4759_vm3, %v4706_v7  ;;  %8696 = vmatmul.mubr.msk.bf16.gmra.mxu1 %vm4979_vm2, %v8210_v61 }
 0x5d5   : > { %v4708_v8 = vpop.permute.xlu0 %4707 }
 0x5d6   : > { %4782 = vst.msk [vmem:[#allocation5 + $0x58] sm:$0xf] %vm4759_vm3, %v4708_v8  ;;  %v4710_v37 = vpop.permute.xlu1 %4709 }
 0x5d7   : > { %4783 = vst.msk [vmem:[#allocation5 + $0x5c] sm:$0xf] %vm4759_vm3, %v4710_v37 }
 0x5d9   : > { %v4576_v51 = vpop.permute.xlu0 %4575  ;;  %v12337_v47 = vld [vmem:[#allocation5 + $0x50] sm:$0xf] }
 0x5da   : > { %4648 = vst.msk [vmem:[#allocation5 + $0x60] sm:$0xf] %vm4623_vm5, %v4576_v51  ;;  %v4578_v42 = vpop.permute.xlu1 %4577  ;;  %v12340_v2 = vld [vmem:[#allocation5 + $0x54] sm:$0xf]  ;;  %v4844_v1 = vmax.bf16 %v8890_v30, %v12337_v47 }
 0x5db   : > { %4649 = vst.msk [vmem:[#allocation5 + $0x64] sm:$0xf] %vm4623_vm5, %v4578_v42  ;;  %v4845_v19 = vmax.bf16 %v8890_v30, %v12340_v2  ;;  %v8357_v6 = vcombine.low %v12337_v47, %v12340_v2 }
 0x5dd   : > { %v4580_v25 = vpop.permute.xlu0 %4579  ;;  %v8211_v55 = vcombine.low %v4844_v1, %v4845_v19  ;;  %v12349_v16 = vld [vmem:[#allocation5 + $0x58] sm:$0xf]  ;;  %v5312_v1 = vld [vmem:[#allocation6] sm:$0xff]  ;;  %v5313_v19 = vld [vmem:[#allocation6 + $0x8] sm:$0xff] }
 0x5de   : > { %4650 = vst.msk [vmem:[#allocation5 + $0x68] sm:$0xf] %vm4623_vm5, %v4580_v25  ;;  %v4582_v33 = vpop.permute.xlu1 %4581  ;;  %v12352_v59 = vld [vmem:[#allocation5 + $0x5c] sm:$0xf]  ;;  %v4846_v17 = vmax.bf16 %v8890_v30, %v12349_v16 }
 0x5df   : > { %4651 = vst.msk [vmem:[#allocation5 + $0x6c] sm:$0xf] %vm4623_vm5, %v4582_v33  ;;  %8699 = vmatprep.mubr.msk.bf16.mxu1 %vm4979_vm2, %v8211_v55  ;;  %v4847_v4 = vmax.bf16 %v8890_v30, %v12352_v59  ;;  %v8358_v49 = vcombine.low %v12349_v16, %v12352_v59  ;;  %v12392_v33 = vpack.c.bf16 %v5312_v1, %v5312_v1 }
 0x5e1   : > { %v4712_v34 = vpop.permute.xlu0 %4711  ;;  %v8212_v3 = vcombine.low %v4846_v17, %v4847_v4  ;;  %v12394_v17 = vpack.c.bf16 %v5313_v19, %v5313_v19  ;;  %v5314_v4 = vld [vmem:[#allocation6 + $0x10] sm:$0x3]  ;;  %5494 = vst.msk [vmem:[#allocation7] sm:$0xf] %vm684_vm8, %v12392_v33 }
 0x5e2   : > { %4784 = vst.msk [vmem:[#allocation5 + $0x60] sm:$0xf] %vm4759_vm3, %v4712_v34  ;;  %v4714_v39 = vpop.permute.xlu1 %4713  ;;  %v12396_v34 = vpack.c.bf16 %v5314_v4, %v5314_v4 }
 0x5e3   : > { %4785 = vst.msk [vmem:[#allocation5 + $0x64] sm:$0xf] %vm4759_vm3, %v4714_v39  ;;  %8700 = vmatmul.mubr.msk.bf16.gmra.mxu1 %vm4979_vm2, %v8212_v3 }
 0x5e4   : > { %5495 = vst.msk [vmem:[#allocation7 + $0x4] sm:$0xf] %vm684_vm8, %v12394_v17 }
 0x5e5   : > { %v4716_v35 = vpop.permute.xlu0 %4715 }
 0x5e6   : > { %4786 = vst.msk [vmem:[#allocation5 + $0x68] sm:$0xf] %vm4759_vm3, %v4716_v35  ;;  %v4718_v36 = vpop.permute.xlu1 %4717  ;;  %v5591_v35 = vshrl.u32 %v12392_v33, 16 }
 0x5e7   : > { %4787 = vst.msk [vmem:[#allocation5 + $0x6c] sm:$0xf] %vm4759_vm3, %v4718_v36  ;;  %v5594_v36 = vshll.u32 %v12392_v33, 16 }
 0x5e9   : > { %v4584_v56 = vpop.permute.xlu0 %4583  ;;  %v12367_v45 = vld [vmem:[#allocation5 + $0x60] sm:$0xf] }
 0x5ea   : > { %4652 = vst.msk [vmem:[#allocation5 + $0x70] sm:$0xf] %vm4623_vm5, %v4584_v56  ;;  %v4586_v10 = vpop.permute.xlu1 %4585  ;;  %v12370_v15 = vld [vmem:[#allocation5 + $0x64] sm:$0xf]  ;;  %v4848_v53 = vmax.bf16 %v8890_v30, %v12367_v45  ;;  %v5600_v56 = vshll.u32 %v12394_v17, 16 }
 0x5eb   : > { %4653 = vst.msk [vmem:[#allocation5 + $0x74] sm:$0xf] %vm4623_vm5, %v4586_v10  ;;  %v4849_v58 = vmax.bf16 %v8890_v30, %v12370_v15  ;;  %v14557_v5 = vcombine.low %v12367_v45, %v12370_v15 }
 0x5ed   : > { %v4588_v61 = vpop.permute.xlu0 %4587  ;;  %v8213_v7 = vcombine.low %v4848_v53, %v4849_v58  ;;  %v12379_v8 = vld [vmem:[#allocation5 + $0x68] sm:$0xf]  ;;  %v5604_v53 = vshrl.u32 %v12394_v17, 16  ;;  %v5610_v58 = vshll.u32 %v12396_v34, 16 }
 0x5ee   : > { %4654 = vst.msk [vmem:[#allocation5 + $0x78] sm:$0xf] %vm4623_vm5, %v4588_v61  ;;  %v4590_v37 = vpop.permute.xlu1 %4589  ;;  %v12382_v51 = vld [vmem:[#allocation5 + $0x6c] sm:$0xf]  ;;  %v4850_v42 = vmax.bf16 %v8890_v30, %v12379_v8  ;;  %v5593_v61 = vrot.slane %v5591_v35, 4 }
 0x5ef   : > { %4655 = vst.msk [vmem:[#allocation5 + $0x7c] sm:$0xf] %vm4623_vm5, %v4590_v37  ;;  %8703 = vmatprep.mubr.msk.bf16.mxu1 %vm4979_vm2, %v8213_v7  ;;  %v4851_v25 = vmax.bf16 %v8890_v30, %v12382_v51  ;;  %v8360_v55 = vcombine.low %v12379_v8, %v12382_v51  ;;  %v5596_v7 = vrot.slane %v5594_v36, 5  ;;  %v5602_v8 = vrot.slane %v5600_v56, 5 }
 0x5f0   : > { %v5606_v37 = vrot.slane %v5604_v53, 4 }
 0x5f1   : > { %v4720_v3 = vpop.permute.xlu0 %4719  ;;  %v8214_v39 = vcombine.low %v4850_v42, %v4851_v25  ;;  %v5597_v42 = vor.u32 %v5596_v7, %v5593_v61  ;;  %v5612_v25 = vrot.slane %v5610_v58, 5 }
 0x5f2   : > { %4788 = vst.msk [vmem:[#allocation5 + $0x70] sm:$0xf] %vm4759_vm3, %v4720_v3  ;;  %v4722_v10 = vpop.permute.xlu1 %4721  ;;  %v5607_v19 = vor.u32 %v5606_v37, %v5602_v8 }
 0x5f3   : > { %4789 = vst.msk [vmem:[#allocation5 + $0x74] sm:$0xf] %vm4759_vm3, %v4722_v10  ;;  %8704 = vmatmul.mubr.msk.bf16.gmra.mxu1 %vm4979_vm2, %v8214_v39  ;;  %v5598_v4 = vrot.slane %v5597_v42, 4 }
 0x5f4   : > { %v5608_v3 = vrot.slane %v5607_v19, 4 }
 0x5f5   : > { %v4724_v51 = vpop.permute.xlu0 %4723  ;;  %v5603_v10 = vsel %vm9239_vm4, %v5598_v4, %v5602_v8 }
 0x5f6   : > { %v4726_v1 = vpop.permute.xlu1 %4725  ;;  %4790 = vst.msk [vmem:[#allocation5 + $0x78] sm:$0xf] %vm4759_vm3, %v4724_v51  ;;  %5974 = vrot.lane.b32.xlu0 %v5603_v10, %s8878_s20  ;;  %v5613_v35 = vsel %vm9239_vm4, %v5608_v3, %v5612_v25 }
 0x5f7   : > { %4791 = vst.msk [vmem:[#allocation5 + $0x7c] sm:$0xf] %vm4759_vm3, %v4726_v1  ;;  %5976 = vrot.lane.b32.xlu1 %v5613_v35, %s8878_s20 }
 0x5f9   : > { %v4820_v38 = vld [vmem:[#allocation5 + $0x70] sm:$0xf] }
 0x5fa   : > { %v4821_v39 = vld [vmem:[#allocation5 + $0x74] sm:$0xf]  ;;  %v4852_v36 = vmax.bf16 %v8890_v30, %v4820_v38 }
 0x5fb   : > { %v4853_v56 = vmax.bf16 %v8890_v30, %v4821_v39  ;;  %v8361_v18 = vcombine.low %v4820_v38, %v4821_v39 }
 0x5fd   : > { %v8215_v53 = vcombine.low %v4852_v36, %v4853_v56  ;;  %v4822_v58 = vld [vmem:[#allocation5 + $0x78] sm:$0xf] }
 0x5fe   : > { %v4823_v61 = vld [vmem:[#allocation5 + $0x7c] sm:$0xf]  ;;  %v4854_v7 = vmax.bf16 %v8890_v30, %v4822_v58 }
 0x5ff   : > { %8707 = vmatprep.mubr.msk.bf16.mxu1 %vm4979_vm2, %v8215_v53  ;;  %v4855_v8 = vmax.bf16 %v8890_v30, %v4823_v61  ;;  %v8362_v37 = vcombine.low %v4822_v58, %v4823_v61  ;;  %v12482_v30 = vld [vmem:[%s14030_s5] ss:$0 sm:$0xff] }
 0x601   : > { %v8216_v51 = vcombine.low %v4854_v7, %v4855_v8 }
 0x603   : > { %8708 = vmatmul.mubr.msk.bf16.gmra.mxu1 %vm4979_vm2, %v8216_v51 }
 0x604   : > { %8759 = vmatprep.mubr.msk.bf16.mxu1 %vm4979_vm2, %v8347_v28 }
 0x60b   : > { %8760 = vmatmul.mubr.msk.bf16.vlgmr.msra.gmra.mxu1 %vm4979_vm2, %v8348_v52 }
 0x60c   : > { %8763 = vmatprep.mubr.msk.bf16.mxu1 %vm4979_vm2, %v8349_v14 }
 0x613   : > { %8764 = vmatmul.mubr.msk.bf16.gmra.mxu1 %vm4979_vm2, %v8350_v11 }
 0x614   : > { %8767 = vmatprep.mubr.msk.bf16.mxu1 %vm4979_vm2, %v8351_v24 }
 0x61b   : > { %8768 = vmatmul.mubr.msk.bf16.gmra.mxu1 %vm4979_vm2, %v8352_v27 }
 0x61c   : > { %8771 = vmatprep.mubr.msk.bf16.mxu1 %vm4979_vm2, %v8353_v13 }
 0x623   : > { %8772 = vmatmul.mubr.msk.bf16.gmra.mxu1 %vm4979_vm2, %v8354_v44 }
 0x624   : > { %8775 = vmatprep.mubr.msk.bf16.mxu1 %vm4979_vm2, %v8355_v0 }
 0x62b   : > { %8776 = vmatmul.mubr.msk.bf16.gmra.mxu1 %vm4979_vm2, %v8356_v60 }
 0x62c   : > { %8779 = vmatprep.mubr.msk.bf16.mxu1 %vm4979_vm2, %v8357_v6 }
 0x633   : > { %8780 = vmatmul.mubr.msk.bf16.gmra.mxu1 %vm4979_vm2, %v8358_v49 }
 0x634   : > { %8783 = vmatprep.mubr.msk.bf16.mxu1 %vm4979_vm2, %v14557_v5 }
 0x63b   : > { %8784 = vmatmul.mubr.msk.bf16.gmra.mxu1 %vm4979_vm2, %v8360_v55 }
 0x63c   : > { %8787 = vmatprep.mubr.msk.bf16.mxu1 %vm4979_vm2, %v8361_v18 }
 0x643   : > { %8788 = vmatmul.mubr.msk.bf16.gmra.mxu1 %vm4979_vm2, %v8362_v37  ;;  %vm14627_vm2 = vcmask 293888  }
 0x644   : > { %vm14629_vm6 = vmmov %vm14627_vm2 }
 0x657   : > { %v8681_v28 = vpop.f32.mrf.mxu1 }
 0x658   : > { %v5075_v48 = vadd.f32 %v8681_v28, %v12482_v30 }
 0x659   : > { %v5066_v43 = vpop.f32.mrf.mxu1 }
 0x65a   : > { %v5195_v52 = vmax.f32 %v5075_v48, 0.0  ;;  %v5067_v62 = vadd.f32 %v12482_v30, %v5066_v43 }
 0x65b   : > { %v8682_v12 = vpop.f32.mrf.mxu1 }
 0x65c   : > { %5282 = vst.msk [vmem:[#allocation6 + $0x31] sm:$0xff] %vm413_vm0, %v5195_v52  ;;  %v5193_v14 = vmax.f32 %v5067_v62, 0.0  ;;  %v5078_v63 = vadd.f32 %v8682_v12, %v12482_v30 }
 0x65d   : > { %v5069_v57 = vpop.f32.mrf.mxu1 }
 0x65e   : > { %5280 = vst.msk [vmem:[#allocation6 + $0x19] sm:$0xff] %vm413_vm0, %v5193_v14  ;;  %v5196_v11 = vmax.f32 %v5078_v63, 0.0  ;;  %v5070_v31 = vadd.f32 %v12482_v30, %v5069_v57 }
 0x660   : > { %5283 = vst.msk [vmem:[#allocation6 + $0x39] sm:$0xff] %vm413_vm0, %v5196_v11  ;;  %v5194_v32 = vmax.f32 %v5070_v31, 0.0 }
 0x662   : > { %5281 = vst.msk [vmem:[#allocation6 + $0x21] sm:$0xff] %vm413_vm0, %v5194_v32 }
 0x663   : > { %v8685_v24 = vpop.f32.mrf.mxu1  ;;  %v5318_v20 = vld [vmem:[#allocation6 + $0x30] sm:$0xff] }
 0x664   : > { %v5091_v54 = vadd.f32 %v8685_v24, %v12482_v30  ;;  %v12493_v27 = vpack.c.bf16 %v5318_v20, %v5318_v20 }
 0x665   : > { %v5082_v29 = vpop.f32.mrf.mxu1  ;;  %v5315_v50 = vld [vmem:[#allocation6 + $0x18] sm:$0xff] }
 0x666   : > { %v5199_v13 = vmax.f32 %v5091_v54, 0.0  ;;  %v5083_v23 = vadd.f32 %v12482_v30, %v5082_v29  ;;  %v12496_v21 = vpack.c.bf16 %v5315_v50, %v5315_v50  ;;  %v5639_v44 = vshrl.u32 %v12493_v27, 16  ;;  %5498 = vst.msk [vmem:[#allocation7 + $0x10] sm:$0xf] %vm684_vm8, %v12493_v27 }
 0x667   : > { %v8686_v22 = vpop.f32.mrf.mxu1  ;;  %v5319_v26 = vld [vmem:[#allocation6 + $0x38] sm:$0xff]  ;;  %v5642_v0 = vshll.u32 %v12493_v27, 16  ;;  %v5320_v46 = vld [vmem:[#allocation6 + $0x40] sm:$0x3] }
 0x668   : > { %5286 = vst.msk [vmem:[#allocation6 + $0x61] sm:$0xff] %vm413_vm0, %v5199_v13  ;;  %v5197_v9 = vmax.f32 %v5083_v23, 0.0  ;;  %v5094_v60 = vadd.f32 %v8686_v22, %v12482_v30  ;;  %v5615_v47 = vshrl.u32 %v12496_v21, 16  ;;  %v5618_v2 = vshll.u32 %v12496_v21, 16  ;;  %v5975_v53 = vpop.permute.xlu0 %5974 }
 0x669   : > { %5496 = vst.msk [vmem:[#allocation7 + $0x8] sm:$0xf] %vm684_vm8, %v12496_v21  ;;  %v5085_v6 = vpop.f32.mrf.mxu1  ;;  %v5316_v16 = vld [vmem:[#allocation6 + $0x20] sm:$0xff]  ;;  %v5317_v59 = vld [vmem:[#allocation6 + $0x28] sm:$0x3]  ;;  %v12508_v49 = vpack.c.bf16 %v5319_v26, %v5319_v26  ;;  %v5641_v45 = vrot.slane %v5639_v44, 4  ;;  %v12510_v38 = vpack.c.bf16 %v5320_v46, %v5320_v46  ;;  %v5977_v7 = vpop.permute.xlu1 %5976 }
 0x66a   : > { %v5644_v15 = vrot.slane %v5642_v0, 5  ;;  %5284 = vst.msk [vmem:[#allocation6 + $0x49] sm:$0xff] %vm413_vm0, %v5197_v9  ;;  %v5200_v55 = vmax.f32 %v5094_v60, 0.0  ;;  %v5086_v42 = vadd.f32 %v12482_v30, %v5085_v6  ;;  %v12514_v1 = vpack.c.bf16 %v5316_v16, %v5316_v16 }
 0x66b   : > { %v5617_v19 = vrot.slane %v5615_v47, 4  ;;  %v5620_v25 = vrot.slane %v5618_v2, 5  ;;  %v12516_v4 = vpack.c.bf16 %v5317_v59, %v5317_v59  ;;  %v5648_v10 = vshll.u32 %v12508_v49, 16  ;;  %5499 = vst.msk [vmem:[#allocation7 + $0x14] sm:$0xf] %vm684_vm8, %v12508_v49 }
 0x66c   : > { %v5645_v3 = vor.u32 %v5644_v15, %v5641_v45  ;;  %5287 = vst.msk [vmem:[#allocation6 + $0x69] sm:$0xff] %vm413_vm0, %v5200_v55  ;;  %v5198_v39 = vmax.f32 %v5086_v42, 0.0  ;;  %v5624_v35 = vshll.u32 %v12514_v1, 16  ;;  %v5628_v36 = vshrl.u32 %v12514_v1, 16 }
 0x66d   : > { %5497 = vst.msk [vmem:[#allocation7 + $0xc] sm:$0xf] %vm684_vm8, %v12514_v1  ;;  %v5652_v56 = vshrl.u32 %v12508_v49, 16  ;;  %v5621_v58 = vor.u32 %v5620_v25, %v5617_v19  ;;  %v5650_v61 = vrot.slane %v5648_v10, 5  ;;  %v5634_v51 = vshll.u32 %v12516_v4, 16 }
 0x66e   : > { %6070 = vst.msk [vmem:[#allocation7] sm:$0xf] %vm1264_vm9, %v5975_v53  ;;  %v5626_v8 = vrot.slane %v5624_v35, 5  ;;  %v5630_v37 = vrot.slane %v5628_v36, 4  ;;  %6071 = vst.msk [vmem:[#allocation7 + $0x4] sm:$0xf] %vm1264_vm9, %v5977_v7 }
 0x66f   : > { %5285 = vst.msk [vmem:[#allocation6 + $0x51] sm:$0xff] %vm413_vm0, %v5198_v39  ;;  %v5654_v5 = vrot.slane %v5652_v56, 4  ;;  %v5622_v18 = vrot.slane %v5621_v58, 4  ;;  %v5646_v28 = vrot.slane %v5645_v3, 4  ;;  %v5324_v48 = vld [vmem:[#allocation6 + $0x60] sm:$0xff]  ;;  %v5658_v62 = vshll.u32 %v12510_v38, 16 }
 0x670   : > { %v5631_v43 = vor.u32 %v5630_v37, %v5626_v8  ;;  %v12532_v12 = vpack.c.bf16 %v5324_v48, %v5324_v48  ;;  %v5636_v11 = vrot.slane %v5634_v51, 5 }
 0x671   : > { %v5655_v52 = vor.u32 %v5654_v5, %v5650_v61  ;;  %v12536_v14 = vsel %vm9239_vm4, %v5622_v18, %v5626_v8  ;;  %v5321_v63 = vld [vmem:[#allocation6 + $0x48] sm:$0xff]  ;;  %v12547_v20 = vsel %vm9239_vm4, %v5646_v28, %v5650_v61  ;;  %v5660_v44 = vrot.slane %v5658_v62, 5 }
 0x672   : > { %14558 = vst [vmem:[#allocation28_spill] sm:$0xff] %v12536_v14  ;;  %5978 = vrot.lane.b32.xlu0 %v12536_v14, %s8878_s20  ;;  %v5632_v57 = vrot.slane %v5631_v43, 4  ;;  %v12540_v31 = vpack.c.bf16 %v5321_v63, %v5321_v63  ;;  %v5687_v32 = vshrl.u32 %v12532_v12, 16  ;;  %5502 = vst.msk [vmem:[#allocation7 + $0x20] sm:$0xf] %vm684_vm8, %v12532_v12  ;;  %v5690_v50 = vshll.u32 %v12532_v12, 16 }
 0x673   : > { %v8689_v24 = vpop.f32.mrf.mxu1  ;;  %14559 = vst [vmem:[#allocation32_spill] sm:$0xff] %v12547_v20  ;;  %v5656_v54 = vrot.slane %v5655_v52, 4  ;;  %v5325_v29 = vld [vmem:[#allocation6 + $0x68] sm:$0xff]  ;;  %v5326_v36 = vld [vmem:[#allocation6 + $0x70] sm:$0x3] }
 0x674   : > { %v5107_v13 = vadd.f32 %v8689_v24, %v12482_v30  ;;  %v12553_v23 = vsel %vm9239_vm4, %v5632_v57, %v5636_v11  ;;  %v5663_v22 = vshrl.u32 %v12540_v31, 16  ;;  %5500 = vst.msk [vmem:[#allocation7 + $0x18] sm:$0xf] %vm684_vm8, %v12540_v31  ;;  %v5666_v46 = vshll.u32 %v12540_v31, 16 }
 0x675   : > { %14560 = vst [vmem:[#allocation42_spill] sm:$0xff] %v12553_v23  ;;  %v5098_v26 = vpop.f32.mrf.mxu1  ;;  %5980 = vrot.lane.b32.xlu1 %v12553_v23, %s8878_s20  ;;  %v12561_v60 = vpack.c.bf16 %v5325_v29, %v5325_v29  ;;  %v5689_v47 = vrot.slane %v5687_v32, 4  ;;  %v5692_v2 = vrot.slane %v5690_v50, 5  ;;  %v12570_v55 = vsel %vm9239_vm4, %v5656_v54, %v5660_v44 }
 0x676   : > { %v5322_v0 = vld [vmem:[#allocation6 + $0x50] sm:$0xff]  ;;  %v5323_v9 = vld [vmem:[#allocation6 + $0x58] sm:$0x3]  ;;  %v5203_v6 = vmax.f32 %v5107_v13, 0.0  ;;  %v5099_v16 = vadd.f32 %v12482_v30, %v5098_v26  ;;  %5982 = vrot.lane.b32.xlu0 %v12547_v20, %s8878_s20  ;;  %v5665_v45 = vrot.slane %v5663_v22, 4  ;;  %14561 = vst [vmem:[#allocation49_spill] sm:$0xff] %v12570_v55  ;;  %v12588_v18 = vpack.c.bf16 %v5326_v36, %v5326_v36 }
 0x677   : > { %v12566_v59 = vpack.c.bf16 %v5322_v0, %v5322_v0  ;;  %v8690_v15 = vpop.f32.mrf.mxu1  ;;  %v5668_v42 = vrot.slane %v5666_v46, 5  ;;  %v12572_v19 = vpack.c.bf16 %v5323_v9, %v5323_v9  ;;  %v5696_v25 = vshll.u32 %v12561_v60, 16  ;;  %5503 = vst.msk [vmem:[#allocation7 + $0x24] sm:$0xf] %vm684_vm8, %v12561_v60 }
 0x678   : > { %5290 = vst.msk [vmem:[#allocation6 + $0x91] sm:$0xff] %vm413_vm0, %v5203_v6  ;;  %v5201_v3 = vmax.f32 %v5099_v16, 0.0  ;;  %v5110_v10 = vadd.f32 %v8690_v15, %v12482_v30  ;;  %v5693_v61 = vor.u32 %v5692_v2, %v5689_v47  ;;  %v5700_v52 = vshrl.u32 %v12561_v60, 16 }
 0x679   : > { %v5672_v39 = vshll.u32 %v12566_v59, 16  ;;  %5501 = vst.msk [vmem:[#allocation7 + $0x1c] sm:$0xf] %vm684_vm8, %v12566_v59  ;;  %v5676_v35 = vshrl.u32 %v12566_v59, 16  ;;  %v5101_v56 = vpop.f32.mrf.mxu1  ;;  %5984 = vrot.lane.b32.xlu1 %v12570_v55, %s8878_s20  ;;  %v5669_v53 = vor.u32 %v5668_v42, %v5665_v45  ;;  %v5682_v58 = vshll.u32 %v12572_v19, 16 }
 0x67a   : > { %5288 = vst.msk [vmem:[#allocation6 + $0x79] sm:$0xff] %vm413_vm0, %v5201_v3  ;;  %v5204_v7 = vmax.f32 %v5110_v10, 0.0  ;;  %v5102_v8 = vadd.f32 %v12482_v30, %v5101_v56  ;;  %v5698_v43 = vrot.slane %v5696_v25, 5  ;;  %v5694_v63 = vrot.slane %v5693_v61, 4 }
 0x67b   : > { %v5674_v37 = vrot.slane %v5672_v39, 5  ;;  %v5678_v51 = vrot.slane %v5676_v35, 4  ;;  %v5670_v5 = vrot.slane %v5669_v53, 4  ;;  %v5706_v57 = vshll.u32 %v12588_v18, 16 }
 0x67c   : > { %5291 = vst.msk [vmem:[#allocation6 + $0x99] sm:$0xff] %vm413_vm0, %v5204_v7  ;;  %v5202_v28 = vmax.f32 %v5102_v8, 0.0  ;;  %v5684_v32 = vrot.slane %v5682_v58, 5  ;;  %v5702_v24 = vrot.slane %v5700_v52, 4  ;;  %v12610_v44 = vsel %vm9239_vm4, %v5694_v63, %v5698_v43 }
 0x67d   : > { %v5679_v48 = vor.u32 %v5678_v51, %v5674_v37  ;;  %v12594_v62 = vsel %vm9239_vm4, %v5670_v5, %v5674_v37  ;;  %14564 = vst [vmem:[#allocation53_spill] sm:$0xff] %v12610_v44  ;;  %v5708_v22 = vrot.slane %v5706_v57, 5 }
 0x67e   : > { %14562 = vst [vmem:[#allocation50_spill] sm:$0xff] %v12594_v62  ;;  %5289 = vst.msk [vmem:[#allocation6 + $0x81] sm:$0xff] %vm413_vm0, %v5202_v28  ;;  %5986 = vrot.lane.b32.xlu0 %v12594_v62, %s8878_s20  ;;  %v5703_v50 = vor.u32 %v5702_v24, %v5698_v43 }
 0x67f   : > { %v5680_v11 = vrot.slane %v5679_v48, 4  ;;  %v5330_v54 = vld [vmem:[#allocation6 + $0x90] sm:$0xff] }
 0x680   : > { %v12604_v13 = vpack.c.bf16 %v5330_v54, %v5330_v54  ;;  %v5704_v0 = vrot.slane %v5703_v50, 4 }
 0x681   : > { %v12602_v29 = vsel %vm9239_vm4, %v5680_v11, %v5684_v32  ;;  %v5327_v26 = vld [vmem:[#allocation6 + $0x78] sm:$0xff] }
 0x682   : > { %14563 = vst [vmem:[#allocation51_spill] sm:$0xff] %v12602_v29  ;;  %5988 = vrot.lane.b32.xlu1 %v12602_v29, %s8878_s20  ;;  %5990 = vrot.lane.b32.xlu0 %v12610_v44, %s8878_s20  ;;  %v12614_v46 = vpack.c.bf16 %v5327_v26, %v5327_v26  ;;  %v5735_v9 = vshrl.u32 %v12604_v13, 16  ;;  %v5738_v47 = vshll.u32 %v12604_v13, 16  ;;  %5506 = vst.msk [vmem:[#allocation7 + $0x30] sm:$0xf] %vm684_vm8, %v12604_v13 }
 0x683   : > { %v8693_v2 = vpop.f32.mrf.mxu1  ;;  %v5331_v6 = vld [vmem:[#allocation6 + $0x98] sm:$0xff]  ;;  %v12623_v45 = vsel %vm9239_vm4, %v5704_v0, %v5708_v22  ;;  %v5332_v7 = vld [vmem:[#allocation6 + $0xa0] sm:$0x3] }
 0x684   : > { %v5123_v16 = vadd.f32 %v8693_v2, %v12482_v30  ;;  %14565 = vst [vmem:[#allocation35_spill] sm:$0xff] %v12623_v45  ;;  %v5711_v15 = vshrl.u32 %v12614_v46, 16  ;;  %v5714_v42 = vshll.u32 %v12614_v46, 16  ;;  %5504 = vst.msk [vmem:[#allocation7 + $0x28] sm:$0xf] %vm684_vm8, %v12614_v46  ;;  %v12631_v39 = vpack.c.bf16 %v5331_v6, %v5331_v6 }
 0x685   : > { %v5114_v25 = vpop.f32.mrf.mxu1  ;;  %v5328_v3 = vld [vmem:[#allocation6 + $0x80] sm:$0xff]  ;;  %v5329_v10 = vld [vmem:[#allocation6 + $0x88] sm:$0x3]  ;;  %v5737_v35 = vrot.slane %v5735_v9, 4  ;;  %v5740_v36 = vrot.slane %v5738_v47, 5  ;;  %v12648_v24 = vpack.c.bf16 %v5332_v7, %v5332_v7 }
 0x686   : > { %5992 = vrot.lane.b32.xlu1 %v12623_v45, %s8878_s20  ;;  %v5207_v56 = vmax.f32 %v5123_v16, 0.0  ;;  %v5115_v53 = vadd.f32 %v12482_v30, %v5114_v25  ;;  %v12634_v58 = vpack.c.bf16 %v5328_v3, %v5328_v3  ;;  %v5713_v61 = vrot.slane %v5711_v15, 4  ;;  %5507 = vst.msk [vmem:[#allocation7 + $0x34] sm:$0xf] %vm684_vm8, %v12631_v39 }
 0x687   : > { %v8694_v8 = vpop.f32.mrf.mxu1  ;;  %v5716_v37 = vrot.slane %v5714_v42, 5  ;;  %v12636_v51 = vpack.c.bf16 %v5329_v10, %v5329_v10  ;;  %v5744_v5 = vshll.u32 %v12631_v39, 16  ;;  %v5741_v32 = vor.u32 %v5740_v36, %v5737_v35 }
 0x688   : > { %5294 = vst.msk [vmem:[#allocation6 + $0xc1] sm:$0xff] %vm413_vm0, %v5207_v56  ;;  %v5205_v28 = vmax.f32 %v5115_v53, 0.0  ;;  %v5126_v48 = vadd.f32 %v8694_v8, %v12482_v30  ;;  %v5720_v43 = vshll.u32 %v12634_v58, 16  ;;  %v5724_v52 = vshrl.u32 %v12634_v58, 16 }
 0x689   : > { %5505 = vst.msk [vmem:[#allocation7 + $0x2c] sm:$0xf] %vm684_vm8, %v12634_v58  ;;  %v5117_v63 = vpop.f32.mrf.mxu1  ;;  %v5717_v57 = vor.u32 %v5716_v37, %v5713_v61  ;;  %v5730_v11 = vshll.u32 %v12636_v51, 16  ;;  %v5746_v9 = vrot.slane %v5744_v5, 5  ;;  %v5748_v47 = vshrl.u32 %v12631_v39, 16 }
 0x68a   : > { %5292 = vst.msk [vmem:[#allocation6 + $0xa9] sm:$0xff] %vm413_vm0, %v5205_v28  ;;  %v5208_v54 = vmax.f32 %v5126_v48, 0.0  ;;  %v5118_v50 = vadd.f32 %v12482_v30, %v5117_v63  ;;  %v5722_v22 = vrot.slane %v5720_v43, 5  ;;  %v5726_v26 = vrot.slane %v5724_v52, 4 }
 0x68b   : > { %v5718_v0 = vrot.slane %v5717_v57, 4  ;;  %v5742_v15 = vrot.slane %v5741_v32, 4  ;;  %v5750_v42 = vrot.slane %v5748_v47, 4  ;;  %v5754_v25 = vshll.u32 %v12648_v24, 16 }
 0x68c   : > { %5295 = vst.msk [vmem:[#allocation6 + $0xc9] sm:$0xff] %vm413_vm0, %v5208_v54  ;;  %v5206_v2 = vmax.f32 %v5118_v50, 0.0  ;;  %v5727_v6 = vor.u32 %v5726_v26, %v5722_v22  ;;  %v5732_v10 = vrot.slane %v5730_v11, 5 }
 0x68d   : > { %v12656_v16 = vsel %vm9239_vm4, %v5718_v0, %v5722_v22  ;;  %v5751_v35 = vor.u32 %v5750_v42, %v5746_v9  ;;  %v12672_v61 = vsel %vm9239_vm4, %v5742_v15, %v5746_v9  ;;  %v5756_v8 = vrot.slane %v5754_v25, 5 }
 0x68e   : > { %14566 = vst [vmem:[#allocation54_spill] sm:$0xff] %v12656_v16  ;;  %5293 = vst.msk [vmem:[#allocation6 + $0xb1] sm:$0xff] %vm413_vm0, %v5206_v2  ;;  %5994 = vrot.lane.b32.xlu0 %v12656_v16, %s8878_s20  ;;  %v5728_v3 = vrot.slane %v5727_v6, 4 }
 0x68f   : > { %v5336_v36 = vld [vmem:[#allocation6 + $0xc0] sm:$0xff]  ;;  %14568 = vst [vmem:[#allocation12_spill] sm:$0xff] %v12672_v61  ;;  %v5752_v7 = vrot.slane %v5751_v35, 4 }
 0x690   : > { %v12664_v56 = vsel %vm9239_vm4, %v5728_v3, %v5732_v10  ;;  %v12666_v53 = vpack.c.bf16 %v5336_v36, %v5336_v36 }
 0x691   : > { %14567 = vst [vmem:[#allocation40_spill] sm:$0xff] %v12664_v56  ;;  %5996 = vrot.lane.b32.xlu1 %v12664_v56, %s8878_s20  ;;  %v5333_v37 = vld [vmem:[#allocation6 + $0xa8] sm:$0xff]  ;;  %v12684_v52 = vsel %vm9239_vm4, %v5752_v7, %v5756_v8 }
 0x692   : > { %5998 = vrot.lane.b32.xlu0 %v12672_v61, %s8878_s20  ;;  %v12676_v5 = vpack.c.bf16 %v5333_v37, %v5333_v37  ;;  %v5783_v28 = vshrl.u32 %v12666_v53, 16  ;;  %v5786_v48 = vshll.u32 %v12666_v53, 16  ;;  %5510 = vst.msk [vmem:[#allocation7 + $0x40] sm:$0xf] %vm684_vm8, %v12666_v53  ;;  %14569 = vst [vmem:[#allocation16_spill] sm:$0xff] %v12684_v52 }
 0x693   : > { %v8697_v43 = vpop.f32.mrf.mxu1  ;;  %v5337_v63 = vld [vmem:[#allocation6 + $0xc8] sm:$0xff]  ;;  %v5338_v42 = vld [vmem:[#allocation6 + $0xd0] sm:$0x3] }
 0x694   : > { %v5139_v57 = vadd.f32 %v8697_v43, %v12482_v30  ;;  %v5759_v11 = vshrl.u32 %v12676_v5, 16  ;;  %v5762_v32 = vshll.u32 %v12676_v5, 16  ;;  %5508 = vst.msk [vmem:[#allocation7 + $0x38] sm:$0xf] %vm684_vm8, %v12676_v5  ;;  %v12691_v54 = vpack.c.bf16 %v5337_v63, %v5337_v63 }
 0x695   : > { %v5130_v50 = vpop.f32.mrf.mxu1  ;;  %6000 = vrot.lane.b32.xlu1 %v12684_v52, %s8878_s20  ;;  %v5334_v22 = vld [vmem:[#allocation6 + $0xb0] sm:$0xff]  ;;  %v5335_v26 = vld [vmem:[#allocation6 + $0xb8] sm:$0x3]  ;;  %v5785_v0 = vrot.slane %v5783_v28, 4  ;;  %v5788_v9 = vrot.slane %v5786_v48, 5 }
 0x696   : > { %v5211_v47 = vmax.f32 %v5139_v57, 0.0  ;;  %v5131_v2 = vadd.f32 %v12482_v30, %v5130_v50  ;;  %v12696_v6 = vpack.c.bf16 %v5334_v22, %v5334_v22  ;;  %v5761_v15 = vrot.slane %v5759_v11, 4  ;;  %5511 = vst.msk [vmem:[#allocation7 + $0x44] sm:$0xf] %vm684_vm8, %v12691_v54 }
 0x697   : > { %v8698_v25 = vpop.f32.mrf.mxu1  ;;  %v5764_v3 = vrot.slane %v5762_v32, 5  ;;  %v12700_v10 = vpack.c.bf16 %v5335_v26, %v5335_v26  ;;  %v5792_v35 = vshll.u32 %v12691_v54, 16  ;;  %v5789_v63 = vor.u32 %v5788_v9, %v5785_v0 }
 0x698   : > { %5298 = vst.msk [vmem:[#allocation6 + $0xf1] sm:$0xff] %vm413_vm0, %v5211_v47  ;;  %v5209_v36 = vmax.f32 %v5131_v2, 0.0  ;;  %v5142_v7 = vadd.f32 %v8698_v25, %v12482_v30  ;;  %v5768_v8 = vshll.u32 %v12696_v6, 16  ;;  %v5772_v37 = vshrl.u32 %v12696_v6, 16 }
 0x699   : > { %5509 = vst.msk [vmem:[#allocation7 + $0x3c] sm:$0xf] %vm684_vm8, %v12696_v6  ;;  %v5133_v28 = vpop.f32.mrf.mxu1  ;;  %v5765_v48 = vor.u32 %v5764_v3, %v5761_v15  ;;  %v5778_v43 = vshll.u32 %v12700_v10, 16  ;;  %v12710_v57 = vpack.c.bf16 %v5338_v42, %v5338_v42  ;;  %v5794_v47 = vrot.slane %v5792_v35, 5 }
 0x69a   : > { %5296 = vst.msk [vmem:[#allocation6 + $0xd9] sm:$0xff] %vm413_vm0, %v5209_v36  ;;  %v5212_v11 = vmax.f32 %v5142_v7, 0.0  ;;  %v5134_v32 = vadd.f32 %v12482_v30, %v5133_v28  ;;  %v5770_v50 = vrot.slane %v5768_v8, 5  ;;  %v5774_v22 = vrot.slane %v5772_v37, 4 }
 0x69b   : > { %v5766_v26 = vrot.slane %v5765_v48, 4  ;;  %v5796_v2 = vshrl.u32 %v12691_v54, 16  ;;  %v5790_v9 = vrot.slane %v5789_v63, 4  ;;  %v5802_v3 = vshll.u32 %v12710_v57, 16 }
 0x69c   : > { %5299 = vst.msk [vmem:[#allocation6 + $0xf9] sm:$0xff] %vm413_vm0, %v5212_v11  ;;  %v5210_v25 = vmax.f32 %v5134_v32, 0.0  ;;  %v5775_v15 = vor.u32 %v5774_v22, %v5770_v50  ;;  %v5780_v36 = vrot.slane %v5778_v43, 5 }
 0x69d   : > { %v12718_v0 = vsel %vm9239_vm4, %v5766_v26, %v5770_v50  ;;  %v5798_v42 = vrot.slane %v5796_v2, 4  ;;  %v12734_v48 = vsel %vm9239_vm4, %v5790_v9, %v5794_v47  ;;  %v5804_v11 = vrot.slane %v5802_v3, 5 }
 0x69e   : > { %14570 = vst [vmem:[#allocation13_spill] sm:$0xff] %v12718_v0  ;;  %5297 = vst.msk [vmem:[#allocation6 + $0xe1] sm:$0xff] %vm413_vm0, %v5210_v25  ;;  %6002 = vrot.lane.b32.xlu0 %v12718_v0, %s8878_s20  ;;  %v5776_v35 = vrot.slane %v5775_v15, 4 }
 0x69f   : > { %v5799_v7 = vor.u32 %v5798_v42, %v5794_v47  ;;  %v5342_v8 = vld [vmem:[#allocation6 + $0xf0] sm:$0xff]  ;;  %14572 = vst [vmem:[#allocation19_spill] sm:$0xff] %v12734_v48 }
 0x6a0   : > { %v12726_v37 = vsel %vm9239_vm4, %v5776_v35, %v5780_v36  ;;  %v12728_v28 = vpack.c.bf16 %v5342_v8, %v5342_v8 }
 0x6a1   : > { %14571 = vst [vmem:[#allocation17_spill] sm:$0xff] %v12726_v37  ;;  %6004 = vrot.lane.b32.xlu1 %v12726_v37, %s8878_s20  ;;  %v5800_v63 = vrot.slane %v5799_v7, 4  ;;  %v5339_v32 = vld [vmem:[#allocation6 + $0xd8] sm:$0xff] }
 0x6a2   : > { %6006 = vrot.lane.b32.xlu0 %v12734_v48, %s8878_s20  ;;  %v12738_v43 = vpack.c.bf16 %v5339_v32, %v5339_v32  ;;  %v5831_v50 = vshrl.u32 %v12728_v28, 16  ;;  %v5834_v22 = vshll.u32 %v12728_v28, 16  ;;  %5514 = vst.msk [vmem:[#allocation7 + $0x50] sm:$0xf] %vm684_vm8, %v12728_v28 }
 0x6a3   : > { %v8701_v26 = vpop.f32.mrf.mxu1  ;;  %v12746_v47 = vsel %vm9239_vm4, %v5800_v63, %v5804_v11  ;;  %v5343_v2 = vld [vmem:[#allocation6 + $0xf8] sm:$0xff]  ;;  %v5344_v48 = vld [vmem:[#allocation6 + $0x100] sm:$0x3] }
 0x6a4   : > { %14573 = vst [vmem:[#allocation21_spill] sm:$0xff] %v12746_v47  ;;  %v5155_v25 = vadd.f32 %v8701_v26, %v12482_v30  ;;  %v5807_v15 = vshrl.u32 %v12738_v43, 16  ;;  %v5810_v9 = vshll.u32 %v12738_v43, 16  ;;  %5512 = vst.msk [vmem:[#allocation7 + $0x48] sm:$0xf] %vm684_vm8, %v12738_v43  ;;  %v12753_v42 = vpack.c.bf16 %v5343_v2, %v5343_v2 }
 0x6a5   : > { %v5146_v3 = vpop.f32.mrf.mxu1  ;;  %6008 = vrot.lane.b32.xlu1 %v12746_v47, %s8878_s20  ;;  %v5340_v35 = vld [vmem:[#allocation6 + $0xe0] sm:$0xff]  ;;  %v5341_v36 = vld [vmem:[#allocation6 + $0xe8] sm:$0x3]  ;;  %v5833_v7 = vrot.slane %v5831_v50, 4  ;;  %v5836_v8 = vrot.slane %v5834_v22, 5  ;;  %v12772_v52 = vpack.c.bf16 %v5344_v48, %v5344_v48 }
 0x6a6   : > { %v5215_v63 = vmax.f32 %v5155_v25, 0.0  ;;  %v5147_v11 = vadd.f32 %v12482_v30, %v5146_v3  ;;  %v12758_v32 = vpack.c.bf16 %v5340_v35, %v5340_v35  ;;  %v5809_v26 = vrot.slane %v5807_v15, 4  ;;  %5515 = vst.msk [vmem:[#allocation7 + $0x54] sm:$0xf] %vm684_vm8, %v12753_v42 }
 0x6a7   : > { %v8702_v2 = vpop.f32.mrf.mxu1  ;;  %v5812_v37 = vrot.slane %v5810_v9, 5  ;;  %v12762_v0 = vpack.c.bf16 %v5341_v36, %v5341_v36  ;;  %v5840_v47 = vshll.u32 %v12753_v42, 16  ;;  %v5837_v36 = vor.u32 %v5836_v8, %v5833_v7 }
 0x6a8   : > { %5302 = vst.msk [vmem:[#allocation6 + $0x121] sm:$0xff] %vm413_vm0, %v5215_v63  ;;  %v5213_v50 = vmax.f32 %v5147_v11, 0.0  ;;  %v5158_v22 = vadd.f32 %v8702_v2, %v12482_v30  ;;  %v5816_v25 = vshll.u32 %v12758_v32, 16  ;;  %v5820_v15 = vshrl.u32 %v12758_v32, 16 }
 0x6a9   : > { %5513 = vst.msk [vmem:[#allocation7 + $0x4c] sm:$0xf] %vm684_vm8, %v12758_v32  ;;  %v5149_v3 = vpop.f32.mrf.mxu1  ;;  %v5813_v35 = vor.u32 %v5812_v37, %v5809_v26  ;;  %v5826_v9 = vshll.u32 %v12762_v0, 16  ;;  %v5842_v16 = vrot.slane %v5840_v47, 5  ;;  %v5844_v45 = vshrl.u32 %v12753_v42, 16 }
 0x6aa   : > { %5300 = vst.msk [vmem:[#allocation6 + $0x109] sm:$0xff] %vm413_vm0, %v5213_v50  ;;  %v5216_v63 = vmax.f32 %v5158_v22, 0.0  ;;  %v5150_v11 = vadd.f32 %v12482_v30, %v5149_v3  ;;  %v5818_v2 = vrot.slane %v5816_v25, 5  ;;  %v5822_v61 = vrot.slane %v5820_v15, 4 }
 0x6ab   : > { %v5814_v56 = vrot.slane %v5813_v35, 4  ;;  %v5838_v48 = vrot.slane %v5837_v36, 4  ;;  %v5846_v8 = vrot.slane %v5844_v45, 4  ;;  %v5850_v26 = vshll.u32 %v12772_v52, 16 }
 0x6ac   : > { %5303 = vst.msk [vmem:[#allocation6 + $0x129] sm:$0xff] %vm413_vm0, %v5216_v63  ;;  %v5214_v44 = vmax.f32 %v5150_v11, 0.0  ;;  %v5823_v37 = vor.u32 %v5822_v61, %v5818_v2  ;;  %v5828_v50 = vrot.slane %v5826_v9, 5  ;;  %v6174_v41 = vrot.slane %v12753_v42, 5 }
 0x6ad   : > { %v12780_v7 = vsel %vm9239_vm4, %v5814_v56, %v5818_v2  ;;  %v5847_v22 = vor.u32 %v5846_v8, %v5842_v16  ;;  %v12796_v45 = vsel %vm9239_vm4, %v5838_v48, %v5842_v16  ;;  %v5852_v56 = vrot.slane %v5850_v26, 5 }
 0x6ae   : > { %14574 = vst [vmem:[#allocation23_spill] sm:$0xff] %v12780_v7  ;;  %5301 = vst.msk [vmem:[#allocation6 + $0x111] sm:$0xff] %vm413_vm0, %v5214_v44  ;;  %6010 = vrot.lane.b32.xlu0 %v12780_v7, %s8878_s20  ;;  %v5824_v47 = vrot.slane %v5823_v37, 4 }
 0x6af   : > { %v5348_v25 = vld [vmem:[#allocation6 + $0x120] sm:$0xff]  ;;  %14577 = vst [vmem:[#allocation9_spill] sm:$0xff] %v12796_v45  ;;  %v5848_v44 = vrot.slane %v5847_v22, 4 }
 0x6b0   : > { %v12788_v61 = vsel %vm9239_vm4, %v5824_v47, %v5828_v50  ;;  %v12790_v15 = vpack.c.bf16 %v5348_v25, %v5348_v25 }
 0x6b1   : > { %14575 = vst [vmem:[#allocation26_spill] sm:$0xff] %v12788_v61  ;;  %6012 = vrot.lane.b32.xlu1 %v12788_v61, %s8878_s20  ;;  %v5345_v3 = vld [vmem:[#allocation6 + $0x108] sm:$0xff]  ;;  %v12808_v16 = vsel %vm9239_vm4, %v5848_v44, %v5852_v56 }
 0x6b2   : > { %14576 = vst [vmem:[#allocation29_spill] sm:$0xff] %v12790_v15  ;;  %6014 = vrot.lane.b32.xlu0 %v12796_v45, %s8878_s20  ;;  %v12800_v35 = vpack.c.bf16 %v5345_v3, %v5345_v3  ;;  %v5879_v9 = vshrl.u32 %v12790_v15, 16  ;;  %v5882_v36 = vshll.u32 %v12790_v15, 16  ;;  %5518 = vst.msk [vmem:[#allocation7 + $0x60] sm:$0xf] %vm684_vm8, %v12790_v15 }
 0x6b3   : > { %v8705_v63 = vpop.f32.mrf.mxu1  ;;  %14578 = vst [vmem:[#allocation44_spill] sm:$0xff] %v12808_v16  ;;  %v5349_v11 = vld [vmem:[#allocation6 + $0x128] sm:$0xff]  ;;  %v5350_v45 = vld [vmem:[#allocation6 + $0x130] sm:$0x3] }
 0x6b4   : > { %v5171_v2 = vadd.f32 %v8705_v63, %v12482_v30  ;;  %v5855_v37 = vshrl.u32 %v12800_v35, 16  ;;  %v5858_v48 = vshll.u32 %v12800_v35, 16  ;;  %5516 = vst.msk [vmem:[#allocation7 + $0x58] sm:$0xf] %vm684_vm8, %v12800_v35  ;;  %v12815_v8 = vpack.c.bf16 %v5349_v11, %v5349_v11 }
 0x6b5   : > { %v5162_v26 = vpop.f32.mrf.mxu1  ;;  %6016 = vrot.lane.b32.xlu1 %v12808_v16, %s8878_s20  ;;  %v5346_v47 = vld [vmem:[#allocation6 + $0x110] sm:$0xff]  ;;  %v5347_v50 = vld [vmem:[#allocation6 + $0x118] sm:$0x3]  ;;  %v5881_v22 = vrot.slane %v5879_v9, 4  ;;  %v5884_v25 = vrot.slane %v5882_v36, 5  ;;  %v12834_v29 = vpack.c.bf16 %v5350_v45, %v5350_v45 }
 0x6b6   : > { %v5219_v44 = vmax.f32 %v5171_v2, 0.0  ;;  %v5163_v56 = vadd.f32 %v12482_v30, %v5162_v26  ;;  %v12820_v3 = vpack.c.bf16 %v5346_v47, %v5346_v47  ;;  %v5857_v63 = vrot.slane %v5855_v37, 4  ;;  %5519 = vst.msk [vmem:[#allocation7 + $0x64] sm:$0xf] %vm684_vm8, %v12815_v8 }
 0x6b7   : > { %v8706_v11 = vpop.f32.mrf.mxu1  ;;  %v5860_v61 = vrot.slane %v5858_v48, 5  ;;  %v12824_v7 = vpack.c.bf16 %v5347_v50, %v5347_v50  ;;  %v5888_v16 = vshll.u32 %v12815_v8, 16  ;;  %v5885_v50 = vor.u32 %v5884_v25, %v5881_v22  ;;  %14580 = vst [vmem:[#allocation46_spill] sm:$0xff] %v12834_v29 }
 0x6b8   : > { %5306 = vst.msk [vmem:[#allocation6 + $0x151] sm:$0xff] %vm413_vm0, %v5219_v44  ;;  %v5217_v9 = vmax.f32 %v5163_v56, 0.0  ;;  %v5174_v36 = vadd.f32 %v8706_v11, %v12482_v30  ;;  %v5864_v2 = vshll.u32 %v12820_v3, 16  ;;  %v5868_v37 = vshrl.u32 %v12820_v3, 16 }
 0x6b9   : > { %14579 = vst [vmem:[#allocation45_spill] sm:$0xff] %v12824_v7  ;;  %5517 = vst.msk [vmem:[#allocation7 + $0x5c] sm:$0xf] %vm684_vm8, %v12820_v3  ;;  %v5165_v26 = vpop.f32.mrf.mxu1  ;;  %v5861_v47 = vor.u32 %v5860_v61, %v5857_v63  ;;  %v5874_v48 = vshll.u32 %v12824_v7, 16  ;;  %v5890_v20 = vrot.slane %v5888_v16, 5  ;;  %v5892_v23 = vshrl.u32 %v12815_v8, 16 }
 0x6ba   : > { %5304 = vst.msk [vmem:[#allocation6 + $0x139] sm:$0xff] %vm413_vm0, %v5217_v9  ;;  %v5220_v44 = vmax.f32 %v5174_v36, 0.0  ;;  %v5166_v56 = vadd.f32 %v12482_v30, %v5165_v26  ;;  %v5866_v11 = vrot.slane %v5864_v2, 5  ;;  %v5870_v62 = vrot.slane %v5868_v37, 4 }
 0x6bb   : > { %v5862_v55 = vrot.slane %v5861_v47, 4  ;;  %v5886_v45 = vrot.slane %v5885_v50, 4  ;;  %v5894_v25 = vrot.slane %v5892_v23, 4  ;;  %v5898_v63 = vshll.u32 %v12834_v29, 16 }
 0x6bc   : > { %5307 = vst.msk [vmem:[#allocation6 + $0x159] sm:$0xff] %vm413_vm0, %v5220_v44  ;;  %v5218_v14 = vmax.f32 %v5166_v56, 0.0  ;;  %v5871_v61 = vor.u32 %v5870_v62, %v5866_v11  ;;  %v5876_v9 = vrot.slane %v5874_v48, 5 }
 0x6bd   : > { %v12842_v22 = vsel %vm9239_vm4, %v5862_v55, %v5866_v11  ;;  %v5895_v36 = vor.u32 %v5894_v25, %v5890_v20  ;;  %v12858_v23 = vsel %vm9239_vm4, %v5886_v45, %v5890_v20  ;;  %v5900_v55 = vrot.slane %v5898_v63, 5 }
 0x6be   : > { %14581 = vst [vmem:[#allocation47_spill] sm:$0xff] %v12842_v22  ;;  %5305 = vst.msk [vmem:[#allocation6 + $0x141] sm:$0xff] %vm413_vm0, %v5218_v14  ;;  %6018 = vrot.lane.b32.xlu0 %v12842_v22, %s8878_s20  ;;  %v5872_v16 = vrot.slane %v5871_v61, 4 }
 0x6bf   : > { %v5354_v2 = vld [vmem:[#allocation6 + $0x150] sm:$0xff]  ;;  %14584 = vst [vmem:[#allocation52_spill] sm:$0xff] %v12858_v23  ;;  %v5896_v14 = vrot.slane %v5895_v36, 4 }
 0x6c0   : > { %v12850_v62 = vsel %vm9239_vm4, %v5872_v16, %v5876_v9  ;;  %v12852_v37 = vpack.c.bf16 %v5354_v2, %v5354_v2 }
 0x6c1   : > { %14582 = vst [vmem:[#allocation48_spill] sm:$0xff] %v12850_v62  ;;  %6020 = vrot.lane.b32.xlu1 %v12850_v62, %s8878_s20  ;;  %v5351_v26 = vld [vmem:[#allocation6 + $0x138] sm:$0xff]  ;;  %v12870_v20 = vsel %vm9239_vm4, %v5896_v14, %v5900_v55 }
 0x6c2   : > { %14583 = vst [vmem:[#allocation27_spill] sm:$0xff] %v12852_v37  ;;  %6022 = vrot.lane.b32.xlu0 %v12858_v23, %s8878_s20  ;;  %v12862_v47 = vpack.c.bf16 %v5351_v26, %v5351_v26  ;;  %v5927_v48 = vshrl.u32 %v12852_v37, 16  ;;  %v5930_v50 = vshll.u32 %v12852_v37, 16  ;;  %5522 = vst.msk [vmem:[#allocation7 + $0x70] sm:$0xf] %vm684_vm8, %v12852_v37 }
 0x6c3   : > { %v8709_v44 = vpop.f32.mrf.mxu1  ;;  %14586 = vst [vmem:[#allocation31_spill] sm:$0xff] %v12870_v20  ;;  %v5355_v56 = vld [vmem:[#allocation6 + $0x158] sm:$0xff]  ;;  %v5356_v23 = vld [vmem:[#allocation6 + $0x160] sm:$0x3] }
 0x6c4   : > { %14585 = vst [vmem:[#allocation30_spill] sm:$0xff] %v12862_v47  ;;  %v5187_v11 = vadd.f32 %v8709_v44, %v12482_v30  ;;  %v5903_v61 = vshrl.u32 %v12862_v47, 16  ;;  %v5906_v45 = vshll.u32 %v12862_v47, 16  ;;  %5520 = vst.msk [vmem:[#allocation7 + $0x68] sm:$0xf] %vm684_vm8, %v12862_v47  ;;  %v12877_v25 = vpack.c.bf16 %v5355_v56, %v5355_v56 }
 0x6c5   : > { %v5178_v63 = vpop.f32.mrf.mxu1  ;;  %6024 = vrot.lane.b32.xlu1 %v12870_v20, %s8878_s20  ;;  %v5352_v16 = vld [vmem:[#allocation6 + $0x140] sm:$0xff]  ;;  %v5353_v9 = vld [vmem:[#allocation6 + $0x148] sm:$0x3]  ;;  %v5929_v36 = vrot.slane %v5927_v48, 4  ;;  %v5932_v2 = vrot.slane %v5930_v50, 5  ;;  %v12896_v37 = vpack.c.bf16 %v5356_v23, %v5356_v23 }
 0x6c6   : > { %14587 = vst [vmem:[#allocation33_spill] sm:$0xff] %v12877_v25  ;;  %v5223_v14 = vmax.f32 %v5187_v11, 0.0  ;;  %v5179_v55 = vadd.f32 %v12482_v30, %v5178_v63  ;;  %v12882_v26 = vpack.c.bf16 %v5352_v16, %v5352_v16  ;;  %v5905_v44 = vrot.slane %v5903_v61, 4  ;;  %5523 = vst.msk [vmem:[#allocation7 + $0x74] sm:$0xf] %vm684_vm8, %v12877_v25 }
 0x6c7   : > { %v8710_v56 = vpop.f32.mrf.mxu1  ;;  %v5908_v62 = vrot.slane %v5906_v45, 5  ;;  %v12886_v22 = vpack.c.bf16 %v5353_v9, %v5353_v9  ;;  %v5936_v20 = vshll.u32 %v12877_v25, 16  ;;  %v5933_v9 = vor.u32 %v5932_v2, %v5929_v36 }
 0x6c8   : > { %14588 = vst [vmem:[#allocation36_spill] sm:$0xff] %v12882_v26  ;;  %5310 = vst.msk [vmem:[#allocation6 + $0x181] sm:$0xff] %vm413_vm0, %v5223_v14  ;;  %v5221_v48 = vmax.f32 %v5179_v55, 0.0  ;;  %v5190_v50 = vadd.f32 %v8710_v56, %v12482_v30  ;;  %v5912_v11 = vshll.u32 %v12882_v26, 16  ;;  %v5916_v61 = vshrl.u32 %v12882_v26, 16 }
 0x6c9   : > { %5521 = vst.msk [vmem:[#allocation7 + $0x6c] sm:$0xf] %vm684_vm8, %v12882_v26  ;;  %v5181_v63 = vpop.f32.mrf.mxu1  ;;  %v5909_v16 = vor.u32 %v5908_v62, %v5905_v44  ;;  %v5922_v45 = vshll.u32 %v12886_v22, 16  ;;  %v5938_v15 = vrot.slane %v5936_v20, 5  ;;  %v5940_v7 = vshrl.u32 %v12877_v25, 16 }
 0x6ca   : > { %5308 = vst.msk [vmem:[#allocation6 + $0x169] sm:$0xff] %vm413_vm0, %v5221_v48  ;;  %v5224_v14 = vmax.f32 %v5190_v50, 0.0  ;;  %v5182_v55 = vadd.f32 %v12482_v30, %v5181_v63  ;;  %v5914_v56 = vrot.slane %v5912_v11, 5  ;;  %v5918_v47 = vrot.slane %v5916_v61, 4 }
 0x6cb   : > { %v5910_v29 = vrot.slane %v5909_v16, 4  ;;  %v5934_v23 = vrot.slane %v5933_v9, 4  ;;  %v5942_v2 = vrot.slane %v5940_v7, 4  ;;  %v5924_v44 = vrot.slane %v5922_v45, 5 }
 0x6cc   : > { %5311 = vst.msk [vmem:[#allocation6 + $0x189] sm:$0xff] %vm413_vm0, %v5224_v14  ;;  %v5222_v26 = vmax.f32 %v5182_v55, 0.0  ;;  %v5919_v62 = vor.u32 %v5918_v47, %v5914_v56  ;;  %v5946_v20 = vshll.u32 %v12896_v37, 16 }
 0x6cd   : > { %v12904_v36 = vsel %vm9239_vm4, %v5910_v29, %v5914_v56  ;;  %v5943_v48 = vor.u32 %v5942_v2, %v5938_v15  ;;  %v12918_v29 = vsel %vm9239_vm4, %v5934_v23, %v5938_v15 }
 0x6ce   : > { %14589 = vst [vmem:[#allocation37_spill] sm:$0xff] %v12904_v36  ;;  %5309 = vst.msk [vmem:[#allocation6 + $0x171] sm:$0xff] %vm413_vm0, %v5222_v26  ;;  %6026 = vrot.lane.b32.xlu0 %v12904_v36, %s8878_s20  ;;  %v5920_v30 = vrot.slane %v5919_v62, 4  ;;  %v5948_v26 = vrot.slane %v5946_v20, 5 }
 0x6cf   : > { %14591 = vst [vmem:[#allocation43_spill] sm:$0xff] %v12918_v29  ;;  %v5944_v7 = vrot.slane %v5943_v48, 4 }
 0x6d0   : > { %v12912_v50 = vsel %vm9239_vm4, %v5920_v30, %v5924_v44  ;;  %v8286_v30 = vrot.slane %v12392_v33, 9  ;;  %v6104_v44 = vrot.slane %v12394_v17, 5  ;;  %v6107_v17 = vrot.slane %v12396_v34, 5 }
 0x6d1   : > { %14590 = vst [vmem:[#allocation41_spill] sm:$0xff] %v12912_v50  ;;  %6028 = vrot.lane.b32.xlu1 %v12912_v50, %s8878_s20  ;;  %v5357_v47 = vld [vmem:[#allocation6 + $0x168] sm:$0xff]  ;;  %v12926_v61 = vsel %vm9239_vm4, %v5944_v7, %v5948_v26 }
 0x6d2   : > { %6030 = vrot.lane.b32.xlu0 %v12918_v29, %s8878_s20  ;;  %v12922_v11 = vpack.c.bf16 %v5357_v47, %v5357_v47  ;;  %14592 = vst [vmem:[#allocation11_spill] sm:$0xff] %v12926_v61 }
 0x6d4   : > { %v5951_v63 = vshrl.u32 %v12922_v11, 16  ;;  %v5954_v16 = vshll.u32 %v12922_v11, 16  ;;  %5524 = vst.msk [vmem:[#allocation7 + $0x78] sm:$0xf] %vm684_vm8, %v12922_v11 }
 0x6d5   : > { %6032 = vrot.lane.b32.xlu1 %v12926_v61, %s8878_s20  ;;  %v5358_v15 = vld [vmem:[#allocation6 + $0x170] sm:$0xff]  ;;  %v5359_v45 = vld [vmem:[#allocation6 + $0x178] sm:$0x3] }
 0x6d6   : > { %v12934_v9 = vpack.c.bf16 %v5358_v15, %v5358_v15  ;;  %v5953_v14 = vrot.slane %v5951_v63, 4  ;;  %v5956_v55 = vrot.slane %v5954_v16, 5  ;;  %v12936_v56 = vpack.c.bf16 %v5359_v45, %v5359_v45 }
 0x6d7   : > { %v6105_v16 = vsel %vm9610_vm7, %v8286_v30, %v6104_v44  ;;  %v6106_v45 = vrot.slane %v6104_v44, 4  ;;  %v6118_v44 = vrot.slane %v12508_v49, 5 }
 0x6d8   : > { %14593 = vst [vmem:[#allocation14_spill] sm:$0xff] %v12934_v9  ;;  %v5957_v62 = vor.u32 %v5956_v55, %v5953_v14  ;;  %v5960_v23 = vshll.u32 %v12934_v9, 16  ;;  %5525 = vst.msk [vmem:[#allocation7 + $0x7c] sm:$0xf] %vm684_vm8, %v12934_v9  ;;  %v5964_v2 = vshrl.u32 %v12934_v9, 16  ;;  %v5970_v47 = vshll.u32 %v12936_v56, 16 }
 0x6d9   : > { %v6111_v55 = vrot.slane %v12514_v1, 5  ;;  %vm14621_vm8 = vcmask 290048  }
 0x6da   : > { %v5958_v20 = vrot.slane %v5957_v62, 4  ;;  %v5962_v48 = vrot.slane %v5960_v23, 5  ;;  %v5966_v7 = vrot.slane %v5964_v2, 4  ;;  %v5972_v33 = vrot.slane %v5970_v47, 5  ;;  %vm14632_vm5 = vmmov %vm14621_vm8 }
 0x6db   : > { %v6108_v62 = vsel %vm9610_vm7, %v6106_v45, %v6107_v17  ;;  %v8287_v23 = vrot.slane %v12496_v21, 9  ;;  %v6113_v30 = vrot.slane %v6111_v55, 4  ;;  %v8289_v45 = vrot.slane %v12540_v31, 9  ;;  %vm14634_vm3 = vmmov %vm14632_vm5 }
 0x6dc   : > { %v12947_v26 = vsel %vm9239_vm4, %v5958_v20, %v5962_v48  ;;  %v5967_v63 = vor.u32 %v5966_v7, %v5962_v48  ;;  %v6114_v20 = vrot.slane %v12516_v4, 5  ;;  %v8288_v48 = vrot.slane %v12493_v27, 9 }
 0x6dd   : > { %14594 = vst [vmem:[#allocation15_spill] sm:$0xff] %v12947_v26  ;;  %6034 = vrot.lane.b32.xlu0 %v12947_v26, %s8878_s20  ;;  %v12967_v34 = vsel %vm9610_vm7, %v8287_v23, %v6111_v55  ;;  %v6121_v4 = vrot.slane %v12510_v38, 5  ;;  %v6128_v38 = vrot.slane %v12572_v19, 5  ;;  %v6135_v19 = vrot.slane %v12588_v18, 5  ;;  %v14599_v26 = vld [vmem:[#allocation29_spill] sm:$0xff] }
 0x6de   : > { %v5968_v15 = vrot.slane %v5967_v63, 4  ;;  %v12979_v63 = vsel %vm9610_vm7, %v6113_v30, %v6114_v20  ;;  %v8290_v30 = vrot.slane %v12532_v12, 9  ;;  %v6142_v18 = vrot.slane %v12636_v51, 5 }
 0x6df   : > { %v6149_v51 = vrot.slane %v12648_v24, 5  ;;  %v6156_v24 = vrot.slane %v12700_v10, 5  ;;  %v6163_v10 = vrot.slane %v12710_v57, 5  ;;  %v6170_v57 = vrot.slane %v12762_v0, 5 }
 0x6e0   : > { %v12956_v14 = vsel %vm9239_vm4, %v5968_v15, %v5972_v33  ;;  %v6120_v15 = vrot.slane %v6118_v44, 4  ;;  %v6125_v33 = vrot.slane %v12566_v59, 5  ;;  %v6177_v0 = vrot.slane %v12772_v52, 5  ;;  %v14598_v52 = vld [vmem:[#allocation45_spill] sm:$0xff] }
 0x6e1   : > { %14595 = vst [vmem:[#allocation18_spill] sm:$0xff] %v12956_v14  ;;  %6036 = vrot.lane.b32.xlu1 %v12956_v14, %s8878_s20  ;;  %6214 = vrot.lane.b32.xlu0 %v6105_v16, %s8879_s21  ;;  %v12983_v16 = vsel %vm9610_vm7, %v8288_v48, %v6118_v44  ;;  %v6184_v14 = vrot.slane %v14598_v52, 5  ;;  %v8298_v61 = vrot.slane %v14599_v26, 9  ;;  %v14602_v52 = vld [vmem:[#allocation46_spill] sm:$0xff] }
 0x6e2   : > { %v12996_v55 = vsel %vm9610_vm7, %v6120_v15, %v6121_v4  ;;  %v6127_v23 = vrot.slane %v6125_v33, 4  ;;  %v8291_v15 = vrot.slane %v12614_v46, 9  ;;  %v6191_v36 = vrot.slane %v14602_v52, 5 }
 0x6e3   : > { %v6198_v52 = vrot.slane %v12886_v22, 5  ;;  %v6205_v22 = vrot.slane %v12896_v37, 5 }
 0x6e4   : > { %v5979_v2 = vpop.permute.xlu0 %5978  ;;  %v13011_v20 = vsel %vm9610_vm7, %v6127_v23, %v6128_v38  ;;  %v8292_v38 = vrot.slane %v12604_v13, 9 }
 0x6e5   : > { %6072 = vst.msk [vmem:[#allocation7 + $0x8] sm:$0xf] %vm1264_vm9, %v5979_v2  ;;  %6216 = vrot.lane.b32.xlu1 %v6108_v62, %s8879_s21  ;;  %6218 = vrot.lane.b32.xlu0 %v12967_v34, %s8879_s21  ;;  %v13000_v62 = vsel %vm9610_vm7, %v8289_v45, %v6125_v33  ;;  %v6132_v2 = vrot.slane %v12561_v60, 5 }
 0x6e7   : > { %v5981_v7 = vpop.permute.xlu1 %5980  ;;  %v13015_v48 = vsel %vm9610_vm7, %v8290_v30, %v6132_v2 }
 0x6e8   : > { %6073 = vst.msk [vmem:[#allocation7 + $0xc] sm:$0xf] %vm1264_vm9, %v5981_v7  ;;  %v5983_v47 = vpop.permute.xlu0 %5982  ;;  %v6134_v7 = vrot.slane %v6132_v2, 4  ;;  %v6146_v2 = vrot.slane %v12631_v39, 5 }
 0x6e9   : > { %6074 = vst.msk [vmem:[#allocation7 + $0x10] sm:$0xf] %vm1264_vm9, %v5983_v47  ;;  %6220 = vrot.lane.b32.xlu1 %v12979_v63, %s8879_s21  ;;  %6222 = vrot.lane.b32.xlu0 %v12983_v16, %s8879_s21  ;;  %v6139_v47 = vrot.slane %v12634_v58, 5 }
 0x6ea   : > { %v13028_v45 = vsel %vm9610_vm7, %v6134_v7, %v6135_v19  ;;  %v13049_v7 = vsel %vm9610_vm7, %v8292_v38, %v6146_v2  ;;  %v6153_v19 = vrot.slane %v12696_v6, 5 }
 0x6eb   : > { %v5985_v17 = vpop.permute.xlu1 %5984  ;;  %v6141_v23 = vrot.slane %v6139_v47, 4 }
 0x6ec   : > { %6075 = vst.msk [vmem:[#allocation7 + $0x14] sm:$0xf] %vm1264_vm9, %v5985_v17  ;;  %v13032_v17 = vsel %vm9610_vm7, %v8291_v15, %v6139_v47  ;;  %v6148_v47 = vrot.slane %v6146_v2, 4  ;;  %v8293_v15 = vrot.slane %v12676_v5, 9  ;;  %v6160_v2 = vrot.slane %v12691_v54, 5 }
 0x6ed   : > { %6224 = vrot.lane.b32.xlu1 %v12996_v55, %s8879_s21  ;;  %6226 = vrot.lane.b32.xlu0 %v13000_v62, %s8879_s21 }
 0x6f0   : > { %v5987_v44 = vpop.permute.xlu0 %5986 }
 0x6f1   : > { %6076 = vst.msk [vmem:[#allocation7 + $0x18] sm:$0xf] %vm1264_vm9, %v5987_v44  ;;  %6228 = vrot.lane.b32.xlu1 %v13011_v20, %s8879_s21  ;;  %6230 = vrot.lane.b32.xlu0 %v13015_v48, %s8879_s21  ;;  %v13045_v44 = vsel %vm9610_vm7, %v6141_v23, %v6142_v18  ;;  %v6155_v23 = vrot.slane %v6153_v19, 4  ;;  %v8294_v18 = vrot.slane %v12666_v53, 9 }
 0x6f4   : > { %v5989_v33 = vpop.permute.xlu1 %5988  ;;  %v5991_v4 = vpop.permute.xlu0 %5990 }
 0x6f5   : > { %6077 = vst.msk [vmem:[#allocation7 + $0x1c] sm:$0xf] %vm1264_vm9, %v5989_v33  ;;  %6078 = vst.msk [vmem:[#allocation7 + $0x20] sm:$0xf] %vm1264_vm9, %v5991_v4  ;;  %6232 = vrot.lane.b32.xlu1 %v13028_v45, %s8879_s21  ;;  %6234 = vrot.lane.b32.xlu0 %v13032_v17, %s8879_s21  ;;  %v13060_v33 = vsel %vm9610_vm7, %v6148_v47, %v6149_v51  ;;  %v13064_v4 = vsel %vm9610_vm7, %v8293_v15, %v6153_v19  ;;  %v6162_v19 = vrot.slane %v6160_v2, 4 }
 0x6f6   : > { %v13079_v47 = vsel %vm9610_vm7, %v8294_v18, %v6160_v2  ;;  %v6167_v51 = vrot.slane %v12758_v32, 5  ;;  %v8295_v15 = vrot.slane %v12738_v43, 9 }
 0x6f7   : > { %v13092_v2 = vsel %vm9610_vm7, %v6162_v19, %v6163_v10  ;;  %v8296_v19 = vrot.slane %v12728_v28, 9 }
 0x6f8   : > { %v5993_v30 = vpop.permute.xlu1 %5992  ;;  %v13096_v18 = vsel %vm9610_vm7, %v8295_v15, %v6167_v51 }
 0x6f9   : > { %6079 = vst.msk [vmem:[#allocation7 + $0x24] sm:$0xf] %vm1264_vm9, %v5993_v30  ;;  %6236 = vrot.lane.b32.xlu1 %v13045_v44, %s8879_s21  ;;  %6238 = vrot.lane.b32.xlu0 %v13049_v7, %s8879_s21  ;;  %v13075_v30 = vsel %vm9610_vm7, %v6155_v23, %v6156_v24  ;;  %v13113_v15 = vsel %vm9610_vm7, %v8296_v19, %v6174_v41  ;;  %v6188_v19 = vrot.slane %v12815_v8, 5 }
 0x6fd   : > { %6240 = vrot.lane.b32.xlu1 %v13060_v33, %s8879_s21  ;;  %6242 = vrot.lane.b32.xlu0 %v13064_v4, %s8879_s21 }
 0x700   : > { %v5995_v38 = vpop.permute.xlu0 %5994 }
 0x701   : > { %6080 = vst.msk [vmem:[#allocation7 + $0x28] sm:$0xf] %vm1264_vm9, %v5995_v38  ;;  %6244 = vrot.lane.b32.xlu1 %v13075_v30, %s8879_s21  ;;  %6246 = vrot.lane.b32.xlu0 %v13079_v47, %s8879_s21  ;;  %v6169_v38 = vrot.slane %v6167_v51, 4 }
 0x703   : > { %v5997_v23 = vpop.permute.xlu1 %5996  ;;  %v13109_v51 = vsel %vm9610_vm7, %v6169_v38, %v6170_v57 }
 0x704   : > { %6081 = vst.msk [vmem:[#allocation7 + $0x2c] sm:$0xf] %vm1264_vm9, %v5997_v23  ;;  %v5999_v24 = vpop.permute.xlu0 %5998  ;;  %v6176_v23 = vrot.slane %v6174_v41, 4 }
 0x705   : > { %6082 = vst.msk [vmem:[#allocation7 + $0x30] sm:$0xf] %vm1264_vm9, %v5999_v24  ;;  %6248 = vrot.lane.b32.xlu1 %v13092_v2, %s8879_s21  ;;  %6250 = vrot.lane.b32.xlu0 %v13096_v18, %s8879_s21  ;;  %v6181_v24 = vrot.slane %v12820_v3, 5 }
 0x706   : > { %v13124_v38 = vsel %vm9610_vm7, %v6176_v23, %v6177_v0  ;;  %v6190_v0 = vrot.slane %v6188_v19, 4 }
 0x707   : > { %v6001_v10 = vpop.permute.xlu1 %6000  ;;  %14596 = vst [vmem:[#allocation20_spill] sm:$0xff] %v13124_v38  ;;  %v6183_v41 = vrot.slane %v6181_v24, 4 }
 0x708   : > { %6083 = vst.msk [vmem:[#allocation7 + $0x34] sm:$0xf] %vm1264_vm9, %v6001_v10  ;;  %v8297_v10 = vrot.slane %v12800_v35, 9 }
 0x709   : > { %6252 = vrot.lane.b32.xlu1 %v13109_v51, %s8879_s21  ;;  %6254 = vrot.lane.b32.xlu0 %v13113_v15, %s8879_s21  ;;  %v13139_v23 = vsel %vm9610_vm7, %v6183_v41, %v6184_v14 }
 0x70a   : > { %v13128_v57 = vsel %vm9610_vm7, %v8297_v10, %v6181_v24  ;;  %14600 = vst [vmem:[#allocation24_spill] sm:$0xff] %v13139_v23  ;;  %v13143_v24 = vsel %vm9610_vm7, %v8298_v61, %v6188_v19  ;;  %v14601_v10 = vld [vmem:[#allocation36_spill] sm:$0xff]  ;;  %v13156_v19 = vsel %vm9610_vm7, %v6190_v0, %v6191_v36 }
 0x70b   : > { %14597 = vst [vmem:[#allocation22_spill] sm:$0xff] %v13128_v57  ;;  %v6195_v50 = vrot.slane %v14601_v10, 5 }
 0x70d   : > { %6256 = vrot.lane.b32.xlu1 %v13124_v38, %s8879_s21  ;;  %6258 = vrot.lane.b32.xlu0 %v13128_v57, %s8879_s21  ;;  %v14603_v57 = vld [vmem:[#allocation30_spill] sm:$0xff]  ;;  %v6202_v38 = vrot.slane %v12877_v25, 5  ;;  %v6209_v25 = vrot.slane %v12934_v9, 5 }
 0x70e   : > { %v8299_v14 = vrot.slane %v14603_v57, 9 }
 0x710   : > { %v6003_v29 = vpop.permute.xlu0 %6002 }
 0x711   : > { %6084 = vst.msk [vmem:[#allocation7 + $0x38] sm:$0xf] %vm1264_vm9, %v6003_v29  ;;  %6260 = vrot.lane.b32.xlu1 %v13139_v23, %s8879_s21  ;;  %6262 = vrot.lane.b32.xlu0 %v13143_v24, %s8879_s21  ;;  %v13160_v29 = vsel %vm9610_vm7, %v8299_v14, %v6195_v50  ;;  %v6197_v23 = vrot.slane %v6195_v50, 4 }
 0x713   : > { %v6005_v41 = vpop.permute.xlu1 %6004  ;;  %v13173_v50 = vsel %vm9610_vm7, %v6197_v23, %v6198_v52 }
 0x714   : > { %6085 = vst.msk [vmem:[#allocation7 + $0x3c] sm:$0xf] %vm1264_vm9, %v6005_v41  ;;  %v6007_v61 = vpop.permute.xlu0 %6006  ;;  %v14604_v41 = vld [vmem:[#allocation27_spill] sm:$0xff] }
 0x715   : > { %6086 = vst.msk [vmem:[#allocation7 + $0x40] sm:$0xf] %vm1264_vm9, %v6007_v61  ;;  %6264 = vrot.lane.b32.xlu1 %v13156_v19, %s8879_s21  ;;  %6266 = vrot.lane.b32.xlu0 %v13160_v29, %s8879_s21  ;;  %v8300_v36 = vrot.slane %v14604_v41, 9  ;;  %v6204_v61 = vrot.slane %v6202_v38, 4 }
 0x717   : > { %v6009_v0 = vpop.permute.xlu1 %6008  ;;  %v13177_v14 = vsel %vm9610_vm7, %v8300_v36, %v6202_v38  ;;  %v13188_v23 = vsel %vm9610_vm7, %v6204_v61, %v6205_v22  ;;  %v6211_v38 = vrot.slane %v6209_v25, 4  ;;  %v6212_v36 = vrot.slane %v12936_v56, 5 }
 0x718   : > { %6087 = vst.msk [vmem:[#allocation7 + $0x44] sm:$0xf] %vm1264_vm9, %v6009_v0  ;;  %v8301_v0 = vrot.slane %v12922_v11, 9 }
 0x719   : > { %6268 = vrot.lane.b32.xlu1 %v13173_v50, %s8879_s21  ;;  %6270 = vrot.lane.b32.xlu0 %v13177_v14, %s8879_s21  ;;  %v13201_v9 = vsel %vm9610_vm7, %v6211_v38, %v6212_v36 }
 0x71a   : > { %v13192_v52 = vsel %vm9610_vm7, %v8301_v0, %v6209_v25 }
 0x71d   : > { %6272 = vrot.lane.b32.xlu1 %v13188_v23, %s8879_s21  ;;  %6274 = vrot.lane.b32.xlu0 %v13192_v52, %s8879_s21 }
 0x720   : > { %v6011_v37 = vpop.permute.xlu0 %6010 }
 0x721   : > { %6088 = vst.msk [vmem:[#allocation7 + $0x48] sm:$0xf] %vm1264_vm9, %v6011_v37  ;;  %6276 = vrot.lane.b32.xlu1 %v13201_v9, %s8879_s21  ;;  %6348 = vrot.lane.b32.xlu0 %v12496_v21, %s8880_s22 }
 0x723   : > { %v6013_v25 = vpop.permute.xlu1 %6012 }
 0x724   : > { %6089 = vst.msk [vmem:[#allocation7 + $0x4c] sm:$0xf] %vm1264_vm9, %v6013_v25  ;;  %v6015_v61 = vpop.permute.xlu0 %6014 }
 0x725   : > { %6090 = vst.msk [vmem:[#allocation7 + $0x50] sm:$0xf] %vm1264_vm9, %v6015_v61  ;;  %6350 = vrot.lane.b32.xlu1 %v12514_v1, %s8880_s22  ;;  %6352 = vrot.lane.b32.xlu0 %v12493_v27, %s8880_s22 }
 0x727   : > { %v6017_v56 = vpop.permute.xlu1 %6016 }
 0x728   : > { %6091 = vst.msk [vmem:[#allocation7 + $0x54] sm:$0xf] %vm1264_vm9, %v6017_v56 }
 0x729   : > { %6354 = vrot.lane.b32.xlu1 %v12508_v49, %s8880_s22  ;;  %6356 = vrot.lane.b32.xlu0 %v12540_v31, %s8880_s22 }
 0x72d   : > { %6358 = vrot.lane.b32.xlu1 %v12566_v59, %s8880_s22  ;;  %6360 = vrot.lane.b32.xlu0 %v12532_v12, %s8880_s22 }
 0x730   : > { %v6019_v21 = vpop.permute.xlu0 %6018 }
 0x731   : > { %6092 = vst.msk [vmem:[#allocation7 + $0x58] sm:$0xf] %vm1264_vm9, %v6019_v21  ;;  %6362 = vrot.lane.b32.xlu1 %v12561_v60, %s8880_s22  ;;  %6364 = vrot.lane.b32.xlu0 %v12614_v46, %s8880_s22 }
 0x733   : > { %v6021_v1 = vpop.permute.xlu1 %6020 }
 0x734   : > { %6093 = vst.msk [vmem:[#allocation7 + $0x5c] sm:$0xf] %vm1264_vm9, %v6021_v1  ;;  %v6023_v22 = vpop.permute.xlu0 %6022  ;;  %v14605_v1 = vld [vmem:[#allocation28_spill] sm:$0xff] }
 0x735   : > { %6094 = vst.msk [vmem:[#allocation7 + $0x60] sm:$0xf] %vm1264_vm9, %v6023_v22  ;;  %6366 = vrot.lane.b32.xlu1 %v12634_v58, %s8880_s22  ;;  %6368 = vrot.lane.b32.xlu0 %v12604_v13, %s8880_s22 }
 0x737   : > { %v6025_v0 = vpop.permute.xlu1 %6024 }
 0x738   : > { %6095 = vst.msk [vmem:[#allocation7 + $0x64] sm:$0xf] %vm1264_vm9, %v6025_v0 }
 0x739   : > { %6370 = vrot.lane.b32.xlu1 %v12631_v39, %s8880_s22  ;;  %6372 = vrot.lane.b32.xlu0 %v12676_v5, %s8880_s22 }
 0x73d   : > { %6374 = vrot.lane.b32.xlu1 %v12696_v6, %s8880_s22  ;;  %6376 = vrot.lane.b32.xlu0 %v12666_v53, %s8880_s22 }
 0x740   : > { %v6027_v38 = vpop.permute.xlu0 %6026 }
 0x741   : > { %6096 = vst.msk [vmem:[#allocation7 + $0x68] sm:$0xf] %vm1264_vm9, %v6027_v38  ;;  %6378 = vrot.lane.b32.xlu1 %v12691_v54, %s8880_s22  ;;  %6380 = vrot.lane.b32.xlu0 %v12738_v43, %s8880_s22  ;;  %v14606_v38 = vld [vmem:[#allocation42_spill] sm:$0xff] }
 0x743   : > { %v6029_v36 = vpop.permute.xlu1 %6028 }
 0x744   : > { %6097 = vst.msk [vmem:[#allocation7 + $0x6c] sm:$0xf] %vm1264_vm9, %v6029_v36  ;;  %v6031_v37 = vpop.permute.xlu0 %6030  ;;  %v14607_v36 = vld [vmem:[#allocation32_spill] sm:$0xff] }
 0x745   : > { %6098 = vst.msk [vmem:[#allocation7 + $0x70] sm:$0xf] %vm1264_vm9, %v6031_v37  ;;  %6382 = vrot.lane.b32.xlu1 %v12758_v32, %s8880_s22  ;;  %6384 = vrot.lane.b32.xlu0 %v12728_v28, %s8880_s22 }
 0x747   : > { %v6033_v25 = vpop.permute.xlu1 %6032 }
 0x748   : > { %6099 = vst.msk [vmem:[#allocation7 + $0x74] sm:$0xf] %vm1264_vm9, %v6033_v25 }
 0x749   : > { %6386 = vrot.lane.b32.xlu1 %v12753_v42, %s8880_s22  ;;  %6388 = vrot.lane.b32.xlu0 %v12800_v35, %s8880_s22 }
 0x74d   : > { %6390 = vrot.lane.b32.xlu1 %v12820_v3, %s8880_s22  ;;  %6392 = vrot.lane.b32.xlu0 %v14599_v26, %s8880_s22 }
 0x74f   : > { %v6035_v61 = vpop.permute.xlu0 %6034 }
 0x750   : > { %6100 = vst.msk [vmem:[#allocation7 + $0x78] sm:$0xf] %vm1264_vm9, %v6035_v61  ;;  %v14608_v61 = vld [vmem:[#allocation49_spill] sm:$0xff] }
 0x751   : > { %6394 = vrot.lane.b32.xlu1 %v12815_v8, %s8880_s22  ;;  %6396 = vrot.lane.b32.xlu0 %v14603_v57, %s8880_s22 }
 0x753   : > { %v6037_v56 = vpop.permute.xlu1 %6036  ;;  %v6215_v21 = vpop.permute.xlu0 %6214 }
 0x754   : > { %6101 = vst.msk [vmem:[#allocation7 + $0x7c] sm:$0xf] %vm1264_vm9, %v6037_v56  ;;  %vm14623_vm9 = vmmov %vm14621_vm8 }
 0x755   : > { %6310 = vst.msk [vmem:[#allocation7] sm:$0xf] %vm1508_vm10, %v6215_v21  ;;  %6398 = vrot.lane.b32.xlu1 %v14601_v10, %s8880_s22  ;;  %6504 = vrot.lane.b32.xlu0 %v14605_v1, %s8881_s23 }
 0x757   : > { %v6217_v22 = vpop.permute.xlu1 %6216  ;;  %v6219_v0 = vpop.permute.xlu0 %6218 }
 0x758   : > { %6311 = vst.msk [vmem:[#allocation7 + $0x4] sm:$0xf] %vm1508_vm10, %v6217_v22  ;;  %6312 = vst.msk [vmem:[#allocation7 + $0x8] sm:$0xf] %vm1508_vm10, %v6219_v0 }
 0x759   : > { %6506 = vrot.lane.b32.xlu1 %v14606_v38, %s8881_s23  ;;  %6508 = vrot.lane.b32.xlu0 %v14607_v36, %s8881_s23 }
 0x75b   : > { %v6221_v37 = vpop.permute.xlu1 %6220  ;;  %v6223_v25 = vpop.permute.xlu0 %6222 }
 0x75c   : > { %6313 = vst.msk [vmem:[#allocation7 + $0xc] sm:$0xf] %vm1508_vm10, %v6221_v37  ;;  %6314 = vst.msk [vmem:[#allocation7 + $0x10] sm:$0xf] %vm1508_vm10, %v6223_v25 }
 0x75d   : > { %6510 = vrot.lane.b32.xlu1 %v14608_v61, %s8881_s23  ;;  %6639 = vrot.lane.b32.xlu0 %v12967_v34, %s8882_s24 }
 0x75f   : > { %v6225_v56 = vpop.permute.xlu1 %6224  ;;  %v6227_v21 = vpop.permute.xlu0 %6226 }
 0x760   : > { %6315 = vst.msk [vmem:[#allocation7 + $0x14] sm:$0xf] %vm1508_vm10, %v6225_v56  ;;  %6316 = vst.msk [vmem:[#allocation7 + $0x18] sm:$0xf] %vm1508_vm10, %v6227_v21  ;;  %v14610_v21 = vld [vmem:[#allocation51_spill] sm:$0xff] }
 0x761   : > { %6641 = vrot.lane.b32.xlu1 %v12979_v63, %s8882_s24  ;;  %6643 = vrot.lane.b32.xlu0 %v12983_v16, %s8882_s24 }
 0x763   : > { %v6229_v1 = vpop.permute.xlu1 %6228  ;;  %v6231_v22 = vpop.permute.xlu0 %6230 }
 0x764   : > { %6317 = vst.msk [vmem:[#allocation7 + $0x1c] sm:$0xf] %vm1508_vm10, %v6229_v1  ;;  %6318 = vst.msk [vmem:[#allocation7 + $0x20] sm:$0xf] %vm1508_vm10, %v6231_v22 }
 0x765   : > { %6645 = vrot.lane.b32.xlu1 %v12996_v55, %s8882_s24  ;;  %6773 = vrot.lane.b32.xlu0 %v12493_v27, %s8883_s25  ;;  %v8850_v27 = vld [vmem:[%s14031_s6 + $0x10] ss:$0 sps:$4 sm:$0x33]  }
 0x766   : > { %8793 = vmatprep.subr.msk.bf16.mxu0 %vm2585_vm15, %v8850_v27 }
 0x767   : > { %v6233_v34 = vpop.permute.xlu1 %6232  ;;  %v6235_v0 = vpop.permute.xlu0 %6234 }
 0x768   : > { %6319 = vst.msk [vmem:[#allocation7 + $0x24] sm:$0xf] %vm1508_vm10, %v6233_v34  ;;  %6320 = vst.msk [vmem:[#allocation7 + $0x28] sm:$0xf] %vm1508_vm10, %v6235_v0 }
 0x769   : > { %6775 = vrot.lane.b32.xlu1 %v12508_v49, %s8883_s25  ;;  %6777 = vrot.lane.b32.xlu0 %v12540_v31, %s8883_s25  ;;  %v7380_v31 = vsel %vm2585_vm15, %v8850_v27, 0  ;;  %vm14626_vm15 = vmmov %vm14621_vm8 }
 0x76a   : > { %8712 = vmatpush3.bf16.msra.mxu0 %v7380_v31 }
 0x76b   : > { %v6237_v63 = vpop.permute.xlu1 %6236  ;;  %v6239_v38 = vpop.permute.xlu0 %6238 }
 0x76c   : > { %6321 = vst.msk [vmem:[#allocation7 + $0x2c] sm:$0xf] %vm1508_vm10, %v6237_v63  ;;  %6322 = vst.msk [vmem:[#allocation7 + $0x30] sm:$0xf] %vm1508_vm10, %v6239_v38 }
 0x76d   : > { %6779 = vrot.lane.b32.xlu1 %v12566_v59, %s8883_s25  ;;  %6929 = vrot.lane.b32.xlu0 %v14607_v36, %s8884_s26  ;;  %v14609_v59 = vld [vmem:[#allocation50_spill] sm:$0xff]  ;;  %v8851_v36 = vld [vmem:[%s14031_s6 + $0x8] sm:$0xff]  }
 0x76e   : > { %8713 = vmatprep.subr.bf16.mxu0 %v8851_v36 }
 0x76f   : > { %v6241_v49 = vpop.permute.xlu1 %6240  ;;  %v6243_v37 = vpop.permute.xlu0 %6242  ;;  %8714 = vmatpush3.bf16.msra.mxu0 %v8851_v36 }
 0x770   : > { %6323 = vst.msk [vmem:[#allocation7 + $0x34] sm:$0xf] %vm1508_vm10, %v6241_v49  ;;  %6324 = vst.msk [vmem:[#allocation7 + $0x38] sm:$0xf] %vm1508_vm10, %v6243_v37  ;;  %v14612_v49 = vld [vmem:[#allocation35_spill] sm:$0xff] }
 0x771   : > { %6931 = vrot.lane.b32.xlu1 %v14608_v61, %s8884_s26  ;;  %6933 = vrot.lane.b32.xlu0 %v14609_v59, %s8884_s26  ;;  %v8852_v61 = vld [vmem:[%s14031_s6] sm:$0xff]  }
 0x772   : > { %8715 = vmatprep.subr.bf16.mxu0 %v8852_v61 }
 0x773   : > { %v6245_v25 = vpop.permute.xlu1 %6244  ;;  %v6247_v56 = vpop.permute.xlu0 %6246  ;;  %8716 = vmatpush3.bf16.msra.mxu0 %v8852_v61 }
 0x774   : > { %6325 = vst.msk [vmem:[#allocation7 + $0x3c] sm:$0xf] %vm1508_vm10, %v6245_v25  ;;  %6326 = vst.msk [vmem:[#allocation7 + $0x40] sm:$0xf] %vm1508_vm10, %v6247_v56 }
 0x775   : > { %6935 = vrot.lane.b32.xlu1 %v14610_v21, %s8884_s26  ;;  %7064 = vrot.lane.b32.xlu0 %v12983_v16, %s8885_s14 }
 0x777   : > { %v6249_v1 = vpop.permute.xlu1 %6248  ;;  %v6251_v22 = vpop.permute.xlu0 %6250 }
 0x778   : > { %6327 = vst.msk [vmem:[#allocation7 + $0x44] sm:$0xf] %vm1508_vm10, %v6249_v1  ;;  %6328 = vst.msk [vmem:[#allocation7 + $0x48] sm:$0xf] %vm1508_vm10, %v6251_v22 }
 0x779   : > { %7066 = vrot.lane.b32.xlu1 %v12996_v55, %s8885_s14  ;;  %7068 = vrot.lane.b32.xlu0 %v13000_v62, %s8885_s14  ;;  %v14611_v55 = vld [vmem:[#allocation53_spill] sm:$0xff] }
 0x77b   : > { %v6253_v34 = vpop.permute.xlu1 %6252  ;;  %v6255_v16 = vpop.permute.xlu0 %6254 }
 0x77c   : > { %6329 = vst.msk [vmem:[#allocation7 + $0x4c] sm:$0xf] %vm1508_vm10, %v6253_v34  ;;  %6330 = vst.msk [vmem:[#allocation7 + $0x50] sm:$0xf] %vm1508_vm10, %v6255_v16 }
 0x77d   : > { %7070 = vrot.lane.b32.xlu1 %v13011_v20, %s8885_s14  ;;  %6512 = vrot.lane.b32.xlu0 %v14609_v59, %s8881_s23 }
 0x77f   : > { %v6257_v0 = vpop.permute.xlu1 %6256  ;;  %v6259_v63 = vpop.permute.xlu0 %6258 }
 0x780   : > { %6331 = vst.msk [vmem:[#allocation7 + $0x54] sm:$0xf] %vm1508_vm10, %v6257_v0  ;;  %6332 = vst.msk [vmem:[#allocation7 + $0x58] sm:$0xf] %vm1508_vm10, %v6259_v63 }
 0x781   : > { %6514 = vrot.lane.b32.xlu1 %v14610_v21, %s8881_s23  ;;  %6516 = vrot.lane.b32.xlu0 %v14611_v55, %s8881_s23 }
 0x783   : > { %v6261_v38 = vpop.permute.xlu1 %6260  ;;  %v6263_v27 = vpop.permute.xlu0 %6262 }
 0x784   : > { %6333 = vst.msk [vmem:[#allocation7 + $0x5c] sm:$0xf] %vm1508_vm10, %v6261_v38  ;;  %6334 = vst.msk [vmem:[#allocation7 + $0x60] sm:$0xf] %vm1508_vm10, %v6263_v27  ;;  %v14616_v38 = vld [vmem:[#allocation16_spill] sm:$0xff] }
 0x785   : > { %6518 = vrot.lane.b32.xlu1 %v14612_v49, %s8881_s23  ;;  %6647 = vrot.lane.b32.xlu0 %v13000_v62, %s8882_s24 }
 0x787   : > { %v6265_v37 = vpop.permute.xlu1 %6264  ;;  %v6267_v31 = vpop.permute.xlu0 %6266 }
 0x788   : > { %6335 = vst.msk [vmem:[#allocation7 + $0x64] sm:$0xf] %vm1508_vm10, %v6265_v37  ;;  %6336 = vst.msk [vmem:[#allocation7 + $0x68] sm:$0xf] %vm1508_vm10, %v6267_v31 }
 0x789   : > { %6649 = vrot.lane.b32.xlu1 %v13011_v20, %s8882_s24  ;;  %6651 = vrot.lane.b32.xlu0 %v13015_v48, %s8882_s24 }
 0x78b   : > { %v6269_v59 = vpop.permute.xlu1 %6268  ;;  %v6271_v36 = vpop.permute.xlu0 %6270 }
 0x78c   : > { %6337 = vst.msk [vmem:[#allocation7 + $0x6c] sm:$0xf] %vm1508_vm10, %v6269_v59  ;;  %6338 = vst.msk [vmem:[#allocation7 + $0x70] sm:$0xf] %vm1508_vm10, %v6271_v36 }
 0x78d   : > { %6653 = vrot.lane.b32.xlu1 %v13028_v45, %s8882_s24  ;;  %6781 = vrot.lane.b32.xlu0 %v12532_v12, %s8883_s25 }
 0x78f   : > { %v6273_v62 = vpop.permute.xlu1 %6272  ;;  %v6275_v25 = vpop.permute.xlu0 %6274 }
 0x790   : > { %6339 = vst.msk [vmem:[#allocation7 + $0x74] sm:$0xf] %vm1508_vm10, %v6273_v62  ;;  %6340 = vst.msk [vmem:[#allocation7 + $0x78] sm:$0xf] %vm1508_vm10, %v6275_v25 }
 0x791   : > { %6783 = vrot.lane.b32.xlu1 %v12561_v60, %s8883_s25  ;;  %6785 = vrot.lane.b32.xlu0 %v12614_v46, %s8883_s25  ;;  %v14613_v60 = vld [vmem:[#allocation54_spill] sm:$0xff] }
 0x793   : > { %v6277_v20 = vpop.permute.xlu1 %6276  ;;  %v6349_v56 = vpop.permute.xlu0 %6348 }
 0x794   : > { %6341 = vst.msk [vmem:[#allocation7 + $0x7c] sm:$0xf] %vm1508_vm10, %v6277_v20  ;;  %vm14624_vm10 = vmmov %vm14621_vm8 }
 0x795   : > { %6444 = vst.msk [vmem:[#allocation7] sm:$0xf] %vm1643_vm11, %v6349_v56  ;;  %6787 = vrot.lane.b32.xlu1 %v12634_v58, %s8883_s25  ;;  %6937 = vrot.lane.b32.xlu0 %v14611_v55, %s8884_s26  ;;  %v14614_v58 = vld [vmem:[#allocation40_spill] sm:$0xff] }
 0x797   : > { %v6351_v12 = vpop.permute.xlu1 %6350  ;;  %v6353_v21 = vpop.permute.xlu0 %6352 }
 0x798   : > { %6445 = vst.msk [vmem:[#allocation7 + $0x4] sm:$0xf] %vm1643_vm11, %v6351_v12  ;;  %6446 = vst.msk [vmem:[#allocation7 + $0x8] sm:$0xf] %vm1643_vm11, %v6353_v21 }
 0x799   : > { %6939 = vrot.lane.b32.xlu1 %v14612_v49, %s8884_s26  ;;  %6941 = vrot.lane.b32.xlu0 %v14613_v60, %s8884_s26 }
 0x79b   : > { %v6355_v46 = vpop.permute.xlu1 %6354  ;;  %v6357_v61 = vpop.permute.xlu0 %6356 }
 0x79c   : > { %6447 = vst.msk [vmem:[#allocation7 + $0xc] sm:$0xf] %vm1643_vm11, %v6355_v46  ;;  %6448 = vst.msk [vmem:[#allocation7 + $0x10] sm:$0xf] %vm1643_vm11, %v6357_v61 }
 0x79d   : > { %6943 = vrot.lane.b32.xlu1 %v14614_v58, %s8884_s26  ;;  %7072 = vrot.lane.b32.xlu0 %v13015_v48, %s8885_s14 }
 0x79f   : > { %v6359_v1 = vpop.permute.xlu1 %6358  ;;  %v6361_v22 = vpop.permute.xlu0 %6360 }
 0x7a0   : > { %6449 = vst.msk [vmem:[#allocation7 + $0x14] sm:$0xf] %vm1643_vm11, %v6359_v1  ;;  %6450 = vst.msk [vmem:[#allocation7 + $0x18] sm:$0xf] %vm1643_vm11, %v6361_v22 }
 0x7a1   : > { %7074 = vrot.lane.b32.xlu1 %v13028_v45, %s8885_s14  ;;  %7076 = vrot.lane.b32.xlu0 %v13032_v17, %s8885_s14  ;;  %v14615_v45 = vld [vmem:[#allocation12_spill] sm:$0xff] }
 0x7a3   : > { %v6363_v34 = vpop.permute.xlu1 %6362  ;;  %v6365_v16 = vpop.permute.xlu0 %6364 }
 0x7a4   : > { %6451 = vst.msk [vmem:[#allocation7 + $0x1c] sm:$0xf] %vm1643_vm11, %v6363_v34  ;;  %6452 = vst.msk [vmem:[#allocation7 + $0x20] sm:$0xf] %vm1643_vm11, %v6365_v16 }
 0x7a5   : > { %7078 = vrot.lane.b32.xlu1 %v13045_v44, %s8885_s14  ;;  %6520 = vrot.lane.b32.xlu0 %v14613_v60, %s8881_s23 }
 0x7a7   : > { %v6367_v48 = vpop.permute.xlu1 %6366  ;;  %v6369_v0 = vpop.permute.xlu0 %6368 }
 0x7a8   : > { %6453 = vst.msk [vmem:[#allocation7 + $0x24] sm:$0xf] %vm1643_vm11, %v6367_v48  ;;  %6454 = vst.msk [vmem:[#allocation7 + $0x28] sm:$0xf] %vm1643_vm11, %v6369_v0 }
 0x7a9   : > { %6522 = vrot.lane.b32.xlu1 %v14614_v58, %s8881_s23  ;;  %6524 = vrot.lane.b32.xlu0 %v14615_v45, %s8881_s23  ;;  %v14620_v58 = vld [vmem:[#allocation21_spill] sm:$0xff] }
 0x7ab   : > { %v6371_v63 = vpop.permute.xlu1 %6370  ;;  %v6373_v55 = vpop.permute.xlu0 %6372 }
 0x7ac   : > { %6455 = vst.msk [vmem:[#allocation7 + $0x2c] sm:$0xf] %vm1643_vm11, %v6371_v63  ;;  %6456 = vst.msk [vmem:[#allocation7 + $0x30] sm:$0xf] %vm1643_vm11, %v6373_v55 }
 0x7ad   : > { %6526 = vrot.lane.b32.xlu1 %v14616_v38, %s8881_s23  ;;  %6655 = vrot.lane.b32.xlu0 %v13032_v17, %s8882_s24 }
 0x7af   : > { %v6375_v27 = vpop.permute.xlu1 %6374  ;;  %v6377_v49 = vpop.permute.xlu0 %6376 }
 0x7b0   : > { %6457 = vst.msk [vmem:[#allocation7 + $0x34] sm:$0xf] %vm1643_vm11, %v6375_v27  ;;  %6458 = vst.msk [vmem:[#allocation7 + $0x38] sm:$0xf] %vm1643_vm11, %v6377_v49 }
 0x7b1   : > { %6657 = vrot.lane.b32.xlu1 %v13045_v44, %s8882_s24  ;;  %6659 = vrot.lane.b32.xlu0 %v13049_v7, %s8882_s24 }
 0x7b3   : > { %v6379_v37 = vpop.permute.xlu1 %6378  ;;  %v6381_v31 = vpop.permute.xlu0 %6380 }
 0x7b4   : > { %6459 = vst.msk [vmem:[#allocation7 + $0x3c] sm:$0xf] %vm1643_vm11, %v6379_v37  ;;  %6460 = vst.msk [vmem:[#allocation7 + $0x40] sm:$0xf] %vm1643_vm11, %v6381_v31 }
 0x7b5   : > { %6661 = vrot.lane.b32.xlu1 %v13060_v33, %s8882_s24  ;;  %6789 = vrot.lane.b32.xlu0 %v12604_v13, %s8883_s25 }
 0x7b7   : > { %v6383_v17 = vpop.permute.xlu1 %6382  ;;  %v6385_v59 = vpop.permute.xlu0 %6384 }
 0x7b8   : > { %6461 = vst.msk [vmem:[#allocation7 + $0x44] sm:$0xf] %vm1643_vm11, %v6383_v17  ;;  %6462 = vst.msk [vmem:[#allocation7 + $0x48] sm:$0xf] %vm1643_vm11, %v6385_v59  ;;  %v14628_v17 = vld [vmem:[#allocation9_spill] sm:$0xff] }
 0x7b9   : > { %6791 = vrot.lane.b32.xlu1 %v12631_v39, %s8883_s25  ;;  %6793 = vrot.lane.b32.xlu0 %v12676_v5, %s8883_s25  ;;  %v14617_v39 = vld [vmem:[#allocation13_spill] sm:$0xff] }
 0x7bb   : > { %v6387_v44 = vpop.permute.xlu1 %6386  ;;  %v6389_v36 = vpop.permute.xlu0 %6388 }
 0x7bc   : > { %6463 = vst.msk [vmem:[#allocation7 + $0x4c] sm:$0xf] %vm1643_vm11, %v6387_v44  ;;  %6464 = vst.msk [vmem:[#allocation7 + $0x50] sm:$0xf] %vm1643_vm11, %v6389_v36  ;;  %v14630_v36 = vld [vmem:[#allocation44_spill] sm:$0xff] }
 0x7bd   : > { %6795 = vrot.lane.b32.xlu1 %v12696_v6, %s8883_s25  ;;  %6945 = vrot.lane.b32.xlu0 %v14615_v45, %s8884_s26  ;;  %v14618_v6 = vld [vmem:[#allocation17_spill] sm:$0xff] }
 0x7bf   : > { %v6391_v13 = vpop.permute.xlu1 %6390  ;;  %v6393_v62 = vpop.permute.xlu0 %6392 }
 0x7c0   : > { %6465 = vst.msk [vmem:[#allocation7 + $0x54] sm:$0xf] %vm1643_vm11, %v6391_v13  ;;  %6466 = vst.msk [vmem:[#allocation7 + $0x58] sm:$0xf] %vm1643_vm11, %v6393_v62 }
 0x7c1   : > { %6947 = vrot.lane.b32.xlu1 %v14616_v38, %s8884_s26  ;;  %6949 = vrot.lane.b32.xlu0 %v14617_v39, %s8884_s26 }
 0x7c3   : > { %v6395_v5 = vpop.permute.xlu1 %6394  ;;  %v6397_v25 = vpop.permute.xlu0 %6396 }
 0x7c4   : > { %6467 = vst.msk [vmem:[#allocation7 + $0x5c] sm:$0xf] %vm1643_vm11, %v6395_v5  ;;  %6468 = vst.msk [vmem:[#allocation7 + $0x60] sm:$0xf] %vm1643_vm11, %v6397_v25 }
 0x7c5   : > { %6951 = vrot.lane.b32.xlu1 %v14618_v6, %s8884_s26  ;;  %7080 = vrot.lane.b32.xlu0 %v13049_v7, %s8885_s14 }
 0x7c7   : > { %v6399_v20 = vpop.permute.xlu1 %6398  ;;  %v6505_v56 = vpop.permute.xlu0 %6504 }
 0x7c8   : > { %6469 = vst.msk [vmem:[#allocation7 + $0x64] sm:$0xf] %vm1643_vm11, %v6399_v20 }
 0x7c9   : > { %6600 = vst.msk [vmem:[#allocation7] sm:$0xf] %vm1800_vm12, %v6505_v56  ;;  %7082 = vrot.lane.b32.xlu1 %v13060_v33, %s8885_s14  ;;  %7084 = vrot.lane.b32.xlu0 %v13064_v4, %s8885_s14  ;;  %v14619_v33 = vld [vmem:[#allocation19_spill] sm:$0xff] }
 0x7cb   : > { %v6507_v12 = vpop.permute.xlu1 %6506  ;;  %v6509_v21 = vpop.permute.xlu0 %6508 }
 0x7cc   : > { %6601 = vst.msk [vmem:[#allocation7 + $0x4] sm:$0xf] %vm1800_vm12, %v6507_v12  ;;  %6602 = vst.msk [vmem:[#allocation7 + $0x8] sm:$0xf] %vm1800_vm12, %v6509_v21 }
 0x7cd   : > { %7086 = vrot.lane.b32.xlu1 %v13075_v30, %s8885_s14  ;;  %6528 = vrot.lane.b32.xlu0 %v14617_v39, %s8881_s23 }
 0x7cf   : > { %v6511_v7 = vpop.permute.xlu1 %6510  ;;  %v6640_v60 = vpop.permute.xlu0 %6639 }
 0x7d0   : > { %6603 = vst.msk [vmem:[#allocation7 + $0xc] sm:$0xf] %vm1800_vm12, %v6511_v7 }
 0x7d1   : > { %6735 = vst.msk [vmem:[#allocation7] sm:$0xf] %vm1936_vm13, %v6640_v60  ;;  %6530 = vrot.lane.b32.xlu1 %v14618_v6, %s8881_s23  ;;  %6532 = vrot.lane.b32.xlu0 %v14619_v33, %s8881_s23  ;;  %v14638_v60 = vld [vmem:[#allocation22_spill] sm:$0xff] }
 0x7d3   : > { %v6642_v46 = vpop.permute.xlu1 %6641  ;;  %v6644_v61 = vpop.permute.xlu0 %6643 }
 0x7d4   : > { %6736 = vst.msk [vmem:[#allocation7 + $0x4] sm:$0xf] %vm1936_vm13, %v6642_v46  ;;  %6737 = vst.msk [vmem:[#allocation7 + $0x8] sm:$0xf] %vm1936_vm13, %v6644_v61 }
 0x7d5   : > { %6534 = vrot.lane.b32.xlu1 %v14620_v58, %s8881_s23  ;;  %6663 = vrot.lane.b32.xlu0 %v13064_v4, %s8882_s24 }
 0x7d7   : > { %v6646_v1 = vpop.permute.xlu1 %6645  ;;  %v6774_v22 = vpop.permute.xlu0 %6773 }
 0x7d8   : > { %6738 = vst.msk [vmem:[#allocation7 + $0xc] sm:$0xf] %vm1936_vm13, %v6646_v1 }
 0x7d9   : > { %6869 = vst.msk [vmem:[#allocation7] sm:$0xf] %vm2071_vm14, %v6774_v22  ;;  %6665 = vrot.lane.b32.xlu1 %v13075_v30, %s8882_s24  ;;  %6667 = vrot.lane.b32.xlu0 %v13079_v47, %s8882_s24 }
 0x7db   : > { %v6776_v34 = vpop.permute.xlu1 %6775  ;;  %v6778_v16 = vpop.permute.xlu0 %6777 }
 0x7dc   : > { %6870 = vst.msk [vmem:[#allocation7 + $0x4] sm:$0xf] %vm2071_vm14, %v6776_v34  ;;  %6871 = vst.msk [vmem:[#allocation7 + $0x8] sm:$0xf] %vm2071_vm14, %v6778_v16  ;;  %v14641_v34 = vld [vmem:[#allocation52_spill] sm:$0xff] }
 0x7dd   : > { %6669 = vrot.lane.b32.xlu1 %v13092_v2, %s8882_s24  ;;  %6797 = vrot.lane.b32.xlu0 %v12666_v53, %s8883_s25 }
 0x7df   : > { %v6780_v4 = vpop.permute.xlu1 %6779  ;;  %v6930_v48 = vpop.permute.xlu0 %6929 }
 0x7e0   : > { %6872 = vst.msk [vmem:[#allocation7 + $0xc] sm:$0xf] %vm2071_vm14, %v6780_v4 }
 0x7e1   : > { %7025 = vst.msk [vmem:[#allocation7] sm:$0xf] %vm2228_vm1, %v6930_v48  ;;  %6799 = vrot.lane.b32.xlu1 %v12691_v54, %s8883_s25  ;;  %6801 = vrot.lane.b32.xlu0 %v12738_v43, %s8883_s25  ;;  %v14622_v54 = vld [vmem:[#allocation23_spill] sm:$0xff] }
 0x7e2   : > { %v14643_v48 = vld [vmem:[#allocation31_spill] sm:$0xff] }
 0x7e3   : > { %v6932_v30 = vpop.permute.xlu1 %6931  ;;  %v6934_v0 = vpop.permute.xlu0 %6933 }
 0x7e4   : > { %7026 = vst.msk [vmem:[#allocation7 + $0x4] sm:$0xf] %vm2228_vm1, %v6932_v30  ;;  %7027 = vst.msk [vmem:[#allocation7 + $0x8] sm:$0xf] %vm2228_vm1, %v6934_v0 }
 0x7e5   : > { %6803 = vrot.lane.b32.xlu1 %v12758_v32, %s8883_s25  ;;  %6953 = vrot.lane.b32.xlu0 %v14619_v33, %s8884_s26  ;;  %v14625_v32 = vld [vmem:[#allocation26_spill] sm:$0xff] }
 0x7e7   : > { %v6936_v53 = vpop.permute.xlu1 %6935  ;;  %v7065_v45 = vpop.permute.xlu0 %7064 }
 0x7e8   : > { %7028 = vst.msk [vmem:[#allocation7 + $0xc] sm:$0xf] %vm2228_vm1, %v6936_v53 }
 0x7e9   : > { %7160 = vst.msk [vmem:[#allocation7] sm:$0xf] %vm14621_vm8, %v7065_v45  ;;  %6955 = vrot.lane.b32.xlu1 %v14620_v58, %s8884_s26  ;;  %6957 = vrot.lane.b32.xlu0 %v14622_v54, %s8884_s26  ;;  %vm14635_vm8 = vmmov %vm14634_vm3 }
 0x7eb   : > { %v7067_v43 = vpop.permute.xlu1 %7066  ;;  %v7069_v63 = vpop.permute.xlu0 %7068 }
 0x7ec   : > { %7161 = vst.msk [vmem:[#allocation7 + $0x4] sm:$0xf] %vm14623_vm9, %v7067_v43  ;;  %vm14637_vm9 = vmmov %vm14634_vm3 }
 0x7ed   : > { %7162 = vst.msk [vmem:[#allocation7 + $0x8] sm:$0xf] %vm14624_vm10, %v7069_v63  ;;  %6959 = vrot.lane.b32.xlu1 %v14625_v32, %s8884_s26  ;;  %7088 = vrot.lane.b32.xlu0 %v13079_v47, %s8885_s14  ;;  %vm14640_vm10 = vmmov %vm14627_vm2 }
 0x7ef   : > { %v7071_v55 = vpop.permute.xlu1 %7070  ;;  %v6513_v38 = vpop.permute.xlu0 %6512 }
 0x7f0   : > { %7163 = vst.msk [vmem:[#allocation7 + $0xc] sm:$0xf] %vm14626_vm15, %v7071_v55  ;;  %vm14642_vm15 = vmmov %vm14627_vm2 }
 0x7f1   : > { %6604 = vst.msk [vmem:[#allocation7 + $0x10] sm:$0xf] %vm1800_vm12, %v6513_v38  ;;  %7090 = vrot.lane.b32.xlu1 %v13092_v2, %s8885_s14  ;;  %7092 = vrot.lane.b32.xlu0 %v13096_v18, %s8885_s14 }
 0x7f3   : > { %v6515_v27 = vpop.permute.xlu1 %6514  ;;  %v6517_v49 = vpop.permute.xlu0 %6516  ;;  %v8853_v37 = vld [vmem:[#allocation7] sm:$0xff]  }
 0x7f4   : > { %6605 = vst.msk [vmem:[#allocation7 + $0x14] sm:$0xf] %vm1800_vm12, %v6515_v27  ;;  %6606 = vst.msk [vmem:[#allocation7 + $0x18] sm:$0xf] %vm1800_vm12, %v6517_v49  ;;  %8717 = vmatprep.mubr.msk.bf16.mxu0 %vm14627_vm2, %v8853_v37 }
 0x7f5   : > { %7094 = vrot.lane.b32.xlu1 %v13109_v51, %s8885_s14  ;;  %6536 = vrot.lane.b32.xlu0 %v14622_v54, %s8881_s23  ;;  %vm14644_vm2 = vmmov %vm14634_vm3 }
 0x7f7   : > { %v6519_v47 = vpop.permute.xlu1 %6518  ;;  %v6648_v2 = vpop.permute.xlu0 %6647  ;;  %v8854_v31 = vld [vmem:[#allocation7 + $0x8] sm:$0xff]  }
 0x7f8   : > { %6607 = vst.msk [vmem:[#allocation7 + $0x1c] sm:$0xf] %vm1800_vm12, %v6519_v47  ;;  %8718 = vmatmul.mubr.msk.bf16.vlgmr.msra.gmra.mxu0 %vm14629_vm6, %v8854_v31  ;;  %vm14646_vm6 = vmmov %vm14644_vm2 }
 0x7f9   : > { %6739 = vst.msk [vmem:[#allocation7 + $0x10] sm:$0xf] %vm1936_vm13, %v6648_v2  ;;  %6538 = vrot.lane.b32.xlu1 %v14625_v32, %s8881_s23  ;;  %6540 = vrot.lane.b32.xlu0 %v14628_v17, %s8881_s23 }
 0x7fb   : > { %v6650_v59 = vpop.permute.xlu1 %6649  ;;  %v6652_v44 = vpop.permute.xlu0 %6651 }
 0x7fc   : > { %6740 = vst.msk [vmem:[#allocation7 + $0x14] sm:$0xf] %vm1936_vm13, %v6650_v59  ;;  %6741 = vst.msk [vmem:[#allocation7 + $0x18] sm:$0xf] %vm1936_vm13, %v6652_v44 }
 0x7fd   : > { %6542 = vrot.lane.b32.xlu1 %v14630_v36, %s8881_s23  ;;  %6671 = vrot.lane.b32.xlu0 %v13096_v18, %s8882_s24  ;;  %v14631_v18 = vld [vmem:[#allocation20_spill] sm:$0xff] }
 0x7ff   : > { %v6654_v13 = vpop.permute.xlu1 %6653  ;;  %v6782_v62 = vpop.permute.xlu0 %6781 }
 0x800   : > { %6742 = vst.msk [vmem:[#allocation7 + $0x1c] sm:$0xf] %vm1936_vm13, %v6654_v13 }
 0x801   : > { %6873 = vst.msk [vmem:[#allocation7 + $0x10] sm:$0xf] %vm2071_vm14, %v6782_v62  ;;  %6673 = vrot.lane.b32.xlu1 %v13109_v51, %s8882_s24  ;;  %6675 = vrot.lane.b32.xlu0 %v13113_v15, %s8882_s24 }
 0x803   : > { %v6784_v39 = vpop.permute.xlu1 %6783  ;;  %v6786_v5 = vpop.permute.xlu0 %6785 }
 0x804   : > { %6874 = vst.msk [vmem:[#allocation7 + $0x14] sm:$0xf] %vm2071_vm14, %v6784_v39  ;;  %6875 = vst.msk [vmem:[#allocation7 + $0x18] sm:$0xf] %vm2071_vm14, %v6786_v5  ;;  %v14654_v39 = vld [vmem:[#allocation11_spill] sm:$0xff] }
 0x805   : > { %6677 = vrot.lane.b32.xlu1 %v14631_v18, %s8882_s24  ;;  %6805 = vrot.lane.b32.xlu0 %v12728_v28, %s8883_s25 }
 0x807   : > { %v6788_v25 = vpop.permute.xlu1 %6787  ;;  %v6938_v6 = vpop.permute.xlu0 %6937 }
 0x808   : > { %6876 = vst.msk [vmem:[#allocation7 + $0x1c] sm:$0xf] %vm2071_vm14, %v6788_v25 }
 0x809   : > { %7029 = vst.msk [vmem:[#allocation7 + $0x10] sm:$0xf] %vm2228_vm1, %v6938_v6  ;;  %6807 = vrot.lane.b32.xlu1 %v12753_v42, %s8883_s25  ;;  %6809 = vrot.lane.b32.xlu0 %v12800_v35, %s8883_s25  ;;  %v14633_v42 = vld [vmem:[#allocation47_spill] sm:$0xff] }
 0x80b   : > { %v6940_v51 = vpop.permute.xlu1 %6939  ;;  %v6942_v20 = vpop.permute.xlu0 %6941 }
 0x80c   : > { %7030 = vst.msk [vmem:[#allocation7 + $0x14] sm:$0xf] %vm2228_vm1, %v6940_v51  ;;  %7031 = vst.msk [vmem:[#allocation7 + $0x18] sm:$0xf] %vm2228_vm1, %v6942_v20 }
 0x80d   : > { %6811 = vrot.lane.b32.xlu1 %v12820_v3, %s8883_s25  ;;  %6961 = vrot.lane.b32.xlu0 %v14628_v17, %s8884_s26  ;;  %v14636_v3 = vld [vmem:[#allocation48_spill] sm:$0xff]  ;;  %v14651_v17 = vld [vmem:[#allocation33_spill] sm:$0xff] }
 0x80f   : > { %v6944_v28 = vpop.permute.xlu1 %6943  ;;  %v7073_v56 = vpop.permute.xlu0 %7072 }
 0x810   : > { %7032 = vst.msk [vmem:[#allocation7 + $0x1c] sm:$0xf] %vm2228_vm1, %v6944_v28 }
 0x811   : > { %7164 = vst.msk [vmem:[#allocation7 + $0x10] sm:$0xf] %vm14632_vm5, %v7073_v56  ;;  %6963 = vrot.lane.b32.xlu1 %v14630_v36, %s8884_s26  ;;  %6965 = vrot.lane.b32.xlu0 %v14633_v42, %s8884_s26  ;;  %vm14647_vm5 = vmmov %vm14644_vm2  ;;  %v14653_v36 = vld [vmem:[#allocation43_spill] sm:$0xff] }
 0x813   : > { %v7075_v35 = vpop.permute.xlu1 %7074  ;;  %v7077_v12 = vpop.permute.xlu0 %7076 }
 0x814   : > { %7165 = vst.msk [vmem:[#allocation7 + $0x14] sm:$0xf] %vm14634_vm3, %v7075_v35  ;;  %vm14649_vm3 = vmmov %vm14644_vm2  ;;  %v5360_v35 = vld [vmem:[#allocation6 + $0x180] sm:$0xff] }
 0x815   : > { %7166 = vst.msk [vmem:[#allocation7 + $0x18] sm:$0xf] %vm14635_vm8, %v7077_v12  ;;  %6967 = vrot.lane.b32.xlu1 %v14636_v3, %s8884_s26  ;;  %7096 = vrot.lane.b32.xlu0 %v13113_v15, %s8885_s14  ;;  %v14639_v15 = vld [vmem:[#allocation24_spill] sm:$0xff]  ;;  %vm14650_vm8 = vmmov %vm14640_vm10 }
 0x817   : > { %v7079_v21 = vpop.permute.xlu1 %7078  ;;  %v6521_v7 = vpop.permute.xlu0 %6520 }
 0x818   : > { %7167 = vst.msk [vmem:[#allocation7 + $0x1c] sm:$0xf] %vm14637_vm9, %v7079_v21  ;;  %vm14652_vm9 = vmmov %vm14650_vm8  ;;  %v13701_v21 = vpack.c.bf16 %v5360_v35, %v5360_v35 }
 0x819   : > { %6608 = vst.msk [vmem:[#allocation7 + $0x20] sm:$0xf] %vm1800_vm12, %v6521_v7  ;;  %7098 = vrot.lane.b32.xlu1 %v14631_v18, %s8885_s14  ;;  %7100 = vrot.lane.b32.xlu0 %v14638_v60, %s8885_s14  ;;  %v14660_v7 = vld [vmem:[#allocation18_spill] sm:$0xff] }
 0x81b   : > { %v6523_v33 = vpop.permute.xlu1 %6522  ;;  %v6525_v46 = vpop.permute.xlu0 %6524  ;;  %v8855_v61 = vld [vmem:[#allocation7 + $0x10] sm:$0xff]  }
 0x81c   : > { %6609 = vst.msk [vmem:[#allocation7 + $0x24] sm:$0xf] %vm1800_vm12, %v6523_v33  ;;  %6610 = vst.msk [vmem:[#allocation7 + $0x28] sm:$0xf] %vm1800_vm12, %v6525_v46  ;;  %8721 = vmatprep.mubr.msk.bf16.mxu0 %vm14640_vm10, %v8855_v61 }
 0x81d   : > { %7102 = vrot.lane.b32.xlu1 %v14639_v15, %s8885_s14  ;;  %6544 = vrot.lane.b32.xlu0 %v14633_v42, %s8881_s23  ;;  %vm14655_vm10 = vmmov %vm14644_vm2  ;;  %v14658_v42 = vld [vmem:[#allocation15_spill] sm:$0xff] }
 0x81f   : > { %v6527_v58 = vpop.permute.xlu1 %6526  ;;  %v6656_v1 = vpop.permute.xlu0 %6655  ;;  %v8856_v22 = vld [vmem:[#allocation7 + $0x18] sm:$0xff]  }
 0x820   : > { %6611 = vst.msk [vmem:[#allocation7 + $0x2c] sm:$0xf] %vm1800_vm12, %v6527_v58  ;;  %8722 = vmatmul.mubr.msk.bf16.gmra.mxu0 %vm14642_vm15, %v8856_v22  ;;  %vm14657_vm15 = vmmov %vm14644_vm2  ;;  %v6481_v58 = vshrl.u32 %v13701_v21, 16 }
 0x821   : > { %6743 = vst.msk [vmem:[#allocation7 + $0x20] sm:$0xf] %vm1936_vm13, %v6656_v1  ;;  %6546 = vrot.lane.b32.xlu1 %v14636_v3, %s8881_s23  ;;  %6548 = vrot.lane.b32.xlu0 %v14641_v34, %s8881_s23  ;;  %v6484_v1 = vshll.u32 %v13701_v21, 16 }
 0x823   : > { %v6658_v16 = vpop.permute.xlu1 %6657  ;;  %v6660_v4 = vpop.permute.xlu0 %6659 }
 0x824   : > { %6744 = vst.msk [vmem:[#allocation7 + $0x24] sm:$0xf] %vm1936_vm13, %v6658_v16  ;;  %6745 = vst.msk [vmem:[#allocation7 + $0x28] sm:$0xf] %vm1936_vm13, %v6660_v4  ;;  %v6483_v16 = vrot.slane %v6481_v58, 4  ;;  %v6486_v4 = vrot.slane %v6484_v1, 5 }
 0x825   : > { %6550 = vrot.lane.b32.xlu1 %v14643_v48, %s8881_s23  ;;  %6679 = vrot.lane.b32.xlu0 %v14638_v60, %s8882_s24  ;;  %v5361_v60 = vld [vmem:[#allocation6 + $0x188] sm:$0xff] }
 0x827   : > { %v6662_v30 = vpop.permute.xlu1 %6661  ;;  %v6790_v0 = vpop.permute.xlu0 %6789 }
 0x828   : > { %6746 = vst.msk [vmem:[#allocation7 + $0x2c] sm:$0xf] %vm1936_vm13, %v6662_v30 }
 0x829   : > { %6877 = vst.msk [vmem:[#allocation7 + $0x20] sm:$0xf] %vm2071_vm14, %v6790_v0  ;;  %6681 = vrot.lane.b32.xlu1 %v14639_v15, %s8882_s24  ;;  %6683 = vrot.lane.b32.xlu0 %v13143_v24, %s8882_s24  ;;  %v13709_v15 = vpack.c.bf16 %v5361_v60, %v5361_v60 }
 0x82b   : > { %v6792_v53 = vpop.permute.xlu1 %6791  ;;  %v6794_v45 = vpop.permute.xlu0 %6793  ;;  %v6494_v30 = vshrl.u32 %v13709_v15, 16 }
 0x82c   : > { %6878 = vst.msk [vmem:[#allocation7 + $0x24] sm:$0xf] %vm2071_vm14, %v6792_v53  ;;  %6879 = vst.msk [vmem:[#allocation7 + $0x28] sm:$0xf] %vm2071_vm14, %v6794_v45  ;;  %v5362_v53 = vld [vmem:[#allocation6 + $0x190] sm:$0x3]  ;;  %v6487_v45 = vor.u32 %v6486_v4, %v6483_v16 }
 0x82d   : > { %6685 = vrot.lane.b32.xlu1 %v13156_v19, %s8882_s24  ;;  %6813 = vrot.lane.b32.xlu0 %v14599_v26, %s8883_s25 }
 0x82f   : > { %v6796_v54 = vpop.permute.xlu1 %6795  ;;  %v6946_v43 = vpop.permute.xlu0 %6945 }
 0x830   : > { %6880 = vst.msk [vmem:[#allocation7 + $0x2c] sm:$0xf] %vm2071_vm14, %v6796_v54 }
 0x831   : > { %7033 = vst.msk [vmem:[#allocation7 + $0x20] sm:$0xf] %vm2228_vm1, %v6946_v43  ;;  %6815 = vrot.lane.b32.xlu1 %v12815_v8, %s8883_s25  ;;  %6817 = vrot.lane.b32.xlu0 %v14603_v57, %s8883_s25  ;;  %v14645_v8 = vld [vmem:[#allocation37_spill] sm:$0xff]  ;;  %v6496_v43 = vrot.slane %v6494_v30, 4 }
 0x833   : > { %v6948_v63 = vpop.permute.xlu1 %6947  ;;  %v6950_v32 = vpop.permute.xlu0 %6949 }
 0x834   : > { %7034 = vst.msk [vmem:[#allocation7 + $0x24] sm:$0xf] %vm2228_vm1, %v6948_v63  ;;  %7035 = vst.msk [vmem:[#allocation7 + $0x28] sm:$0xf] %vm2228_vm1, %v6950_v32  ;;  %v8547_v63 = vpack.c.bf16 %v5362_v53, %v5362_v53 }
 0x835   : > { %6819 = vrot.lane.b32.xlu1 %v14601_v10, %s8883_s25  ;;  %6969 = vrot.lane.b32.xlu0 %v14641_v34, %s8884_s26  ;;  %v14648_v10 = vld [vmem:[#allocation41_spill] sm:$0xff] }
 0x837   : > { %v6952_v26 = vpop.permute.xlu1 %6951  ;;  %v7081_v55 = vpop.permute.xlu0 %7080 }
 0x838   : > { %7036 = vst.msk [vmem:[#allocation7 + $0x2c] sm:$0xf] %vm2228_vm1, %v6952_v26  ;;  %v6488_v26 = vrot.slane %v6487_v45, 4 }
 0x839   : > { %7168 = vst.msk [vmem:[#allocation7 + $0x20] sm:$0xf] %vm14644_vm2, %v7081_v55  ;;  %6971 = vrot.lane.b32.xlu1 %v14643_v48, %s8884_s26  ;;  %6973 = vrot.lane.b32.xlu0 %v14645_v8, %s8884_s26  ;;  %v6490_v48 = vshll.u32 %v13709_v15, 16 }
 0x83b   : > { %v7083_v57 = vpop.permute.xlu1 %7082  ;;  %v7085_v38 = vpop.permute.xlu0 %7084  ;;  %v6492_v54 = vrot.slane %v6490_v48, 5 }
 0x83c   : > { %7169 = vst.msk [vmem:[#allocation7 + $0x24] sm:$0xf] %vm14646_vm6, %v7083_v57  ;;  %vm14659_vm6 = vmmov %vm14644_vm2 }
 0x83d   : > { %7170 = vst.msk [vmem:[#allocation7 + $0x28] sm:$0xf] %vm14647_vm5, %v7085_v38  ;;  %6975 = vrot.lane.b32.xlu1 %v14648_v10, %s8884_s26  ;;  %7104 = vrot.lane.b32.xlu0 %v13143_v24, %s8885_s14  ;;  %vm14661_vm5 = vmmov %vm14650_vm8  ;;  %v6497_v55 = vor.u32 %v6496_v43, %v6492_v54 }
 0x83f   : > { %v7087_v27 = vpop.permute.xlu1 %7086  ;;  %v6529_v49 = vpop.permute.xlu0 %6528 }
 0x840   : > { %7171 = vst.msk [vmem:[#allocation7 + $0x2c] sm:$0xf] %vm14649_vm3, %v7087_v27  ;;  %vm14662_vm3 = vmmov %vm14661_vm5 }
 0x841   : > { %6612 = vst.msk [vmem:[#allocation7 + $0x30] sm:$0xf] %vm1800_vm12, %v6529_v49  ;;  %7106 = vrot.lane.b32.xlu1 %v13156_v19, %s8885_s14  ;;  %7108 = vrot.lane.b32.xlu0 %v13160_v29, %s8885_s14  ;;  %v6493_v49 = vsel %vm9239_vm4, %v6488_v26, %v6492_v54 }
 0x843   : > { %v6531_v37 = vpop.permute.xlu1 %6530  ;;  %v6533_v47 = vpop.permute.xlu0 %6532  ;;  %v8857_v2 = vld [vmem:[#allocation7 + $0x20] sm:$0xff]  }
 0x844   : > { %6613 = vst.msk [vmem:[#allocation7 + $0x34] sm:$0xf] %vm1800_vm12, %v6531_v37  ;;  %6614 = vst.msk [vmem:[#allocation7 + $0x38] sm:$0xf] %vm1800_vm12, %v6533_v47  ;;  %8725 = vmatprep.mubr.msk.bf16.mxu0 %vm14650_vm8, %v8857_v2  ;;  %v6498_v37 = vrot.slane %v6497_v55, 4 }
 0x845   : > { %7110 = vrot.lane.b32.xlu1 %v13173_v50, %s8885_s14  ;;  %6400 = vrot.lane.b32.xlu0 %v14604_v41, %s8880_s22  ;;  %vm14664_vm8 = vmmov %vm14644_vm2 }
 0x847   : > { %v6535_v24 = vpop.permute.xlu1 %6534  ;;  %v6664_v19 = vpop.permute.xlu0 %6663  ;;  %v8858_v31 = vld [vmem:[#allocation7 + $0x28] sm:$0xff]  }
 0x848   : > { %6615 = vst.msk [vmem:[#allocation7 + $0x3c] sm:$0xf] %vm1800_vm12, %v6535_v24  ;;  %8726 = vmatmul.mubr.msk.bf16.gmra.mxu0 %vm14652_vm9, %v8858_v31  ;;  %v5364_v31 = vld [vmem:[#allocation6 + $0x1a0] sm:$0xff]  ;;  %vm14665_vm9 = vmmov %vm14644_vm2 }
 0x849   : > { %6747 = vst.msk [vmem:[#allocation7 + $0x30] sm:$0xf] %vm1936_vm13, %v6664_v19  ;;  %6402 = vrot.lane.b32.xlu1 %v14651_v17, %s8880_s22  ;;  %6552 = vrot.lane.b32.xlu0 %v14645_v8, %s8881_s23  ;;  %v6500_v8 = vshll.u32 %v8547_v63, 16 }
 0x84b   : > { %v6666_v59 = vpop.permute.xlu1 %6665  ;;  %v6668_v44 = vpop.permute.xlu0 %6667  ;;  %v6502_v47 = vrot.slane %v6500_v8, 5 }
 0x84c   : > { %6748 = vst.msk [vmem:[#allocation7 + $0x34] sm:$0xf] %vm1936_vm13, %v6666_v59  ;;  %6749 = vst.msk [vmem:[#allocation7 + $0x38] sm:$0xf] %vm1936_vm13, %v6668_v44  ;;  %v6634_v59 = vrot.slane %v13709_v15, 5  ;;  %v8305_v44 = vrot.slane %v13701_v21, 9 }
 0x84d   : > { %6554 = vrot.lane.b32.xlu1 %v14648_v10, %s8881_s23  ;;  %6556 = vrot.lane.b32.xlu0 %v14653_v36, %s8881_s23  ;;  %v5363_v10 = vld [vmem:[#allocation6 + $0x198] sm:$0xff] }
 0x84e   : > { %v13746_v2 = vpack.c.bf16 %v5363_v10, %v5363_v10 }
 0x84f   : > { %v6670_v13 = vpop.permute.xlu1 %6669  ;;  %v6798_v62 = vpop.permute.xlu0 %6797 }
 0x850   : > { %6750 = vst.msk [vmem:[#allocation7 + $0x3c] sm:$0xf] %vm1936_vm13, %v6670_v13  ;;  %v6906_v13 = vshrl.u32 %v13746_v2, 16  ;;  %v8309_v48 = vrot.slane %v13746_v2, 9 }
 0x851   : > { %6881 = vst.msk [vmem:[#allocation7 + $0x30] sm:$0xf] %vm2071_vm14, %v6798_v62  ;;  %6558 = vrot.lane.b32.xlu1 %v14654_v39, %s8881_s23  ;;  %6687 = vrot.lane.b32.xlu0 %v13160_v29, %s8882_s24  ;;  %v6909_v62 = vshll.u32 %v13746_v2, 16 }
 0x853   : > { %v6800_v5 = vpop.permute.xlu1 %6799  ;;  %v6802_v18 = vpop.permute.xlu0 %6801 }
 0x854   : > { %6882 = vst.msk [vmem:[#allocation7 + $0x34] sm:$0xf] %vm2071_vm14, %v6800_v5  ;;  %6883 = vst.msk [vmem:[#allocation7 + $0x38] sm:$0xf] %vm2071_vm14, %v6802_v18  ;;  %v6635_v18 = vsel %vm9610_vm7, %v8305_v44, %v6634_v59 }
 0x855   : > { %6689 = vrot.lane.b32.xlu1 %v13173_v50, %s8882_s24  ;;  %6691 = vrot.lane.b32.xlu0 %v13177_v14, %s8882_s24 }
 0x857   : > { %v6804_v25 = vpop.permute.xlu1 %6803  ;;  %v6954_v6 = vpop.permute.xlu0 %6953 }
 0x858   : > { %6884 = vst.msk [vmem:[#allocation7 + $0x3c] sm:$0xf] %vm2071_vm14, %v6804_v25  ;;  %v6636_v25 = vrot.slane %v6634_v59, 4  ;;  %v13835_v59 = vld [vmem:[%s14032_s7] ss:$0 sm:$0xff] }
 0x859   : > { %7037 = vst.msk [vmem:[#allocation7 + $0x30] sm:$0xf] %vm2228_vm1, %v6954_v6  ;;  %6693 = vrot.lane.b32.xlu1 %v13188_v23, %s8882_s24  ;;  %6821 = vrot.lane.b32.xlu0 %v14604_v41, %s8883_s25  ;;  %v14656_v41 = vld [vmem:[#allocation14_spill] sm:$0xff]  ;;  %v6908_v6 = vrot.slane %v6906_v13, 4 }
 0x85b   : > { %v6956_v29 = vpop.permute.xlu1 %6955  ;;  %v6958_v51 = vpop.permute.xlu0 %6957 }
 0x85c   : > { %7038 = vst.msk [vmem:[#allocation7 + $0x34] sm:$0xf] %vm2228_vm1, %v6956_v29  ;;  %7039 = vst.msk [vmem:[#allocation7 + $0x38] sm:$0xf] %vm2228_vm1, %v6958_v51  ;;  %v6911_v29 = vrot.slane %v6909_v62, 5 }
 0x85d   : > { %6823 = vrot.lane.b32.xlu1 %v14651_v17, %s8883_s25  ;;  %6825 = vrot.lane.b32.xlu0 %v12922_v11, %s8883_s25  ;;  %v6503_v17 = vsel %vm9239_vm4, %v6498_v37, %v6502_v47  ;;  %v8761_v37 = vpop.f32.mrf.mxu1 }
 0x85f   : > { %v6960_v50 = vpop.permute.xlu1 %6959  ;;  %v7089_v20 = vpop.permute.xlu0 %7088 }
 0x860   : > { %7040 = vst.msk [vmem:[#allocation7 + $0x3c] sm:$0xf] %vm2228_vm1, %v6960_v50 }
 0x861   : > { %7172 = vst.msk [vmem:[#allocation7 + $0x30] sm:$0xf] %vm14655_vm10, %v7089_v20  ;;  %6827 = vrot.lane.b32.xlu1 %v14656_v41, %s8883_s25  ;;  %6977 = vrot.lane.b32.xlu0 %v14653_v36, %s8884_s26  ;;  %v13757_v36 = vpack.c.bf16 %v5364_v31, %v5364_v31  ;;  %vm14666_vm10 = vmmov %vm14644_vm2 }
 0x863   : > { %v7091_v28 = vpop.permute.xlu1 %7090  ;;  %v7093_v56 = vpop.permute.xlu0 %7092  ;;  %v6915_v51 = vshll.u32 %v13757_v36, 16  ;;  %v6919_v50 = vshrl.u32 %v13757_v36, 16  ;;  %v7059_v4 = vrot.slane %v13757_v36, 5 }
 0x864   : > { %7173 = vst.msk [vmem:[#allocation7 + $0x34] sm:$0xf] %vm14657_vm15, %v7091_v28  ;;  %v5365_v28 = vld [vmem:[#allocation6 + $0x1a8] sm:$0x3]  ;;  %vm14667_vm15 = vmmov %vm14644_vm2 }
 0x865   : > { %7174 = vst.msk [vmem:[#allocation7 + $0x38] sm:$0xf] %vm14644_vm2, %v7093_v56  ;;  %6979 = vrot.lane.b32.xlu1 %v14654_v39, %s8884_s26  ;;  %6981 = vrot.lane.b32.xlu0 %v14658_v42, %s8884_s26  ;;  %v8550_v35 = vpack.c.bf16 %v5365_v28, %v5365_v28  ;;  %vm14668_vm2 = vmmov %vm14662_vm3  ;;  %v7061_v53 = vrot.slane %v7059_v4, 4  ;;  %v7060_v54 = vsel %vm9610_vm7, %v8309_v48, %v7059_v4 }
 0x867   : > { %v7095_v12 = vpop.permute.xlu1 %7094  ;;  %v6537_v3 = vpop.permute.xlu0 %6536  ;;  %v7062_v45 = vrot.slane %v8550_v35, 5 }
 0x868   : > { %7175 = vst.msk [vmem:[#allocation7 + $0x3c] sm:$0xf] %vm14659_vm6, %v7095_v12  ;;  %v6921_v12 = vrot.slane %v6919_v50, 4  ;;  %vm14669_vm6 = vmmov %vm14668_vm2 }
 0x869   : > { %6616 = vst.msk [vmem:[#allocation7 + $0x40] sm:$0xf] %vm1800_vm12, %v6537_v3  ;;  %6983 = vrot.lane.b32.xlu1 %v14660_v7, %s8884_s26  ;;  %7112 = vrot.lane.b32.xlu0 %v13177_v14, %s8885_s14 }
 0x86b   : > { %v6539_v33 = vpop.permute.xlu1 %6538  ;;  %v6541_v46 = vpop.permute.xlu0 %6540  ;;  %v8859_v61 = vld [vmem:[#allocation7 + $0x30] sm:$0xff]  }
 0x86c   : > { %6617 = vst.msk [vmem:[#allocation7 + $0x44] sm:$0xf] %vm1800_vm12, %v6539_v33  ;;  %6618 = vst.msk [vmem:[#allocation7 + $0x48] sm:$0xf] %vm1800_vm12, %v6541_v46  ;;  %8729 = vmatprep.mubr.msk.bf16.mxu0 %vm14661_vm5, %v8859_v61  ;;  %v6925_v46 = vshll.u32 %v8550_v35, 16 }
 0x86d   : > { %7114 = vrot.lane.b32.xlu1 %v13188_v23, %s8885_s14  ;;  %7116 = vrot.lane.b32.xlu0 %v13192_v52, %s8885_s14 }
 0x86e   : > { %v6927_v1 = vrot.slane %v6925_v46, 5 }
 0x86f   : > { %v6543_v14 = vpop.permute.xlu1 %6542  ;;  %v6672_v22 = vpop.permute.xlu0 %6671  ;;  %v8860_v34 = vld [vmem:[#allocation7 + $0x38] sm:$0xff]  }
 0x870   : > { %6619 = vst.msk [vmem:[#allocation7 + $0x4c] sm:$0xf] %vm1800_vm12, %v6543_v14  ;;  %8730 = vmatmul.mubr.msk.bf16.gmra.mxu0 %vm14662_vm3, %v8860_v34 }
 0x871   : > { %6751 = vst.msk [vmem:[#allocation7 + $0x40] sm:$0xf] %vm1936_vm13, %v6672_v22  ;;  %7118 = vrot.lane.b32.xlu1 %v13201_v9, %s8885_s14  ;;  %6404 = vrot.lane.b32.xlu0 %v12922_v11, %s8880_s22 }
 0x873   : > { %v6674_v23 = vpop.permute.xlu1 %6673  ;;  %v6676_v0 = vpop.permute.xlu0 %6675 }
 0x874   : > { %6752 = vst.msk [vmem:[#allocation7 + $0x44] sm:$0xf] %vm1936_vm13, %v6674_v23  ;;  %6753 = vst.msk [vmem:[#allocation7 + $0x48] sm:$0xf] %vm1936_vm13, %v6676_v0 }
 0x875   : > { %6406 = vrot.lane.b32.xlu1 %v14656_v41, %s8880_s22  ;;  %6408 = vrot.lane.b32.xlu0 %v13701_v21, %s8880_s22 }
 0x877   : > { %v6678_v11 = vpop.permute.xlu1 %6677  ;;  %v6806_v32 = vpop.permute.xlu0 %6805 }
 0x878   : > { %6754 = vst.msk [vmem:[#allocation7 + $0x4c] sm:$0xf] %vm1936_vm13, %v6678_v11  ;;  %v7063_v11 = vsel %vm9610_vm7, %v7061_v53, %v7062_v45 }
 0x879   : > { %6885 = vst.msk [vmem:[#allocation7 + $0x40] sm:$0xf] %vm2071_vm14, %v6806_v32  ;;  %6410 = vrot.lane.b32.xlu1 %v13709_v15, %s8880_s22  ;;  %6560 = vrot.lane.b32.xlu0 %v14658_v42, %s8881_s23  ;;  %v6917_v42 = vrot.slane %v6915_v51, 5 }
 0x87b   : > { %v6808_v57 = vpop.permute.xlu1 %6807  ;;  %v6810_v38 = vpop.permute.xlu0 %6809  ;;  %v6922_v33 = vor.u32 %v6921_v12, %v6917_v42 }
 0x87c   : > { %6886 = vst.msk [vmem:[#allocation7 + $0x44] sm:$0xf] %vm2071_vm14, %v6808_v57  ;;  %6887 = vst.msk [vmem:[#allocation7 + $0x48] sm:$0xf] %vm2071_vm14, %v6810_v38 }
 0x87d   : > { %6562 = vrot.lane.b32.xlu1 %v14660_v7, %s8881_s23  ;;  %6564 = vrot.lane.b32.xlu0 %v6493_v49, %s8881_s23  ;;  %v6923_v58 = vrot.slane %v6922_v33, 4 }
 0x87f   : > { %v6812_v24 = vpop.permute.xlu1 %6811  ;;  %v6962_v19 = vpop.permute.xlu0 %6961  ;;  %v6928_v16 = vsel %vm9239_vm4, %v6923_v58, %v6927_v1 }
 0x880   : > { %6888 = vst.msk [vmem:[#allocation7 + $0x4c] sm:$0xf] %vm2071_vm14, %v6812_v24  ;;  %v7751_v24 = vpop.f32.mrf.mxu1 }
 0x881   : > { %7041 = vst.msk [vmem:[#allocation7 + $0x40] sm:$0xf] %vm2228_vm1, %v6962_v19  ;;  %6566 = vrot.lane.b32.xlu1 %v6503_v17, %s8881_s23  ;;  %6695 = vrot.lane.b32.xlu0 %v13192_v52, %s8882_s24  ;;  %v6637_v52 = vrot.slane %v8547_v63, 5 }
 0x882   : > { %v8762_v44 = vpop.f32.mrf.mxu1 }
 0x883   : > { %v6964_v39 = vpop.permute.xlu1 %6963  ;;  %v6966_v5 = vpop.permute.xlu0 %6965  ;;  %v6638_v56 = vsel %vm9610_vm7, %v6636_v25, %v6637_v52 }
 0x884   : > { %7042 = vst.msk [vmem:[#allocation7 + $0x44] sm:$0xf] %vm2228_vm1, %v6964_v39  ;;  %7043 = vst.msk [vmem:[#allocation7 + $0x48] sm:$0xf] %vm2228_vm1, %v6966_v5  ;;  %v7754_v51 = vpop.f32.mrf.mxu1 }
 0x885   : > { %6697 = vrot.lane.b32.xlu1 %v13201_v9, %s8882_s24  ;;  %6699 = vrot.lane.b32.xlu0 %v6635_v18, %s8882_s24  ;;  %v6912_v9 = vor.u32 %v6911_v29, %v6908_v6 }
 0x886   : > { %v8765_v48 = vpop.f32.mrf.mxu1 }
 0x887   : > { %v6968_v20 = vpop.permute.xlu1 %6967  ;;  %v7097_v41 = vpop.permute.xlu0 %7096  ;;  %v6913_v60 = vrot.slane %v6912_v9, 4 }
 0x888   : > { %7044 = vst.msk [vmem:[#allocation7 + $0x4c] sm:$0xf] %vm2228_vm1, %v6968_v20 }
 0x889   : > { %7176 = vst.msk [vmem:[#allocation7 + $0x40] sm:$0xf] %vm14664_vm8, %v7097_v41  ;;  %6701 = vrot.lane.b32.xlu1 %v6638_v56, %s8882_s24  ;;  %6829 = vrot.lane.b32.xlu0 %v13701_v21, %s8883_s25 }
 0x88b   : > { %v7099_v3 = vpop.permute.xlu1 %7098  ;;  %v7101_v7 = vpop.permute.xlu0 %7100 }
 0x88c   : > { %7177 = vst.msk [vmem:[#allocation7 + $0x44] sm:$0xf] %vm14665_vm9, %v7099_v3  ;;  %vm14675_vm9 = vmmov %vm14668_vm2 }
 0x88d   : > { %7178 = vst.msk [vmem:[#allocation7 + $0x48] sm:$0xf] %vm14666_vm10, %v7101_v7  ;;  %6831 = vrot.lane.b32.xlu1 %v13709_v15, %s8883_s25  ;;  %6833 = vrot.lane.b32.xlu0 %v13746_v2, %s8883_s25  ;;  %v6918_v15 = vsel %vm9239_vm4, %v6913_v60, %v6917_v42  ;;  %vm14670_vm4 = vmmov %vm14664_vm8 }
 0x88e   : > { %vm14671_vm7 = vmmov %vm14670_vm4 }
 0x88f   : > { %v7103_v21 = vpop.permute.xlu1 %7102  ;;  %v6545_v61 = vpop.permute.xlu0 %6544  ;;  %vm14672_vm5 = vmmov %vm14670_vm4 }
 0x890   : > { %7179 = vst.msk [vmem:[#allocation7 + $0x4c] sm:$0xf] %vm14667_vm15, %v7103_v21  ;;  %vm14673_vm3 = vmmov %vm14670_vm4 }
 0x891   : > { %6620 = vst.msk [vmem:[#allocation7 + $0x50] sm:$0xf] %vm1800_vm12, %v6545_v61  ;;  %6835 = vrot.lane.b32.xlu1 %v13757_v36, %s8883_s25  ;;  %6985 = vrot.lane.b32.xlu0 %v6493_v49, %s8884_s26  ;;  %vm14674_vm8 = vmmov %vm14668_vm2 }
 0x892   : > { %vm14676_vm10 = vmmov %vm14673_vm3 }
 0x893   : > { %v6547_v14 = vpop.permute.xlu1 %6546  ;;  %v6549_v22 = vpop.permute.xlu0 %6548  ;;  %v8861_v34 = vld [vmem:[#allocation7 + $0x40] sm:$0xff]   ;;  %vm14677_vm15 = vmmov %vm14673_vm3 }
 0x894   : > { %6621 = vst.msk [vmem:[#allocation7 + $0x54] sm:$0xf] %vm1800_vm12, %v6547_v14  ;;  %6622 = vst.msk [vmem:[#allocation7 + $0x58] sm:$0xf] %vm1800_vm12, %v6549_v22  ;;  %8733 = vmatprep.mubr.msk.bf16.mxu0 %vm14668_vm2, %v8861_v34 }
 0x895   : > { %6987 = vrot.lane.b32.xlu1 %v6503_v17, %s8884_s26  ;;  %6989 = vrot.lane.b32.xlu0 %v6918_v15, %s8884_s26  ;;  %v13828_v17 = vld [vmem:[%s14034_s9] ss:$0 sm:$0xff]  ;;  %vm14678_vm2 = vmmov %vm14673_vm3 }
 0x896   : > { %v7760_v13 = vadd.f32 %v8761_v37, %v13828_v17  ;;  %v7752_v52 = vadd.f32 %v13828_v17, %v7751_v24  ;;  %v7763_v20 = vadd.f32 %v8762_v44, %v13828_v17  ;;  %v7755_v12 = vadd.f32 %v13828_v17, %v7754_v51 }
 0x897   : > { %v6551_v30 = vpop.permute.xlu1 %6550  ;;  %v6680_v23 = vpop.permute.xlu0 %6679  ;;  %v8862_v0 = vld [vmem:[#allocation7 + $0x48] sm:$0xff]  }
 0x898   : > { %6623 = vst.msk [vmem:[#allocation7 + $0x5c] sm:$0xf] %vm1800_vm12, %v6551_v30  ;;  %8734 = vmatmul.mubr.msk.bf16.gmra.mxu0 %vm14669_vm6, %v8862_v0  ;;  %v7767_v0 = vpop.f32.mrf.mxu1  ;;  %vm14679_vm6 = vmmov %vm14678_vm2 }
 0x899   : > { %6755 = vst.msk [vmem:[#allocation7 + $0x50] sm:$0xf] %vm1936_vm13, %v6680_v23  ;;  %6991 = vrot.lane.b32.xlu1 %v6928_v16, %s8884_s26  ;;  %7120 = vrot.lane.b32.xlu0 %v6635_v18, %s8885_s14 }
 0x89b   : > { %v6682_v43 = vpop.permute.xlu1 %6681  ;;  %v6684_v63 = vpop.permute.xlu0 %6683 }
 0x89c   : > { %6756 = vst.msk [vmem:[#allocation7 + $0x54] sm:$0xf] %vm1936_vm13, %v6682_v43  ;;  %6757 = vst.msk [vmem:[#allocation7 + $0x58] sm:$0xf] %vm1936_vm13, %v6684_v63  ;;  %v7776_v63 = vadd.f32 %v8765_v48, %v13828_v17 }
 0x89d   : > { %7122 = vrot.lane.b32.xlu1 %v6638_v56, %s8885_s14  ;;  %7124 = vrot.lane.b32.xlu0 %v7060_v54, %s8885_s14  ;;  %v8766_v54 = vpop.f32.mrf.mxu1 }
 0x89f   : > { %v6686_v32 = vpop.permute.xlu1 %6685  ;;  %v6814_v26 = vpop.permute.xlu0 %6813 }
 0x8a0   : > { %6758 = vst.msk [vmem:[#allocation7 + $0x5c] sm:$0xf] %vm1936_vm13, %v6686_v32 }
 0x8a1   : > { %6889 = vst.msk [vmem:[#allocation7 + $0x50] sm:$0xf] %vm2071_vm14, %v6814_v26  ;;  %7126 = vrot.lane.b32.xlu1 %v7063_v11, %s8885_s14 }
 0x8a3   : > { %v6816_v55 = vpop.permute.xlu1 %6815  ;;  %v6818_v8 = vpop.permute.xlu0 %6817 }
 0x8a4   : > { %6890 = vst.msk [vmem:[#allocation7 + $0x54] sm:$0xf] %vm2071_vm14, %v6816_v55  ;;  %6891 = vst.msk [vmem:[#allocation7 + $0x58] sm:$0xf] %vm2071_vm14, %v6818_v8  ;;  %v7768_v8 = vadd.f32 %v13828_v17, %v7767_v0 }
 0x8a7   : > { %v6820_v57 = vpop.permute.xlu1 %6819  ;;  %v6970_v38 = vpop.permute.xlu0 %6969 }
 0x8a8   : > { %6892 = vst.msk [vmem:[#allocation7 + $0x5c] sm:$0xf] %vm2071_vm14, %v6820_v57 }
 0x8a9   : > { %7045 = vst.msk [vmem:[#allocation7 + $0x50] sm:$0xf] %vm2228_vm1, %v6970_v38 }
 0x8ab   : > { %v6972_v40 = vpop.permute.xlu1 %6971  ;;  %v6974_v10 = vpop.permute.xlu0 %6973 }
 0x8ac   : > { %7046 = vst.msk [vmem:[#allocation7 + $0x54] sm:$0xf] %vm2228_vm1, %v6972_v40  ;;  %7047 = vst.msk [vmem:[#allocation7 + $0x58] sm:$0xf] %vm2228_vm1, %v6974_v10  ;;  %v7770_v40 = vpop.f32.mrf.mxu1 }
 0x8af   : > { %v6976_v27 = vpop.permute.xlu1 %6975  ;;  %v7105_v49 = vpop.permute.xlu0 %7104 }
 0x8b0   : > { %7048 = vst.msk [vmem:[#allocation7 + $0x5c] sm:$0xf] %vm2228_vm1, %v6976_v27  ;;  %v7779_v27 = vadd.f32 %v8766_v54, %v13828_v17 }
 0x8b1   : > { %7180 = vst.msk [vmem:[#allocation7 + $0x50] sm:$0xf] %vm14670_vm4, %v7105_v49  ;;  %vm14680_vm4 = vmmov %vm14674_vm8 }
 0x8b3   : > { %v7107_v47 = vpop.permute.xlu1 %7106  ;;  %v7109_v2 = vpop.permute.xlu0 %7108 }
 0x8b4   : > { %7181 = vst.msk [vmem:[#allocation7 + $0x54] sm:$0xf] %vm14671_vm7, %v7107_v47  ;;  %vm14681_vm7 = vmmov %vm14680_vm4 }
 0x8b5   : > { %7182 = vst.msk [vmem:[#allocation7 + $0x58] sm:$0xf] %vm14672_vm5, %v7109_v2 }
 0x8b7   : > { %v7111_v19 = vpop.permute.xlu1 %7110  ;;  %v6401_v31 = vpop.permute.xlu0 %6400 }
 0x8b8   : > { %7183 = vst.msk [vmem:[#allocation7 + $0x5c] sm:$0xf] %vm14673_vm3, %v7111_v19  ;;  %v8719_v36 = vpop.f32.mrf.mxu0 }
 0x8b9   : > { %6470 = vst.msk [vmem:[#allocation7 + $0x68] sm:$0xf] %vm1643_vm11, %v6401_v31  ;;  %v7425_v62 = vadd.f32 %v8719_v36, %v13835_v59  ;;  %v7771_v31 = vadd.f32 %v13828_v17, %v7770_v40 }
 0x8ba   : > { %v7416_v25 = vpop.f32.mrf.mxu0 }
 0x8bb   : > { %v6403_v39 = vpop.permute.xlu1 %6402  ;;  %v6553_v5 = vpop.permute.xlu0 %6552  ;;  %v8863_v18 = vld [vmem:[#allocation7 + $0x50] sm:$0xff]   ;;  %v7880_v6 = vadd.f32 %v7760_v13, %v7425_v62  ;;  %v7417_v29 = vadd.f32 %v13835_v59, %v7416_v25 }
 0x8bc   : > { %6471 = vst.msk [vmem:[#allocation7 + $0x6c] sm:$0xf] %vm1643_vm11, %v6403_v39  ;;  %8737 = vmatprep.mubr.msk.bf16.mxu0 %vm14674_vm8, %v8863_v18  ;;  %v8720_v50 = vpop.f32.mrf.mxu0 }
 0x8bd   : > { %6624 = vst.msk [vmem:[#allocation7 + $0x60] sm:$0xf] %vm1800_vm12, %v6553_v5  ;;  %v7878_v41 = vadd.f32 %v7752_v52, %v7417_v29  ;;  %v7428_v28 = vadd.f32 %v8720_v50, %v13835_v59 }
 0x8be   : > { %7912 = vst.msk [vmem:[%s13843_s28 + $0x10] sm:$0xff] %vm413_vm0, %v7880_v6  ;;  %v7419_v35 = vpop.f32.mrf.mxu0 }
 0x8bf   : > { %v6555_v56 = vpop.permute.xlu1 %6554  ;;  %v6557_v9 = vpop.permute.xlu0 %6556  ;;  %v8864_v42 = vld [vmem:[#allocation7 + $0x58] sm:$0xff]   ;;  %7910 = vst.msk [vmem:[%s13843_s28] sm:$0xff] %vm413_vm0, %v7878_v41  ;;  %v7881_v3 = vadd.f32 %v7763_v20, %v7428_v28  ;;  %v7420_v7 = vadd.f32 %v13835_v59, %v7419_v35 }
 0x8c0   : > { %6625 = vst.msk [vmem:[#allocation7 + $0x64] sm:$0xf] %vm1800_vm12, %v6555_v56  ;;  %6626 = vst.msk [vmem:[#allocation7 + $0x68] sm:$0xf] %vm1800_vm12, %v6557_v9  ;;  %8738 = vmatmul.mubr.msk.bf16.gmra.mxu0 %vm14675_vm9, %v8864_v42  ;;  %v8769_v56 = vpop.f32.mrf.mxu1 }
 0x8c1   : > { %7913 = vst.msk [vmem:[%s13843_s28 + $0x18] sm:$0xff] %vm413_vm0, %v7881_v3  ;;  %v7879_v60 = vadd.f32 %v7755_v12, %v7420_v7 }
 0x8c2   : > { %v7783_v35 = vpop.f32.mrf.mxu1 }
 0x8c3   : > { %v6559_v33 = vpop.permute.xlu1 %6558  ;;  %v6688_v46 = vpop.permute.xlu0 %6687  ;;  %7911 = vst.msk [vmem:[%s13843_s28 + $0x8] sm:$0xff] %vm413_vm0, %v7879_v60 }
 0x8c4   : > { %6627 = vst.msk [vmem:[#allocation7 + $0x6c] sm:$0xf] %vm1800_vm12, %v6559_v33  ;;  %v8770_v7 = vpop.f32.mrf.mxu1  ;;  %v7792_v33 = vadd.f32 %v8769_v56, %v13828_v17 }
 0x8c5   : > { %6759 = vst.msk [vmem:[#allocation7 + $0x60] sm:$0xf] %vm1936_vm13, %v6688_v46 }
 0x8c7   : > { %v6690_v21 = vpop.permute.xlu1 %6689  ;;  %v6692_v61 = vpop.permute.xlu0 %6691 }
 0x8c8   : > { %6760 = vst.msk [vmem:[#allocation7 + $0x64] sm:$0xf] %vm1936_vm13, %v6690_v21  ;;  %6761 = vst.msk [vmem:[#allocation7 + $0x68] sm:$0xf] %vm1936_vm13, %v6692_v61 }
 0x8cb   : > { %v6694_v15 = vpop.permute.xlu1 %6693  ;;  %v6822_v58 = vpop.permute.xlu0 %6821 }
 0x8cc   : > { %6762 = vst.msk [vmem:[#allocation7 + $0x6c] sm:$0xf] %vm1936_vm13, %v6694_v15 }
 0x8cd   : > { %6893 = vst.msk [vmem:[#allocation7 + $0x60] sm:$0xf] %vm2071_vm14, %v6822_v58  ;;  %v7784_v58 = vadd.f32 %v13828_v17, %v7783_v35 }
 0x8cf   : > { %v6824_v1 = vpop.permute.xlu1 %6823  ;;  %v6826_v14 = vpop.permute.xlu0 %6825 }
 0x8d0   : > { %6894 = vst.msk [vmem:[#allocation7 + $0x64] sm:$0xf] %vm2071_vm14, %v6824_v1  ;;  %6895 = vst.msk [vmem:[#allocation7 + $0x68] sm:$0xf] %vm2071_vm14, %v6826_v14 }
 0x8d3   : > { %v6828_v22 = vpop.permute.xlu1 %6827  ;;  %v6978_v34 = vpop.permute.xlu0 %6977 }
 0x8d4   : > { %6896 = vst.msk [vmem:[#allocation7 + $0x6c] sm:$0xf] %vm2071_vm14, %v6828_v22  ;;  %v7786_v22 = vpop.f32.mrf.mxu1 }
 0x8d5   : > { %7049 = vst.msk [vmem:[#allocation7 + $0x60] sm:$0xf] %vm2228_vm1, %v6978_v34 }
 0x8d7   : > { %v6980_v16 = vpop.permute.xlu1 %6979  ;;  %v6982_v4 = vpop.permute.xlu0 %6981 }
 0x8d8   : > { %7050 = vst.msk [vmem:[#allocation7 + $0x64] sm:$0xf] %vm2228_vm1, %v6980_v16  ;;  %7051 = vst.msk [vmem:[#allocation7 + $0x68] sm:$0xf] %vm2228_vm1, %v6982_v4  ;;  %v7795_v16 = vadd.f32 %v8770_v7, %v13828_v17 }
 0x8db   : > { %v6984_v30 = vpop.permute.xlu1 %6983  ;;  %v7113_v23 = vpop.permute.xlu0 %7112 }
 0x8dc   : > { %7052 = vst.msk [vmem:[#allocation7 + $0x6c] sm:$0xf] %vm2228_vm1, %v6984_v30 }
 0x8dd   : > { %7184 = vst.msk [vmem:[#allocation7 + $0x60] sm:$0xf] %vm14676_vm10, %v7113_v23 }
 0x8df   : > { %v7115_v53 = vpop.permute.xlu1 %7114  ;;  %v7117_v45 = vpop.permute.xlu0 %7116 }
 0x8e0   : > { %7185 = vst.msk [vmem:[#allocation7 + $0x64] sm:$0xf] %vm14677_vm15, %v7115_v53  ;;  %v8723_v43 = vpop.f32.mrf.mxu0  ;;  %v7787_v53 = vadd.f32 %v13828_v17, %v7786_v22 }
 0x8e1   : > { %7186 = vst.msk [vmem:[#allocation7 + $0x68] sm:$0xf] %vm14678_vm2, %v7117_v45  ;;  %v7441_v11 = vadd.f32 %v8723_v43, %v13835_v59 }
 0x8e2   : > { %v7432_v55 = vpop.f32.mrf.mxu0 }
 0x8e3   : > { %v7119_v32 = vpop.permute.xlu1 %7118  ;;  %v6405_v26 = vpop.permute.xlu0 %6404  ;;  %v7884_v57 = vadd.f32 %v7776_v63, %v7441_v11  ;;  %v7433_v38 = vadd.f32 %v13835_v59, %v7432_v55 }
 0x8e4   : > { %7187 = vst.msk [vmem:[#allocation7 + $0x6c] sm:$0xf] %vm14679_vm6, %v7119_v32  ;;  %v8724_v10 = vpop.f32.mrf.mxu0 }
 0x8e5   : > { %6472 = vst.msk [vmem:[#allocation7 + $0x70] sm:$0xf] %vm1643_vm11, %v6405_v26  ;;  %v7882_v49 = vadd.f32 %v7768_v8, %v7433_v38  ;;  %v7444_v37 = vadd.f32 %v8724_v10, %v13835_v59  ;;  %v8773_v26 = vpop.f32.mrf.mxu1 }
 0x8e6   : > { %7916 = vst.msk [vmem:[%s13843_s28 + $0x30] sm:$0xff] %vm413_vm0, %v7884_v57  ;;  %v7435_v19 = vpop.f32.mrf.mxu0  ;;  %v7808_v38 = vadd.f32 %v8773_v26, %v13828_v17 }
 0x8e7   : > { %v6407_v47 = vpop.permute.xlu1 %6406  ;;  %v6409_v2 = vpop.permute.xlu0 %6408  ;;  %v8865_v24 = vld [vmem:[#allocation7 + $0x60] sm:$0xff]   ;;  %7914 = vst.msk [vmem:[%s13843_s28 + $0x20] sm:$0xff] %vm413_vm0, %v7882_v49  ;;  %v7885_v44 = vadd.f32 %v7779_v27, %v7444_v37  ;;  %v7436_v36 = vadd.f32 %v13835_v59, %v7435_v19 }
 0x8e8   : > { %6473 = vst.msk [vmem:[#allocation7 + $0x74] sm:$0xf] %vm1643_vm11, %v6407_v47  ;;  %6474 = vst.msk [vmem:[#allocation7 + $0x78] sm:$0xf] %vm1643_vm11, %v6409_v2  ;;  %8741 = vmatprep.mubr.msk.bf16.mxu0 %vm14680_vm4, %v8865_v24  ;;  %v7799_v55 = vpop.f32.mrf.mxu1 }
 0x8e9   : > { %7917 = vst.msk [vmem:[%s13843_s28 + $0x38] sm:$0xff] %vm413_vm0, %v7885_v44  ;;  %v7883_v13 = vadd.f32 %v7771_v31, %v7436_v36  ;;  %v7800_v27 = vadd.f32 %v13828_v17, %v7799_v55 }
 0x8ea   : > { %v8774_v8 = vpop.f32.mrf.mxu1 }
 0x8eb   : > { %v6411_v62 = vpop.permute.xlu1 %6410  ;;  %v6561_v39 = vpop.permute.xlu0 %6560  ;;  %v8866_v5 = vld [vmem:[#allocation7 + $0x68] sm:$0xff]   ;;  %7915 = vst.msk [vmem:[%s13843_s28 + $0x28] sm:$0xff] %vm413_vm0, %v7883_v13  ;;  %v7811_v24 = vadd.f32 %v8774_v8, %v13828_v17 }
 0x8ec   : > { %6475 = vst.msk [vmem:[#allocation7 + $0x7c] sm:$0xf] %vm1643_vm11, %v6411_v62  ;;  %8742 = vmatmul.mubr.msk.bf16.gmra.mxu0 %vm14681_vm7, %v8866_v5  ;;  %vm14682_vm11 = vmmov %vm14678_vm2  ;;  %v7802_v47 = vpop.f32.mrf.mxu1 }
 0x8ed   : > { %6628 = vst.msk [vmem:[#allocation7 + $0x70] sm:$0xf] %vm1800_vm12, %v6561_v39  ;;  %v7803_v36 = vadd.f32 %v13828_v17, %v7802_v47 }
 0x8ee   : > { %v8777_v5 = vpop.f32.mrf.mxu1 }
 0x8ef   : > { %v6563_v18 = vpop.permute.xlu1 %6562  ;;  %v6565_v25 = vpop.permute.xlu0 %6564 }
 0x8f0   : > { %6629 = vst.msk [vmem:[#allocation7 + $0x74] sm:$0xf] %vm1800_vm12, %v6563_v18  ;;  %6630 = vst.msk [vmem:[#allocation7 + $0x78] sm:$0xf] %vm1800_vm12, %v6565_v25  ;;  %v7815_v18 = vpop.f32.mrf.mxu1 }
 0x8f2   : > { %v8778_v25 = vpop.f32.mrf.mxu1 }
 0x8f3   : > { %v6567_v52 = vpop.permute.xlu1 %6566  ;;  %v6696_v6 = vpop.permute.xlu0 %6695 }
 0x8f4   : > { %6631 = vst.msk [vmem:[#allocation7 + $0x7c] sm:$0xf] %vm1800_vm12, %v6567_v52  ;;  %vm14683_vm12 = vmmov %vm14678_vm2 }
 0x8f5   : > { %6763 = vst.msk [vmem:[#allocation7 + $0x70] sm:$0xf] %vm1936_vm13, %v6696_v6  ;;  %v7824_v6 = vadd.f32 %v8777_v5, %v13828_v17 }
 0x8f7   : > { %v6698_v29 = vpop.permute.xlu1 %6697  ;;  %v6700_v51 = vpop.permute.xlu0 %6699 }
 0x8f8   : > { %6764 = vst.msk [vmem:[#allocation7 + $0x74] sm:$0xf] %vm1936_vm13, %v6698_v29  ;;  %6765 = vst.msk [vmem:[#allocation7 + $0x78] sm:$0xf] %vm1936_vm13, %v6700_v51 }
 0x8fb   : > { %v6702_v50 = vpop.permute.xlu1 %6701  ;;  %v6830_v20 = vpop.permute.xlu0 %6829 }
 0x8fc   : > { %6766 = vst.msk [vmem:[#allocation7 + $0x7c] sm:$0xf] %vm1936_vm13, %v6702_v50  ;;  %vm14684_vm13 = vmmov %vm14678_vm2  ;;  %v7816_v50 = vadd.f32 %v13828_v17, %v7815_v18 }
 0x8fd   : > { %6897 = vst.msk [vmem:[#allocation7 + $0x70] sm:$0xf] %vm2071_vm14, %v6830_v20 }
 0x8ff   : > { %v6832_v41 = vpop.permute.xlu1 %6831  ;;  %v6834_v28 = vpop.permute.xlu0 %6833 }
 0x900   : > { %6898 = vst.msk [vmem:[#allocation7 + $0x74] sm:$0xf] %vm2071_vm14, %v6832_v41  ;;  %6899 = vst.msk [vmem:[#allocation7 + $0x78] sm:$0xf] %vm2071_vm14, %v6834_v28  ;;  %v7818_v28 = vpop.f32.mrf.mxu1 }
 0x903   : > { %v6836_v9 = vpop.permute.xlu1 %6835  ;;  %v6986_v42 = vpop.permute.xlu0 %6985 }
 0x904   : > { %6900 = vst.msk [vmem:[#allocation7 + $0x7c] sm:$0xf] %vm2071_vm14, %v6836_v9  ;;  %vm14685_vm14 = vmmov %vm14678_vm2  ;;  %v7827_v9 = vadd.f32 %v8778_v25, %v13828_v17 }
 0x905   : > { %7053 = vst.msk [vmem:[#allocation7 + $0x70] sm:$0xf] %vm2228_vm1, %v6986_v42 }
 0x907   : > { %v6988_v12 = vpop.permute.xlu1 %6987  ;;  %v6990_v3 = vpop.permute.xlu0 %6989 }
 0x908   : > { %7054 = vst.msk [vmem:[#allocation7 + $0x74] sm:$0xf] %vm2228_vm1, %v6988_v12  ;;  %7055 = vst.msk [vmem:[#allocation7 + $0x78] sm:$0xf] %vm2228_vm1, %v6990_v3  ;;  %v8727_v60 = vpop.f32.mrf.mxu0  ;;  %v7819_v3 = vadd.f32 %v13828_v17, %v7818_v28 }
 0x909   : > { %v7457_v46 = vadd.f32 %v8727_v60, %v13835_v59 }
 0x90a   : > { %v7448_v15 = vpop.f32.mrf.mxu0 }
 0x90b   : > { %v6992_v21 = vpop.permute.xlu1 %6991  ;;  %v7121_v61 = vpop.permute.xlu0 %7120  ;;  %v7888_v1 = vadd.f32 %v7792_v33, %v7457_v46  ;;  %v7449_v14 = vadd.f32 %v13835_v59, %v7448_v15 }
 0x90c   : > { %7056 = vst.msk [vmem:[#allocation7 + $0x7c] sm:$0xf] %vm2228_vm1, %v6992_v21  ;;  %v8728_v34 = vpop.f32.mrf.mxu0  ;;  %vm14686_vm1 = vmmov %vm14680_vm4  ;;  %v8781_v46 = vpop.f32.mrf.mxu1 }
 0x90d   : > { %7188 = vst.msk [vmem:[#allocation7 + $0x70] sm:$0xf] %vm14682_vm11, %v7121_v61  ;;  %v7886_v4 = vadd.f32 %v7784_v58, %v7449_v14  ;;  %v7460_v48 = vadd.f32 %v8728_v34, %v13835_v59  ;;  %vm14687_vm5 = vmmov %vm14686_vm1  ;;  %v7840_v58 = vadd.f32 %v8781_v46, %v13828_v17 }
 0x90e   : > { %7920 = vst.msk [vmem:[%s13843_s28 + $0x50] sm:$0xff] %vm413_vm0, %v7888_v1  ;;  %v7451_v0 = vpop.f32.mrf.mxu0  ;;  %v7831_v21 = vpop.f32.mrf.mxu1 }
 0x90f   : > { %v7123_v30 = vpop.permute.xlu1 %7122  ;;  %v7125_v23 = vpop.permute.xlu0 %7124  ;;  %7918 = vst.msk [vmem:[%s13843_s28 + $0x40] sm:$0xff] %vm413_vm0, %v7886_v4  ;;  %v7889_v45 = vadd.f32 %v7795_v16, %v7460_v48  ;;  %v7452_v54 = vadd.f32 %v13835_v59, %v7451_v0  ;;  %v7832_v22 = vadd.f32 %v13828_v17, %v7831_v21 }
 0x910   : > { %7189 = vst.msk [vmem:[#allocation7 + $0x74] sm:$0xf] %vm14683_vm12, %v7123_v30  ;;  %v8782_v61 = vpop.f32.mrf.mxu1 }
 0x911   : > { %7190 = vst.msk [vmem:[#allocation7 + $0x78] sm:$0xf] %vm14684_vm13, %v7125_v23  ;;  %v7887_v43 = vadd.f32 %v7787_v53, %v7452_v54  ;;  %v7843_v30 = vadd.f32 %v8782_v61, %v13828_v17 }
 0x912   : > { %7921 = vst.msk [vmem:[%s13843_s28 + $0x58] sm:$0xff] %vm413_vm0, %v7889_v45  ;;  %v7834_v4 = vpop.f32.mrf.mxu1 }
 0x913   : > { %v7127_v63 = vpop.permute.xlu1 %7126  ;;  %7919 = vst.msk [vmem:[%s13843_s28 + $0x48] sm:$0xff] %vm413_vm0, %v7887_v43  ;;  %v7835_v45 = vadd.f32 %v13828_v17, %v7834_v4 }
 0x914   : > { %7191 = vst.msk [vmem:[#allocation7 + $0x7c] sm:$0xf] %vm14685_vm14, %v7127_v63 }
 0x917   : > { %v8867_v11 = vld [vmem:[#allocation7 + $0x70] sm:$0xff]  }
 0x918   : > { %8745 = vmatprep.mubr.msk.bf16.mxu0 %vm14686_vm1, %v8867_v11  ;;  %v8785_v11 = vpop.f32.mrf.mxu1 }
 0x919   : > { %v7856_v8 = vadd.f32 %v8785_v11, %v13828_v17 }
 0x91b   : > { %v8868_v32 = vld [vmem:[#allocation7 + $0x78] sm:$0xff]  }
 0x91c   : > { %8746 = vmatmul.mubr.msk.bf16.gmra.mxu0 %vm14687_vm5, %v8868_v32  ;;  %v7847_v32 = vpop.f32.mrf.mxu1 }
 0x91e   : > { %v8786_v26 = vpop.f32.mrf.mxu1 }
 0x91f   : > { %v7859_v47 = vadd.f32 %v8786_v26, %v13828_v17 }
 0x930   : > { %v8731_v57 = vpop.f32.mrf.mxu0 }
 0x931   : > { %v7473_v40 = vadd.f32 %v8731_v57, %v13835_v59 }
 0x932   : > { %v7464_v10 = vpop.f32.mrf.mxu0 }
 0x933   : > { %v7892_v49 = vadd.f32 %v7808_v38, %v7473_v40  ;;  %v7465_v37 = vadd.f32 %v13835_v59, %v7464_v10  ;;  %v7848_v40 = vadd.f32 %v13828_v17, %v7847_v32 }
 0x934   : > { %v8732_v2 = vpop.f32.mrf.mxu0 }
 0x935   : > { %7924 = vst.msk [vmem:[%s13843_s28 + $0x70] sm:$0xff] %vm413_vm0, %v7892_v49  ;;  %v7890_v19 = vadd.f32 %v7800_v27, %v7465_v37  ;;  %v7476_v31 = vadd.f32 %v8732_v2, %v13835_v59  ;;  %v7850_v49 = vpop.f32.mrf.mxu1 }
 0x936   : > { %v7467_v44 = vpop.f32.mrf.mxu0 }
 0x937   : > { %7922 = vst.msk [vmem:[%s13843_s28 + $0x60] sm:$0xff] %vm413_vm0, %v7890_v19  ;;  %v7893_v13 = vadd.f32 %v7811_v24, %v7476_v31  ;;  %v7468_v62 = vadd.f32 %v13835_v59, %v7467_v44  ;;  %v7851_v31 = vadd.f32 %v13828_v17, %v7850_v49 }
 0x939   : > { %7925 = vst.msk [vmem:[%s13843_s28 + $0x78] sm:$0xff] %vm413_vm0, %v7893_v13  ;;  %v7891_v39 = vadd.f32 %v7803_v36, %v7468_v62  ;;  %v8789_v62 = vpop.f32.mrf.mxu1 }
 0x93a   : > { %v7872_v25 = vadd.f32 %v8789_v62, %v13828_v17 }
 0x93b   : > { %7923 = vst.msk [vmem:[%s13843_s28 + $0x68] sm:$0xff] %vm413_vm0, %v7891_v39  ;;  %v7863_v39 = vpop.f32.mrf.mxu1 }
 0x93d   : > { %v8790_v5 = vpop.f32.mrf.mxu1 }
 0x93e   : > { %v7875_v28 = vadd.f32 %v8790_v5, %v13828_v17 }
 0x958   : > { %v8735_v52 = vpop.f32.mrf.mxu0 }
 0x959   : > { %v7489_v29 = vadd.f32 %v8735_v52, %v13835_v59 }
 0x95a   : > { %v7480_v51 = vpop.f32.mrf.mxu0 }
 0x95b   : > { %v7896_v20 = vadd.f32 %v7824_v6, %v7489_v29  ;;  %v7481_v41 = vadd.f32 %v13835_v59, %v7480_v51  ;;  %v7864_v29 = vadd.f32 %v13828_v17, %v7863_v39 }
 0x95c   : > { %v8736_v56 = vpop.f32.mrf.mxu0 }
 0x95d   : > { %7928 = vst.msk [vmem:[%s13843_s28 + $0x90] sm:$0xff] %vm413_vm0, %v7896_v20  ;;  %v7894_v42 = vadd.f32 %v7816_v50, %v7481_v41  ;;  %v7492_v35 = vadd.f32 %v8736_v56, %v13835_v59  ;;  %v7866_v20 = vpop.f32.mrf.mxu1 }
 0x95e   : > { %v7483_v12 = vpop.f32.mrf.mxu0 }
 0x95f   : > { %7926 = vst.msk [vmem:[%s13843_s28 + $0x80] sm:$0xff] %vm413_vm0, %v7894_v42  ;;  %v7897_v7 = vadd.f32 %v7827_v9, %v7492_v35  ;;  %v7484_v60 = vadd.f32 %v13835_v59, %v7483_v12  ;;  %v7867_v35 = vadd.f32 %v13828_v17, %v7866_v20 }
 0x961   : > { %7929 = vst.msk [vmem:[%s13843_s28 + $0x98] sm:$0xff] %vm413_vm0, %v7897_v7  ;;  %v7895_v33 = vadd.f32 %v7819_v3, %v7484_v60 }
 0x963   : > { %7927 = vst.msk [vmem:[%s13843_s28 + $0x88] sm:$0xff] %vm413_vm0, %v7895_v33 }
 0x980   : > { %v8739_v15 = vpop.f32.mrf.mxu0 }
 0x981   : > { %v7505_v1 = vadd.f32 %v8739_v15, %v13835_v59 }
 0x982   : > { %v7496_v14 = vpop.f32.mrf.mxu0 }
 0x983   : > { %v7900_v34 = vadd.f32 %v7840_v58, %v7505_v1  ;;  %v7497_v16 = vadd.f32 %v13835_v59, %v7496_v14 }
 0x984   : > { %v8740_v48 = vpop.f32.mrf.mxu0 }
 0x985   : > { %7932 = vst.msk [vmem:[%s13843_s28 + $0xb0] sm:$0xff] %vm413_vm0, %v7900_v34  ;;  %v7898_v23 = vadd.f32 %v7832_v22, %v7497_v16  ;;  %v7508_v0 = vadd.f32 %v8740_v48, %v13835_v59 }
 0x986   : > { %v7499_v53 = vpop.f32.mrf.mxu0 }
 0x987   : > { %7930 = vst.msk [vmem:[%s13843_s28 + $0xa0] sm:$0xff] %vm413_vm0, %v7898_v23  ;;  %v7901_v54 = vadd.f32 %v7843_v30, %v7508_v0  ;;  %v7500_v43 = vadd.f32 %v13835_v59, %v7499_v53 }
 0x989   : > { %7933 = vst.msk [vmem:[%s13843_s28 + $0xb8] sm:$0xff] %vm413_vm0, %v7901_v54  ;;  %v7899_v63 = vadd.f32 %v7835_v45, %v7500_v43 }
 0x98b   : > { %7931 = vst.msk [vmem:[%s13843_s28 + $0xa8] sm:$0xff] %vm413_vm0, %v7899_v63 }
 0x9ac   : > { %v8743_v55 = vpop.f32.mrf.mxu0 }
 0x9ad   : > { %v7521_v57 = vadd.f32 %v8743_v55, %v13835_v59 }
 0x9ae   : > { %v7512_v38 = vpop.f32.mrf.mxu0 }
 0x9af   : > { %v7904_v10 = vadd.f32 %v7856_v8, %v7521_v57  ;;  %v7513_v27 = vadd.f32 %v13835_v59, %v7512_v38 }
 0x9b0   : > { %v8744_v37 = vpop.f32.mrf.mxu0 }
 0x9b1   : > { %7936 = vst.msk [vmem:[%s13843_s28 + $0xd0] sm:$0xff] %vm413_vm0, %v7904_v10  ;;  %v7902_v2 = vadd.f32 %v7848_v40, %v7513_v27  ;;  %v7524_v24 = vadd.f32 %v8744_v37, %v13835_v59 }
 0x9b2   : > { %v7515_v19 = vpop.f32.mrf.mxu0 }
 0x9b3   : > { %7934 = vst.msk [vmem:[%s13843_s28 + $0xc0] sm:$0xff] %vm413_vm0, %v7902_v2  ;;  %v7905_v44 = vadd.f32 %v7859_v47, %v7524_v24  ;;  %v7516_v36 = vadd.f32 %v13835_v59, %v7515_v19 }
 0x9b5   : > { %7937 = vst.msk [vmem:[%s13843_s28 + $0xd8] sm:$0xff] %vm413_vm0, %v7905_v44  ;;  %v7903_v13 = vadd.f32 %v7851_v31, %v7516_v36 }
 0x9b7   : > { %7935 = vst.msk [vmem:[%s13843_s28 + $0xc8] sm:$0xff] %vm413_vm0, %v7903_v13 }
 0x9dc   : > { %v8747_v18 = vpop.f32.mrf.mxu0 }
 0x9dd   : > { %v7537_v52 = vadd.f32 %v8747_v18, %v13835_v59 }
 0x9de   : > { %v7528_v6 = vpop.f32.mrf.mxu0 }
 0x9df   : > { %v7908_v51 = vadd.f32 %v7872_v25, %v7537_v52  ;;  %v7529_v50 = vadd.f32 %v13835_v59, %v7528_v6 }
 0x9e0   : > { %v8748_v41 = vpop.f32.mrf.mxu0 }
 0x9e1   : > { %7940 = vst.msk [vmem:[%s13843_s28 + $0xf0] sm:$0xff] %vm413_vm0, %v7908_v51  ;;  %v7906_v56 = vadd.f32 %v7864_v29, %v7529_v50  ;;  %v7540_v9 = vadd.f32 %v8748_v41, %v13835_v59 }
 0x9e2   : > { %v7531_v42 = vpop.f32.mrf.mxu0 }
 0x9e3   : > { %7938 = vst.msk [vmem:[%s13843_s28 + $0xe0] sm:$0xff] %vm413_vm0, %v7906_v56  ;;  %v7909_v12 = vadd.f32 %v7875_v28, %v7540_v9  ;;  %v7532_v3 = vadd.f32 %v13835_v59, %v7531_v42 }
 0x9e5   : > { %7941 = vst.msk [vmem:[%s13843_s28 + $0xf8] sm:$0xff] %vm413_vm0, %v7909_v12  ;;  %v7907_v7 = vadd.f32 %v7867_v35, %v7532_v3 }
 0x9e7   : > { %7939 = vst.msk [vmem:[%s13843_s28 + $0xe8] sm:$0xff] %vm413_vm0, %v7907_v7 }
 0x9e8 PF: > { %s20_s13 = sadd.s32 1, %s8875_s13  }
 0x9e9   : > { %p17_p4 = scmp.ge.s32.totalorder %s20_s13, 4  }
 0x9eb   :  { %19 = sbr.rel (!%p17_p4) target bundleno = 1 (0x1), region = 96 }

</bundles_post_ra>
